<compile_context>
chip_gen: v7x
topology: tpu7x:2x2x1
jax: 0.10.0
libtpu: 0.0.40
codegen_flags: <defaults>
</compile_context>

<pallas_src>
import jax
import jax.numpy as jnp
from jax.experimental import pallas as pl
from jax.experimental.pallas import tpu as pltpu


# ---------------------------------------------------------------------------
# shared math helpers (used by both the kernel and the pure-JAX reference)
# ---------------------------------------------------------------------------
def _softplus(x):
    # numerically-stable softplus: max(x,0) + log1p(exp(-|x|))
    return jnp.maximum(x, 0.0) + jnp.log1p(jnp.exp(-jnp.abs(x)))


def _relu(x):
    return jnp.maximum(x, 0.0)


# ---------------------------------------------------------------------------
# Pallas kernel (single invocation, in-kernel time loop)
# ---------------------------------------------------------------------------
def _make_vrnn_kernel(n_layers, h_dim, z_dim, seq_len, unroll):
    def kernel(x_ref, eps_ref,
               pxw1, pxb1, pxw2, pxb2,          # phi_x
               pzw, pzb,                        # phi_z
               ew1x, ew1h, eb1, ew2, eb2,       # enc (first weight pre-split)
               emsw, emsb,                      # fused enc_mean|enc_std head (h, 2z)
               prw, prb, pmsw, pmsb,            # prior + fused prior_mean|prior_std
               *rest):
        gru = rest[:-2]          # layer 0: (wi_x, wi_z, wh); layers>0: (wi, wh)
        kld_ref = rest[-2]       # (1, 1)
        phiz_ref = rest[-1]      # (B, h_dim)

        B = x_ref.shape[1]

        def lin(a, w_ref, b_ref):
            return jnp.dot(a, w_ref[...], preferred_element_type=jnp.float32) + b_ref[...]

        def dot(a, w_ref):
            return jnp.dot(a, w_ref[...], preferred_element_type=jnp.float32)

        def step(t, carry):
            h_states, kld_acc, _ = carry
            x_t = x_ref[t]                       # (B, x_dim)
            eps_t = eps_ref[t]                   # (B, z_dim)
            h_last = h_states[n_layers - 1]      # (B, h_dim)

            # phi_x(x_t)
            phi_x = _relu(lin(_relu(lin(x_t, pxw1, pxb1)), pxw2, pxb2))

            # enc(cat([phi_x, h_last], 1)) via the pre-split first weight.
            enc1 = dot(phi_x, ew1x) + dot(h_last, ew1h) + eb1[...]
            enc_h = _relu(lin(_relu(enc1), ew2, eb2))
            ems = lin(enc_h, emsw, emsb)                     # (B, 2z)
            enc_mean = ems[:, :z_dim]
            enc_std = _softplus(ems[:, z_dim:])

            # prior(h_last)
            prior_h = _relu(lin(h_last, prw, prb))
            pms = lin(prior_h, pmsw, pmsb)                   # (B, 2z)
            prior_mean = pms[:, :z_dim]
            prior_std = _softplus(pms[:, z_dim:])

            # reparameterized sample + phi_z
            z_t = eps_t * enc_std + enc_mean
            phi_z = _relu(lin(z_t, pzw, pzb))

            # GRU (bias=False), fused 3-gate matmuls per layer.
            new_h = []
            layer_in = None
            off = 0
            for l in range(n_layers):
                h_prev = h_states[l]
                if l == 0:
                    wi_x, wi_z, wh = gru[off], gru[off + 1], gru[off + 2]
                    off += 3
                    gi = dot(phi_x, wi_x) + dot(phi_z, wi_z)          # (B, 3h)
                else:
                    wi, wh = gru[off], gru[off + 1]
                    off += 2
                    gi = dot(layer_in, wi)                            # (B, 3h)
                gh = dot(h_prev, wh)                                  # (B, 3h)
                r = jax.nn.sigmoid(gi[:, :h_dim] + gh[:, :h_dim])
                zg = jax.nn.sigmoid(gi[:, h_dim:2 * h_dim] + gh[:, h_dim:2 * h_dim])
                n = jnp.tanh(gi[:, 2 * h_dim:] + r * gh[:, 2 * h_dim:])
                h_new = (1.0 - zg) * n + zg * h_prev
                new_h.append(h_new)
                layer_in = h_new

            # per-lane KLD accumulation; the cross-lane reduce happens once,
            # after the loop.
            kld_el = (2.0 * jnp.log(prior_std) - 2.0 * jnp.log(enc_std)
                      + (enc_std * enc_std + (enc_mean - prior_mean) ** 2)
                      / (prior_std * prior_std)
                      - 1.0)
            return (tuple(new_h), kld_acc + kld_el, phi_z)

        h0 = tuple(jnp.zeros((B, h_dim), jnp.float32) for _ in range(n_layers))
        kld0 = jnp.zeros((B, z_dim), jnp.float32)
        phiz0 = jnp.zeros((B, h_dim), jnp.float32)

        _, kld_acc, phi_z_last = jax.lax.fori_loop(
            0, seq_len, step, (h0, kld0, phiz0), unroll=unroll)

        kld_ref[...] = 0.5 * jnp.sum(kld_acc, keepdims=True)   # single (1,1) store
        phiz_ref[...] = phi_z_last                              # single store

    return kernel


# ---------------------------------------------------------------------------
# wrapper: weight fusion / pre-splitting + pallas_call
# ---------------------------------------------------------------------------
def vrnn_forward(x_bt, eps_tm, params, gru_params, n_layers, h_dim, z_dim,
                 *, unroll=True):
    """x_bt: (B, T, x_dim) batch-first (PyTorch convention).
       eps_tm: (T, B, z_dim) precomputed reparameterization noise.
       Returns (kld_loss: scalar, phi_z_last: (B, h_dim))."""
    x_tm = jnp.transpose(x_bt, (1, 0, 2))  # one-time layout change to time-major
    T, B, x_dim = x_tm.shape
    p = params

    # Zero-cost layout plumbing outside the kernel:
    #  - split enc's first weight into its phi_x / h halves,
    #  - fuse the mean/std heads into single (h, 2z) matmuls,
    #  - fuse the GRU gate weights into (in, 3h) / (h, 3h) and split layer 0's
    #    input weight into its phi_x / phi_z halves.
    ew1x, ew1h = p['ew1'][:h_dim], p['ew1'][h_dim:]
    emsw = jnp.concatenate([p['emw'], p['esw']], axis=1)
    emsb = jnp.concatenate([p['emb'], p['esb']], axis=1)
    pmsw = jnp.concatenate([p['pmw'], p['psw']], axis=1)
    pmsb = jnp.concatenate([p['pmb'], p['psb']], axis=1)

    weight_list = [p['pxw1'], p['pxb1'], p['pxw2'], p['pxb2'],
                   p['pzw'], p['pzb'],
                   ew1x, ew1h, p['eb1'], p['ew2'], p['eb2'],
                   emsw, emsb,
                   p['prw'], p['prb'], pmsw, pmsb]
    for l, (w_ir, w_iz, w_in_, w_hr, w_hz, w_hn) in enumerate(gru_params):
        wi = jnp.concatenate([w_ir, w_iz, w_in_], axis=1)   # (in, 3h)
        wh = jnp.concatenate([w_hr, w_hz, w_hn], axis=1)    # (h, 3h)
        if l == 0:
            weight_list += [wi[:h_dim], wi[h_dim:], wh]
        else:
            weight_list += [wi, wh]

    kernel = _make_vrnn_kernel(n_layers, h_dim, z_dim, T, unroll)

    n_in = 2 + len(weight_list)
    vmem_spec = pl.BlockSpec(memory_space=pltpu.MemorySpace.VMEM)

    kld, phi_z_last = pl.pallas_call(
        kernel,
        out_shape=(jax.ShapeDtypeStruct((1, 1), jnp.float32),
                   jax.ShapeDtypeStruct((B, h_dim), jnp.float32)),
        in_specs=[vmem_spec] * n_in,
        out_specs=(vmem_spec, vmem_spec),
    )(x_tm, eps_tm, *weight_list)

    return kld[0, 0], phi_z_last


# ---------------------------------------------------------------------------
# pure-JAX reference (mirrors the PyTorch forward exactly; unfused weights)
# ---------------------------------------------------------------------------
def vrnn_reference(x_bt, eps_tm, p, gru, n_layers, h_dim):
    B, T, _ = x_bt.shape
    h = jnp.zeros((n_layers, B, h_dim), jnp.float32)
    kld = jnp.float32(0.0)
    lin = lambda a, w, b: a @ w + b
    phi_z = None
    for t in range(T):
        x_t = x_bt[:, t]
        phi_x = _relu(lin(_relu(lin(x_t, p['pxw1'], p['pxb1'])), p['pxw2'], p['pxb2']))
        enc_in = jnp.concatenate([phi_x, h[-1]], axis=1)
        enc_h = _relu(lin(_relu(lin(enc_in, p['ew1'], p['eb1'])), p['ew2'], p['eb2']))
        enc_mean = lin(enc_h, p['emw'], p['emb'])
        enc_std = _softplus(lin(enc_h, p['esw'], p['esb']))
        prior_h = _relu(lin(h[-1], p['prw'], p['prb']))
        prior_mean = lin(prior_h, p['pmw'], p['pmb'])
        prior_std = _softplus(lin(prior_h, p['psw'], p['psb']))
        z_t = eps_tm[t] * enc_std + enc_mean
        phi_z = _relu(lin(z_t, p['pzw'], p['pzb']))
        layer_in = jnp.concatenate([phi_x, phi_z], axis=1)
        new_h = []
        for l in range(n_layers):
            w_ir, w_iz, w_in_, w_hr, w_hz, w_hn = gru[l]
            h_prev = h[l]
            r = jax.nn.sigmoid(layer_in @ w_ir + h_prev @ w_hr)
            zg = jax.nn.sigmoid(layer_in @ w_iz + h_prev @ w_hz)
            n = jnp.tanh(layer_in @ w_in_ + r * (h_prev @ w_hn))
            h_new = (1.0 - zg) * n + zg * h_prev
            new_h.append(h_new)
            layer_in = h_new
        h = jnp.stack(new_h)
        kld_el = (2.0 * jnp.log(prior_std) - 2.0 * jnp.log(enc_std)
                  + (enc_std ** 2 + (enc_mean - prior_mean) ** 2) / prior_std ** 2 - 1.0)
        kld = kld + 0.5 * jnp.sum(kld_el)
    return kld, phi_z


# ---------------------------------------------------------------------------
# deterministic parameter construction
# ---------------------------------------------------------------------------
def init_params(key, x_dim, h_dim, z_dim, n_layers, scale=0.1):
    n_keys = 32 + 6 * n_layers
    keys = iter(jax.random.split(key, n_keys))

    def w(shape):
        return (scale * jax.random.normal(next(keys), shape)).astype(jnp.float32)

    p = {
        'pxw1': w((x_dim, h_dim)), 'pxb1': w((1, h_dim)),
        'pxw2': w((h_dim, h_dim)), 'pxb2': w((1, h_dim)),
        'pzw': w((z_dim, h_dim)), 'pzb': w((1, h_dim)),
        'ew1': w((2 * h_dim, h_dim)), 'eb1': w((1, h_dim)),
        'ew2': w((h_dim, h_dim)), 'eb2': w((1, h_dim)),
        'emw': w((h_dim, z_dim)), 'emb': w((1, z_dim)),
        'esw': w((h_dim, z_dim)), 'esb': w((1, z_dim)),
        'prw': w((h_dim, h_dim)), 'prb': w((1, h_dim)),
        'pmw': w((h_dim, z_dim)), 'pmb': w((1, z_dim)),
        'psw': w((h_dim, z_dim)), 'psb': w((1, z_dim)),
    }
    gru = []
    for l in range(n_layers):
        in_dim = 2 * h_dim if l == 0 else h_dim
        layer = (w((in_dim, h_dim)), w((in_dim, h_dim)), w((in_dim, h_dim)),   # w_ir, w_iz, w_in
                 w((h_dim, h_dim)), w((h_dim, h_dim)), w((h_dim, h_dim)))      # w_hr, w_hz, w_hn
        gru.append(layer)
    return p, gru


# ---------------------------------------------------------------------------
if __name__ == "__main__":
    # small, TPU-friendly shapes
    B, T = 8, 8
    x_dim, h_dim, z_dim, n_layers = 16, 32, 16, 2

    root = jax.random.PRNGKey(0)
    k_x, k_eps, k_p = jax.random.split(root, 3)

    x = jax.random.normal(k_x, (B, T, x_dim), dtype=jnp.float32)
    # deterministic reparameterization noise (replaces torch .normal_() on CUDA)
    eps = jax.random.normal(k_eps, (T, B, z_dim), dtype=jnp.float32)

    params, gru_params = init_params(k_p, x_dim, h_dim, z_dim, n_layers)

    kld, phi_z_last = vrnn_forward(x, eps, params, gru_params, n_layers, h_dim, z_dim)
    kld = jax.block_until_ready(kld)
    phi_z_last = jax.block_until_ready(phi_z_last)

    kld_ref, phi_z_ref = vrnn_reference(x, eps, params, gru_params, n_layers, h_dim)
    kld_ref = jax.block_until_ready(kld_ref)

    assert jnp.allclose(kld, kld_ref, rtol=1e-4, atol=1e-4), (kld, kld_ref)
    assert jnp.allclose(phi_z_last, phi_z_ref, rtol=1e-4, atol=1e-4)

    print("KERNEL_OK")
</pallas_src>

<mosaic_0001>
module attributes {stable_mosaic.version = 11 : i64} {
  func.func @kernel(%arg0: memref<8x8x16xf32, #tpu.memory_space<vmem>>, %arg1: memref<8x8x16xf32, #tpu.memory_space<vmem>>, %arg2: memref<16x32xf32, #tpu.memory_space<vmem>>, %arg3: memref<1x32xf32, #tpu.memory_space<vmem>>, %arg4: memref<32x32xf32, #tpu.memory_space<vmem>>, %arg5: memref<1x32xf32, #tpu.memory_space<vmem>>, %arg6: memref<16x32xf32, #tpu.memory_space<vmem>>, %arg7: memref<1x32xf32, #tpu.memory_space<vmem>>, %arg8: memref<32x32xf32, #tpu.memory_space<vmem>>, %arg9: memref<32x32xf32, #tpu.memory_space<vmem>>, %arg10: memref<1x32xf32, #tpu.memory_space<vmem>>, %arg11: memref<32x32xf32, #tpu.memory_space<vmem>>, %arg12: memref<1x32xf32, #tpu.memory_space<vmem>>, %arg13: memref<32x32xf32, #tpu.memory_space<vmem>>, %arg14: memref<1x32xf32, #tpu.memory_space<vmem>>, %arg15: memref<32x32xf32, #tpu.memory_space<vmem>>, %arg16: memref<1x32xf32, #tpu.memory_space<vmem>>, %arg17: memref<32x32xf32, #tpu.memory_space<vmem>>, %arg18: memref<1x32xf32, #tpu.memory_space<vmem>>, %arg19: memref<32x96xf32, #tpu.memory_space<vmem>>, %arg20: memref<32x96xf32, #tpu.memory_space<vmem>>, %arg21: memref<32x96xf32, #tpu.memory_space<vmem>>, %arg22: memref<32x96xf32, #tpu.memory_space<vmem>>, %arg23: memref<32x96xf32, #tpu.memory_space<vmem>>, %arg24: memref<1x1xf32, #tpu.memory_space<vmem>>, %arg25: memref<8x32xf32, #tpu.memory_space<vmem>>) attributes {dimension_semantics = [], scalar_prefetch = 0 : i64, scratch_operands = 0 : i64, tpu.core_type = #tpu.core_type<tc>} {
    %cst = arith.constant 0.000000e+00 : f32
    %0 = vector.broadcast %cst : f32 to vector<8x32xf32>
    %cst_0 = arith.constant 0.000000e+00 : f32
    %1 = vector.broadcast %cst_0 : f32 to vector<8x32xf32>
    %cst_1 = arith.constant 0.000000e+00 : f32
    %2 = vector.broadcast %cst_1 : f32 to vector<8x16xf32>
    %cst_2 = arith.constant 0.000000e+00 : f32
    %3 = vector.broadcast %cst_2 : f32 to vector<8x32xf32>
    %c0_i32 = arith.constant 0 : i32
    %4 = arith.index_cast %c0_i32 : i32 to index
    %c0 = arith.constant 0 : index
    %c0_3 = arith.constant 0 : index
    %5 = vector.load %arg0[%4, %c0, %c0_3] : memref<8x8x16xf32, #tpu.memory_space<vmem>>, vector<1x8x16xf32>
    %6 = vector.shape_cast %5 : vector<1x8x16xf32> to vector<8x16xf32>
    %7 = arith.index_cast %c0_i32 : i32 to index
    %c0_4 = arith.constant 0 : index
    %c0_5 = arith.constant 0 : index
    %8 = vector.load %arg1[%7, %c0_4, %c0_5] : memref<8x8x16xf32, #tpu.memory_space<vmem>>, vector<1x8x16xf32>
    %9 = vector.shape_cast %8 : vector<1x8x16xf32> to vector<8x16xf32>
    %c0_6 = arith.constant 0 : index
    %c0_7 = arith.constant 0 : index
    %10 = vector.load %arg2[%c0_6, %c0_7] : memref<16x32xf32, #tpu.memory_space<vmem>>, vector<16x32xf32>
    %cst_8 = arith.constant dense<0.000000e+00> : vector<8x32xf32>
    %11 = tpu.matmul %6, %10, %cst_8 {dimension_numbers = #tpu.dot_dimension_numbers<[1], [0], [0], [1], [0, 0, 1, 1], [], []>} : vector<8x16xf32>, vector<16x32xf32>, vector<8x32xf32> -> vector<8x32xf32>
    %c0_9 = arith.constant 0 : index
    %c0_10 = arith.constant 0 : index
    %12 = vector.load %arg3[%c0_9, %c0_10] : memref<1x32xf32, #tpu.memory_space<vmem>>, vector<1x32xf32>
    %13 = vector.broadcast %12 : vector<1x32xf32> to vector<8x32xf32>
    %14 = arith.addf %11, %13 : vector<8x32xf32>
    %cst_11 = arith.constant 0.000000e+00 : f32
    %15 = vector.broadcast %cst_11 : f32 to vector<8x32xf32>
    %16 = arith.maximumf %14, %15 : vector<8x32xf32>
    %c0_12 = arith.constant 0 : index
    %c0_13 = arith.constant 0 : index
    %17 = vector.load %arg4[%c0_12, %c0_13] : memref<32x32xf32, #tpu.memory_space<vmem>>, vector<32x32xf32>
    %cst_14 = arith.constant dense<0.000000e+00> : vector<8x32xf32>
    %18 = tpu.matmul %16, %17, %cst_14 {dimension_numbers = #tpu.dot_dimension_numbers<[1], [0], [0], [1], [0, 0, 1, 1], [], []>} : vector<8x32xf32>, vector<32x32xf32>, vector<8x32xf32> -> vector<8x32xf32>
    %c0_15 = arith.constant 0 : index
    %c0_16 = arith.constant 0 : index
    %19 = vector.load %arg5[%c0_15, %c0_16] : memref<1x32xf32, #tpu.memory_space<vmem>>, vector<1x32xf32>
    %20 = vector.broadcast %19 : vector<1x32xf32> to vector<8x32xf32>
    %21 = arith.addf %18, %20 : vector<8x32xf32>
    %cst_17 = arith.constant 0.000000e+00 : f32
    %22 = vector.broadcast %cst_17 : f32 to vector<8x32xf32>
    %23 = arith.maximumf %21, %22 : vector<8x32xf32>
    %c0_18 = arith.constant 0 : index
    %c0_19 = arith.constant 0 : index
    %24 = vector.load %arg8[%c0_18, %c0_19] : memref<32x32xf32, #tpu.memory_space<vmem>>, vector<32x32xf32>
    %cst_20 = arith.constant dense<0.000000e+00> : vector<8x32xf32>
    %25 = tpu.matmul %23, %24, %cst_20 {dimension_numbers = #tpu.dot_dimension_numbers<[1], [0], [0], [1], [0, 0, 1, 1], [], []>} : vector<8x32xf32>, vector<32x32xf32>, vector<8x32xf32> -> vector<8x32xf32>
    %c0_21 = arith.constant 0 : index
    %c0_22 = arith.constant 0 : index
    %26 = vector.load %arg9[%c0_21, %c0_22] : memref<32x32xf32, #tpu.memory_space<vmem>>, vector<32x32xf32>
    %cst_23 = arith.constant dense<0.000000e+00> : vector<8x32xf32>
    %27 = tpu.matmul %1, %26, %cst_23 {dimension_numbers = #tpu.dot_dimension_numbers<[1], [0], [0], [1], [0, 0, 1, 1], [], []>} : vector<8x32xf32>, vector<32x32xf32>, vector<8x32xf32> -> vector<8x32xf32>
    %28 = arith.addf %25, %27 : vector<8x32xf32>
    %c0_24 = arith.constant 0 : index
    %c0_25 = arith.constant 0 : index
    %29 = vector.load %arg10[%c0_24, %c0_25] : memref<1x32xf32, #tpu.memory_space<vmem>>, vector<1x32xf32>
    %30 = vector.broadcast %29 : vector<1x32xf32> to vector<8x32xf32>
    %31 = arith.addf %28, %30 : vector<8x32xf32>
    %cst_26 = arith.constant 0.000000e+00 : f32
    %32 = vector.broadcast %cst_26 : f32 to vector<8x32xf32>
    %33 = arith.maximumf %31, %32 : vector<8x32xf32>
    %c0_27 = arith.constant 0 : index
    %c0_28 = arith.constant 0 : index
    %34 = vector.load %arg11[%c0_27, %c0_28] : memref<32x32xf32, #tpu.memory_space<vmem>>, vector<32x32xf32>
    %cst_29 = arith.constant dense<0.000000e+00> : vector<8x32xf32>
    %35 = tpu.matmul %33, %34, %cst_29 {dimension_numbers = #tpu.dot_dimension_numbers<[1], [0], [0], [1], [0, 0, 1, 1], [], []>} : vector<8x32xf32>, vector<32x32xf32>, vector<8x32xf32> -> vector<8x32xf32>
    %c0_30 = arith.constant 0 : index
    %c0_31 = arith.constant 0 : index
    %36 = vector.load %arg12[%c0_30, %c0_31] : memref<1x32xf32, #tpu.memory_space<vmem>>, vector<1x32xf32>
    %37 = vector.broadcast %36 : vector<1x32xf32> to vector<8x32xf32>
    %38 = arith.addf %35, %37 : vector<8x32xf32>
    %cst_32 = arith.constant 0.000000e+00 : f32
    %39 = vector.broadcast %cst_32 : f32 to vector<8x32xf32>
    %40 = arith.maximumf %38, %39 : vector<8x32xf32>
    %c0_33 = arith.constant 0 : index
    %c0_34 = arith.constant 0 : index
    %41 = vector.load %arg13[%c0_33, %c0_34] : memref<32x32xf32, #tpu.memory_space<vmem>>, vector<32x32xf32>
    %cst_35 = arith.constant dense<0.000000e+00> : vector<8x32xf32>
    %42 = tpu.matmul %40, %41, %cst_35 {dimension_numbers = #tpu.dot_dimension_numbers<[1], [0], [0], [1], [0, 0, 1, 1], [], []>} : vector<8x32xf32>, vector<32x32xf32>, vector<8x32xf32> -> vector<8x32xf32>
    %c0_36 = arith.constant 0 : index
    %c0_37 = arith.constant 0 : index
    %43 = vector.load %arg14[%c0_36, %c0_37] : memref<1x32xf32, #tpu.memory_space<vmem>>, vector<1x32xf32>
    %44 = vector.broadcast %43 : vector<1x32xf32> to vector<8x32xf32>
    %45 = arith.addf %42, %44 : vector<8x32xf32>
    %46 = vector.extract_strided_slice %45 {offsets = [0, 0], sizes = [8, 16], strides = [1, 1]} : vector<8x32xf32> to vector<8x16xf32>
    %47 = vector.extract_strided_slice %45 {offsets = [0, 16], sizes = [8, 16], strides = [1, 1]} : vector<8x32xf32> to vector<8x16xf32>
    %cst_38 = arith.constant 0.000000e+00 : f32
    %48 = vector.broadcast %cst_38 : f32 to vector<8x16xf32>
    %49 = arith.maximumf %47, %48 : vector<8x16xf32>
    %50 = math.absf %47 : vector<8x16xf32>
    %cst_39 = arith.constant 0.000000e+00 : f32
    %51 = vector.broadcast %cst_39 : f32 to vector<8x16xf32>
    %52 = arith.subf %51, %50 : vector<8x16xf32>
    %53 = math.exp %52 : vector<8x16xf32>
    %54 = math.log1p %53 : vector<8x16xf32>
    %55 = arith.addf %49, %54 : vector<8x16xf32>
    %c0_40 = arith.constant 0 : index
    %c0_41 = arith.constant 0 : index
    %56 = vector.load %arg15[%c0_40, %c0_41] : memref<32x32xf32, #tpu.memory_space<vmem>>, vector<32x32xf32>
    %cst_42 = arith.constant dense<0.000000e+00> : vector<8x32xf32>
    %57 = tpu.matmul %1, %56, %cst_42 {dimension_numbers = #tpu.dot_dimension_numbers<[1], [0], [0], [1], [0, 0, 1, 1], [], []>} : vector<8x32xf32>, vector<32x32xf32>, vector<8x32xf32> -> vector<8x32xf32>
    %c0_43 = arith.constant 0 : index
    %c0_44 = arith.constant 0 : index
    %58 = vector.load %arg16[%c0_43, %c0_44] : memref<1x32xf32, #tpu.memory_space<vmem>>, vector<1x32xf32>
    %59 = vector.broadcast %58 : vector<1x32xf32> to vector<8x32xf32>
    %60 = arith.addf %57, %59 : vector<8x32xf32>
    %cst_45 = arith.constant 0.000000e+00 : f32
    %61 = vector.broadcast %cst_45 : f32 to vector<8x32xf32>
    %62 = arith.maximumf %60, %61 : vector<8x32xf32>
    %c0_46 = arith.constant 0 : index
    %c0_47 = arith.constant 0 : index
    %63 = vector.load %arg17[%c0_46, %c0_47] : memref<32x32xf32, #tpu.memory_space<vmem>>, vector<32x32xf32>
    %cst_48 = arith.constant dense<0.000000e+00> : vector<8x32xf32>
    %64 = tpu.matmul %62, %63, %cst_48 {dimension_numbers = #tpu.dot_dimension_numbers<[1], [0], [0], [1], [0, 0, 1, 1], [], []>} : vector<8x32xf32>, vector<32x32xf32>, vector<8x32xf32> -> vector<8x32xf32>
    %c0_49 = arith.constant 0 : index
    %c0_50 = arith.constant 0 : index
    %65 = vector.load %arg18[%c0_49, %c0_50] : memref<1x32xf32, #tpu.memory_space<vmem>>, vector<1x32xf32>
    %66 = vector.broadcast %65 : vector<1x32xf32> to vector<8x32xf32>
    %67 = arith.addf %64, %66 : vector<8x32xf32>
    %68 = vector.extract_strided_slice %67 {offsets = [0, 0], sizes = [8, 16], strides = [1, 1]} : vector<8x32xf32> to vector<8x16xf32>
    %69 = vector.extract_strided_slice %67 {offsets = [0, 16], sizes = [8, 16], strides = [1, 1]} : vector<8x32xf32> to vector<8x16xf32>
    %cst_51 = arith.constant 0.000000e+00 : f32
    %70 = vector.broadcast %cst_51 : f32 to vector<8x16xf32>
    %71 = arith.maximumf %69, %70 : vector<8x16xf32>
    %72 = math.absf %69 : vector<8x16xf32>
    %cst_52 = arith.constant 0.000000e+00 : f32
    %73 = vector.broadcast %cst_52 : f32 to vector<8x16xf32>
    %74 = arith.subf %73, %72 : vector<8x16xf32>
    %75 = math.exp %74 : vector<8x16xf32>
    %76 = math.log1p %75 : vector<8x16xf32>
    %77 = arith.addf %71, %76 : vector<8x16xf32>
    %78 = arith.mulf %9, %55 : vector<8x16xf32>
    %79 = arith.addf %78, %46 : vector<8x16xf32>
    %c0_53 = arith.constant 0 : index
    %c0_54 = arith.constant 0 : index
    %80 = vector.load %arg6[%c0_53, %c0_54] : memref<16x32xf32, #tpu.memory_space<vmem>>, vector<16x32xf32>
    %cst_55 = arith.constant dense<0.000000e+00> : vector<8x32xf32>
    %81 = tpu.matmul %79, %80, %cst_55 {dimension_numbers = #tpu.dot_dimension_numbers<[1], [0], [0], [1], [0, 0, 1, 1], [], []>} : vector<8x16xf32>, vector<16x32xf32>, vector<8x32xf32> -> vector<8x32xf32>
    %c0_56 = arith.constant 0 : index
    %c0_57 = arith.constant 0 : index
    %82 = vector.load %arg7[%c0_56, %c0_57] : memref<1x32xf32, #tpu.memory_space<vmem>>, vector<1x32xf32>
    %83 = vector.broadcast %82 : vector<1x32xf32> to vector<8x32xf32>
    %84 = arith.addf %81, %83 : vector<8x32xf32>
    %cst_58 = arith.constant 0.000000e+00 : f32
    %85 = vector.broadcast %cst_58 : f32 to vector<8x32xf32>
    %86 = arith.maximumf %84, %85 : vector<8x32xf32>
    %c0_59 = arith.constant 0 : index
    %c0_60 = arith.constant 0 : index
    %87 = vector.load %arg19[%c0_59, %c0_60] : memref<32x96xf32, #tpu.memory_space<vmem>>, vector<32x96xf32>
    %cst_61 = arith.constant dense<0.000000e+00> : vector<8x96xf32>
    %88 = tpu.matmul %23, %87, %cst_61 {dimension_numbers = #tpu.dot_dimension_numbers<[1], [0], [0], [1], [0, 0, 1, 1], [], []>} : vector<8x32xf32>, vector<32x96xf32>, vector<8x96xf32> -> vector<8x96xf32>
    %c0_62 = arith.constant 0 : index
    %c0_63 = arith.constant 0 : index
    %89 = vector.load %arg20[%c0_62, %c0_63] : memref<32x96xf32, #tpu.memory_space<vmem>>, vector<32x96xf32>
    %cst_64 = arith.constant dense<0.000000e+00> : vector<8x96xf32>
    %90 = tpu.matmul %86, %89, %cst_64 {dimension_numbers = #tpu.dot_dimension_numbers<[1], [0], [0], [1], [0, 0, 1, 1], [], []>} : vector<8x32xf32>, vector<32x96xf32>, vector<8x96xf32> -> vector<8x96xf32>
    %91 = arith.addf %88, %90 : vector<8x96xf32>
    %c0_65 = arith.constant 0 : index
    %c0_66 = arith.constant 0 : index
    %92 = vector.load %arg21[%c0_65, %c0_66] : memref<32x96xf32, #tpu.memory_space<vmem>>, vector<32x96xf32>
    %cst_67 = arith.constant dense<0.000000e+00> : vector<8x96xf32>
    %93 = tpu.matmul %0, %92, %cst_67 {dimension_numbers = #tpu.dot_dimension_numbers<[1], [0], [0], [1], [0, 0, 1, 1], [], []>} : vector<8x32xf32>, vector<32x96xf32>, vector<8x96xf32> -> vector<8x96xf32>
    %94 = vector.extract_strided_slice %91 {offsets = [0, 0], sizes = [8, 32], strides = [1, 1]} : vector<8x96xf32> to vector<8x32xf32>
    %95 = vector.extract_strided_slice %93 {offsets = [0, 0], sizes = [8, 32], strides = [1, 1]} : vector<8x96xf32> to vector<8x32xf32>
    %96 = arith.addf %94, %95 : vector<8x32xf32>
    %97 = arith.negf %96 : vector<8x32xf32>
    %98 = math.exp %97 : vector<8x32xf32>
    %cst_68 = arith.constant 1.000000e+00 : f32
    %99 = vector.broadcast %cst_68 : f32 to vector<8x32xf32>
    %100 = arith.addf %99, %98 : vector<8x32xf32>
    %101 = arith.divf %99, %100 : vector<8x32xf32>
    %102 = vector.extract_strided_slice %91 {offsets = [0, 32], sizes = [8, 32], strides = [1, 1]} : vector<8x96xf32> to vector<8x32xf32>
    %103 = vector.extract_strided_slice %93 {offsets = [0, 32], sizes = [8, 32], strides = [1, 1]} : vector<8x96xf32> to vector<8x32xf32>
    %104 = arith.addf %102, %103 : vector<8x32xf32>
    %105 = arith.negf %104 : vector<8x32xf32>
    %106 = math.exp %105 : vector<8x32xf32>
    %cst_69 = arith.constant 1.000000e+00 : f32
    %107 = vector.broadcast %cst_69 : f32 to vector<8x32xf32>
    %108 = arith.addf %107, %106 : vector<8x32xf32>
    %109 = arith.divf %107, %108 : vector<8x32xf32>
    %110 = vector.extract_strided_slice %91 {offsets = [0, 64], sizes = [8, 32], strides = [1, 1]} : vector<8x96xf32> to vector<8x32xf32>
    %111 = vector.extract_strided_slice %93 {offsets = [0, 64], sizes = [8, 32], strides = [1, 1]} : vector<8x96xf32> to vector<8x32xf32>
    %112 = arith.mulf %101, %111 : vector<8x32xf32>
    %113 = arith.addf %110, %112 : vector<8x32xf32>
    %114 = math.tanh %113 : vector<8x32xf32>
    %cst_70 = arith.constant 1.000000e+00 : f32
    %115 = vector.broadcast %cst_70 : f32 to vector<8x32xf32>
    %116 = arith.subf %115, %109 : vector<8x32xf32>
    %117 = arith.mulf %116, %114 : vector<8x32xf32>
    %118 = arith.mulf %109, %0 : vector<8x32xf32>
    %119 = arith.addf %117, %118 : vector<8x32xf32>
    %c0_71 = arith.constant 0 : index
    %c0_72 = arith.constant 0 : index
    %120 = vector.load %arg22[%c0_71, %c0_72] : memref<32x96xf32, #tpu.memory_space<vmem>>, vector<32x96xf32>
    %cst_73 = arith.constant dense<0.000000e+00> : vector<8x96xf32>
    %121 = tpu.matmul %119, %120, %cst_73 {dimension_numbers = #tpu.dot_dimension_numbers<[1], [0], [0], [1], [0, 0, 1, 1], [], []>} : vector<8x32xf32>, vector<32x96xf32>, vector<8x96xf32> -> vector<8x96xf32>
    %c0_74 = arith.constant 0 : index
    %c0_75 = arith.constant 0 : index
    %122 = vector.load %arg23[%c0_74, %c0_75] : memref<32x96xf32, #tpu.memory_space<vmem>>, vector<32x96xf32>
    %cst_76 = arith.constant dense<0.000000e+00> : vector<8x96xf32>
    %123 = tpu.matmul %1, %122, %cst_76 {dimension_numbers = #tpu.dot_dimension_numbers<[1], [0], [0], [1], [0, 0, 1, 1], [], []>} : vector<8x32xf32>, vector<32x96xf32>, vector<8x96xf32> -> vector<8x96xf32>
    %124 = vector.extract_strided_slice %121 {offsets = [0, 0], sizes = [8, 32], strides = [1, 1]} : vector<8x96xf32> to vector<8x32xf32>
    %125 = vector.extract_strided_slice %123 {offsets = [0, 0], sizes = [8, 32], strides = [1, 1]} : vector<8x96xf32> to vector<8x32xf32>
    %126 = arith.addf %124, %125 : vector<8x32xf32>
    %127 = arith.negf %126 : vector<8x32xf32>
    %128 = math.exp %127 : vector<8x32xf32>
    %cst_77 = arith.constant 1.000000e+00 : f32
    %129 = vector.broadcast %cst_77 : f32 to vector<8x32xf32>
    %130 = arith.addf %129, %128 : vector<8x32xf32>
    %131 = arith.divf %129, %130 : vector<8x32xf32>
    %132 = vector.extract_strided_slice %121 {offsets = [0, 32], sizes = [8, 32], strides = [1, 1]} : vector<8x96xf32> to vector<8x32xf32>
    %133 = vector.extract_strided_slice %123 {offsets = [0, 32], sizes = [8, 32], strides = [1, 1]} : vector<8x96xf32> to vector<8x32xf32>
    %134 = arith.addf %132, %133 : vector<8x32xf32>
    %135 = arith.negf %134 : vector<8x32xf32>
    %136 = math.exp %135 : vector<8x32xf32>
    %cst_78 = arith.constant 1.000000e+00 : f32
    %137 = vector.broadcast %cst_78 : f32 to vector<8x32xf32>
    %138 = arith.addf %137, %136 : vector<8x32xf32>
    %139 = arith.divf %137, %138 : vector<8x32xf32>
    %140 = vector.extract_strided_slice %121 {offsets = [0, 64], sizes = [8, 32], strides = [1, 1]} : vector<8x96xf32> to vector<8x32xf32>
    %141 = vector.extract_strided_slice %123 {offsets = [0, 64], sizes = [8, 32], strides = [1, 1]} : vector<8x96xf32> to vector<8x32xf32>
    %142 = arith.mulf %131, %141 : vector<8x32xf32>
    %143 = arith.addf %140, %142 : vector<8x32xf32>
    %144 = math.tanh %143 : vector<8x32xf32>
    %cst_79 = arith.constant 1.000000e+00 : f32
    %145 = vector.broadcast %cst_79 : f32 to vector<8x32xf32>
    %146 = arith.subf %145, %139 : vector<8x32xf32>
    %147 = arith.mulf %146, %144 : vector<8x32xf32>
    %148 = arith.mulf %139, %1 : vector<8x32xf32>
    %149 = arith.addf %147, %148 : vector<8x32xf32>
    %150 = math.log %77 : vector<8x16xf32>
    %cst_80 = arith.constant 2.000000e+00 : f32
    %151 = vector.broadcast %cst_80 : f32 to vector<8x16xf32>
    %152 = arith.mulf %151, %150 : vector<8x16xf32>
    %153 = math.log %55 : vector<8x16xf32>
    %cst_81 = arith.constant 2.000000e+00 : f32
    %154 = vector.broadcast %cst_81 : f32 to vector<8x16xf32>
    %155 = arith.mulf %154, %153 : vector<8x16xf32>
    %156 = arith.subf %152, %155 : vector<8x16xf32>
    %157 = arith.mulf %55, %55 : vector<8x16xf32>
    %158 = arith.subf %46, %68 : vector<8x16xf32>
    %159 = arith.mulf %158, %158 : vector<8x16xf32>
    %160 = arith.addf %157, %159 : vector<8x16xf32>
    %161 = arith.mulf %77, %77 : vector<8x16xf32>
    %162 = arith.divf %160, %161 : vector<8x16xf32>
    %163 = arith.addf %156, %162 : vector<8x16xf32>
    %cst_82 = arith.constant 1.000000e+00 : f32
    %164 = vector.broadcast %cst_82 : f32 to vector<8x16xf32>
    %165 = arith.subf %163, %164 : vector<8x16xf32>
    %166 = arith.addf %2, %165 : vector<8x16xf32>
    %c1_i32 = arith.constant 1 : i32
    %167 = arith.index_cast %c1_i32 : i32 to index
    %c0_83 = arith.constant 0 : index
    %c0_84 = arith.constant 0 : index
    %168 = vector.load %arg0[%167, %c0_83, %c0_84] : memref<8x8x16xf32, #tpu.memory_space<vmem>>, vector<1x8x16xf32>
    %169 = vector.shape_cast %168 : vector<1x8x16xf32> to vector<8x16xf32>
    %170 = arith.index_cast %c1_i32 : i32 to index
    %c0_85 = arith.constant 0 : index
    %c0_86 = arith.constant 0 : index
    %171 = vector.load %arg1[%170, %c0_85, %c0_86] : memref<8x8x16xf32, #tpu.memory_space<vmem>>, vector<1x8x16xf32>
    %172 = vector.shape_cast %171 : vector<1x8x16xf32> to vector<8x16xf32>
    %c0_87 = arith.constant 0 : index
    %c0_88 = arith.constant 0 : index
    %173 = vector.load %arg2[%c0_87, %c0_88] : memref<16x32xf32, #tpu.memory_space<vmem>>, vector<16x32xf32>
    %cst_89 = arith.constant dense<0.000000e+00> : vector<8x32xf32>
    %174 = tpu.matmul %169, %173, %cst_89 {dimension_numbers = #tpu.dot_dimension_numbers<[1], [0], [0], [1], [0, 0, 1, 1], [], []>} : vector<8x16xf32>, vector<16x32xf32>, vector<8x32xf32> -> vector<8x32xf32>
    %c0_90 = arith.constant 0 : index
    %c0_91 = arith.constant 0 : index
    %175 = vector.load %arg3[%c0_90, %c0_91] : memref<1x32xf32, #tpu.memory_space<vmem>>, vector<1x32xf32>
    %176 = vector.broadcast %175 : vector<1x32xf32> to vector<8x32xf32>
    %177 = arith.addf %174, %176 : vector<8x32xf32>
    %cst_92 = arith.constant 0.000000e+00 : f32
    %178 = vector.broadcast %cst_92 : f32 to vector<8x32xf32>
    %179 = arith.maximumf %177, %178 : vector<8x32xf32>
    %c0_93 = arith.constant 0 : index
    %c0_94 = arith.constant 0 : index
    %180 = vector.load %arg4[%c0_93, %c0_94] : memref<32x32xf32, #tpu.memory_space<vmem>>, vector<32x32xf32>
    %cst_95 = arith.constant dense<0.000000e+00> : vector<8x32xf32>
    %181 = tpu.matmul %179, %180, %cst_95 {dimension_numbers = #tpu.dot_dimension_numbers<[1], [0], [0], [1], [0, 0, 1, 1], [], []>} : vector<8x32xf32>, vector<32x32xf32>, vector<8x32xf32> -> vector<8x32xf32>
    %c0_96 = arith.constant 0 : index
    %c0_97 = arith.constant 0 : index
    %182 = vector.load %arg5[%c0_96, %c0_97] : memref<1x32xf32, #tpu.memory_space<vmem>>, vector<1x32xf32>
    %183 = vector.broadcast %182 : vector<1x32xf32> to vector<8x32xf32>
    %184 = arith.addf %181, %183 : vector<8x32xf32>
    %cst_98 = arith.constant 0.000000e+00 : f32
    %185 = vector.broadcast %cst_98 : f32 to vector<8x32xf32>
    %186 = arith.maximumf %184, %185 : vector<8x32xf32>
    %c0_99 = arith.constant 0 : index
    %c0_100 = arith.constant 0 : index
    %187 = vector.load %arg8[%c0_99, %c0_100] : memref<32x32xf32, #tpu.memory_space<vmem>>, vector<32x32xf32>
    %cst_101 = arith.constant dense<0.000000e+00> : vector<8x32xf32>
    %188 = tpu.matmul %186, %187, %cst_101 {dimension_numbers = #tpu.dot_dimension_numbers<[1], [0], [0], [1], [0, 0, 1, 1], [], []>} : vector<8x32xf32>, vector<32x32xf32>, vector<8x32xf32> -> vector<8x32xf32>
    %c0_102 = arith.constant 0 : index
    %c0_103 = arith.constant 0 : index
    %189 = vector.load %arg9[%c0_102, %c0_103] : memref<32x32xf32, #tpu.memory_space<vmem>>, vector<32x32xf32>
    %cst_104 = arith.constant dense<0.000000e+00> : vector<8x32xf32>
    %190 = tpu.matmul %149, %189, %cst_104 {dimension_numbers = #tpu.dot_dimension_numbers<[1], [0], [0], [1], [0, 0, 1, 1], [], []>} : vector<8x32xf32>, vector<32x32xf32>, vector<8x32xf32> -> vector<8x32xf32>
    %191 = arith.addf %188, %190 : vector<8x32xf32>
    %c0_105 = arith.constant 0 : index
    %c0_106 = arith.constant 0 : index
    %192 = vector.load %arg10[%c0_105, %c0_106] : memref<1x32xf32, #tpu.memory_space<vmem>>, vector<1x32xf32>
    %193 = vector.broadcast %192 : vector<1x32xf32> to vector<8x32xf32>
    %194 = arith.addf %191, %193 : vector<8x32xf32>
    %cst_107 = arith.constant 0.000000e+00 : f32
    %195 = vector.broadcast %cst_107 : f32 to vector<8x32xf32>
    %196 = arith.maximumf %194, %195 : vector<8x32xf32>
    %c0_108 = arith.constant 0 : index
    %c0_109 = arith.constant 0 : index
    %197 = vector.load %arg11[%c0_108, %c0_109] : memref<32x32xf32, #tpu.memory_space<vmem>>, vector<32x32xf32>
    %cst_110 = arith.constant dense<0.000000e+00> : vector<8x32xf32>
    %198 = tpu.matmul %196, %197, %cst_110 {dimension_numbers = #tpu.dot_dimension_numbers<[1], [0], [0], [1], [0, 0, 1, 1], [], []>} : vector<8x32xf32>, vector<32x32xf32>, vector<8x32xf32> -> vector<8x32xf32>
    %c0_111 = arith.constant 0 : index
    %c0_112 = arith.constant 0 : index
    %199 = vector.load %arg12[%c0_111, %c0_112] : memref<1x32xf32, #tpu.memory_space<vmem>>, vector<1x32xf32>
    %200 = vector.broadcast %199 : vector<1x32xf32> to vector<8x32xf32>
    %201 = arith.addf %198, %200 : vector<8x32xf32>
    %cst_113 = arith.constant 0.000000e+00 : f32
    %202 = vector.broadcast %cst_113 : f32 to vector<8x32xf32>
    %203 = arith.maximumf %201, %202 : vector<8x32xf32>
    %c0_114 = arith.constant 0 : index
    %c0_115 = arith.constant 0 : index
    %204 = vector.load %arg13[%c0_114, %c0_115] : memref<32x32xf32, #tpu.memory_space<vmem>>, vector<32x32xf32>
    %cst_116 = arith.constant dense<0.000000e+00> : vector<8x32xf32>
    %205 = tpu.matmul %203, %204, %cst_116 {dimension_numbers = #tpu.dot_dimension_numbers<[1], [0], [0], [1], [0, 0, 1, 1], [], []>} : vector<8x32xf32>, vector<32x32xf32>, vector<8x32xf32> -> vector<8x32xf32>
    %c0_117 = arith.constant 0 : index
    %c0_118 = arith.constant 0 : index
    %206 = vector.load %arg14[%c0_117, %c0_118] : memref<1x32xf32, #tpu.memory_space<vmem>>, vector<1x32xf32>
    %207 = vector.broadcast %206 : vector<1x32xf32> to vector<8x32xf32>
    %208 = arith.addf %205, %207 : vector<8x32xf32>
    %209 = vector.extract_strided_slice %208 {offsets = [0, 0], sizes = [8, 16], strides = [1, 1]} : vector<8x32xf32> to vector<8x16xf32>
    %210 = vector.extract_strided_slice %208 {offsets = [0, 16], sizes = [8, 16], strides = [1, 1]} : vector<8x32xf32> to vector<8x16xf32>
    %cst_119 = arith.constant 0.000000e+00 : f32
    %211 = vector.broadcast %cst_119 : f32 to vector<8x16xf32>
    %212 = arith.maximumf %210, %211 : vector<8x16xf32>
    %213 = math.absf %210 : vector<8x16xf32>
    %cst_120 = arith.constant 0.000000e+00 : f32
    %214 = vector.broadcast %cst_120 : f32 to vector<8x16xf32>
    %215 = arith.subf %214, %213 : vector<8x16xf32>
    %216 = math.exp %215 : vector<8x16xf32>
    %217 = math.log1p %216 : vector<8x16xf32>
    %218 = arith.addf %212, %217 : vector<8x16xf32>
    %c0_121 = arith.constant 0 : index
    %c0_122 = arith.constant 0 : index
    %219 = vector.load %arg15[%c0_121, %c0_122] : memref<32x32xf32, #tpu.memory_space<vmem>>, vector<32x32xf32>
    %cst_123 = arith.constant dense<0.000000e+00> : vector<8x32xf32>
    %220 = tpu.matmul %149, %219, %cst_123 {dimension_numbers = #tpu.dot_dimension_numbers<[1], [0], [0], [1], [0, 0, 1, 1], [], []>} : vector<8x32xf32>, vector<32x32xf32>, vector<8x32xf32> -> vector<8x32xf32>
    %c0_124 = arith.constant 0 : index
    %c0_125 = arith.constant 0 : index
    %221 = vector.load %arg16[%c0_124, %c0_125] : memref<1x32xf32, #tpu.memory_space<vmem>>, vector<1x32xf32>
    %222 = vector.broadcast %221 : vector<1x32xf32> to vector<8x32xf32>
    %223 = arith.addf %220, %222 : vector<8x32xf32>
    %cst_126 = arith.constant 0.000000e+00 : f32
    %224 = vector.broadcast %cst_126 : f32 to vector<8x32xf32>
    %225 = arith.maximumf %223, %224 : vector<8x32xf32>
    %c0_127 = arith.constant 0 : index
    %c0_128 = arith.constant 0 : index
    %226 = vector.load %arg17[%c0_127, %c0_128] : memref<32x32xf32, #tpu.memory_space<vmem>>, vector<32x32xf32>
    %cst_129 = arith.constant dense<0.000000e+00> : vector<8x32xf32>
    %227 = tpu.matmul %225, %226, %cst_129 {dimension_numbers = #tpu.dot_dimension_numbers<[1], [0], [0], [1], [0, 0, 1, 1], [], []>} : vector<8x32xf32>, vector<32x32xf32>, vector<8x32xf32> -> vector<8x32xf32>
    %c0_130 = arith.constant 0 : index
    %c0_131 = arith.constant 0 : index
    %228 = vector.load %arg18[%c0_130, %c0_131] : memref<1x32xf32, #tpu.memory_space<vmem>>, vector<1x32xf32>
    %229 = vector.broadcast %228 : vector<1x32xf32> to vector<8x32xf32>
    %230 = arith.addf %227, %229 : vector<8x32xf32>
    %231 = vector.extract_strided_slice %230 {offsets = [0, 0], sizes = [8, 16], strides = [1, 1]} : vector<8x32xf32> to vector<8x16xf32>
    %232 = vector.extract_strided_slice %230 {offsets = [0, 16], sizes = [8, 16], strides = [1, 1]} : vector<8x32xf32> to vector<8x16xf32>
    %cst_132 = arith.constant 0.000000e+00 : f32
    %233 = vector.broadcast %cst_132 : f32 to vector<8x16xf32>
    %234 = arith.maximumf %232, %233 : vector<8x16xf32>
    %235 = math.absf %232 : vector<8x16xf32>
    %cst_133 = arith.constant 0.000000e+00 : f32
    %236 = vector.broadcast %cst_133 : f32 to vector<8x16xf32>
    %237 = arith.subf %236, %235 : vector<8x16xf32>
    %238 = math.exp %237 : vector<8x16xf32>
    %239 = math.log1p %238 : vector<8x16xf32>
    %240 = arith.addf %234, %239 : vector<8x16xf32>
    %241 = arith.mulf %172, %218 : vector<8x16xf32>
    %242 = arith.addf %241, %209 : vector<8x16xf32>
    %c0_134 = arith.constant 0 : index
    %c0_135 = arith.constant 0 : index
    %243 = vector.load %arg6[%c0_134, %c0_135] : memref<16x32xf32, #tpu.memory_space<vmem>>, vector<16x32xf32>
    %cst_136 = arith.constant dense<0.000000e+00> : vector<8x32xf32>
    %244 = tpu.matmul %242, %243, %cst_136 {dimension_numbers = #tpu.dot_dimension_numbers<[1], [0], [0], [1], [0, 0, 1, 1], [], []>} : vector<8x16xf32>, vector<16x32xf32>, vector<8x32xf32> -> vector<8x32xf32>
    %c0_137 = arith.constant 0 : index
    %c0_138 = arith.constant 0 : index
    %245 = vector.load %arg7[%c0_137, %c0_138] : memref<1x32xf32, #tpu.memory_space<vmem>>, vector<1x32xf32>
    %246 = vector.broadcast %245 : vector<1x32xf32> to vector<8x32xf32>
    %247 = arith.addf %244, %246 : vector<8x32xf32>
    %cst_139 = arith.constant 0.000000e+00 : f32
    %248 = vector.broadcast %cst_139 : f32 to vector<8x32xf32>
    %249 = arith.maximumf %247, %248 : vector<8x32xf32>
    %c0_140 = arith.constant 0 : index
    %c0_141 = arith.constant 0 : index
    %250 = vector.load %arg19[%c0_140, %c0_141] : memref<32x96xf32, #tpu.memory_space<vmem>>, vector<32x96xf32>
    %cst_142 = arith.constant dense<0.000000e+00> : vector<8x96xf32>
    %251 = tpu.matmul %186, %250, %cst_142 {dimension_numbers = #tpu.dot_dimension_numbers<[1], [0], [0], [1], [0, 0, 1, 1], [], []>} : vector<8x32xf32>, vector<32x96xf32>, vector<8x96xf32> -> vector<8x96xf32>
    %c0_143 = arith.constant 0 : index
    %c0_144 = arith.constant 0 : index
    %252 = vector.load %arg20[%c0_143, %c0_144] : memref<32x96xf32, #tpu.memory_space<vmem>>, vector<32x96xf32>
    %cst_145 = arith.constant dense<0.000000e+00> : vector<8x96xf32>
    %253 = tpu.matmul %249, %252, %cst_145 {dimension_numbers = #tpu.dot_dimension_numbers<[1], [0], [0], [1], [0, 0, 1, 1], [], []>} : vector<8x32xf32>, vector<32x96xf32>, vector<8x96xf32> -> vector<8x96xf32>
    %254 = arith.addf %251, %253 : vector<8x96xf32>
    %c0_146 = arith.constant 0 : index
    %c0_147 = arith.constant 0 : index
    %255 = vector.load %arg21[%c0_146, %c0_147] : memref<32x96xf32, #tpu.memory_space<vmem>>, vector<32x96xf32>
    %cst_148 = arith.constant dense<0.000000e+00> : vector<8x96xf32>
    %256 = tpu.matmul %119, %255, %cst_148 {dimension_numbers = #tpu.dot_dimension_numbers<[1], [0], [0], [1], [0, 0, 1, 1], [], []>} : vector<8x32xf32>, vector<32x96xf32>, vector<8x96xf32> -> vector<8x96xf32>
    %257 = vector.extract_strided_slice %254 {offsets = [0, 0], sizes = [8, 32], strides = [1, 1]} : vector<8x96xf32> to vector<8x32xf32>
    %258 = vector.extract_strided_slice %256 {offsets = [0, 0], sizes = [8, 32], strides = [1, 1]} : vector<8x96xf32> to vector<8x32xf32>
    %259 = arith.addf %257, %258 : vector<8x32xf32>
    %260 = arith.negf %259 : vector<8x32xf32>
    %261 = math.exp %260 : vector<8x32xf32>
    %cst_149 = arith.constant 1.000000e+00 : f32
    %262 = vector.broadcast %cst_149 : f32 to vector<8x32xf32>
    %263 = arith.addf %262, %261 : vector<8x32xf32>
    %264 = arith.divf %262, %263 : vector<8x32xf32>
    %265 = vector.extract_strided_slice %254 {offsets = [0, 32], sizes = [8, 32], strides = [1, 1]} : vector<8x96xf32> to vector<8x32xf32>
    %266 = vector.extract_strided_slice %256 {offsets = [0, 32], sizes = [8, 32], strides = [1, 1]} : vector<8x96xf32> to vector<8x32xf32>
    %267 = arith.addf %265, %266 : vector<8x32xf32>
    %268 = arith.negf %267 : vector<8x32xf32>
    %269 = math.exp %268 : vector<8x32xf32>
    %cst_150 = arith.constant 1.000000e+00 : f32
    %270 = vector.broadcast %cst_150 : f32 to vector<8x32xf32>
    %271 = arith.addf %270, %269 : vector<8x32xf32>
    %272 = arith.divf %270, %271 : vector<8x32xf32>
    %273 = vector.extract_strided_slice %254 {offsets = [0, 64], sizes = [8, 32], strides = [1, 1]} : vector<8x96xf32> to vector<8x32xf32>
    %274 = vector.extract_strided_slice %256 {offsets = [0, 64], sizes = [8, 32], strides = [1, 1]} : vector<8x96xf32> to vector<8x32xf32>
    %275 = arith.mulf %264, %274 : vector<8x32xf32>
    %276 = arith.addf %273, %275 : vector<8x32xf32>
    %277 = math.tanh %276 : vector<8x32xf32>
    %cst_151 = arith.constant 1.000000e+00 : f32
    %278 = vector.broadcast %cst_151 : f32 to vector<8x32xf32>
    %279 = arith.subf %278, %272 : vector<8x32xf32>
    %280 = arith.mulf %279, %277 : vector<8x32xf32>
    %281 = arith.mulf %272, %119 : vector<8x32xf32>
    %282 = arith.addf %280, %281 : vector<8x32xf32>
    %c0_152 = arith.constant 0 : index
    %c0_153 = arith.constant 0 : index
    %283 = vector.load %arg22[%c0_152, %c0_153] : memref<32x96xf32, #tpu.memory_space<vmem>>, vector<32x96xf32>
    %cst_154 = arith.constant dense<0.000000e+00> : vector<8x96xf32>
    %284 = tpu.matmul %282, %283, %cst_154 {dimension_numbers = #tpu.dot_dimension_numbers<[1], [0], [0], [1], [0, 0, 1, 1], [], []>} : vector<8x32xf32>, vector<32x96xf32>, vector<8x96xf32> -> vector<8x96xf32>
    %c0_155 = arith.constant 0 : index
    %c0_156 = arith.constant 0 : index
    %285 = vector.load %arg23[%c0_155, %c0_156] : memref<32x96xf32, #tpu.memory_space<vmem>>, vector<32x96xf32>
    %cst_157 = arith.constant dense<0.000000e+00> : vector<8x96xf32>
    %286 = tpu.matmul %149, %285, %cst_157 {dimension_numbers = #tpu.dot_dimension_numbers<[1], [0], [0], [1], [0, 0, 1, 1], [], []>} : vector<8x32xf32>, vector<32x96xf32>, vector<8x96xf32> -> vector<8x96xf32>
    %287 = vector.extract_strided_slice %284 {offsets = [0, 0], sizes = [8, 32], strides = [1, 1]} : vector<8x96xf32> to vector<8x32xf32>
    %288 = vector.extract_strided_slice %286 {offsets = [0, 0], sizes = [8, 32], strides = [1, 1]} : vector<8x96xf32> to vector<8x32xf32>
    %289 = arith.addf %287, %288 : vector<8x32xf32>
    %290 = arith.negf %289 : vector<8x32xf32>
    %291 = math.exp %290 : vector<8x32xf32>
    %cst_158 = arith.constant 1.000000e+00 : f32
    %292 = vector.broadcast %cst_158 : f32 to vector<8x32xf32>
    %293 = arith.addf %292, %291 : vector<8x32xf32>
    %294 = arith.divf %292, %293 : vector<8x32xf32>
    %295 = vector.extract_strided_slice %284 {offsets = [0, 32], sizes = [8, 32], strides = [1, 1]} : vector<8x96xf32> to vector<8x32xf32>
    %296 = vector.extract_strided_slice %286 {offsets = [0, 32], sizes = [8, 32], strides = [1, 1]} : vector<8x96xf32> to vector<8x32xf32>
    %297 = arith.addf %295, %296 : vector<8x32xf32>
    %298 = arith.negf %297 : vector<8x32xf32>
    %299 = math.exp %298 : vector<8x32xf32>
    %cst_159 = arith.constant 1.000000e+00 : f32
    %300 = vector.broadcast %cst_159 : f32 to vector<8x32xf32>
    %301 = arith.addf %300, %299 : vector<8x32xf32>
    %302 = arith.divf %300, %301 : vector<8x32xf32>
    %303 = vector.extract_strided_slice %284 {offsets = [0, 64], sizes = [8, 32], strides = [1, 1]} : vector<8x96xf32> to vector<8x32xf32>
    %304 = vector.extract_strided_slice %286 {offsets = [0, 64], sizes = [8, 32], strides = [1, 1]} : vector<8x96xf32> to vector<8x32xf32>
    %305 = arith.mulf %294, %304 : vector<8x32xf32>
    %306 = arith.addf %303, %305 : vector<8x32xf32>
    %307 = math.tanh %306 : vector<8x32xf32>
    %cst_160 = arith.constant 1.000000e+00 : f32
    %308 = vector.broadcast %cst_160 : f32 to vector<8x32xf32>
    %309 = arith.subf %308, %302 : vector<8x32xf32>
    %310 = arith.mulf %309, %307 : vector<8x32xf32>
    %311 = arith.mulf %302, %149 : vector<8x32xf32>
    %312 = arith.addf %310, %311 : vector<8x32xf32>
    %313 = math.log %240 : vector<8x16xf32>
    %cst_161 = arith.constant 2.000000e+00 : f32
    %314 = vector.broadcast %cst_161 : f32 to vector<8x16xf32>
    %315 = arith.mulf %314, %313 : vector<8x16xf32>
    %316 = math.log %218 : vector<8x16xf32>
    %cst_162 = arith.constant 2.000000e+00 : f32
    %317 = vector.broadcast %cst_162 : f32 to vector<8x16xf32>
    %318 = arith.mulf %317, %316 : vector<8x16xf32>
    %319 = arith.subf %315, %318 : vector<8x16xf32>
    %320 = arith.mulf %218, %218 : vector<8x16xf32>
    %321 = arith.subf %209, %231 : vector<8x16xf32>
    %322 = arith.mulf %321, %321 : vector<8x16xf32>
    %323 = arith.addf %320, %322 : vector<8x16xf32>
    %324 = arith.mulf %240, %240 : vector<8x16xf32>
    %325 = arith.divf %323, %324 : vector<8x16xf32>
    %326 = arith.addf %319, %325 : vector<8x16xf32>
    %cst_163 = arith.constant 1.000000e+00 : f32
    %327 = vector.broadcast %cst_163 : f32 to vector<8x16xf32>
    %328 = arith.subf %326, %327 : vector<8x16xf32>
    %329 = arith.addf %166, %328 : vector<8x16xf32>
    %c2_i32 = arith.constant 2 : i32
    %330 = arith.index_cast %c2_i32 : i32 to index
    %c0_164 = arith.constant 0 : index
    %c0_165 = arith.constant 0 : index
    %331 = vector.load %arg0[%330, %c0_164, %c0_165] : memref<8x8x16xf32, #tpu.memory_space<vmem>>, vector<1x8x16xf32>
    %332 = vector.shape_cast %331 : vector<1x8x16xf32> to vector<8x16xf32>
    %333 = arith.index_cast %c2_i32 : i32 to index
    %c0_166 = arith.constant 0 : index
    %c0_167 = arith.constant 0 : index
    %334 = vector.load %arg1[%333, %c0_166, %c0_167] : memref<8x8x16xf32, #tpu.memory_space<vmem>>, vector<1x8x16xf32>
    %335 = vector.shape_cast %334 : vector<1x8x16xf32> to vector<8x16xf32>
    %c0_168 = arith.constant 0 : index
    %c0_169 = arith.constant 0 : index
    %336 = vector.load %arg2[%c0_168, %c0_169] : memref<16x32xf32, #tpu.memory_space<vmem>>, vector<16x32xf32>
    %cst_170 = arith.constant dense<0.000000e+00> : vector<8x32xf32>
    %337 = tpu.matmul %332, %336, %cst_170 {dimension_numbers = #tpu.dot_dimension_numbers<[1], [0], [0], [1], [0, 0, 1, 1], [], []>} : vector<8x16xf32>, vector<16x32xf32>, vector<8x32xf32> -> vector<8x32xf32>
    %c0_171 = arith.constant 0 : index
    %c0_172 = arith.constant 0 : index
    %338 = vector.load %arg3[%c0_171, %c0_172] : memref<1x32xf32, #tpu.memory_space<vmem>>, vector<1x32xf32>
    %339 = vector.broadcast %338 : vector<1x32xf32> to vector<8x32xf32>
    %340 = arith.addf %337, %339 : vector<8x32xf32>
    %cst_173 = arith.constant 0.000000e+00 : f32
    %341 = vector.broadcast %cst_173 : f32 to vector<8x32xf32>
    %342 = arith.maximumf %340, %341 : vector<8x32xf32>
    %c0_174 = arith.constant 0 : index
    %c0_175 = arith.constant 0 : index
    %343 = vector.load %arg4[%c0_174, %c0_175] : memref<32x32xf32, #tpu.memory_space<vmem>>, vector<32x32xf32>
    %cst_176 = arith.constant dense<0.000000e+00> : vector<8x32xf32>
    %344 = tpu.matmul %342, %343, %cst_176 {dimension_numbers = #tpu.dot_dimension_numbers<[1], [0], [0], [1], [0, 0, 1, 1], [], []>} : vector<8x32xf32>, vector<32x32xf32>, vector<8x32xf32> -> vector<8x32xf32>
    %c0_177 = arith.constant 0 : index
    %c0_178 = arith.constant 0 : index
    %345 = vector.load %arg5[%c0_177, %c0_178] : memref<1x32xf32, #tpu.memory_space<vmem>>, vector<1x32xf32>
    %346 = vector.broadcast %345 : vector<1x32xf32> to vector<8x32xf32>
    %347 = arith.addf %344, %346 : vector<8x32xf32>
    %cst_179 = arith.constant 0.000000e+00 : f32
    %348 = vector.broadcast %cst_179 : f32 to vector<8x32xf32>
    %349 = arith.maximumf %347, %348 : vector<8x32xf32>
    %c0_180 = arith.constant 0 : index
    %c0_181 = arith.constant 0 : index
    %350 = vector.load %arg8[%c0_180, %c0_181] : memref<32x32xf32, #tpu.memory_space<vmem>>, vector<32x32xf32>
    %cst_182 = arith.constant dense<0.000000e+00> : vector<8x32xf32>
    %351 = tpu.matmul %349, %350, %cst_182 {dimension_numbers = #tpu.dot_dimension_numbers<[1], [0], [0], [1], [0, 0, 1, 1], [], []>} : vector<8x32xf32>, vector<32x32xf32>, vector<8x32xf32> -> vector<8x32xf32>
    %c0_183 = arith.constant 0 : index
    %c0_184 = arith.constant 0 : index
    %352 = vector.load %arg9[%c0_183, %c0_184] : memref<32x32xf32, #tpu.memory_space<vmem>>, vector<32x32xf32>
    %cst_185 = arith.constant dense<0.000000e+00> : vector<8x32xf32>
    %353 = tpu.matmul %312, %352, %cst_185 {dimension_numbers = #tpu.dot_dimension_numbers<[1], [0], [0], [1], [0, 0, 1, 1], [], []>} : vector<8x32xf32>, vector<32x32xf32>, vector<8x32xf32> -> vector<8x32xf32>
    %354 = arith.addf %351, %353 : vector<8x32xf32>
    %c0_186 = arith.constant 0 : index
    %c0_187 = arith.constant 0 : index
    %355 = vector.load %arg10[%c0_186, %c0_187] : memref<1x32xf32, #tpu.memory_space<vmem>>, vector<1x32xf32>
    %356 = vector.broadcast %355 : vector<1x32xf32> to vector<8x32xf32>
    %357 = arith.addf %354, %356 : vector<8x32xf32>
    %cst_188 = arith.constant 0.000000e+00 : f32
    %358 = vector.broadcast %cst_188 : f32 to vector<8x32xf32>
    %359 = arith.maximumf %357, %358 : vector<8x32xf32>
    %c0_189 = arith.constant 0 : index
    %c0_190 = arith.constant 0 : index
    %360 = vector.load %arg11[%c0_189, %c0_190] : memref<32x32xf32, #tpu.memory_space<vmem>>, vector<32x32xf32>
    %cst_191 = arith.constant dense<0.000000e+00> : vector<8x32xf32>
    %361 = tpu.matmul %359, %360, %cst_191 {dimension_numbers = #tpu.dot_dimension_numbers<[1], [0], [0], [1], [0, 0, 1, 1], [], []>} : vector<8x32xf32>, vector<32x32xf32>, vector<8x32xf32> -> vector<8x32xf32>
    %c0_192 = arith.constant 0 : index
    %c0_193 = arith.constant 0 : index
    %362 = vector.load %arg12[%c0_192, %c0_193] : memref<1x32xf32, #tpu.memory_space<vmem>>, vector<1x32xf32>
    %363 = vector.broadcast %362 : vector<1x32xf32> to vector<8x32xf32>
    %364 = arith.addf %361, %363 : vector<8x32xf32>
    %cst_194 = arith.constant 0.000000e+00 : f32
    %365 = vector.broadcast %cst_194 : f32 to vector<8x32xf32>
    %366 = arith.maximumf %364, %365 : vector<8x32xf32>
    %c0_195 = arith.constant 0 : index
    %c0_196 = arith.constant 0 : index
    %367 = vector.load %arg13[%c0_195, %c0_196] : memref<32x32xf32, #tpu.memory_space<vmem>>, vector<32x32xf32>
    %cst_197 = arith.constant dense<0.000000e+00> : vector<8x32xf32>
    %368 = tpu.matmul %366, %367, %cst_197 {dimension_numbers = #tpu.dot_dimension_numbers<[1], [0], [0], [1], [0, 0, 1, 1], [], []>} : vector<8x32xf32>, vector<32x32xf32>, vector<8x32xf32> -> vector<8x32xf32>
    %c0_198 = arith.constant 0 : index
    %c0_199 = arith.constant 0 : index
    %369 = vector.load %arg14[%c0_198, %c0_199] : memref<1x32xf32, #tpu.memory_space<vmem>>, vector<1x32xf32>
    %370 = vector.broadcast %369 : vector<1x32xf32> to vector<8x32xf32>
    %371 = arith.addf %368, %370 : vector<8x32xf32>
    %372 = vector.extract_strided_slice %371 {offsets = [0, 0], sizes = [8, 16], strides = [1, 1]} : vector<8x32xf32> to vector<8x16xf32>
    %373 = vector.extract_strided_slice %371 {offsets = [0, 16], sizes = [8, 16], strides = [1, 1]} : vector<8x32xf32> to vector<8x16xf32>
    %cst_200 = arith.constant 0.000000e+00 : f32
    %374 = vector.broadcast %cst_200 : f32 to vector<8x16xf32>
    %375 = arith.maximumf %373, %374 : vector<8x16xf32>
    %376 = math.absf %373 : vector<8x16xf32>
    %cst_201 = arith.constant 0.000000e+00 : f32
    %377 = vector.broadcast %cst_201 : f32 to vector<8x16xf32>
    %378 = arith.subf %377, %376 : vector<8x16xf32>
    %379 = math.exp %378 : vector<8x16xf32>
    %380 = math.log1p %379 : vector<8x16xf32>
    %381 = arith.addf %375, %380 : vector<8x16xf32>
    %c0_202 = arith.constant 0 : index
    %c0_203 = arith.constant 0 : index
    %382 = vector.load %arg15[%c0_202, %c0_203] : memref<32x32xf32, #tpu.memory_space<vmem>>, vector<32x32xf32>
    %cst_204 = arith.constant dense<0.000000e+00> : vector<8x32xf32>
    %383 = tpu.matmul %312, %382, %cst_204 {dimension_numbers = #tpu.dot_dimension_numbers<[1], [0], [0], [1], [0, 0, 1, 1], [], []>} : vector<8x32xf32>, vector<32x32xf32>, vector<8x32xf32> -> vector<8x32xf32>
    %c0_205 = arith.constant 0 : index
    %c0_206 = arith.constant 0 : index
    %384 = vector.load %arg16[%c0_205, %c0_206] : memref<1x32xf32, #tpu.memory_space<vmem>>, vector<1x32xf32>
    %385 = vector.broadcast %384 : vector<1x32xf32> to vector<8x32xf32>
    %386 = arith.addf %383, %385 : vector<8x32xf32>
    %cst_207 = arith.constant 0.000000e+00 : f32
    %387 = vector.broadcast %cst_207 : f32 to vector<8x32xf32>
    %388 = arith.maximumf %386, %387 : vector<8x32xf32>
    %c0_208 = arith.constant 0 : index
    %c0_209 = arith.constant 0 : index
    %389 = vector.load %arg17[%c0_208, %c0_209] : memref<32x32xf32, #tpu.memory_space<vmem>>, vector<32x32xf32>
    %cst_210 = arith.constant dense<0.000000e+00> : vector<8x32xf32>
    %390 = tpu.matmul %388, %389, %cst_210 {dimension_numbers = #tpu.dot_dimension_numbers<[1], [0], [0], [1], [0, 0, 1, 1], [], []>} : vector<8x32xf32>, vector<32x32xf32>, vector<8x32xf32> -> vector<8x32xf32>
    %c0_211 = arith.constant 0 : index
    %c0_212 = arith.constant 0 : index
    %391 = vector.load %arg18[%c0_211, %c0_212] : memref<1x32xf32, #tpu.memory_space<vmem>>, vector<1x32xf32>
    %392 = vector.broadcast %391 : vector<1x32xf32> to vector<8x32xf32>
    %393 = arith.addf %390, %392 : vector<8x32xf32>
    %394 = vector.extract_strided_slice %393 {offsets = [0, 0], sizes = [8, 16], strides = [1, 1]} : vector<8x32xf32> to vector<8x16xf32>
    %395 = vector.extract_strided_slice %393 {offsets = [0, 16], sizes = [8, 16], strides = [1, 1]} : vector<8x32xf32> to vector<8x16xf32>
    %cst_213 = arith.constant 0.000000e+00 : f32
    %396 = vector.broadcast %cst_213 : f32 to vector<8x16xf32>
    %397 = arith.maximumf %395, %396 : vector<8x16xf32>
    %398 = math.absf %395 : vector<8x16xf32>
    %cst_214 = arith.constant 0.000000e+00 : f32
    %399 = vector.broadcast %cst_214 : f32 to vector<8x16xf32>
    %400 = arith.subf %399, %398 : vector<8x16xf32>
    %401 = math.exp %400 : vector<8x16xf32>
    %402 = math.log1p %401 : vector<8x16xf32>
    %403 = arith.addf %397, %402 : vector<8x16xf32>
    %404 = arith.mulf %335, %381 : vector<8x16xf32>
    %405 = arith.addf %404, %372 : vector<8x16xf32>
    %c0_215 = arith.constant 0 : index
    %c0_216 = arith.constant 0 : index
    %406 = vector.load %arg6[%c0_215, %c0_216] : memref<16x32xf32, #tpu.memory_space<vmem>>, vector<16x32xf32>
    %cst_217 = arith.constant dense<0.000000e+00> : vector<8x32xf32>
    %407 = tpu.matmul %405, %406, %cst_217 {dimension_numbers = #tpu.dot_dimension_numbers<[1], [0], [0], [1], [0, 0, 1, 1], [], []>} : vector<8x16xf32>, vector<16x32xf32>, vector<8x32xf32> -> vector<8x32xf32>
    %c0_218 = arith.constant 0 : index
    %c0_219 = arith.constant 0 : index
    %408 = vector.load %arg7[%c0_218, %c0_219] : memref<1x32xf32, #tpu.memory_space<vmem>>, vector<1x32xf32>
    %409 = vector.broadcast %408 : vector<1x32xf32> to vector<8x32xf32>
    %410 = arith.addf %407, %409 : vector<8x32xf32>
    %cst_220 = arith.constant 0.000000e+00 : f32
    %411 = vector.broadcast %cst_220 : f32 to vector<8x32xf32>
    %412 = arith.maximumf %410, %411 : vector<8x32xf32>
    %c0_221 = arith.constant 0 : index
    %c0_222 = arith.constant 0 : index
    %413 = vector.load %arg19[%c0_221, %c0_222] : memref<32x96xf32, #tpu.memory_space<vmem>>, vector<32x96xf32>
    %cst_223 = arith.constant dense<0.000000e+00> : vector<8x96xf32>
    %414 = tpu.matmul %349, %413, %cst_223 {dimension_numbers = #tpu.dot_dimension_numbers<[1], [0], [0], [1], [0, 0, 1, 1], [], []>} : vector<8x32xf32>, vector<32x96xf32>, vector<8x96xf32> -> vector<8x96xf32>
    %c0_224 = arith.constant 0 : index
    %c0_225 = arith.constant 0 : index
    %415 = vector.load %arg20[%c0_224, %c0_225] : memref<32x96xf32, #tpu.memory_space<vmem>>, vector<32x96xf32>
    %cst_226 = arith.constant dense<0.000000e+00> : vector<8x96xf32>
    %416 = tpu.matmul %412, %415, %cst_226 {dimension_numbers = #tpu.dot_dimension_numbers<[1], [0], [0], [1], [0, 0, 1, 1], [], []>} : vector<8x32xf32>, vector<32x96xf32>, vector<8x96xf32> -> vector<8x96xf32>
    %417 = arith.addf %414, %416 : vector<8x96xf32>
    %c0_227 = arith.constant 0 : index
    %c0_228 = arith.constant 0 : index
    %418 = vector.load %arg21[%c0_227, %c0_228] : memref<32x96xf32, #tpu.memory_space<vmem>>, vector<32x96xf32>
    %cst_229 = arith.constant dense<0.000000e+00> : vector<8x96xf32>
    %419 = tpu.matmul %282, %418, %cst_229 {dimension_numbers = #tpu.dot_dimension_numbers<[1], [0], [0], [1], [0, 0, 1, 1], [], []>} : vector<8x32xf32>, vector<32x96xf32>, vector<8x96xf32> -> vector<8x96xf32>
    %420 = vector.extract_strided_slice %417 {offsets = [0, 0], sizes = [8, 32], strides = [1, 1]} : vector<8x96xf32> to vector<8x32xf32>
    %421 = vector.extract_strided_slice %419 {offsets = [0, 0], sizes = [8, 32], strides = [1, 1]} : vector<8x96xf32> to vector<8x32xf32>
    %422 = arith.addf %420, %421 : vector<8x32xf32>
    %423 = arith.negf %422 : vector<8x32xf32>
    %424 = math.exp %423 : vector<8x32xf32>
    %cst_230 = arith.constant 1.000000e+00 : f32
    %425 = vector.broadcast %cst_230 : f32 to vector<8x32xf32>
    %426 = arith.addf %425, %424 : vector<8x32xf32>
    %427 = arith.divf %425, %426 : vector<8x32xf32>
    %428 = vector.extract_strided_slice %417 {offsets = [0, 32], sizes = [8, 32], strides = [1, 1]} : vector<8x96xf32> to vector<8x32xf32>
    %429 = vector.extract_strided_slice %419 {offsets = [0, 32], sizes = [8, 32], strides = [1, 1]} : vector<8x96xf32> to vector<8x32xf32>
    %430 = arith.addf %428, %429 : vector<8x32xf32>
    %431 = arith.negf %430 : vector<8x32xf32>
    %432 = math.exp %431 : vector<8x32xf32>
    %cst_231 = arith.constant 1.000000e+00 : f32
    %433 = vector.broadcast %cst_231 : f32 to vector<8x32xf32>
    %434 = arith.addf %433, %432 : vector<8x32xf32>
    %435 = arith.divf %433, %434 : vector<8x32xf32>
    %436 = vector.extract_strided_slice %417 {offsets = [0, 64], sizes = [8, 32], strides = [1, 1]} : vector<8x96xf32> to vector<8x32xf32>
    %437 = vector.extract_strided_slice %419 {offsets = [0, 64], sizes = [8, 32], strides = [1, 1]} : vector<8x96xf32> to vector<8x32xf32>
    %438 = arith.mulf %427, %437 : vector<8x32xf32>
    %439 = arith.addf %436, %438 : vector<8x32xf32>
    %440 = math.tanh %439 : vector<8x32xf32>
    %cst_232 = arith.constant 1.000000e+00 : f32
    %441 = vector.broadcast %cst_232 : f32 to vector<8x32xf32>
    %442 = arith.subf %441, %435 : vector<8x32xf32>
    %443 = arith.mulf %442, %440 : vector<8x32xf32>
    %444 = arith.mulf %435, %282 : vector<8x32xf32>
    %445 = arith.addf %443, %444 : vector<8x32xf32>
    %c0_233 = arith.constant 0 : index
    %c0_234 = arith.constant 0 : index
    %446 = vector.load %arg22[%c0_233, %c0_234] : memref<32x96xf32, #tpu.memory_space<vmem>>, vector<32x96xf32>
    %cst_235 = arith.constant dense<0.000000e+00> : vector<8x96xf32>
    %447 = tpu.matmul %445, %446, %cst_235 {dimension_numbers = #tpu.dot_dimension_numbers<[1], [0], [0], [1], [0, 0, 1, 1], [], []>} : vector<8x32xf32>, vector<32x96xf32>, vector<8x96xf32> -> vector<8x96xf32>
    %c0_236 = arith.constant 0 : index
    %c0_237 = arith.constant 0 : index
    %448 = vector.load %arg23[%c0_236, %c0_237] : memref<32x96xf32, #tpu.memory_space<vmem>>, vector<32x96xf32>
    %cst_238 = arith.constant dense<0.000000e+00> : vector<8x96xf32>
    %449 = tpu.matmul %312, %448, %cst_238 {dimension_numbers = #tpu.dot_dimension_numbers<[1], [0], [0], [1], [0, 0, 1, 1], [], []>} : vector<8x32xf32>, vector<32x96xf32>, vector<8x96xf32> -> vector<8x96xf32>
    %450 = vector.extract_strided_slice %447 {offsets = [0, 0], sizes = [8, 32], strides = [1, 1]} : vector<8x96xf32> to vector<8x32xf32>
    %451 = vector.extract_strided_slice %449 {offsets = [0, 0], sizes = [8, 32], strides = [1, 1]} : vector<8x96xf32> to vector<8x32xf32>
    %452 = arith.addf %450, %451 : vector<8x32xf32>
    %453 = arith.negf %452 : vector<8x32xf32>
    %454 = math.exp %453 : vector<8x32xf32>
    %cst_239 = arith.constant 1.000000e+00 : f32
    %455 = vector.broadcast %cst_239 : f32 to vector<8x32xf32>
    %456 = arith.addf %455, %454 : vector<8x32xf32>
    %457 = arith.divf %455, %456 : vector<8x32xf32>
    %458 = vector.extract_strided_slice %447 {offsets = [0, 32], sizes = [8, 32], strides = [1, 1]} : vector<8x96xf32> to vector<8x32xf32>
    %459 = vector.extract_strided_slice %449 {offsets = [0, 32], sizes = [8, 32], strides = [1, 1]} : vector<8x96xf32> to vector<8x32xf32>
    %460 = arith.addf %458, %459 : vector<8x32xf32>
    %461 = arith.negf %460 : vector<8x32xf32>
    %462 = math.exp %461 : vector<8x32xf32>
    %cst_240 = arith.constant 1.000000e+00 : f32
    %463 = vector.broadcast %cst_240 : f32 to vector<8x32xf32>
    %464 = arith.addf %463, %462 : vector<8x32xf32>
    %465 = arith.divf %463, %464 : vector<8x32xf32>
    %466 = vector.extract_strided_slice %447 {offsets = [0, 64], sizes = [8, 32], strides = [1, 1]} : vector<8x96xf32> to vector<8x32xf32>
    %467 = vector.extract_strided_slice %449 {offsets = [0, 64], sizes = [8, 32], strides = [1, 1]} : vector<8x96xf32> to vector<8x32xf32>
    %468 = arith.mulf %457, %467 : vector<8x32xf32>
    %469 = arith.addf %466, %468 : vector<8x32xf32>
    %470 = math.tanh %469 : vector<8x32xf32>
    %cst_241 = arith.constant 1.000000e+00 : f32
    %471 = vector.broadcast %cst_241 : f32 to vector<8x32xf32>
    %472 = arith.subf %471, %465 : vector<8x32xf32>
    %473 = arith.mulf %472, %470 : vector<8x32xf32>
    %474 = arith.mulf %465, %312 : vector<8x32xf32>
    %475 = arith.addf %473, %474 : vector<8x32xf32>
    %476 = math.log %403 : vector<8x16xf32>
    %cst_242 = arith.constant 2.000000e+00 : f32
    %477 = vector.broadcast %cst_242 : f32 to vector<8x16xf32>
    %478 = arith.mulf %477, %476 : vector<8x16xf32>
    %479 = math.log %381 : vector<8x16xf32>
    %cst_243 = arith.constant 2.000000e+00 : f32
    %480 = vector.broadcast %cst_243 : f32 to vector<8x16xf32>
    %481 = arith.mulf %480, %479 : vector<8x16xf32>
    %482 = arith.subf %478, %481 : vector<8x16xf32>
    %483 = arith.mulf %381, %381 : vector<8x16xf32>
    %484 = arith.subf %372, %394 : vector<8x16xf32>
    %485 = arith.mulf %484, %484 : vector<8x16xf32>
    %486 = arith.addf %483, %485 : vector<8x16xf32>
    %487 = arith.mulf %403, %403 : vector<8x16xf32>
    %488 = arith.divf %486, %487 : vector<8x16xf32>
    %489 = arith.addf %482, %488 : vector<8x16xf32>
    %cst_244 = arith.constant 1.000000e+00 : f32
    %490 = vector.broadcast %cst_244 : f32 to vector<8x16xf32>
    %491 = arith.subf %489, %490 : vector<8x16xf32>
    %492 = arith.addf %329, %491 : vector<8x16xf32>
    %c3_i32 = arith.constant 3 : i32
    %493 = arith.index_cast %c3_i32 : i32 to index
    %c0_245 = arith.constant 0 : index
    %c0_246 = arith.constant 0 : index
    %494 = vector.load %arg0[%493, %c0_245, %c0_246] : memref<8x8x16xf32, #tpu.memory_space<vmem>>, vector<1x8x16xf32>
    %495 = vector.shape_cast %494 : vector<1x8x16xf32> to vector<8x16xf32>
    %496 = arith.index_cast %c3_i32 : i32 to index
    %c0_247 = arith.constant 0 : index
    %c0_248 = arith.constant 0 : index
    %497 = vector.load %arg1[%496, %c0_247, %c0_248] : memref<8x8x16xf32, #tpu.memory_space<vmem>>, vector<1x8x16xf32>
    %498 = vector.shape_cast %497 : vector<1x8x16xf32> to vector<8x16xf32>
    %c0_249 = arith.constant 0 : index
    %c0_250 = arith.constant 0 : index
    %499 = vector.load %arg2[%c0_249, %c0_250] : memref<16x32xf32, #tpu.memory_space<vmem>>, vector<16x32xf32>
    %cst_251 = arith.constant dense<0.000000e+00> : vector<8x32xf32>
    %500 = tpu.matmul %495, %499, %cst_251 {dimension_numbers = #tpu.dot_dimension_numbers<[1], [0], [0], [1], [0, 0, 1, 1], [], []>} : vector<8x16xf32>, vector<16x32xf32>, vector<8x32xf32> -> vector<8x32xf32>
    %c0_252 = arith.constant 0 : index
    %c0_253 = arith.constant 0 : index
    %501 = vector.load %arg3[%c0_252, %c0_253] : memref<1x32xf32, #tpu.memory_space<vmem>>, vector<1x32xf32>
    %502 = vector.broadcast %501 : vector<1x32xf32> to vector<8x32xf32>
    %503 = arith.addf %500, %502 : vector<8x32xf32>
    %cst_254 = arith.constant 0.000000e+00 : f32
    %504 = vector.broadcast %cst_254 : f32 to vector<8x32xf32>
    %505 = arith.maximumf %503, %504 : vector<8x32xf32>
    %c0_255 = arith.constant 0 : index
    %c0_256 = arith.constant 0 : index
    %506 = vector.load %arg4[%c0_255, %c0_256] : memref<32x32xf32, #tpu.memory_space<vmem>>, vector<32x32xf32>
    %cst_257 = arith.constant dense<0.000000e+00> : vector<8x32xf32>
    %507 = tpu.matmul %505, %506, %cst_257 {dimension_numbers = #tpu.dot_dimension_numbers<[1], [0], [0], [1], [0, 0, 1, 1], [], []>} : vector<8x32xf32>, vector<32x32xf32>, vector<8x32xf32> -> vector<8x32xf32>
    %c0_258 = arith.constant 0 : index
    %c0_259 = arith.constant 0 : index
    %508 = vector.load %arg5[%c0_258, %c0_259] : memref<1x32xf32, #tpu.memory_space<vmem>>, vector<1x32xf32>
    %509 = vector.broadcast %508 : vector<1x32xf32> to vector<8x32xf32>
    %510 = arith.addf %507, %509 : vector<8x32xf32>
    %cst_260 = arith.constant 0.000000e+00 : f32
    %511 = vector.broadcast %cst_260 : f32 to vector<8x32xf32>
    %512 = arith.maximumf %510, %511 : vector<8x32xf32>
    %c0_261 = arith.constant 0 : index
    %c0_262 = arith.constant 0 : index
    %513 = vector.load %arg8[%c0_261, %c0_262] : memref<32x32xf32, #tpu.memory_space<vmem>>, vector<32x32xf32>
    %cst_263 = arith.constant dense<0.000000e+00> : vector<8x32xf32>
    %514 = tpu.matmul %512, %513, %cst_263 {dimension_numbers = #tpu.dot_dimension_numbers<[1], [0], [0], [1], [0, 0, 1, 1], [], []>} : vector<8x32xf32>, vector<32x32xf32>, vector<8x32xf32> -> vector<8x32xf32>
    %c0_264 = arith.constant 0 : index
    %c0_265 = arith.constant 0 : index
    %515 = vector.load %arg9[%c0_264, %c0_265] : memref<32x32xf32, #tpu.memory_space<vmem>>, vector<32x32xf32>
    %cst_266 = arith.constant dense<0.000000e+00> : vector<8x32xf32>
    %516 = tpu.matmul %475, %515, %cst_266 {dimension_numbers = #tpu.dot_dimension_numbers<[1], [0], [0], [1], [0, 0, 1, 1], [], []>} : vector<8x32xf32>, vector<32x32xf32>, vector<8x32xf32> -> vector<8x32xf32>
    %517 = arith.addf %514, %516 : vector<8x32xf32>
    %c0_267 = arith.constant 0 : index
    %c0_268 = arith.constant 0 : index
    %518 = vector.load %arg10[%c0_267, %c0_268] : memref<1x32xf32, #tpu.memory_space<vmem>>, vector<1x32xf32>
    %519 = vector.broadcast %518 : vector<1x32xf32> to vector<8x32xf32>
    %520 = arith.addf %517, %519 : vector<8x32xf32>
    %cst_269 = arith.constant 0.000000e+00 : f32
    %521 = vector.broadcast %cst_269 : f32 to vector<8x32xf32>
    %522 = arith.maximumf %520, %521 : vector<8x32xf32>
    %c0_270 = arith.constant 0 : index
    %c0_271 = arith.constant 0 : index
    %523 = vector.load %arg11[%c0_270, %c0_271] : memref<32x32xf32, #tpu.memory_space<vmem>>, vector<32x32xf32>
    %cst_272 = arith.constant dense<0.000000e+00> : vector<8x32xf32>
    %524 = tpu.matmul %522, %523, %cst_272 {dimension_numbers = #tpu.dot_dimension_numbers<[1], [0], [0], [1], [0, 0, 1, 1], [], []>} : vector<8x32xf32>, vector<32x32xf32>, vector<8x32xf32> -> vector<8x32xf32>
    %c0_273 = arith.constant 0 : index
    %c0_274 = arith.constant 0 : index
    %525 = vector.load %arg12[%c0_273, %c0_274] : memref<1x32xf32, #tpu.memory_space<vmem>>, vector<1x32xf32>
    %526 = vector.broadcast %525 : vector<1x32xf32> to vector<8x32xf32>
    %527 = arith.addf %524, %526 : vector<8x32xf32>
    %cst_275 = arith.constant 0.000000e+00 : f32
    %528 = vector.broadcast %cst_275 : f32 to vector<8x32xf32>
    %529 = arith.maximumf %527, %528 : vector<8x32xf32>
    %c0_276 = arith.constant 0 : index
    %c0_277 = arith.constant 0 : index
    %530 = vector.load %arg13[%c0_276, %c0_277] : memref<32x32xf32, #tpu.memory_space<vmem>>, vector<32x32xf32>
    %cst_278 = arith.constant dense<0.000000e+00> : vector<8x32xf32>
    %531 = tpu.matmul %529, %530, %cst_278 {dimension_numbers = #tpu.dot_dimension_numbers<[1], [0], [0], [1], [0, 0, 1, 1], [], []>} : vector<8x32xf32>, vector<32x32xf32>, vector<8x32xf32> -> vector<8x32xf32>
    %c0_279 = arith.constant 0 : index
    %c0_280 = arith.constant 0 : index
    %532 = vector.load %arg14[%c0_279, %c0_280] : memref<1x32xf32, #tpu.memory_space<vmem>>, vector<1x32xf32>
    %533 = vector.broadcast %532 : vector<1x32xf32> to vector<8x32xf32>
    %534 = arith.addf %531, %533 : vector<8x32xf32>
    %535 = vector.extract_strided_slice %534 {offsets = [0, 0], sizes = [8, 16], strides = [1, 1]} : vector<8x32xf32> to vector<8x16xf32>
    %536 = vector.extract_strided_slice %534 {offsets = [0, 16], sizes = [8, 16], strides = [1, 1]} : vector<8x32xf32> to vector<8x16xf32>
    %cst_281 = arith.constant 0.000000e+00 : f32
    %537 = vector.broadcast %cst_281 : f32 to vector<8x16xf32>
    %538 = arith.maximumf %536, %537 : vector<8x16xf32>
    %539 = math.absf %536 : vector<8x16xf32>
    %cst_282 = arith.constant 0.000000e+00 : f32
    %540 = vector.broadcast %cst_282 : f32 to vector<8x16xf32>
    %541 = arith.subf %540, %539 : vector<8x16xf32>
    %542 = math.exp %541 : vector<8x16xf32>
    %543 = math.log1p %542 : vector<8x16xf32>
    %544 = arith.addf %538, %543 : vector<8x16xf32>
    %c0_283 = arith.constant 0 : index
    %c0_284 = arith.constant 0 : index
    %545 = vector.load %arg15[%c0_283, %c0_284] : memref<32x32xf32, #tpu.memory_space<vmem>>, vector<32x32xf32>
    %cst_285 = arith.constant dense<0.000000e+00> : vector<8x32xf32>
    %546 = tpu.matmul %475, %545, %cst_285 {dimension_numbers = #tpu.dot_dimension_numbers<[1], [0], [0], [1], [0, 0, 1, 1], [], []>} : vector<8x32xf32>, vector<32x32xf32>, vector<8x32xf32> -> vector<8x32xf32>
    %c0_286 = arith.constant 0 : index
    %c0_287 = arith.constant 0 : index
    %547 = vector.load %arg16[%c0_286, %c0_287] : memref<1x32xf32, #tpu.memory_space<vmem>>, vector<1x32xf32>
    %548 = vector.broadcast %547 : vector<1x32xf32> to vector<8x32xf32>
    %549 = arith.addf %546, %548 : vector<8x32xf32>
    %cst_288 = arith.constant 0.000000e+00 : f32
    %550 = vector.broadcast %cst_288 : f32 to vector<8x32xf32>
    %551 = arith.maximumf %549, %550 : vector<8x32xf32>
    %c0_289 = arith.constant 0 : index
    %c0_290 = arith.constant 0 : index
    %552 = vector.load %arg17[%c0_289, %c0_290] : memref<32x32xf32, #tpu.memory_space<vmem>>, vector<32x32xf32>
    %cst_291 = arith.constant dense<0.000000e+00> : vector<8x32xf32>
    %553 = tpu.matmul %551, %552, %cst_291 {dimension_numbers = #tpu.dot_dimension_numbers<[1], [0], [0], [1], [0, 0, 1, 1], [], []>} : vector<8x32xf32>, vector<32x32xf32>, vector<8x32xf32> -> vector<8x32xf32>
    %c0_292 = arith.constant 0 : index
    %c0_293 = arith.constant 0 : index
    %554 = vector.load %arg18[%c0_292, %c0_293] : memref<1x32xf32, #tpu.memory_space<vmem>>, vector<1x32xf32>
    %555 = vector.broadcast %554 : vector<1x32xf32> to vector<8x32xf32>
    %556 = arith.addf %553, %555 : vector<8x32xf32>
    %557 = vector.extract_strided_slice %556 {offsets = [0, 0], sizes = [8, 16], strides = [1, 1]} : vector<8x32xf32> to vector<8x16xf32>
    %558 = vector.extract_strided_slice %556 {offsets = [0, 16], sizes = [8, 16], strides = [1, 1]} : vector<8x32xf32> to vector<8x16xf32>
    %cst_294 = arith.constant 0.000000e+00 : f32
    %559 = vector.broadcast %cst_294 : f32 to vector<8x16xf32>
    %560 = arith.maximumf %558, %559 : vector<8x16xf32>
    %561 = math.absf %558 : vector<8x16xf32>
    %cst_295 = arith.constant 0.000000e+00 : f32
    %562 = vector.broadcast %cst_295 : f32 to vector<8x16xf32>
    %563 = arith.subf %562, %561 : vector<8x16xf32>
    %564 = math.exp %563 : vector<8x16xf32>
    %565 = math.log1p %564 : vector<8x16xf32>
    %566 = arith.addf %560, %565 : vector<8x16xf32>
    %567 = arith.mulf %498, %544 : vector<8x16xf32>
    %568 = arith.addf %567, %535 : vector<8x16xf32>
    %c0_296 = arith.constant 0 : index
    %c0_297 = arith.constant 0 : index
    %569 = vector.load %arg6[%c0_296, %c0_297] : memref<16x32xf32, #tpu.memory_space<vmem>>, vector<16x32xf32>
    %cst_298 = arith.constant dense<0.000000e+00> : vector<8x32xf32>
    %570 = tpu.matmul %568, %569, %cst_298 {dimension_numbers = #tpu.dot_dimension_numbers<[1], [0], [0], [1], [0, 0, 1, 1], [], []>} : vector<8x16xf32>, vector<16x32xf32>, vector<8x32xf32> -> vector<8x32xf32>
    %c0_299 = arith.constant 0 : index
    %c0_300 = arith.constant 0 : index
    %571 = vector.load %arg7[%c0_299, %c0_300] : memref<1x32xf32, #tpu.memory_space<vmem>>, vector<1x32xf32>
    %572 = vector.broadcast %571 : vector<1x32xf32> to vector<8x32xf32>
    %573 = arith.addf %570, %572 : vector<8x32xf32>
    %cst_301 = arith.constant 0.000000e+00 : f32
    %574 = vector.broadcast %cst_301 : f32 to vector<8x32xf32>
    %575 = arith.maximumf %573, %574 : vector<8x32xf32>
    %c0_302 = arith.constant 0 : index
    %c0_303 = arith.constant 0 : index
    %576 = vector.load %arg19[%c0_302, %c0_303] : memref<32x96xf32, #tpu.memory_space<vmem>>, vector<32x96xf32>
    %cst_304 = arith.constant dense<0.000000e+00> : vector<8x96xf32>
    %577 = tpu.matmul %512, %576, %cst_304 {dimension_numbers = #tpu.dot_dimension_numbers<[1], [0], [0], [1], [0, 0, 1, 1], [], []>} : vector<8x32xf32>, vector<32x96xf32>, vector<8x96xf32> -> vector<8x96xf32>
    %c0_305 = arith.constant 0 : index
    %c0_306 = arith.constant 0 : index
    %578 = vector.load %arg20[%c0_305, %c0_306] : memref<32x96xf32, #tpu.memory_space<vmem>>, vector<32x96xf32>
    %cst_307 = arith.constant dense<0.000000e+00> : vector<8x96xf32>
    %579 = tpu.matmul %575, %578, %cst_307 {dimension_numbers = #tpu.dot_dimension_numbers<[1], [0], [0], [1], [0, 0, 1, 1], [], []>} : vector<8x32xf32>, vector<32x96xf32>, vector<8x96xf32> -> vector<8x96xf32>
    %580 = arith.addf %577, %579 : vector<8x96xf32>
    %c0_308 = arith.constant 0 : index
    %c0_309 = arith.constant 0 : index
    %581 = vector.load %arg21[%c0_308, %c0_309] : memref<32x96xf32, #tpu.memory_space<vmem>>, vector<32x96xf32>
    %cst_310 = arith.constant dense<0.000000e+00> : vector<8x96xf32>
    %582 = tpu.matmul %445, %581, %cst_310 {dimension_numbers = #tpu.dot_dimension_numbers<[1], [0], [0], [1], [0, 0, 1, 1], [], []>} : vector<8x32xf32>, vector<32x96xf32>, vector<8x96xf32> -> vector<8x96xf32>
    %583 = vector.extract_strided_slice %580 {offsets = [0, 0], sizes = [8, 32], strides = [1, 1]} : vector<8x96xf32> to vector<8x32xf32>
    %584 = vector.extract_strided_slice %582 {offsets = [0, 0], sizes = [8, 32], strides = [1, 1]} : vector<8x96xf32> to vector<8x32xf32>
    %585 = arith.addf %583, %584 : vector<8x32xf32>
    %586 = arith.negf %585 : vector<8x32xf32>
    %587 = math.exp %586 : vector<8x32xf32>
    %cst_311 = arith.constant 1.000000e+00 : f32
    %588 = vector.broadcast %cst_311 : f32 to vector<8x32xf32>
    %589 = arith.addf %588, %587 : vector<8x32xf32>
    %590 = arith.divf %588, %589 : vector<8x32xf32>
    %591 = vector.extract_strided_slice %580 {offsets = [0, 32], sizes = [8, 32], strides = [1, 1]} : vector<8x96xf32> to vector<8x32xf32>
    %592 = vector.extract_strided_slice %582 {offsets = [0, 32], sizes = [8, 32], strides = [1, 1]} : vector<8x96xf32> to vector<8x32xf32>
    %593 = arith.addf %591, %592 : vector<8x32xf32>
    %594 = arith.negf %593 : vector<8x32xf32>
    %595 = math.exp %594 : vector<8x32xf32>
    %cst_312 = arith.constant 1.000000e+00 : f32
    %596 = vector.broadcast %cst_312 : f32 to vector<8x32xf32>
    %597 = arith.addf %596, %595 : vector<8x32xf32>
    %598 = arith.divf %596, %597 : vector<8x32xf32>
    %599 = vector.extract_strided_slice %580 {offsets = [0, 64], sizes = [8, 32], strides = [1, 1]} : vector<8x96xf32> to vector<8x32xf32>
    %600 = vector.extract_strided_slice %582 {offsets = [0, 64], sizes = [8, 32], strides = [1, 1]} : vector<8x96xf32> to vector<8x32xf32>
    %601 = arith.mulf %590, %600 : vector<8x32xf32>
    %602 = arith.addf %599, %601 : vector<8x32xf32>
    %603 = math.tanh %602 : vector<8x32xf32>
    %cst_313 = arith.constant 1.000000e+00 : f32
    %604 = vector.broadcast %cst_313 : f32 to vector<8x32xf32>
    %605 = arith.subf %604, %598 : vector<8x32xf32>
    %606 = arith.mulf %605, %603 : vector<8x32xf32>
    %607 = arith.mulf %598, %445 : vector<8x32xf32>
    %608 = arith.addf %606, %607 : vector<8x32xf32>
    %c0_314 = arith.constant 0 : index
    %c0_315 = arith.constant 0 : index
    %609 = vector.load %arg22[%c0_314, %c0_315] : memref<32x96xf32, #tpu.memory_space<vmem>>, vector<32x96xf32>
    %cst_316 = arith.constant dense<0.000000e+00> : vector<8x96xf32>
    %610 = tpu.matmul %608, %609, %cst_316 {dimension_numbers = #tpu.dot_dimension_numbers<[1], [0], [0], [1], [0, 0, 1, 1], [], []>} : vector<8x32xf32>, vector<32x96xf32>, vector<8x96xf32> -> vector<8x96xf32>
    %c0_317 = arith.constant 0 : index
    %c0_318 = arith.constant 0 : index
    %611 = vector.load %arg23[%c0_317, %c0_318] : memref<32x96xf32, #tpu.memory_space<vmem>>, vector<32x96xf32>
    %cst_319 = arith.constant dense<0.000000e+00> : vector<8x96xf32>
    %612 = tpu.matmul %475, %611, %cst_319 {dimension_numbers = #tpu.dot_dimension_numbers<[1], [0], [0], [1], [0, 0, 1, 1], [], []>} : vector<8x32xf32>, vector<32x96xf32>, vector<8x96xf32> -> vector<8x96xf32>
    %613 = vector.extract_strided_slice %610 {offsets = [0, 0], sizes = [8, 32], strides = [1, 1]} : vector<8x96xf32> to vector<8x32xf32>
    %614 = vector.extract_strided_slice %612 {offsets = [0, 0], sizes = [8, 32], strides = [1, 1]} : vector<8x96xf32> to vector<8x32xf32>
    %615 = arith.addf %613, %614 : vector<8x32xf32>
    %616 = arith.negf %615 : vector<8x32xf32>
    %617 = math.exp %616 : vector<8x32xf32>
    %cst_320 = arith.constant 1.000000e+00 : f32
    %618 = vector.broadcast %cst_320 : f32 to vector<8x32xf32>
    %619 = arith.addf %618, %617 : vector<8x32xf32>
    %620 = arith.divf %618, %619 : vector<8x32xf32>
    %621 = vector.extract_strided_slice %610 {offsets = [0, 32], sizes = [8, 32], strides = [1, 1]} : vector<8x96xf32> to vector<8x32xf32>
    %622 = vector.extract_strided_slice %612 {offsets = [0, 32], sizes = [8, 32], strides = [1, 1]} : vector<8x96xf32> to vector<8x32xf32>
    %623 = arith.addf %621, %622 : vector<8x32xf32>
    %624 = arith.negf %623 : vector<8x32xf32>
    %625 = math.exp %624 : vector<8x32xf32>
    %cst_321 = arith.constant 1.000000e+00 : f32
    %626 = vector.broadcast %cst_321 : f32 to vector<8x32xf32>
    %627 = arith.addf %626, %625 : vector<8x32xf32>
    %628 = arith.divf %626, %627 : vector<8x32xf32>
    %629 = vector.extract_strided_slice %610 {offsets = [0, 64], sizes = [8, 32], strides = [1, 1]} : vector<8x96xf32> to vector<8x32xf32>
    %630 = vector.extract_strided_slice %612 {offsets = [0, 64], sizes = [8, 32], strides = [1, 1]} : vector<8x96xf32> to vector<8x32xf32>
    %631 = arith.mulf %620, %630 : vector<8x32xf32>
    %632 = arith.addf %629, %631 : vector<8x32xf32>
    %633 = math.tanh %632 : vector<8x32xf32>
    %cst_322 = arith.constant 1.000000e+00 : f32
    %634 = vector.broadcast %cst_322 : f32 to vector<8x32xf32>
    %635 = arith.subf %634, %628 : vector<8x32xf32>
    %636 = arith.mulf %635, %633 : vector<8x32xf32>
    %637 = arith.mulf %628, %475 : vector<8x32xf32>
    %638 = arith.addf %636, %637 : vector<8x32xf32>
    %639 = math.log %566 : vector<8x16xf32>
    %cst_323 = arith.constant 2.000000e+00 : f32
    %640 = vector.broadcast %cst_323 : f32 to vector<8x16xf32>
    %641 = arith.mulf %640, %639 : vector<8x16xf32>
    %642 = math.log %544 : vector<8x16xf32>
    %cst_324 = arith.constant 2.000000e+00 : f32
    %643 = vector.broadcast %cst_324 : f32 to vector<8x16xf32>
    %644 = arith.mulf %643, %642 : vector<8x16xf32>
    %645 = arith.subf %641, %644 : vector<8x16xf32>
    %646 = arith.mulf %544, %544 : vector<8x16xf32>
    %647 = arith.subf %535, %557 : vector<8x16xf32>
    %648 = arith.mulf %647, %647 : vector<8x16xf32>
    %649 = arith.addf %646, %648 : vector<8x16xf32>
    %650 = arith.mulf %566, %566 : vector<8x16xf32>
    %651 = arith.divf %649, %650 : vector<8x16xf32>
    %652 = arith.addf %645, %651 : vector<8x16xf32>
    %cst_325 = arith.constant 1.000000e+00 : f32
    %653 = vector.broadcast %cst_325 : f32 to vector<8x16xf32>
    %654 = arith.subf %652, %653 : vector<8x16xf32>
    %655 = arith.addf %492, %654 : vector<8x16xf32>
    %c4_i32 = arith.constant 4 : i32
    %656 = arith.index_cast %c4_i32 : i32 to index
    %c0_326 = arith.constant 0 : index
    %c0_327 = arith.constant 0 : index
    %657 = vector.load %arg0[%656, %c0_326, %c0_327] : memref<8x8x16xf32, #tpu.memory_space<vmem>>, vector<1x8x16xf32>
    %658 = vector.shape_cast %657 : vector<1x8x16xf32> to vector<8x16xf32>
    %659 = arith.index_cast %c4_i32 : i32 to index
    %c0_328 = arith.constant 0 : index
    %c0_329 = arith.constant 0 : index
    %660 = vector.load %arg1[%659, %c0_328, %c0_329] : memref<8x8x16xf32, #tpu.memory_space<vmem>>, vector<1x8x16xf32>
    %661 = vector.shape_cast %660 : vector<1x8x16xf32> to vector<8x16xf32>
    %c0_330 = arith.constant 0 : index
    %c0_331 = arith.constant 0 : index
    %662 = vector.load %arg2[%c0_330, %c0_331] : memref<16x32xf32, #tpu.memory_space<vmem>>, vector<16x32xf32>
    %cst_332 = arith.constant dense<0.000000e+00> : vector<8x32xf32>
    %663 = tpu.matmul %658, %662, %cst_332 {dimension_numbers = #tpu.dot_dimension_numbers<[1], [0], [0], [1], [0, 0, 1, 1], [], []>} : vector<8x16xf32>, vector<16x32xf32>, vector<8x32xf32> -> vector<8x32xf32>
    %c0_333 = arith.constant 0 : index
    %c0_334 = arith.constant 0 : index
    %664 = vector.load %arg3[%c0_333, %c0_334] : memref<1x32xf32, #tpu.memory_space<vmem>>, vector<1x32xf32>
    %665 = vector.broadcast %664 : vector<1x32xf32> to vector<8x32xf32>
    %666 = arith.addf %663, %665 : vector<8x32xf32>
    %cst_335 = arith.constant 0.000000e+00 : f32
    %667 = vector.broadcast %cst_335 : f32 to vector<8x32xf32>
    %668 = arith.maximumf %666, %667 : vector<8x32xf32>
    %c0_336 = arith.constant 0 : index
    %c0_337 = arith.constant 0 : index
    %669 = vector.load %arg4[%c0_336, %c0_337] : memref<32x32xf32, #tpu.memory_space<vmem>>, vector<32x32xf32>
    %cst_338 = arith.constant dense<0.000000e+00> : vector<8x32xf32>
    %670 = tpu.matmul %668, %669, %cst_338 {dimension_numbers = #tpu.dot_dimension_numbers<[1], [0], [0], [1], [0, 0, 1, 1], [], []>} : vector<8x32xf32>, vector<32x32xf32>, vector<8x32xf32> -> vector<8x32xf32>
    %c0_339 = arith.constant 0 : index
    %c0_340 = arith.constant 0 : index
    %671 = vector.load %arg5[%c0_339, %c0_340] : memref<1x32xf32, #tpu.memory_space<vmem>>, vector<1x32xf32>
    %672 = vector.broadcast %671 : vector<1x32xf32> to vector<8x32xf32>
    %673 = arith.addf %670, %672 : vector<8x32xf32>
    %cst_341 = arith.constant 0.000000e+00 : f32
    %674 = vector.broadcast %cst_341 : f32 to vector<8x32xf32>
    %675 = arith.maximumf %673, %674 : vector<8x32xf32>
    %c0_342 = arith.constant 0 : index
    %c0_343 = arith.constant 0 : index
    %676 = vector.load %arg8[%c0_342, %c0_343] : memref<32x32xf32, #tpu.memory_space<vmem>>, vector<32x32xf32>
    %cst_344 = arith.constant dense<0.000000e+00> : vector<8x32xf32>
    %677 = tpu.matmul %675, %676, %cst_344 {dimension_numbers = #tpu.dot_dimension_numbers<[1], [0], [0], [1], [0, 0, 1, 1], [], []>} : vector<8x32xf32>, vector<32x32xf32>, vector<8x32xf32> -> vector<8x32xf32>
    %c0_345 = arith.constant 0 : index
    %c0_346 = arith.constant 0 : index
    %678 = vector.load %arg9[%c0_345, %c0_346] : memref<32x32xf32, #tpu.memory_space<vmem>>, vector<32x32xf32>
    %cst_347 = arith.constant dense<0.000000e+00> : vector<8x32xf32>
    %679 = tpu.matmul %638, %678, %cst_347 {dimension_numbers = #tpu.dot_dimension_numbers<[1], [0], [0], [1], [0, 0, 1, 1], [], []>} : vector<8x32xf32>, vector<32x32xf32>, vector<8x32xf32> -> vector<8x32xf32>
    %680 = arith.addf %677, %679 : vector<8x32xf32>
    %c0_348 = arith.constant 0 : index
    %c0_349 = arith.constant 0 : index
    %681 = vector.load %arg10[%c0_348, %c0_349] : memref<1x32xf32, #tpu.memory_space<vmem>>, vector<1x32xf32>
    %682 = vector.broadcast %681 : vector<1x32xf32> to vector<8x32xf32>
    %683 = arith.addf %680, %682 : vector<8x32xf32>
    %cst_350 = arith.constant 0.000000e+00 : f32
    %684 = vector.broadcast %cst_350 : f32 to vector<8x32xf32>
    %685 = arith.maximumf %683, %684 : vector<8x32xf32>
    %c0_351 = arith.constant 0 : index
    %c0_352 = arith.constant 0 : index
    %686 = vector.load %arg11[%c0_351, %c0_352] : memref<32x32xf32, #tpu.memory_space<vmem>>, vector<32x32xf32>
    %cst_353 = arith.constant dense<0.000000e+00> : vector<8x32xf32>
    %687 = tpu.matmul %685, %686, %cst_353 {dimension_numbers = #tpu.dot_dimension_numbers<[1], [0], [0], [1], [0, 0, 1, 1], [], []>} : vector<8x32xf32>, vector<32x32xf32>, vector<8x32xf32> -> vector<8x32xf32>
    %c0_354 = arith.constant 0 : index
    %c0_355 = arith.constant 0 : index
    %688 = vector.load %arg12[%c0_354, %c0_355] : memref<1x32xf32, #tpu.memory_space<vmem>>, vector<1x32xf32>
    %689 = vector.broadcast %688 : vector<1x32xf32> to vector<8x32xf32>
    %690 = arith.addf %687, %689 : vector<8x32xf32>
    %cst_356 = arith.constant 0.000000e+00 : f32
    %691 = vector.broadcast %cst_356 : f32 to vector<8x32xf32>
    %692 = arith.maximumf %690, %691 : vector<8x32xf32>
    %c0_357 = arith.constant 0 : index
    %c0_358 = arith.constant 0 : index
    %693 = vector.load %arg13[%c0_357, %c0_358] : memref<32x32xf32, #tpu.memory_space<vmem>>, vector<32x32xf32>
    %cst_359 = arith.constant dense<0.000000e+00> : vector<8x32xf32>
    %694 = tpu.matmul %692, %693, %cst_359 {dimension_numbers = #tpu.dot_dimension_numbers<[1], [0], [0], [1], [0, 0, 1, 1], [], []>} : vector<8x32xf32>, vector<32x32xf32>, vector<8x32xf32> -> vector<8x32xf32>
    %c0_360 = arith.constant 0 : index
    %c0_361 = arith.constant 0 : index
    %695 = vector.load %arg14[%c0_360, %c0_361] : memref<1x32xf32, #tpu.memory_space<vmem>>, vector<1x32xf32>
    %696 = vector.broadcast %695 : vector<1x32xf32> to vector<8x32xf32>
    %697 = arith.addf %694, %696 : vector<8x32xf32>
    %698 = vector.extract_strided_slice %697 {offsets = [0, 0], sizes = [8, 16], strides = [1, 1]} : vector<8x32xf32> to vector<8x16xf32>
    %699 = vector.extract_strided_slice %697 {offsets = [0, 16], sizes = [8, 16], strides = [1, 1]} : vector<8x32xf32> to vector<8x16xf32>
    %cst_362 = arith.constant 0.000000e+00 : f32
    %700 = vector.broadcast %cst_362 : f32 to vector<8x16xf32>
    %701 = arith.maximumf %699, %700 : vector<8x16xf32>
    %702 = math.absf %699 : vector<8x16xf32>
    %cst_363 = arith.constant 0.000000e+00 : f32
    %703 = vector.broadcast %cst_363 : f32 to vector<8x16xf32>
    %704 = arith.subf %703, %702 : vector<8x16xf32>
    %705 = math.exp %704 : vector<8x16xf32>
    %706 = math.log1p %705 : vector<8x16xf32>
    %707 = arith.addf %701, %706 : vector<8x16xf32>
    %c0_364 = arith.constant 0 : index
    %c0_365 = arith.constant 0 : index
    %708 = vector.load %arg15[%c0_364, %c0_365] : memref<32x32xf32, #tpu.memory_space<vmem>>, vector<32x32xf32>
    %cst_366 = arith.constant dense<0.000000e+00> : vector<8x32xf32>
    %709 = tpu.matmul %638, %708, %cst_366 {dimension_numbers = #tpu.dot_dimension_numbers<[1], [0], [0], [1], [0, 0, 1, 1], [], []>} : vector<8x32xf32>, vector<32x32xf32>, vector<8x32xf32> -> vector<8x32xf32>
    %c0_367 = arith.constant 0 : index
    %c0_368 = arith.constant 0 : index
    %710 = vector.load %arg16[%c0_367, %c0_368] : memref<1x32xf32, #tpu.memory_space<vmem>>, vector<1x32xf32>
    %711 = vector.broadcast %710 : vector<1x32xf32> to vector<8x32xf32>
    %712 = arith.addf %709, %711 : vector<8x32xf32>
    %cst_369 = arith.constant 0.000000e+00 : f32
    %713 = vector.broadcast %cst_369 : f32 to vector<8x32xf32>
    %714 = arith.maximumf %712, %713 : vector<8x32xf32>
    %c0_370 = arith.constant 0 : index
    %c0_371 = arith.constant 0 : index
    %715 = vector.load %arg17[%c0_370, %c0_371] : memref<32x32xf32, #tpu.memory_space<vmem>>, vector<32x32xf32>
    %cst_372 = arith.constant dense<0.000000e+00> : vector<8x32xf32>
    %716 = tpu.matmul %714, %715, %cst_372 {dimension_numbers = #tpu.dot_dimension_numbers<[1], [0], [0], [1], [0, 0, 1, 1], [], []>} : vector<8x32xf32>, vector<32x32xf32>, vector<8x32xf32> -> vector<8x32xf32>
    %c0_373 = arith.constant 0 : index
    %c0_374 = arith.constant 0 : index
    %717 = vector.load %arg18[%c0_373, %c0_374] : memref<1x32xf32, #tpu.memory_space<vmem>>, vector<1x32xf32>
    %718 = vector.broadcast %717 : vector<1x32xf32> to vector<8x32xf32>
    %719 = arith.addf %716, %718 : vector<8x32xf32>
    %720 = vector.extract_strided_slice %719 {offsets = [0, 0], sizes = [8, 16], strides = [1, 1]} : vector<8x32xf32> to vector<8x16xf32>
    %721 = vector.extract_strided_slice %719 {offsets = [0, 16], sizes = [8, 16], strides = [1, 1]} : vector<8x32xf32> to vector<8x16xf32>
    %cst_375 = arith.constant 0.000000e+00 : f32
    %722 = vector.broadcast %cst_375 : f32 to vector<8x16xf32>
    %723 = arith.maximumf %721, %722 : vector<8x16xf32>
    %724 = math.absf %721 : vector<8x16xf32>
    %cst_376 = arith.constant 0.000000e+00 : f32
    %725 = vector.broadcast %cst_376 : f32 to vector<8x16xf32>
    %726 = arith.subf %725, %724 : vector<8x16xf32>
    %727 = math.exp %726 : vector<8x16xf32>
    %728 = math.log1p %727 : vector<8x16xf32>
    %729 = arith.addf %723, %728 : vector<8x16xf32>
    %730 = arith.mulf %661, %707 : vector<8x16xf32>
    %731 = arith.addf %730, %698 : vector<8x16xf32>
    %c0_377 = arith.constant 0 : index
    %c0_378 = arith.constant 0 : index
    %732 = vector.load %arg6[%c0_377, %c0_378] : memref<16x32xf32, #tpu.memory_space<vmem>>, vector<16x32xf32>
    %cst_379 = arith.constant dense<0.000000e+00> : vector<8x32xf32>
    %733 = tpu.matmul %731, %732, %cst_379 {dimension_numbers = #tpu.dot_dimension_numbers<[1], [0], [0], [1], [0, 0, 1, 1], [], []>} : vector<8x16xf32>, vector<16x32xf32>, vector<8x32xf32> -> vector<8x32xf32>
    %c0_380 = arith.constant 0 : index
    %c0_381 = arith.constant 0 : index
    %734 = vector.load %arg7[%c0_380, %c0_381] : memref<1x32xf32, #tpu.memory_space<vmem>>, vector<1x32xf32>
    %735 = vector.broadcast %734 : vector<1x32xf32> to vector<8x32xf32>
    %736 = arith.addf %733, %735 : vector<8x32xf32>
    %cst_382 = arith.constant 0.000000e+00 : f32
    %737 = vector.broadcast %cst_382 : f32 to vector<8x32xf32>
    %738 = arith.maximumf %736, %737 : vector<8x32xf32>
    %c0_383 = arith.constant 0 : index
    %c0_384 = arith.constant 0 : index
    %739 = vector.load %arg19[%c0_383, %c0_384] : memref<32x96xf32, #tpu.memory_space<vmem>>, vector<32x96xf32>
    %cst_385 = arith.constant dense<0.000000e+00> : vector<8x96xf32>
    %740 = tpu.matmul %675, %739, %cst_385 {dimension_numbers = #tpu.dot_dimension_numbers<[1], [0], [0], [1], [0, 0, 1, 1], [], []>} : vector<8x32xf32>, vector<32x96xf32>, vector<8x96xf32> -> vector<8x96xf32>
    %c0_386 = arith.constant 0 : index
    %c0_387 = arith.constant 0 : index
    %741 = vector.load %arg20[%c0_386, %c0_387] : memref<32x96xf32, #tpu.memory_space<vmem>>, vector<32x96xf32>
    %cst_388 = arith.constant dense<0.000000e+00> : vector<8x96xf32>
    %742 = tpu.matmul %738, %741, %cst_388 {dimension_numbers = #tpu.dot_dimension_numbers<[1], [0], [0], [1], [0, 0, 1, 1], [], []>} : vector<8x32xf32>, vector<32x96xf32>, vector<8x96xf32> -> vector<8x96xf32>
    %743 = arith.addf %740, %742 : vector<8x96xf32>
    %c0_389 = arith.constant 0 : index
    %c0_390 = arith.constant 0 : index
    %744 = vector.load %arg21[%c0_389, %c0_390] : memref<32x96xf32, #tpu.memory_space<vmem>>, vector<32x96xf32>
    %cst_391 = arith.constant dense<0.000000e+00> : vector<8x96xf32>
    %745 = tpu.matmul %608, %744, %cst_391 {dimension_numbers = #tpu.dot_dimension_numbers<[1], [0], [0], [1], [0, 0, 1, 1], [], []>} : vector<8x32xf32>, vector<32x96xf32>, vector<8x96xf32> -> vector<8x96xf32>
    %746 = vector.extract_strided_slice %743 {offsets = [0, 0], sizes = [8, 32], strides = [1, 1]} : vector<8x96xf32> to vector<8x32xf32>
    %747 = vector.extract_strided_slice %745 {offsets = [0, 0], sizes = [8, 32], strides = [1, 1]} : vector<8x96xf32> to vector<8x32xf32>
    %748 = arith.addf %746, %747 : vector<8x32xf32>
    %749 = arith.negf %748 : vector<8x32xf32>
    %750 = math.exp %749 : vector<8x32xf32>
    %cst_392 = arith.constant 1.000000e+00 : f32
    %751 = vector.broadcast %cst_392 : f32 to vector<8x32xf32>
    %752 = arith.addf %751, %750 : vector<8x32xf32>
    %753 = arith.divf %751, %752 : vector<8x32xf32>
    %754 = vector.extract_strided_slice %743 {offsets = [0, 32], sizes = [8, 32], strides = [1, 1]} : vector<8x96xf32> to vector<8x32xf32>
    %755 = vector.extract_strided_slice %745 {offsets = [0, 32], sizes = [8, 32], strides = [1, 1]} : vector<8x96xf32> to vector<8x32xf32>
    %756 = arith.addf %754, %755 : vector<8x32xf32>
    %757 = arith.negf %756 : vector<8x32xf32>
    %758 = math.exp %757 : vector<8x32xf32>
    %cst_393 = arith.constant 1.000000e+00 : f32
    %759 = vector.broadcast %cst_393 : f32 to vector<8x32xf32>
    %760 = arith.addf %759, %758 : vector<8x32xf32>
    %761 = arith.divf %759, %760 : vector<8x32xf32>
    %762 = vector.extract_strided_slice %743 {offsets = [0, 64], sizes = [8, 32], strides = [1, 1]} : vector<8x96xf32> to vector<8x32xf32>
    %763 = vector.extract_strided_slice %745 {offsets = [0, 64], sizes = [8, 32], strides = [1, 1]} : vector<8x96xf32> to vector<8x32xf32>
    %764 = arith.mulf %753, %763 : vector<8x32xf32>
    %765 = arith.addf %762, %764 : vector<8x32xf32>
    %766 = math.tanh %765 : vector<8x32xf32>
    %cst_394 = arith.constant 1.000000e+00 : f32
    %767 = vector.broadcast %cst_394 : f32 to vector<8x32xf32>
    %768 = arith.subf %767, %761 : vector<8x32xf32>
    %769 = arith.mulf %768, %766 : vector<8x32xf32>
    %770 = arith.mulf %761, %608 : vector<8x32xf32>
    %771 = arith.addf %769, %770 : vector<8x32xf32>
    %c0_395 = arith.constant 0 : index
    %c0_396 = arith.constant 0 : index
    %772 = vector.load %arg22[%c0_395, %c0_396] : memref<32x96xf32, #tpu.memory_space<vmem>>, vector<32x96xf32>
    %cst_397 = arith.constant dense<0.000000e+00> : vector<8x96xf32>
    %773 = tpu.matmul %771, %772, %cst_397 {dimension_numbers = #tpu.dot_dimension_numbers<[1], [0], [0], [1], [0, 0, 1, 1], [], []>} : vector<8x32xf32>, vector<32x96xf32>, vector<8x96xf32> -> vector<8x96xf32>
    %c0_398 = arith.constant 0 : index
    %c0_399 = arith.constant 0 : index
    %774 = vector.load %arg23[%c0_398, %c0_399] : memref<32x96xf32, #tpu.memory_space<vmem>>, vector<32x96xf32>
    %cst_400 = arith.constant dense<0.000000e+00> : vector<8x96xf32>
    %775 = tpu.matmul %638, %774, %cst_400 {dimension_numbers = #tpu.dot_dimension_numbers<[1], [0], [0], [1], [0, 0, 1, 1], [], []>} : vector<8x32xf32>, vector<32x96xf32>, vector<8x96xf32> -> vector<8x96xf32>
    %776 = vector.extract_strided_slice %773 {offsets = [0, 0], sizes = [8, 32], strides = [1, 1]} : vector<8x96xf32> to vector<8x32xf32>
    %777 = vector.extract_strided_slice %775 {offsets = [0, 0], sizes = [8, 32], strides = [1, 1]} : vector<8x96xf32> to vector<8x32xf32>
    %778 = arith.addf %776, %777 : vector<8x32xf32>
    %779 = arith.negf %778 : vector<8x32xf32>
    %780 = math.exp %779 : vector<8x32xf32>
    %cst_401 = arith.constant 1.000000e+00 : f32
    %781 = vector.broadcast %cst_401 : f32 to vector<8x32xf32>
    %782 = arith.addf %781, %780 : vector<8x32xf32>
    %783 = arith.divf %781, %782 : vector<8x32xf32>
    %784 = vector.extract_strided_slice %773 {offsets = [0, 32], sizes = [8, 32], strides = [1, 1]} : vector<8x96xf32> to vector<8x32xf32>
    %785 = vector.extract_strided_slice %775 {offsets = [0, 32], sizes = [8, 32], strides = [1, 1]} : vector<8x96xf32> to vector<8x32xf32>
    %786 = arith.addf %784, %785 : vector<8x32xf32>
    %787 = arith.negf %786 : vector<8x32xf32>
    %788 = math.exp %787 : vector<8x32xf32>
    %cst_402 = arith.constant 1.000000e+00 : f32
    %789 = vector.broadcast %cst_402 : f32 to vector<8x32xf32>
    %790 = arith.addf %789, %788 : vector<8x32xf32>
    %791 = arith.divf %789, %790 : vector<8x32xf32>
    %792 = vector.extract_strided_slice %773 {offsets = [0, 64], sizes = [8, 32], strides = [1, 1]} : vector<8x96xf32> to vector<8x32xf32>
    %793 = vector.extract_strided_slice %775 {offsets = [0, 64], sizes = [8, 32], strides = [1, 1]} : vector<8x96xf32> to vector<8x32xf32>
    %794 = arith.mulf %783, %793 : vector<8x32xf32>
    %795 = arith.addf %792, %794 : vector<8x32xf32>
    %796 = math.tanh %795 : vector<8x32xf32>
    %cst_403 = arith.constant 1.000000e+00 : f32
    %797 = vector.broadcast %cst_403 : f32 to vector<8x32xf32>
    %798 = arith.subf %797, %791 : vector<8x32xf32>
    %799 = arith.mulf %798, %796 : vector<8x32xf32>
    %800 = arith.mulf %791, %638 : vector<8x32xf32>
    %801 = arith.addf %799, %800 : vector<8x32xf32>
    %802 = math.log %729 : vector<8x16xf32>
    %cst_404 = arith.constant 2.000000e+00 : f32
    %803 = vector.broadcast %cst_404 : f32 to vector<8x16xf32>
    %804 = arith.mulf %803, %802 : vector<8x16xf32>
    %805 = math.log %707 : vector<8x16xf32>
    %cst_405 = arith.constant 2.000000e+00 : f32
    %806 = vector.broadcast %cst_405 : f32 to vector<8x16xf32>
    %807 = arith.mulf %806, %805 : vector<8x16xf32>
    %808 = arith.subf %804, %807 : vector<8x16xf32>
    %809 = arith.mulf %707, %707 : vector<8x16xf32>
    %810 = arith.subf %698, %720 : vector<8x16xf32>
    %811 = arith.mulf %810, %810 : vector<8x16xf32>
    %812 = arith.addf %809, %811 : vector<8x16xf32>
    %813 = arith.mulf %729, %729 : vector<8x16xf32>
    %814 = arith.divf %812, %813 : vector<8x16xf32>
    %815 = arith.addf %808, %814 : vector<8x16xf32>
    %cst_406 = arith.constant 1.000000e+00 : f32
    %816 = vector.broadcast %cst_406 : f32 to vector<8x16xf32>
    %817 = arith.subf %815, %816 : vector<8x16xf32>
    %818 = arith.addf %655, %817 : vector<8x16xf32>
    %c5_i32 = arith.constant 5 : i32
    %819 = arith.index_cast %c5_i32 : i32 to index
    %c0_407 = arith.constant 0 : index
    %c0_408 = arith.constant 0 : index
    %820 = vector.load %arg0[%819, %c0_407, %c0_408] : memref<8x8x16xf32, #tpu.memory_space<vmem>>, vector<1x8x16xf32>
    %821 = vector.shape_cast %820 : vector<1x8x16xf32> to vector<8x16xf32>
    %822 = arith.index_cast %c5_i32 : i32 to index
    %c0_409 = arith.constant 0 : index
    %c0_410 = arith.constant 0 : index
    %823 = vector.load %arg1[%822, %c0_409, %c0_410] : memref<8x8x16xf32, #tpu.memory_space<vmem>>, vector<1x8x16xf32>
    %824 = vector.shape_cast %823 : vector<1x8x16xf32> to vector<8x16xf32>
    %c0_411 = arith.constant 0 : index
    %c0_412 = arith.constant 0 : index
    %825 = vector.load %arg2[%c0_411, %c0_412] : memref<16x32xf32, #tpu.memory_space<vmem>>, vector<16x32xf32>
    %cst_413 = arith.constant dense<0.000000e+00> : vector<8x32xf32>
    %826 = tpu.matmul %821, %825, %cst_413 {dimension_numbers = #tpu.dot_dimension_numbers<[1], [0], [0], [1], [0, 0, 1, 1], [], []>} : vector<8x16xf32>, vector<16x32xf32>, vector<8x32xf32> -> vector<8x32xf32>
    %c0_414 = arith.constant 0 : index
    %c0_415 = arith.constant 0 : index
    %827 = vector.load %arg3[%c0_414, %c0_415] : memref<1x32xf32, #tpu.memory_space<vmem>>, vector<1x32xf32>
    %828 = vector.broadcast %827 : vector<1x32xf32> to vector<8x32xf32>
    %829 = arith.addf %826, %828 : vector<8x32xf32>
    %cst_416 = arith.constant 0.000000e+00 : f32
    %830 = vector.broadcast %cst_416 : f32 to vector<8x32xf32>
    %831 = arith.maximumf %829, %830 : vector<8x32xf32>
    %c0_417 = arith.constant 0 : index
    %c0_418 = arith.constant 0 : index
    %832 = vector.load %arg4[%c0_417, %c0_418] : memref<32x32xf32, #tpu.memory_space<vmem>>, vector<32x32xf32>
    %cst_419 = arith.constant dense<0.000000e+00> : vector<8x32xf32>
    %833 = tpu.matmul %831, %832, %cst_419 {dimension_numbers = #tpu.dot_dimension_numbers<[1], [0], [0], [1], [0, 0, 1, 1], [], []>} : vector<8x32xf32>, vector<32x32xf32>, vector<8x32xf32> -> vector<8x32xf32>
    %c0_420 = arith.constant 0 : index
    %c0_421 = arith.constant 0 : index
    %834 = vector.load %arg5[%c0_420, %c0_421] : memref<1x32xf32, #tpu.memory_space<vmem>>, vector<1x32xf32>
    %835 = vector.broadcast %834 : vector<1x32xf32> to vector<8x32xf32>
    %836 = arith.addf %833, %835 : vector<8x32xf32>
    %cst_422 = arith.constant 0.000000e+00 : f32
    %837 = vector.broadcast %cst_422 : f32 to vector<8x32xf32>
    %838 = arith.maximumf %836, %837 : vector<8x32xf32>
    %c0_423 = arith.constant 0 : index
    %c0_424 = arith.constant 0 : index
    %839 = vector.load %arg8[%c0_423, %c0_424] : memref<32x32xf32, #tpu.memory_space<vmem>>, vector<32x32xf32>
    %cst_425 = arith.constant dense<0.000000e+00> : vector<8x32xf32>
    %840 = tpu.matmul %838, %839, %cst_425 {dimension_numbers = #tpu.dot_dimension_numbers<[1], [0], [0], [1], [0, 0, 1, 1], [], []>} : vector<8x32xf32>, vector<32x32xf32>, vector<8x32xf32> -> vector<8x32xf32>
    %c0_426 = arith.constant 0 : index
    %c0_427 = arith.constant 0 : index
    %841 = vector.load %arg9[%c0_426, %c0_427] : memref<32x32xf32, #tpu.memory_space<vmem>>, vector<32x32xf32>
    %cst_428 = arith.constant dense<0.000000e+00> : vector<8x32xf32>
    %842 = tpu.matmul %801, %841, %cst_428 {dimension_numbers = #tpu.dot_dimension_numbers<[1], [0], [0], [1], [0, 0, 1, 1], [], []>} : vector<8x32xf32>, vector<32x32xf32>, vector<8x32xf32> -> vector<8x32xf32>
    %843 = arith.addf %840, %842 : vector<8x32xf32>
    %c0_429 = arith.constant 0 : index
    %c0_430 = arith.constant 0 : index
    %844 = vector.load %arg10[%c0_429, %c0_430] : memref<1x32xf32, #tpu.memory_space<vmem>>, vector<1x32xf32>
    %845 = vector.broadcast %844 : vector<1x32xf32> to vector<8x32xf32>
    %846 = arith.addf %843, %845 : vector<8x32xf32>
    %cst_431 = arith.constant 0.000000e+00 : f32
    %847 = vector.broadcast %cst_431 : f32 to vector<8x32xf32>
    %848 = arith.maximumf %846, %847 : vector<8x32xf32>
    %c0_432 = arith.constant 0 : index
    %c0_433 = arith.constant 0 : index
    %849 = vector.load %arg11[%c0_432, %c0_433] : memref<32x32xf32, #tpu.memory_space<vmem>>, vector<32x32xf32>
    %cst_434 = arith.constant dense<0.000000e+00> : vector<8x32xf32>
    %850 = tpu.matmul %848, %849, %cst_434 {dimension_numbers = #tpu.dot_dimension_numbers<[1], [0], [0], [1], [0, 0, 1, 1], [], []>} : vector<8x32xf32>, vector<32x32xf32>, vector<8x32xf32> -> vector<8x32xf32>
    %c0_435 = arith.constant 0 : index
    %c0_436 = arith.constant 0 : index
    %851 = vector.load %arg12[%c0_435, %c0_436] : memref<1x32xf32, #tpu.memory_space<vmem>>, vector<1x32xf32>
    %852 = vector.broadcast %851 : vector<1x32xf32> to vector<8x32xf32>
    %853 = arith.addf %850, %852 : vector<8x32xf32>
    %cst_437 = arith.constant 0.000000e+00 : f32
    %854 = vector.broadcast %cst_437 : f32 to vector<8x32xf32>
    %855 = arith.maximumf %853, %854 : vector<8x32xf32>
    %c0_438 = arith.constant 0 : index
    %c0_439 = arith.constant 0 : index
    %856 = vector.load %arg13[%c0_438, %c0_439] : memref<32x32xf32, #tpu.memory_space<vmem>>, vector<32x32xf32>
    %cst_440 = arith.constant dense<0.000000e+00> : vector<8x32xf32>
    %857 = tpu.matmul %855, %856, %cst_440 {dimension_numbers = #tpu.dot_dimension_numbers<[1], [0], [0], [1], [0, 0, 1, 1], [], []>} : vector<8x32xf32>, vector<32x32xf32>, vector<8x32xf32> -> vector<8x32xf32>
    %c0_441 = arith.constant 0 : index
    %c0_442 = arith.constant 0 : index
    %858 = vector.load %arg14[%c0_441, %c0_442] : memref<1x32xf32, #tpu.memory_space<vmem>>, vector<1x32xf32>
    %859 = vector.broadcast %858 : vector<1x32xf32> to vector<8x32xf32>
    %860 = arith.addf %857, %859 : vector<8x32xf32>
    %861 = vector.extract_strided_slice %860 {offsets = [0, 0], sizes = [8, 16], strides = [1, 1]} : vector<8x32xf32> to vector<8x16xf32>
    %862 = vector.extract_strided_slice %860 {offsets = [0, 16], sizes = [8, 16], strides = [1, 1]} : vector<8x32xf32> to vector<8x16xf32>
    %cst_443 = arith.constant 0.000000e+00 : f32
    %863 = vector.broadcast %cst_443 : f32 to vector<8x16xf32>
    %864 = arith.maximumf %862, %863 : vector<8x16xf32>
    %865 = math.absf %862 : vector<8x16xf32>
    %cst_444 = arith.constant 0.000000e+00 : f32
    %866 = vector.broadcast %cst_444 : f32 to vector<8x16xf32>
    %867 = arith.subf %866, %865 : vector<8x16xf32>
    %868 = math.exp %867 : vector<8x16xf32>
    %869 = math.log1p %868 : vector<8x16xf32>
    %870 = arith.addf %864, %869 : vector<8x16xf32>
    %c0_445 = arith.constant 0 : index
    %c0_446 = arith.constant 0 : index
    %871 = vector.load %arg15[%c0_445, %c0_446] : memref<32x32xf32, #tpu.memory_space<vmem>>, vector<32x32xf32>
    %cst_447 = arith.constant dense<0.000000e+00> : vector<8x32xf32>
    %872 = tpu.matmul %801, %871, %cst_447 {dimension_numbers = #tpu.dot_dimension_numbers<[1], [0], [0], [1], [0, 0, 1, 1], [], []>} : vector<8x32xf32>, vector<32x32xf32>, vector<8x32xf32> -> vector<8x32xf32>
    %c0_448 = arith.constant 0 : index
    %c0_449 = arith.constant 0 : index
    %873 = vector.load %arg16[%c0_448, %c0_449] : memref<1x32xf32, #tpu.memory_space<vmem>>, vector<1x32xf32>
    %874 = vector.broadcast %873 : vector<1x32xf32> to vector<8x32xf32>
    %875 = arith.addf %872, %874 : vector<8x32xf32>
    %cst_450 = arith.constant 0.000000e+00 : f32
    %876 = vector.broadcast %cst_450 : f32 to vector<8x32xf32>
    %877 = arith.maximumf %875, %876 : vector<8x32xf32>
    %c0_451 = arith.constant 0 : index
    %c0_452 = arith.constant 0 : index
    %878 = vector.load %arg17[%c0_451, %c0_452] : memref<32x32xf32, #tpu.memory_space<vmem>>, vector<32x32xf32>
    %cst_453 = arith.constant dense<0.000000e+00> : vector<8x32xf32>
    %879 = tpu.matmul %877, %878, %cst_453 {dimension_numbers = #tpu.dot_dimension_numbers<[1], [0], [0], [1], [0, 0, 1, 1], [], []>} : vector<8x32xf32>, vector<32x32xf32>, vector<8x32xf32> -> vector<8x32xf32>
    %c0_454 = arith.constant 0 : index
    %c0_455 = arith.constant 0 : index
    %880 = vector.load %arg18[%c0_454, %c0_455] : memref<1x32xf32, #tpu.memory_space<vmem>>, vector<1x32xf32>
    %881 = vector.broadcast %880 : vector<1x32xf32> to vector<8x32xf32>
    %882 = arith.addf %879, %881 : vector<8x32xf32>
    %883 = vector.extract_strided_slice %882 {offsets = [0, 0], sizes = [8, 16], strides = [1, 1]} : vector<8x32xf32> to vector<8x16xf32>
    %884 = vector.extract_strided_slice %882 {offsets = [0, 16], sizes = [8, 16], strides = [1, 1]} : vector<8x32xf32> to vector<8x16xf32>
    %cst_456 = arith.constant 0.000000e+00 : f32
    %885 = vector.broadcast %cst_456 : f32 to vector<8x16xf32>
    %886 = arith.maximumf %884, %885 : vector<8x16xf32>
    %887 = math.absf %884 : vector<8x16xf32>
    %cst_457 = arith.constant 0.000000e+00 : f32
    %888 = vector.broadcast %cst_457 : f32 to vector<8x16xf32>
    %889 = arith.subf %888, %887 : vector<8x16xf32>
    %890 = math.exp %889 : vector<8x16xf32>
    %891 = math.log1p %890 : vector<8x16xf32>
    %892 = arith.addf %886, %891 : vector<8x16xf32>
    %893 = arith.mulf %824, %870 : vector<8x16xf32>
    %894 = arith.addf %893, %861 : vector<8x16xf32>
    %c0_458 = arith.constant 0 : index
    %c0_459 = arith.constant 0 : index
    %895 = vector.load %arg6[%c0_458, %c0_459] : memref<16x32xf32, #tpu.memory_space<vmem>>, vector<16x32xf32>
    %cst_460 = arith.constant dense<0.000000e+00> : vector<8x32xf32>
    %896 = tpu.matmul %894, %895, %cst_460 {dimension_numbers = #tpu.dot_dimension_numbers<[1], [0], [0], [1], [0, 0, 1, 1], [], []>} : vector<8x16xf32>, vector<16x32xf32>, vector<8x32xf32> -> vector<8x32xf32>
    %c0_461 = arith.constant 0 : index
    %c0_462 = arith.constant 0 : index
    %897 = vector.load %arg7[%c0_461, %c0_462] : memref<1x32xf32, #tpu.memory_space<vmem>>, vector<1x32xf32>
    %898 = vector.broadcast %897 : vector<1x32xf32> to vector<8x32xf32>
    %899 = arith.addf %896, %898 : vector<8x32xf32>
    %cst_463 = arith.constant 0.000000e+00 : f32
    %900 = vector.broadcast %cst_463 : f32 to vector<8x32xf32>
    %901 = arith.maximumf %899, %900 : vector<8x32xf32>
    %c0_464 = arith.constant 0 : index
    %c0_465 = arith.constant 0 : index
    %902 = vector.load %arg19[%c0_464, %c0_465] : memref<32x96xf32, #tpu.memory_space<vmem>>, vector<32x96xf32>
    %cst_466 = arith.constant dense<0.000000e+00> : vector<8x96xf32>
    %903 = tpu.matmul %838, %902, %cst_466 {dimension_numbers = #tpu.dot_dimension_numbers<[1], [0], [0], [1], [0, 0, 1, 1], [], []>} : vector<8x32xf32>, vector<32x96xf32>, vector<8x96xf32> -> vector<8x96xf32>
    %c0_467 = arith.constant 0 : index
    %c0_468 = arith.constant 0 : index
    %904 = vector.load %arg20[%c0_467, %c0_468] : memref<32x96xf32, #tpu.memory_space<vmem>>, vector<32x96xf32>
    %cst_469 = arith.constant dense<0.000000e+00> : vector<8x96xf32>
    %905 = tpu.matmul %901, %904, %cst_469 {dimension_numbers = #tpu.dot_dimension_numbers<[1], [0], [0], [1], [0, 0, 1, 1], [], []>} : vector<8x32xf32>, vector<32x96xf32>, vector<8x96xf32> -> vector<8x96xf32>
    %906 = arith.addf %903, %905 : vector<8x96xf32>
    %c0_470 = arith.constant 0 : index
    %c0_471 = arith.constant 0 : index
    %907 = vector.load %arg21[%c0_470, %c0_471] : memref<32x96xf32, #tpu.memory_space<vmem>>, vector<32x96xf32>
    %cst_472 = arith.constant dense<0.000000e+00> : vector<8x96xf32>
    %908 = tpu.matmul %771, %907, %cst_472 {dimension_numbers = #tpu.dot_dimension_numbers<[1], [0], [0], [1], [0, 0, 1, 1], [], []>} : vector<8x32xf32>, vector<32x96xf32>, vector<8x96xf32> -> vector<8x96xf32>
    %909 = vector.extract_strided_slice %906 {offsets = [0, 0], sizes = [8, 32], strides = [1, 1]} : vector<8x96xf32> to vector<8x32xf32>
    %910 = vector.extract_strided_slice %908 {offsets = [0, 0], sizes = [8, 32], strides = [1, 1]} : vector<8x96xf32> to vector<8x32xf32>
    %911 = arith.addf %909, %910 : vector<8x32xf32>
    %912 = arith.negf %911 : vector<8x32xf32>
    %913 = math.exp %912 : vector<8x32xf32>
    %cst_473 = arith.constant 1.000000e+00 : f32
    %914 = vector.broadcast %cst_473 : f32 to vector<8x32xf32>
    %915 = arith.addf %914, %913 : vector<8x32xf32>
    %916 = arith.divf %914, %915 : vector<8x32xf32>
    %917 = vector.extract_strided_slice %906 {offsets = [0, 32], sizes = [8, 32], strides = [1, 1]} : vector<8x96xf32> to vector<8x32xf32>
    %918 = vector.extract_strided_slice %908 {offsets = [0, 32], sizes = [8, 32], strides = [1, 1]} : vector<8x96xf32> to vector<8x32xf32>
    %919 = arith.addf %917, %918 : vector<8x32xf32>
    %920 = arith.negf %919 : vector<8x32xf32>
    %921 = math.exp %920 : vector<8x32xf32>
    %cst_474 = arith.constant 1.000000e+00 : f32
    %922 = vector.broadcast %cst_474 : f32 to vector<8x32xf32>
    %923 = arith.addf %922, %921 : vector<8x32xf32>
    %924 = arith.divf %922, %923 : vector<8x32xf32>
    %925 = vector.extract_strided_slice %906 {offsets = [0, 64], sizes = [8, 32], strides = [1, 1]} : vector<8x96xf32> to vector<8x32xf32>
    %926 = vector.extract_strided_slice %908 {offsets = [0, 64], sizes = [8, 32], strides = [1, 1]} : vector<8x96xf32> to vector<8x32xf32>
    %927 = arith.mulf %916, %926 : vector<8x32xf32>
    %928 = arith.addf %925, %927 : vector<8x32xf32>
    %929 = math.tanh %928 : vector<8x32xf32>
    %cst_475 = arith.constant 1.000000e+00 : f32
    %930 = vector.broadcast %cst_475 : f32 to vector<8x32xf32>
    %931 = arith.subf %930, %924 : vector<8x32xf32>
    %932 = arith.mulf %931, %929 : vector<8x32xf32>
    %933 = arith.mulf %924, %771 : vector<8x32xf32>
    %934 = arith.addf %932, %933 : vector<8x32xf32>
    %c0_476 = arith.constant 0 : index
    %c0_477 = arith.constant 0 : index
    %935 = vector.load %arg22[%c0_476, %c0_477] : memref<32x96xf32, #tpu.memory_space<vmem>>, vector<32x96xf32>
    %cst_478 = arith.constant dense<0.000000e+00> : vector<8x96xf32>
    %936 = tpu.matmul %934, %935, %cst_478 {dimension_numbers = #tpu.dot_dimension_numbers<[1], [0], [0], [1], [0, 0, 1, 1], [], []>} : vector<8x32xf32>, vector<32x96xf32>, vector<8x96xf32> -> vector<8x96xf32>
    %c0_479 = arith.constant 0 : index
    %c0_480 = arith.constant 0 : index
    %937 = vector.load %arg23[%c0_479, %c0_480] : memref<32x96xf32, #tpu.memory_space<vmem>>, vector<32x96xf32>
    %cst_481 = arith.constant dense<0.000000e+00> : vector<8x96xf32>
    %938 = tpu.matmul %801, %937, %cst_481 {dimension_numbers = #tpu.dot_dimension_numbers<[1], [0], [0], [1], [0, 0, 1, 1], [], []>} : vector<8x32xf32>, vector<32x96xf32>, vector<8x96xf32> -> vector<8x96xf32>
    %939 = vector.extract_strided_slice %936 {offsets = [0, 0], sizes = [8, 32], strides = [1, 1]} : vector<8x96xf32> to vector<8x32xf32>
    %940 = vector.extract_strided_slice %938 {offsets = [0, 0], sizes = [8, 32], strides = [1, 1]} : vector<8x96xf32> to vector<8x32xf32>
    %941 = arith.addf %939, %940 : vector<8x32xf32>
    %942 = arith.negf %941 : vector<8x32xf32>
    %943 = math.exp %942 : vector<8x32xf32>
    %cst_482 = arith.constant 1.000000e+00 : f32
    %944 = vector.broadcast %cst_482 : f32 to vector<8x32xf32>
    %945 = arith.addf %944, %943 : vector<8x32xf32>
    %946 = arith.divf %944, %945 : vector<8x32xf32>
    %947 = vector.extract_strided_slice %936 {offsets = [0, 32], sizes = [8, 32], strides = [1, 1]} : vector<8x96xf32> to vector<8x32xf32>
    %948 = vector.extract_strided_slice %938 {offsets = [0, 32], sizes = [8, 32], strides = [1, 1]} : vector<8x96xf32> to vector<8x32xf32>
    %949 = arith.addf %947, %948 : vector<8x32xf32>
    %950 = arith.negf %949 : vector<8x32xf32>
    %951 = math.exp %950 : vector<8x32xf32>
    %cst_483 = arith.constant 1.000000e+00 : f32
    %952 = vector.broadcast %cst_483 : f32 to vector<8x32xf32>
    %953 = arith.addf %952, %951 : vector<8x32xf32>
    %954 = arith.divf %952, %953 : vector<8x32xf32>
    %955 = vector.extract_strided_slice %936 {offsets = [0, 64], sizes = [8, 32], strides = [1, 1]} : vector<8x96xf32> to vector<8x32xf32>
    %956 = vector.extract_strided_slice %938 {offsets = [0, 64], sizes = [8, 32], strides = [1, 1]} : vector<8x96xf32> to vector<8x32xf32>
    %957 = arith.mulf %946, %956 : vector<8x32xf32>
    %958 = arith.addf %955, %957 : vector<8x32xf32>
    %959 = math.tanh %958 : vector<8x32xf32>
    %cst_484 = arith.constant 1.000000e+00 : f32
    %960 = vector.broadcast %cst_484 : f32 to vector<8x32xf32>
    %961 = arith.subf %960, %954 : vector<8x32xf32>
    %962 = arith.mulf %961, %959 : vector<8x32xf32>
    %963 = arith.mulf %954, %801 : vector<8x32xf32>
    %964 = arith.addf %962, %963 : vector<8x32xf32>
    %965 = math.log %892 : vector<8x16xf32>
    %cst_485 = arith.constant 2.000000e+00 : f32
    %966 = vector.broadcast %cst_485 : f32 to vector<8x16xf32>
    %967 = arith.mulf %966, %965 : vector<8x16xf32>
    %968 = math.log %870 : vector<8x16xf32>
    %cst_486 = arith.constant 2.000000e+00 : f32
    %969 = vector.broadcast %cst_486 : f32 to vector<8x16xf32>
    %970 = arith.mulf %969, %968 : vector<8x16xf32>
    %971 = arith.subf %967, %970 : vector<8x16xf32>
    %972 = arith.mulf %870, %870 : vector<8x16xf32>
    %973 = arith.subf %861, %883 : vector<8x16xf32>
    %974 = arith.mulf %973, %973 : vector<8x16xf32>
    %975 = arith.addf %972, %974 : vector<8x16xf32>
    %976 = arith.mulf %892, %892 : vector<8x16xf32>
    %977 = arith.divf %975, %976 : vector<8x16xf32>
    %978 = arith.addf %971, %977 : vector<8x16xf32>
    %cst_487 = arith.constant 1.000000e+00 : f32
    %979 = vector.broadcast %cst_487 : f32 to vector<8x16xf32>
    %980 = arith.subf %978, %979 : vector<8x16xf32>
    %981 = arith.addf %818, %980 : vector<8x16xf32>
    %c6_i32 = arith.constant 6 : i32
    %982 = arith.index_cast %c6_i32 : i32 to index
    %c0_488 = arith.constant 0 : index
    %c0_489 = arith.constant 0 : index
    %983 = vector.load %arg0[%982, %c0_488, %c0_489] : memref<8x8x16xf32, #tpu.memory_space<vmem>>, vector<1x8x16xf32>
    %984 = vector.shape_cast %983 : vector<1x8x16xf32> to vector<8x16xf32>
    %985 = arith.index_cast %c6_i32 : i32 to index
    %c0_490 = arith.constant 0 : index
    %c0_491 = arith.constant 0 : index
    %986 = vector.load %arg1[%985, %c0_490, %c0_491] : memref<8x8x16xf32, #tpu.memory_space<vmem>>, vector<1x8x16xf32>
    %987 = vector.shape_cast %986 : vector<1x8x16xf32> to vector<8x16xf32>
    %c0_492 = arith.constant 0 : index
    %c0_493 = arith.constant 0 : index
    %988 = vector.load %arg2[%c0_492, %c0_493] : memref<16x32xf32, #tpu.memory_space<vmem>>, vector<16x32xf32>
    %cst_494 = arith.constant dense<0.000000e+00> : vector<8x32xf32>
    %989 = tpu.matmul %984, %988, %cst_494 {dimension_numbers = #tpu.dot_dimension_numbers<[1], [0], [0], [1], [0, 0, 1, 1], [], []>} : vector<8x16xf32>, vector<16x32xf32>, vector<8x32xf32> -> vector<8x32xf32>
    %c0_495 = arith.constant 0 : index
    %c0_496 = arith.constant 0 : index
    %990 = vector.load %arg3[%c0_495, %c0_496] : memref<1x32xf32, #tpu.memory_space<vmem>>, vector<1x32xf32>
    %991 = vector.broadcast %990 : vector<1x32xf32> to vector<8x32xf32>
    %992 = arith.addf %989, %991 : vector<8x32xf32>
    %cst_497 = arith.constant 0.000000e+00 : f32
    %993 = vector.broadcast %cst_497 : f32 to vector<8x32xf32>
    %994 = arith.maximumf %992, %993 : vector<8x32xf32>
    %c0_498 = arith.constant 0 : index
    %c0_499 = arith.constant 0 : index
    %995 = vector.load %arg4[%c0_498, %c0_499] : memref<32x32xf32, #tpu.memory_space<vmem>>, vector<32x32xf32>
    %cst_500 = arith.constant dense<0.000000e+00> : vector<8x32xf32>
    %996 = tpu.matmul %994, %995, %cst_500 {dimension_numbers = #tpu.dot_dimension_numbers<[1], [0], [0], [1], [0, 0, 1, 1], [], []>} : vector<8x32xf32>, vector<32x32xf32>, vector<8x32xf32> -> vector<8x32xf32>
    %c0_501 = arith.constant 0 : index
    %c0_502 = arith.constant 0 : index
    %997 = vector.load %arg5[%c0_501, %c0_502] : memref<1x32xf32, #tpu.memory_space<vmem>>, vector<1x32xf32>
    %998 = vector.broadcast %997 : vector<1x32xf32> to vector<8x32xf32>
    %999 = arith.addf %996, %998 : vector<8x32xf32>
    %cst_503 = arith.constant 0.000000e+00 : f32
    %1000 = vector.broadcast %cst_503 : f32 to vector<8x32xf32>
    %1001 = arith.maximumf %999, %1000 : vector<8x32xf32>
    %c0_504 = arith.constant 0 : index
    %c0_505 = arith.constant 0 : index
    %1002 = vector.load %arg8[%c0_504, %c0_505] : memref<32x32xf32, #tpu.memory_space<vmem>>, vector<32x32xf32>
    %cst_506 = arith.constant dense<0.000000e+00> : vector<8x32xf32>
    %1003 = tpu.matmul %1001, %1002, %cst_506 {dimension_numbers = #tpu.dot_dimension_numbers<[1], [0], [0], [1], [0, 0, 1, 1], [], []>} : vector<8x32xf32>, vector<32x32xf32>, vector<8x32xf32> -> vector<8x32xf32>
    %c0_507 = arith.constant 0 : index
    %c0_508 = arith.constant 0 : index
    %1004 = vector.load %arg9[%c0_507, %c0_508] : memref<32x32xf32, #tpu.memory_space<vmem>>, vector<32x32xf32>
    %cst_509 = arith.constant dense<0.000000e+00> : vector<8x32xf32>
    %1005 = tpu.matmul %964, %1004, %cst_509 {dimension_numbers = #tpu.dot_dimension_numbers<[1], [0], [0], [1], [0, 0, 1, 1], [], []>} : vector<8x32xf32>, vector<32x32xf32>, vector<8x32xf32> -> vector<8x32xf32>
    %1006 = arith.addf %1003, %1005 : vector<8x32xf32>
    %c0_510 = arith.constant 0 : index
    %c0_511 = arith.constant 0 : index
    %1007 = vector.load %arg10[%c0_510, %c0_511] : memref<1x32xf32, #tpu.memory_space<vmem>>, vector<1x32xf32>
    %1008 = vector.broadcast %1007 : vector<1x32xf32> to vector<8x32xf32>
    %1009 = arith.addf %1006, %1008 : vector<8x32xf32>
    %cst_512 = arith.constant 0.000000e+00 : f32
    %1010 = vector.broadcast %cst_512 : f32 to vector<8x32xf32>
    %1011 = arith.maximumf %1009, %1010 : vector<8x32xf32>
    %c0_513 = arith.constant 0 : index
    %c0_514 = arith.constant 0 : index
    %1012 = vector.load %arg11[%c0_513, %c0_514] : memref<32x32xf32, #tpu.memory_space<vmem>>, vector<32x32xf32>
    %cst_515 = arith.constant dense<0.000000e+00> : vector<8x32xf32>
    %1013 = tpu.matmul %1011, %1012, %cst_515 {dimension_numbers = #tpu.dot_dimension_numbers<[1], [0], [0], [1], [0, 0, 1, 1], [], []>} : vector<8x32xf32>, vector<32x32xf32>, vector<8x32xf32> -> vector<8x32xf32>
    %c0_516 = arith.constant 0 : index
    %c0_517 = arith.constant 0 : index
    %1014 = vector.load %arg12[%c0_516, %c0_517] : memref<1x32xf32, #tpu.memory_space<vmem>>, vector<1x32xf32>
    %1015 = vector.broadcast %1014 : vector<1x32xf32> to vector<8x32xf32>
    %1016 = arith.addf %1013, %1015 : vector<8x32xf32>
    %cst_518 = arith.constant 0.000000e+00 : f32
    %1017 = vector.broadcast %cst_518 : f32 to vector<8x32xf32>
    %1018 = arith.maximumf %1016, %1017 : vector<8x32xf32>
    %c0_519 = arith.constant 0 : index
    %c0_520 = arith.constant 0 : index
    %1019 = vector.load %arg13[%c0_519, %c0_520] : memref<32x32xf32, #tpu.memory_space<vmem>>, vector<32x32xf32>
    %cst_521 = arith.constant dense<0.000000e+00> : vector<8x32xf32>
    %1020 = tpu.matmul %1018, %1019, %cst_521 {dimension_numbers = #tpu.dot_dimension_numbers<[1], [0], [0], [1], [0, 0, 1, 1], [], []>} : vector<8x32xf32>, vector<32x32xf32>, vector<8x32xf32> -> vector<8x32xf32>
    %c0_522 = arith.constant 0 : index
    %c0_523 = arith.constant 0 : index
    %1021 = vector.load %arg14[%c0_522, %c0_523] : memref<1x32xf32, #tpu.memory_space<vmem>>, vector<1x32xf32>
    %1022 = vector.broadcast %1021 : vector<1x32xf32> to vector<8x32xf32>
    %1023 = arith.addf %1020, %1022 : vector<8x32xf32>
    %1024 = vector.extract_strided_slice %1023 {offsets = [0, 0], sizes = [8, 16], strides = [1, 1]} : vector<8x32xf32> to vector<8x16xf32>
    %1025 = vector.extract_strided_slice %1023 {offsets = [0, 16], sizes = [8, 16], strides = [1, 1]} : vector<8x32xf32> to vector<8x16xf32>
    %cst_524 = arith.constant 0.000000e+00 : f32
    %1026 = vector.broadcast %cst_524 : f32 to vector<8x16xf32>
    %1027 = arith.maximumf %1025, %1026 : vector<8x16xf32>
    %1028 = math.absf %1025 : vector<8x16xf32>
    %cst_525 = arith.constant 0.000000e+00 : f32
    %1029 = vector.broadcast %cst_525 : f32 to vector<8x16xf32>
    %1030 = arith.subf %1029, %1028 : vector<8x16xf32>
    %1031 = math.exp %1030 : vector<8x16xf32>
    %1032 = math.log1p %1031 : vector<8x16xf32>
    %1033 = arith.addf %1027, %1032 : vector<8x16xf32>
    %c0_526 = arith.constant 0 : index
    %c0_527 = arith.constant 0 : index
    %1034 = vector.load %arg15[%c0_526, %c0_527] : memref<32x32xf32, #tpu.memory_space<vmem>>, vector<32x32xf32>
    %cst_528 = arith.constant dense<0.000000e+00> : vector<8x32xf32>
    %1035 = tpu.matmul %964, %1034, %cst_528 {dimension_numbers = #tpu.dot_dimension_numbers<[1], [0], [0], [1], [0, 0, 1, 1], [], []>} : vector<8x32xf32>, vector<32x32xf32>, vector<8x32xf32> -> vector<8x32xf32>
    %c0_529 = arith.constant 0 : index
    %c0_530 = arith.constant 0 : index
    %1036 = vector.load %arg16[%c0_529, %c0_530] : memref<1x32xf32, #tpu.memory_space<vmem>>, vector<1x32xf32>
    %1037 = vector.broadcast %1036 : vector<1x32xf32> to vector<8x32xf32>
    %1038 = arith.addf %1035, %1037 : vector<8x32xf32>
    %cst_531 = arith.constant 0.000000e+00 : f32
    %1039 = vector.broadcast %cst_531 : f32 to vector<8x32xf32>
    %1040 = arith.maximumf %1038, %1039 : vector<8x32xf32>
    %c0_532 = arith.constant 0 : index
    %c0_533 = arith.constant 0 : index
    %1041 = vector.load %arg17[%c0_532, %c0_533] : memref<32x32xf32, #tpu.memory_space<vmem>>, vector<32x32xf32>
    %cst_534 = arith.constant dense<0.000000e+00> : vector<8x32xf32>
    %1042 = tpu.matmul %1040, %1041, %cst_534 {dimension_numbers = #tpu.dot_dimension_numbers<[1], [0], [0], [1], [0, 0, 1, 1], [], []>} : vector<8x32xf32>, vector<32x32xf32>, vector<8x32xf32> -> vector<8x32xf32>
    %c0_535 = arith.constant 0 : index
    %c0_536 = arith.constant 0 : index
    %1043 = vector.load %arg18[%c0_535, %c0_536] : memref<1x32xf32, #tpu.memory_space<vmem>>, vector<1x32xf32>
    %1044 = vector.broadcast %1043 : vector<1x32xf32> to vector<8x32xf32>
    %1045 = arith.addf %1042, %1044 : vector<8x32xf32>
    %1046 = vector.extract_strided_slice %1045 {offsets = [0, 0], sizes = [8, 16], strides = [1, 1]} : vector<8x32xf32> to vector<8x16xf32>
    %1047 = vector.extract_strided_slice %1045 {offsets = [0, 16], sizes = [8, 16], strides = [1, 1]} : vector<8x32xf32> to vector<8x16xf32>
    %cst_537 = arith.constant 0.000000e+00 : f32
    %1048 = vector.broadcast %cst_537 : f32 to vector<8x16xf32>
    %1049 = arith.maximumf %1047, %1048 : vector<8x16xf32>
    %1050 = math.absf %1047 : vector<8x16xf32>
    %cst_538 = arith.constant 0.000000e+00 : f32
    %1051 = vector.broadcast %cst_538 : f32 to vector<8x16xf32>
    %1052 = arith.subf %1051, %1050 : vector<8x16xf32>
    %1053 = math.exp %1052 : vector<8x16xf32>
    %1054 = math.log1p %1053 : vector<8x16xf32>
    %1055 = arith.addf %1049, %1054 : vector<8x16xf32>
    %1056 = arith.mulf %987, %1033 : vector<8x16xf32>
    %1057 = arith.addf %1056, %1024 : vector<8x16xf32>
    %c0_539 = arith.constant 0 : index
    %c0_540 = arith.constant 0 : index
    %1058 = vector.load %arg6[%c0_539, %c0_540] : memref<16x32xf32, #tpu.memory_space<vmem>>, vector<16x32xf32>
    %cst_541 = arith.constant dense<0.000000e+00> : vector<8x32xf32>
    %1059 = tpu.matmul %1057, %1058, %cst_541 {dimension_numbers = #tpu.dot_dimension_numbers<[1], [0], [0], [1], [0, 0, 1, 1], [], []>} : vector<8x16xf32>, vector<16x32xf32>, vector<8x32xf32> -> vector<8x32xf32>
    %c0_542 = arith.constant 0 : index
    %c0_543 = arith.constant 0 : index
    %1060 = vector.load %arg7[%c0_542, %c0_543] : memref<1x32xf32, #tpu.memory_space<vmem>>, vector<1x32xf32>
    %1061 = vector.broadcast %1060 : vector<1x32xf32> to vector<8x32xf32>
    %1062 = arith.addf %1059, %1061 : vector<8x32xf32>
    %cst_544 = arith.constant 0.000000e+00 : f32
    %1063 = vector.broadcast %cst_544 : f32 to vector<8x32xf32>
    %1064 = arith.maximumf %1062, %1063 : vector<8x32xf32>
    %c0_545 = arith.constant 0 : index
    %c0_546 = arith.constant 0 : index
    %1065 = vector.load %arg19[%c0_545, %c0_546] : memref<32x96xf32, #tpu.memory_space<vmem>>, vector<32x96xf32>
    %cst_547 = arith.constant dense<0.000000e+00> : vector<8x96xf32>
    %1066 = tpu.matmul %1001, %1065, %cst_547 {dimension_numbers = #tpu.dot_dimension_numbers<[1], [0], [0], [1], [0, 0, 1, 1], [], []>} : vector<8x32xf32>, vector<32x96xf32>, vector<8x96xf32> -> vector<8x96xf32>
    %c0_548 = arith.constant 0 : index
    %c0_549 = arith.constant 0 : index
    %1067 = vector.load %arg20[%c0_548, %c0_549] : memref<32x96xf32, #tpu.memory_space<vmem>>, vector<32x96xf32>
    %cst_550 = arith.constant dense<0.000000e+00> : vector<8x96xf32>
    %1068 = tpu.matmul %1064, %1067, %cst_550 {dimension_numbers = #tpu.dot_dimension_numbers<[1], [0], [0], [1], [0, 0, 1, 1], [], []>} : vector<8x32xf32>, vector<32x96xf32>, vector<8x96xf32> -> vector<8x96xf32>
    %1069 = arith.addf %1066, %1068 : vector<8x96xf32>
    %c0_551 = arith.constant 0 : index
    %c0_552 = arith.constant 0 : index
    %1070 = vector.load %arg21[%c0_551, %c0_552] : memref<32x96xf32, #tpu.memory_space<vmem>>, vector<32x96xf32>
    %cst_553 = arith.constant dense<0.000000e+00> : vector<8x96xf32>
    %1071 = tpu.matmul %934, %1070, %cst_553 {dimension_numbers = #tpu.dot_dimension_numbers<[1], [0], [0], [1], [0, 0, 1, 1], [], []>} : vector<8x32xf32>, vector<32x96xf32>, vector<8x96xf32> -> vector<8x96xf32>
    %1072 = vector.extract_strided_slice %1069 {offsets = [0, 0], sizes = [8, 32], strides = [1, 1]} : vector<8x96xf32> to vector<8x32xf32>
    %1073 = vector.extract_strided_slice %1071 {offsets = [0, 0], sizes = [8, 32], strides = [1, 1]} : vector<8x96xf32> to vector<8x32xf32>
    %1074 = arith.addf %1072, %1073 : vector<8x32xf32>
    %1075 = arith.negf %1074 : vector<8x32xf32>
    %1076 = math.exp %1075 : vector<8x32xf32>
    %cst_554 = arith.constant 1.000000e+00 : f32
    %1077 = vector.broadcast %cst_554 : f32 to vector<8x32xf32>
    %1078 = arith.addf %1077, %1076 : vector<8x32xf32>
    %1079 = arith.divf %1077, %1078 : vector<8x32xf32>
    %1080 = vector.extract_strided_slice %1069 {offsets = [0, 32], sizes = [8, 32], strides = [1, 1]} : vector<8x96xf32> to vector<8x32xf32>
    %1081 = vector.extract_strided_slice %1071 {offsets = [0, 32], sizes = [8, 32], strides = [1, 1]} : vector<8x96xf32> to vector<8x32xf32>
    %1082 = arith.addf %1080, %1081 : vector<8x32xf32>
    %1083 = arith.negf %1082 : vector<8x32xf32>
    %1084 = math.exp %1083 : vector<8x32xf32>
    %cst_555 = arith.constant 1.000000e+00 : f32
    %1085 = vector.broadcast %cst_555 : f32 to vector<8x32xf32>
    %1086 = arith.addf %1085, %1084 : vector<8x32xf32>
    %1087 = arith.divf %1085, %1086 : vector<8x32xf32>
    %1088 = vector.extract_strided_slice %1069 {offsets = [0, 64], sizes = [8, 32], strides = [1, 1]} : vector<8x96xf32> to vector<8x32xf32>
    %1089 = vector.extract_strided_slice %1071 {offsets = [0, 64], sizes = [8, 32], strides = [1, 1]} : vector<8x96xf32> to vector<8x32xf32>
    %1090 = arith.mulf %1079, %1089 : vector<8x32xf32>
    %1091 = arith.addf %1088, %1090 : vector<8x32xf32>
    %1092 = math.tanh %1091 : vector<8x32xf32>
    %cst_556 = arith.constant 1.000000e+00 : f32
    %1093 = vector.broadcast %cst_556 : f32 to vector<8x32xf32>
    %1094 = arith.subf %1093, %1087 : vector<8x32xf32>
    %1095 = arith.mulf %1094, %1092 : vector<8x32xf32>
    %1096 = arith.mulf %1087, %934 : vector<8x32xf32>
    %1097 = arith.addf %1095, %1096 : vector<8x32xf32>
    %c0_557 = arith.constant 0 : index
    %c0_558 = arith.constant 0 : index
    %1098 = vector.load %arg22[%c0_557, %c0_558] : memref<32x96xf32, #tpu.memory_space<vmem>>, vector<32x96xf32>
    %cst_559 = arith.constant dense<0.000000e+00> : vector<8x96xf32>
    %1099 = tpu.matmul %1097, %1098, %cst_559 {dimension_numbers = #tpu.dot_dimension_numbers<[1], [0], [0], [1], [0, 0, 1, 1], [], []>} : vector<8x32xf32>, vector<32x96xf32>, vector<8x96xf32> -> vector<8x96xf32>
    %c0_560 = arith.constant 0 : index
    %c0_561 = arith.constant 0 : index
    %1100 = vector.load %arg23[%c0_560, %c0_561] : memref<32x96xf32, #tpu.memory_space<vmem>>, vector<32x96xf32>
    %cst_562 = arith.constant dense<0.000000e+00> : vector<8x96xf32>
    %1101 = tpu.matmul %964, %1100, %cst_562 {dimension_numbers = #tpu.dot_dimension_numbers<[1], [0], [0], [1], [0, 0, 1, 1], [], []>} : vector<8x32xf32>, vector<32x96xf32>, vector<8x96xf32> -> vector<8x96xf32>
    %1102 = vector.extract_strided_slice %1099 {offsets = [0, 0], sizes = [8, 32], strides = [1, 1]} : vector<8x96xf32> to vector<8x32xf32>
    %1103 = vector.extract_strided_slice %1101 {offsets = [0, 0], sizes = [8, 32], strides = [1, 1]} : vector<8x96xf32> to vector<8x32xf32>
    %1104 = arith.addf %1102, %1103 : vector<8x32xf32>
    %1105 = arith.negf %1104 : vector<8x32xf32>
    %1106 = math.exp %1105 : vector<8x32xf32>
    %cst_563 = arith.constant 1.000000e+00 : f32
    %1107 = vector.broadcast %cst_563 : f32 to vector<8x32xf32>
    %1108 = arith.addf %1107, %1106 : vector<8x32xf32>
    %1109 = arith.divf %1107, %1108 : vector<8x32xf32>
    %1110 = vector.extract_strided_slice %1099 {offsets = [0, 32], sizes = [8, 32], strides = [1, 1]} : vector<8x96xf32> to vector<8x32xf32>
    %1111 = vector.extract_strided_slice %1101 {offsets = [0, 32], sizes = [8, 32], strides = [1, 1]} : vector<8x96xf32> to vector<8x32xf32>
    %1112 = arith.addf %1110, %1111 : vector<8x32xf32>
    %1113 = arith.negf %1112 : vector<8x32xf32>
    %1114 = math.exp %1113 : vector<8x32xf32>
    %cst_564 = arith.constant 1.000000e+00 : f32
    %1115 = vector.broadcast %cst_564 : f32 to vector<8x32xf32>
    %1116 = arith.addf %1115, %1114 : vector<8x32xf32>
    %1117 = arith.divf %1115, %1116 : vector<8x32xf32>
    %1118 = vector.extract_strided_slice %1099 {offsets = [0, 64], sizes = [8, 32], strides = [1, 1]} : vector<8x96xf32> to vector<8x32xf32>
    %1119 = vector.extract_strided_slice %1101 {offsets = [0, 64], sizes = [8, 32], strides = [1, 1]} : vector<8x96xf32> to vector<8x32xf32>
    %1120 = arith.mulf %1109, %1119 : vector<8x32xf32>
    %1121 = arith.addf %1118, %1120 : vector<8x32xf32>
    %1122 = math.tanh %1121 : vector<8x32xf32>
    %cst_565 = arith.constant 1.000000e+00 : f32
    %1123 = vector.broadcast %cst_565 : f32 to vector<8x32xf32>
    %1124 = arith.subf %1123, %1117 : vector<8x32xf32>
    %1125 = arith.mulf %1124, %1122 : vector<8x32xf32>
    %1126 = arith.mulf %1117, %964 : vector<8x32xf32>
    %1127 = arith.addf %1125, %1126 : vector<8x32xf32>
    %1128 = math.log %1055 : vector<8x16xf32>
    %cst_566 = arith.constant 2.000000e+00 : f32
    %1129 = vector.broadcast %cst_566 : f32 to vector<8x16xf32>
    %1130 = arith.mulf %1129, %1128 : vector<8x16xf32>
    %1131 = math.log %1033 : vector<8x16xf32>
    %cst_567 = arith.constant 2.000000e+00 : f32
    %1132 = vector.broadcast %cst_567 : f32 to vector<8x16xf32>
    %1133 = arith.mulf %1132, %1131 : vector<8x16xf32>
    %1134 = arith.subf %1130, %1133 : vector<8x16xf32>
    %1135 = arith.mulf %1033, %1033 : vector<8x16xf32>
    %1136 = arith.subf %1024, %1046 : vector<8x16xf32>
    %1137 = arith.mulf %1136, %1136 : vector<8x16xf32>
    %1138 = arith.addf %1135, %1137 : vector<8x16xf32>
    %1139 = arith.mulf %1055, %1055 : vector<8x16xf32>
    %1140 = arith.divf %1138, %1139 : vector<8x16xf32>
    %1141 = arith.addf %1134, %1140 : vector<8x16xf32>
    %cst_568 = arith.constant 1.000000e+00 : f32
    %1142 = vector.broadcast %cst_568 : f32 to vector<8x16xf32>
    %1143 = arith.subf %1141, %1142 : vector<8x16xf32>
    %1144 = arith.addf %981, %1143 : vector<8x16xf32>
    %c7_i32 = arith.constant 7 : i32
    %1145 = arith.index_cast %c7_i32 : i32 to index
    %c0_569 = arith.constant 0 : index
    %c0_570 = arith.constant 0 : index
    %1146 = vector.load %arg0[%1145, %c0_569, %c0_570] : memref<8x8x16xf32, #tpu.memory_space<vmem>>, vector<1x8x16xf32>
    %1147 = vector.shape_cast %1146 : vector<1x8x16xf32> to vector<8x16xf32>
    %1148 = arith.index_cast %c7_i32 : i32 to index
    %c0_571 = arith.constant 0 : index
    %c0_572 = arith.constant 0 : index
    %1149 = vector.load %arg1[%1148, %c0_571, %c0_572] : memref<8x8x16xf32, #tpu.memory_space<vmem>>, vector<1x8x16xf32>
    %1150 = vector.shape_cast %1149 : vector<1x8x16xf32> to vector<8x16xf32>
    %c0_573 = arith.constant 0 : index
    %c0_574 = arith.constant 0 : index
    %1151 = vector.load %arg2[%c0_573, %c0_574] : memref<16x32xf32, #tpu.memory_space<vmem>>, vector<16x32xf32>
    %cst_575 = arith.constant dense<0.000000e+00> : vector<8x32xf32>
    %1152 = tpu.matmul %1147, %1151, %cst_575 {dimension_numbers = #tpu.dot_dimension_numbers<[1], [0], [0], [1], [0, 0, 1, 1], [], []>} : vector<8x16xf32>, vector<16x32xf32>, vector<8x32xf32> -> vector<8x32xf32>
    %c0_576 = arith.constant 0 : index
    %c0_577 = arith.constant 0 : index
    %1153 = vector.load %arg3[%c0_576, %c0_577] : memref<1x32xf32, #tpu.memory_space<vmem>>, vector<1x32xf32>
    %1154 = vector.broadcast %1153 : vector<1x32xf32> to vector<8x32xf32>
    %1155 = arith.addf %1152, %1154 : vector<8x32xf32>
    %cst_578 = arith.constant 0.000000e+00 : f32
    %1156 = vector.broadcast %cst_578 : f32 to vector<8x32xf32>
    %1157 = arith.maximumf %1155, %1156 : vector<8x32xf32>
    %c0_579 = arith.constant 0 : index
    %c0_580 = arith.constant 0 : index
    %1158 = vector.load %arg4[%c0_579, %c0_580] : memref<32x32xf32, #tpu.memory_space<vmem>>, vector<32x32xf32>
    %cst_581 = arith.constant dense<0.000000e+00> : vector<8x32xf32>
    %1159 = tpu.matmul %1157, %1158, %cst_581 {dimension_numbers = #tpu.dot_dimension_numbers<[1], [0], [0], [1], [0, 0, 1, 1], [], []>} : vector<8x32xf32>, vector<32x32xf32>, vector<8x32xf32> -> vector<8x32xf32>
    %c0_582 = arith.constant 0 : index
    %c0_583 = arith.constant 0 : index
    %1160 = vector.load %arg5[%c0_582, %c0_583] : memref<1x32xf32, #tpu.memory_space<vmem>>, vector<1x32xf32>
    %1161 = vector.broadcast %1160 : vector<1x32xf32> to vector<8x32xf32>
    %1162 = arith.addf %1159, %1161 : vector<8x32xf32>
    %cst_584 = arith.constant 0.000000e+00 : f32
    %1163 = vector.broadcast %cst_584 : f32 to vector<8x32xf32>
    %1164 = arith.maximumf %1162, %1163 : vector<8x32xf32>
    %c0_585 = arith.constant 0 : index
    %c0_586 = arith.constant 0 : index
    %1165 = vector.load %arg8[%c0_585, %c0_586] : memref<32x32xf32, #tpu.memory_space<vmem>>, vector<32x32xf32>
    %cst_587 = arith.constant dense<0.000000e+00> : vector<8x32xf32>
    %1166 = tpu.matmul %1164, %1165, %cst_587 {dimension_numbers = #tpu.dot_dimension_numbers<[1], [0], [0], [1], [0, 0, 1, 1], [], []>} : vector<8x32xf32>, vector<32x32xf32>, vector<8x32xf32> -> vector<8x32xf32>
    %c0_588 = arith.constant 0 : index
    %c0_589 = arith.constant 0 : index
    %1167 = vector.load %arg9[%c0_588, %c0_589] : memref<32x32xf32, #tpu.memory_space<vmem>>, vector<32x32xf32>
    %cst_590 = arith.constant dense<0.000000e+00> : vector<8x32xf32>
    %1168 = tpu.matmul %1127, %1167, %cst_590 {dimension_numbers = #tpu.dot_dimension_numbers<[1], [0], [0], [1], [0, 0, 1, 1], [], []>} : vector<8x32xf32>, vector<32x32xf32>, vector<8x32xf32> -> vector<8x32xf32>
    %1169 = arith.addf %1166, %1168 : vector<8x32xf32>
    %c0_591 = arith.constant 0 : index
    %c0_592 = arith.constant 0 : index
    %1170 = vector.load %arg10[%c0_591, %c0_592] : memref<1x32xf32, #tpu.memory_space<vmem>>, vector<1x32xf32>
    %1171 = vector.broadcast %1170 : vector<1x32xf32> to vector<8x32xf32>
    %1172 = arith.addf %1169, %1171 : vector<8x32xf32>
    %cst_593 = arith.constant 0.000000e+00 : f32
    %1173 = vector.broadcast %cst_593 : f32 to vector<8x32xf32>
    %1174 = arith.maximumf %1172, %1173 : vector<8x32xf32>
    %c0_594 = arith.constant 0 : index
    %c0_595 = arith.constant 0 : index
    %1175 = vector.load %arg11[%c0_594, %c0_595] : memref<32x32xf32, #tpu.memory_space<vmem>>, vector<32x32xf32>
    %cst_596 = arith.constant dense<0.000000e+00> : vector<8x32xf32>
    %1176 = tpu.matmul %1174, %1175, %cst_596 {dimension_numbers = #tpu.dot_dimension_numbers<[1], [0], [0], [1], [0, 0, 1, 1], [], []>} : vector<8x32xf32>, vector<32x32xf32>, vector<8x32xf32> -> vector<8x32xf32>
    %c0_597 = arith.constant 0 : index
    %c0_598 = arith.constant 0 : index
    %1177 = vector.load %arg12[%c0_597, %c0_598] : memref<1x32xf32, #tpu.memory_space<vmem>>, vector<1x32xf32>
    %1178 = vector.broadcast %1177 : vector<1x32xf32> to vector<8x32xf32>
    %1179 = arith.addf %1176, %1178 : vector<8x32xf32>
    %cst_599 = arith.constant 0.000000e+00 : f32
    %1180 = vector.broadcast %cst_599 : f32 to vector<8x32xf32>
    %1181 = arith.maximumf %1179, %1180 : vector<8x32xf32>
    %c0_600 = arith.constant 0 : index
    %c0_601 = arith.constant 0 : index
    %1182 = vector.load %arg13[%c0_600, %c0_601] : memref<32x32xf32, #tpu.memory_space<vmem>>, vector<32x32xf32>
    %cst_602 = arith.constant dense<0.000000e+00> : vector<8x32xf32>
    %1183 = tpu.matmul %1181, %1182, %cst_602 {dimension_numbers = #tpu.dot_dimension_numbers<[1], [0], [0], [1], [0, 0, 1, 1], [], []>} : vector<8x32xf32>, vector<32x32xf32>, vector<8x32xf32> -> vector<8x32xf32>
    %c0_603 = arith.constant 0 : index
    %c0_604 = arith.constant 0 : index
    %1184 = vector.load %arg14[%c0_603, %c0_604] : memref<1x32xf32, #tpu.memory_space<vmem>>, vector<1x32xf32>
    %1185 = vector.broadcast %1184 : vector<1x32xf32> to vector<8x32xf32>
    %1186 = arith.addf %1183, %1185 : vector<8x32xf32>
    %1187 = vector.extract_strided_slice %1186 {offsets = [0, 0], sizes = [8, 16], strides = [1, 1]} : vector<8x32xf32> to vector<8x16xf32>
    %1188 = vector.extract_strided_slice %1186 {offsets = [0, 16], sizes = [8, 16], strides = [1, 1]} : vector<8x32xf32> to vector<8x16xf32>
    %cst_605 = arith.constant 0.000000e+00 : f32
    %1189 = vector.broadcast %cst_605 : f32 to vector<8x16xf32>
    %1190 = arith.maximumf %1188, %1189 : vector<8x16xf32>
    %1191 = math.absf %1188 : vector<8x16xf32>
    %cst_606 = arith.constant 0.000000e+00 : f32
    %1192 = vector.broadcast %cst_606 : f32 to vector<8x16xf32>
    %1193 = arith.subf %1192, %1191 : vector<8x16xf32>
    %1194 = math.exp %1193 : vector<8x16xf32>
    %1195 = math.log1p %1194 : vector<8x16xf32>
    %1196 = arith.addf %1190, %1195 : vector<8x16xf32>
    %c0_607 = arith.constant 0 : index
    %c0_608 = arith.constant 0 : index
    %1197 = vector.load %arg15[%c0_607, %c0_608] : memref<32x32xf32, #tpu.memory_space<vmem>>, vector<32x32xf32>
    %cst_609 = arith.constant dense<0.000000e+00> : vector<8x32xf32>
    %1198 = tpu.matmul %1127, %1197, %cst_609 {dimension_numbers = #tpu.dot_dimension_numbers<[1], [0], [0], [1], [0, 0, 1, 1], [], []>} : vector<8x32xf32>, vector<32x32xf32>, vector<8x32xf32> -> vector<8x32xf32>
    %c0_610 = arith.constant 0 : index
    %c0_611 = arith.constant 0 : index
    %1199 = vector.load %arg16[%c0_610, %c0_611] : memref<1x32xf32, #tpu.memory_space<vmem>>, vector<1x32xf32>
    %1200 = vector.broadcast %1199 : vector<1x32xf32> to vector<8x32xf32>
    %1201 = arith.addf %1198, %1200 : vector<8x32xf32>
    %cst_612 = arith.constant 0.000000e+00 : f32
    %1202 = vector.broadcast %cst_612 : f32 to vector<8x32xf32>
    %1203 = arith.maximumf %1201, %1202 : vector<8x32xf32>
    %c0_613 = arith.constant 0 : index
    %c0_614 = arith.constant 0 : index
    %1204 = vector.load %arg17[%c0_613, %c0_614] : memref<32x32xf32, #tpu.memory_space<vmem>>, vector<32x32xf32>
    %cst_615 = arith.constant dense<0.000000e+00> : vector<8x32xf32>
    %1205 = tpu.matmul %1203, %1204, %cst_615 {dimension_numbers = #tpu.dot_dimension_numbers<[1], [0], [0], [1], [0, 0, 1, 1], [], []>} : vector<8x32xf32>, vector<32x32xf32>, vector<8x32xf32> -> vector<8x32xf32>
    %c0_616 = arith.constant 0 : index
    %c0_617 = arith.constant 0 : index
    %1206 = vector.load %arg18[%c0_616, %c0_617] : memref<1x32xf32, #tpu.memory_space<vmem>>, vector<1x32xf32>
    %1207 = vector.broadcast %1206 : vector<1x32xf32> to vector<8x32xf32>
    %1208 = arith.addf %1205, %1207 : vector<8x32xf32>
    %1209 = vector.extract_strided_slice %1208 {offsets = [0, 0], sizes = [8, 16], strides = [1, 1]} : vector<8x32xf32> to vector<8x16xf32>
    %1210 = vector.extract_strided_slice %1208 {offsets = [0, 16], sizes = [8, 16], strides = [1, 1]} : vector<8x32xf32> to vector<8x16xf32>
    %cst_618 = arith.constant 0.000000e+00 : f32
    %1211 = vector.broadcast %cst_618 : f32 to vector<8x16xf32>
    %1212 = arith.maximumf %1210, %1211 : vector<8x16xf32>
    %1213 = math.absf %1210 : vector<8x16xf32>
    %cst_619 = arith.constant 0.000000e+00 : f32
    %1214 = vector.broadcast %cst_619 : f32 to vector<8x16xf32>
    %1215 = arith.subf %1214, %1213 : vector<8x16xf32>
    %1216 = math.exp %1215 : vector<8x16xf32>
    %1217 = math.log1p %1216 : vector<8x16xf32>
    %1218 = arith.addf %1212, %1217 : vector<8x16xf32>
    %1219 = arith.mulf %1150, %1196 : vector<8x16xf32>
    %1220 = arith.addf %1219, %1187 : vector<8x16xf32>
    %c0_620 = arith.constant 0 : index
    %c0_621 = arith.constant 0 : index
    %1221 = vector.load %arg6[%c0_620, %c0_621] : memref<16x32xf32, #tpu.memory_space<vmem>>, vector<16x32xf32>
    %cst_622 = arith.constant dense<0.000000e+00> : vector<8x32xf32>
    %1222 = tpu.matmul %1220, %1221, %cst_622 {dimension_numbers = #tpu.dot_dimension_numbers<[1], [0], [0], [1], [0, 0, 1, 1], [], []>} : vector<8x16xf32>, vector<16x32xf32>, vector<8x32xf32> -> vector<8x32xf32>
    %c0_623 = arith.constant 0 : index
    %c0_624 = arith.constant 0 : index
    %1223 = vector.load %arg7[%c0_623, %c0_624] : memref<1x32xf32, #tpu.memory_space<vmem>>, vector<1x32xf32>
    %1224 = vector.broadcast %1223 : vector<1x32xf32> to vector<8x32xf32>
    %1225 = arith.addf %1222, %1224 : vector<8x32xf32>
    %cst_625 = arith.constant 0.000000e+00 : f32
    %1226 = vector.broadcast %cst_625 : f32 to vector<8x32xf32>
    %1227 = arith.maximumf %1225, %1226 : vector<8x32xf32>
    %c0_626 = arith.constant 0 : index
    %c0_627 = arith.constant 0 : index
    %1228 = vector.load %arg19[%c0_626, %c0_627] : memref<32x96xf32, #tpu.memory_space<vmem>>, vector<32x96xf32>
    %cst_628 = arith.constant dense<0.000000e+00> : vector<8x96xf32>
    %1229 = tpu.matmul %1164, %1228, %cst_628 {dimension_numbers = #tpu.dot_dimension_numbers<[1], [0], [0], [1], [0, 0, 1, 1], [], []>} : vector<8x32xf32>, vector<32x96xf32>, vector<8x96xf32> -> vector<8x96xf32>
    %c0_629 = arith.constant 0 : index
    %c0_630 = arith.constant 0 : index
    %1230 = vector.load %arg20[%c0_629, %c0_630] : memref<32x96xf32, #tpu.memory_space<vmem>>, vector<32x96xf32>
    %cst_631 = arith.constant dense<0.000000e+00> : vector<8x96xf32>
    %1231 = tpu.matmul %1227, %1230, %cst_631 {dimension_numbers = #tpu.dot_dimension_numbers<[1], [0], [0], [1], [0, 0, 1, 1], [], []>} : vector<8x32xf32>, vector<32x96xf32>, vector<8x96xf32> -> vector<8x96xf32>
    %1232 = arith.addf %1229, %1231 : vector<8x96xf32>
    %c0_632 = arith.constant 0 : index
    %c0_633 = arith.constant 0 : index
    %1233 = vector.load %arg21[%c0_632, %c0_633] : memref<32x96xf32, #tpu.memory_space<vmem>>, vector<32x96xf32>
    %cst_634 = arith.constant dense<0.000000e+00> : vector<8x96xf32>
    %1234 = tpu.matmul %1097, %1233, %cst_634 {dimension_numbers = #tpu.dot_dimension_numbers<[1], [0], [0], [1], [0, 0, 1, 1], [], []>} : vector<8x32xf32>, vector<32x96xf32>, vector<8x96xf32> -> vector<8x96xf32>
    %1235 = vector.extract_strided_slice %1232 {offsets = [0, 0], sizes = [8, 32], strides = [1, 1]} : vector<8x96xf32> to vector<8x32xf32>
    %1236 = vector.extract_strided_slice %1234 {offsets = [0, 0], sizes = [8, 32], strides = [1, 1]} : vector<8x96xf32> to vector<8x32xf32>
    %1237 = arith.addf %1235, %1236 : vector<8x32xf32>
    %1238 = arith.negf %1237 : vector<8x32xf32>
    %1239 = math.exp %1238 : vector<8x32xf32>
    %cst_635 = arith.constant 1.000000e+00 : f32
    %1240 = vector.broadcast %cst_635 : f32 to vector<8x32xf32>
    %1241 = arith.addf %1240, %1239 : vector<8x32xf32>
    %1242 = arith.divf %1240, %1241 : vector<8x32xf32>
    %1243 = vector.extract_strided_slice %1232 {offsets = [0, 32], sizes = [8, 32], strides = [1, 1]} : vector<8x96xf32> to vector<8x32xf32>
    %1244 = vector.extract_strided_slice %1234 {offsets = [0, 32], sizes = [8, 32], strides = [1, 1]} : vector<8x96xf32> to vector<8x32xf32>
    %1245 = arith.addf %1243, %1244 : vector<8x32xf32>
    %1246 = arith.negf %1245 : vector<8x32xf32>
    %1247 = math.exp %1246 : vector<8x32xf32>
    %cst_636 = arith.constant 1.000000e+00 : f32
    %1248 = vector.broadcast %cst_636 : f32 to vector<8x32xf32>
    %1249 = arith.addf %1248, %1247 : vector<8x32xf32>
    %1250 = arith.divf %1248, %1249 : vector<8x32xf32>
    %1251 = vector.extract_strided_slice %1232 {offsets = [0, 64], sizes = [8, 32], strides = [1, 1]} : vector<8x96xf32> to vector<8x32xf32>
    %1252 = vector.extract_strided_slice %1234 {offsets = [0, 64], sizes = [8, 32], strides = [1, 1]} : vector<8x96xf32> to vector<8x32xf32>
    %1253 = arith.mulf %1242, %1252 : vector<8x32xf32>
    %1254 = arith.addf %1251, %1253 : vector<8x32xf32>
    %1255 = math.tanh %1254 : vector<8x32xf32>
    %cst_637 = arith.constant 1.000000e+00 : f32
    %1256 = vector.broadcast %cst_637 : f32 to vector<8x32xf32>
    %1257 = arith.subf %1256, %1250 : vector<8x32xf32>
    %1258 = arith.mulf %1257, %1255 : vector<8x32xf32>
    %1259 = arith.mulf %1250, %1097 : vector<8x32xf32>
    %1260 = arith.addf %1258, %1259 : vector<8x32xf32>
    %c0_638 = arith.constant 0 : index
    %c0_639 = arith.constant 0 : index
    %1261 = vector.load %arg22[%c0_638, %c0_639] : memref<32x96xf32, #tpu.memory_space<vmem>>, vector<32x96xf32>
    %cst_640 = arith.constant dense<0.000000e+00> : vector<8x96xf32>
    %1262 = tpu.matmul %1260, %1261, %cst_640 {dimension_numbers = #tpu.dot_dimension_numbers<[1], [0], [0], [1], [0, 0, 1, 1], [], []>} : vector<8x32xf32>, vector<32x96xf32>, vector<8x96xf32> -> vector<8x96xf32>
    %c0_641 = arith.constant 0 : index
    %c0_642 = arith.constant 0 : index
    %1263 = vector.load %arg23[%c0_641, %c0_642] : memref<32x96xf32, #tpu.memory_space<vmem>>, vector<32x96xf32>
    %cst_643 = arith.constant dense<0.000000e+00> : vector<8x96xf32>
    %1264 = tpu.matmul %1127, %1263, %cst_643 {dimension_numbers = #tpu.dot_dimension_numbers<[1], [0], [0], [1], [0, 0, 1, 1], [], []>} : vector<8x32xf32>, vector<32x96xf32>, vector<8x96xf32> -> vector<8x96xf32>
    %1265 = vector.extract_strided_slice %1262 {offsets = [0, 0], sizes = [8, 32], strides = [1, 1]} : vector<8x96xf32> to vector<8x32xf32>
    %1266 = vector.extract_strided_slice %1264 {offsets = [0, 0], sizes = [8, 32], strides = [1, 1]} : vector<8x96xf32> to vector<8x32xf32>
    %1267 = arith.addf %1265, %1266 : vector<8x32xf32>
    %1268 = arith.negf %1267 : vector<8x32xf32>
    %1269 = math.exp %1268 : vector<8x32xf32>
    %cst_644 = arith.constant 1.000000e+00 : f32
    %1270 = vector.broadcast %cst_644 : f32 to vector<8x32xf32>
    %1271 = arith.addf %1270, %1269 : vector<8x32xf32>
    %1272 = arith.divf %1270, %1271 : vector<8x32xf32>
    %1273 = vector.extract_strided_slice %1262 {offsets = [0, 32], sizes = [8, 32], strides = [1, 1]} : vector<8x96xf32> to vector<8x32xf32>
    %1274 = vector.extract_strided_slice %1264 {offsets = [0, 32], sizes = [8, 32], strides = [1, 1]} : vector<8x96xf32> to vector<8x32xf32>
    %1275 = arith.addf %1273, %1274 : vector<8x32xf32>
    %1276 = arith.negf %1275 : vector<8x32xf32>
    %1277 = math.exp %1276 : vector<8x32xf32>
    %cst_645 = arith.constant 1.000000e+00 : f32
    %1278 = vector.broadcast %cst_645 : f32 to vector<8x32xf32>
    %1279 = arith.addf %1278, %1277 : vector<8x32xf32>
    %1280 = arith.divf %1278, %1279 : vector<8x32xf32>
    %1281 = vector.extract_strided_slice %1262 {offsets = [0, 64], sizes = [8, 32], strides = [1, 1]} : vector<8x96xf32> to vector<8x32xf32>
    %1282 = vector.extract_strided_slice %1264 {offsets = [0, 64], sizes = [8, 32], strides = [1, 1]} : vector<8x96xf32> to vector<8x32xf32>
    %1283 = arith.mulf %1272, %1282 : vector<8x32xf32>
    %1284 = arith.addf %1281, %1283 : vector<8x32xf32>
    %1285 = math.tanh %1284 : vector<8x32xf32>
    %cst_646 = arith.constant 1.000000e+00 : f32
    %1286 = vector.broadcast %cst_646 : f32 to vector<8x32xf32>
    %1287 = arith.subf %1286, %1280 : vector<8x32xf32>
    %1288 = arith.mulf %1287, %1285 : vector<8x32xf32>
    %1289 = arith.mulf %1280, %1127 : vector<8x32xf32>
    %1290 = arith.addf %1288, %1289 : vector<8x32xf32>
    %1291 = math.log %1218 : vector<8x16xf32>
    %cst_647 = arith.constant 2.000000e+00 : f32
    %1292 = vector.broadcast %cst_647 : f32 to vector<8x16xf32>
    %1293 = arith.mulf %1292, %1291 : vector<8x16xf32>
    %1294 = math.log %1196 : vector<8x16xf32>
    %cst_648 = arith.constant 2.000000e+00 : f32
    %1295 = vector.broadcast %cst_648 : f32 to vector<8x16xf32>
    %1296 = arith.mulf %1295, %1294 : vector<8x16xf32>
    %1297 = arith.subf %1293, %1296 : vector<8x16xf32>
    %1298 = arith.mulf %1196, %1196 : vector<8x16xf32>
    %1299 = arith.subf %1187, %1209 : vector<8x16xf32>
    %1300 = arith.mulf %1299, %1299 : vector<8x16xf32>
    %1301 = arith.addf %1298, %1300 : vector<8x16xf32>
    %1302 = arith.mulf %1218, %1218 : vector<8x16xf32>
    %1303 = arith.divf %1301, %1302 : vector<8x16xf32>
    %1304 = arith.addf %1297, %1303 : vector<8x16xf32>
    %cst_649 = arith.constant 1.000000e+00 : f32
    %1305 = vector.broadcast %cst_649 : f32 to vector<8x16xf32>
    %1306 = arith.subf %1304, %1305 : vector<8x16xf32>
    %1307 = arith.addf %1144, %1306 : vector<8x16xf32>
    %c8_i32 = arith.constant 8 : i32
    %1308 = vector.shape_cast %1307 : vector<8x16xf32> to vector<1x8x16xf32>
    %cst_650 = arith.constant dense<0.000000e+00> : vector<1xf32>
    %1309 = vector.multi_reduction <add>, %1308, %cst_650 [1, 2] : vector<1x8x16xf32> to vector<1xf32>
    %1310 = vector.shape_cast %1309 : vector<1xf32> to vector<1x1x1xf32>
    %1311 = vector.extract %1310[0, 0, 0] : f32 from vector<1x1x1xf32>
    %1312 = vector.broadcast %1311 : f32 to vector<1x1xf32>
    %cst_651 = arith.constant 5.000000e-01 : f32
    %1313 = vector.broadcast %cst_651 : f32 to vector<1x1xf32>
    %1314 = arith.mulf %1313, %1312 : vector<1x1xf32>
    %c0_652 = arith.constant 0 : index
    %c0_653 = arith.constant 0 : index
    %1315 = vector.load %arg24[%c0_652, %c0_653] : memref<1x1xf32, #tpu.memory_space<vmem>>, vector<1x1xf32>
    tpu.vector_store %arg24[%c0_652, %c0_653], %1314 {strides = array<i32>} : memref<1x1xf32, #tpu.memory_space<vmem>>, vector<1x1xf32>,
    %c0_654 = arith.constant 0 : index
    %c0_655 = arith.constant 0 : index
    %1316 = vector.load %arg25[%c0_654, %c0_655] : memref<8x32xf32, #tpu.memory_space<vmem>>, vector<8x32xf32>
    tpu.vector_store %arg25[%c0_654, %c0_655], %1227 {strides = array<i32>} : memref<8x32xf32, #tpu.memory_space<vmem>>, vector<8x32xf32>,
    return
  }
}

</mosaic_0001>

<bundles_post_ra>
// kernel: tpu_custom_call.1
= control target key start
LH: loop header
LB: loop body
LE: loop exit
PB: predicated region body
PF: predicated region fallthrough
CT: control target
= control target key end

     0   :  { %s14247_s0 = inlined_call_operand.hbm [shape: f32[8,8,16], index: 0, kind: input, shape index: {}]   ;;  %s14248_s1 = inlined_call_operand.hbm [shape: f32[8,8,16], index: 1, kind: input, shape index: {}]   ;;  %s14249_s2 = inlined_call_operand.hbm [shape: f32[16,32], index: 2, kind: input, shape index: {}]   ;;  %s14250_s3 = inlined_call_operand.hbm [shape: f32[1,32], index: 3, kind: input, shape index: {}]   ;;  %s14251_s4 = inlined_call_operand.hbm [shape: f32[32,32], index: 4, kind: input, shape index: {}]   ;;  %s14252_s5 = inlined_call_operand.hbm [shape: f32[1,32], index: 5, kind: input, shape index: {}]   ;;  %s14253_s6 = inlined_call_operand.hbm [shape: f32[16,32], index: 6, kind: input, shape index: {}]   ;;  %s14254_s7 = inlined_call_operand.hbm [shape: f32[1,32], index: 7, kind: input, shape index: {}]   ;;  %s14255_s8 = inlined_call_operand.hbm [shape: f32[32,32], index: 8, kind: input, shape index: {}]   ;;  %s14256_s9 = inlined_call_operand.vmem [shape: f32[32,32], index: 9, kind: input, shape index: {}]   ;;  %s14257_s10 = inlined_call_operand.hbm [shape: f32[1,32], index: 10, kind: input, shape index: {}]   ;;  %s14258_s11 = inlined_call_operand.hbm [shape: f32[32,32], index: 11, kind: input, shape index: {}]   ;;  %s14259_s12 = inlined_call_operand.hbm [shape: f32[1,32], index: 12, kind: input, shape index: {}]   ;;  %s14260_s13 = inlined_call_operand.hbm [shape: f32[32,32], index: 13, kind: input, shape index: {}]   ;;  %s14261_s14 = inlined_call_operand.hbm [shape: f32[1,32], index: 14, kind: input, shape index: {}]   ;;  %s14262_s15 = inlined_call_operand.hbm [shape: f32[32,32], index: 15, kind: input, shape index: {}]   ;;  %s14263_s16 = inlined_call_operand.hbm [shape: f32[1,32], index: 16, kind: input, shape index: {}]   ;;  %s14264_s17 = inlined_call_operand.vmem [shape: f32[32,32], index: 17, kind: input, shape index: {}]   ;;  %s14265_s18 = inlined_call_operand.vmem [shape: f32[1,32], index: 18, kind: input, shape index: {}]   ;;  %s14266_s19 = inlined_call_operand.hbm [shape: f32[32,96], index: 19, kind: input, shape index: {}]   ;;  %s14267_s20 = inlined_call_operand.hbm [shape: f32[32,96], index: 20, kind: input, shape index: {}]   ;;  %s14268_s21 = inlined_call_operand.hbm [shape: f32[32,96], index: 21, kind: input, shape index: {}]   ;;  %s14269_s22 = inlined_call_operand.hbm [shape: f32[32,96], index: 22, kind: input, shape index: {}]   ;;  %s14270_s23 = inlined_call_operand.hbm [shape: f32[32,96], index: 23, kind: input, shape index: {}]   ;;  %s14271_s24 = inlined_call_operand.hbm [shape: f32[1,1], index: 24, kind: output, shape index: {0}]   ;;  %s14272_s25 = inlined_call_operand.hbm [shape: f32[8,32], index: 25, kind: output, shape index: {1}]  }
   0x1   :  { %14324 = sst [smem:[#allocation78_spill]] %s14247_s0 }
   0x2   :  { %14325 = sst [smem:[#allocation79_spill]] %s14248_s1 }
   0x3   :  { %14326 = sst [smem:[#allocation80_spill]] %s14249_s2 }
   0x4   :  { %14327 = sst [smem:[#allocation81_spill]] %s14250_s3 }
   0x5   :  { %14328 = sst [smem:[#allocation82_spill]] %s14251_s4 }
   0x6   :  { %14329 = sst [smem:[#allocation83_spill]] %s14252_s5 }
   0x7   :  { %14330 = sst [smem:[#allocation84_spill]] %s14253_s6 }
   0x8   :  { %14331 = sst [smem:[#allocation85_spill]] %s14254_s7 }
   0x9   :  { %14332 = sst [smem:[#allocation86_spill]] %s14255_s8 }
   0xa   :  { %14333 = sst [smem:[#allocation87_spill]] %s14256_s9 }
   0xb   :  { %14334 = sst [smem:[#allocation88_spill]] %s14271_s24 }
   0xc   :  { %31 = vsyncpa [#allocation3], 0 }
   0xd   :  { %32 = vsyncpa [#allocation6], 0 }
   0xe   :  { %33 = vsyncpa [#allocation9], 0 }
   0xf   :  { %34 = vsyncpa [#allocation12], 0 }
  0x10   :  { %35 = vsyncpa [#allocation15], 0 }
  0x11   :  { %36 = vsyncpa [#allocation18], 0 }
  0x12   :  { %37 = vsyncpa [#allocation21], 0 }
  0x13   :  { %38 = vsyncpa [#allocation24], 0 }
  0x14   :  { %39 = vsyncpa [#allocation27], 0 }
  0x15   :  { %40 = vsyncpa [#allocation30], 0 }
  0x16   :  { %41 = vsyncpa [#allocation33], 0 }
  0x17   :  { %42 = vsyncpa [#allocation4], 0 }
  0x18   :  { %43 = vsyncpa [#allocation37], 0  ;;  %s12312_s29 = smov [#allocation5]   ;;  %s12313_s6 = smov [#allocation8]  }
  0x19   :  { %s61_s2 = sshll.u32 %s12312_s29, 4  ;;  %s86_s30 = sshll.u32 %s12313_s6, 4  ;;  %s62_s2 = int_to_ptr.vmem [resolvable:$true] %s61_s2  ;;  %s12474_s30 = int_to_ptr.vmem [resolvable:$true] %s86_s30 }
  0x1a   :  { %s14335_s26 = sld [smem:[#allocation79_spill]] }
  0x20   :  { %s11780_s1 = scalar_lea.hbm %s14335_s26, 1024 }
  0x21   :  { %p11781_p0 = scmp.ne.s32.totalorder %s14335_s26, %s11780_s1  ;;  %p11784_p1 = scmp.lt.u32.totalorder %s11780_s1, %s14335_s26 }
  0x23   :  { %p11786_p2 = pnand %p11784_p1, %p11781_p0 }
  0x25   :  { %11789 = shalt.err (!%p11786_p2)
}
  0x26   :  { %s11790_s9 = scalar_lea.vmem %s62_s2, 1024  ;;  %p11795_p4 = scmp.lt.s32.totalorder %s62_s2, %s62_s2 }
  0x27   :  { %p11791_p3 = scmp.ne.s32.totalorder %s62_s2, %s11790_s9  ;;  %p11796_p5 = scmp.lt.s32.totalorder %s11790_s9, %s11790_s9 }
  0x29   :  { %p11797_p6 = por %p11796_p5, %p11795_p4 }
  0x2b   :  { %p11798_p7 = pnand %p11797_p6, %p11791_p3 }
  0x2d   :  { %11801 = shalt.err (!%p11798_p7)
}
  0x2e   :  { %s14283_s5 = smov 128   ;;  %s14285_s0 = smov 8  }
  0x2f   :  { %67 = dma.hbm_to_vmem [thread:$0]  %s14335_s26, 1024, %s62_s2, [#allocation6], %s14283_s5, %s14283_s5, %s14285_s0  }
  0x30   :  { %s14336_s1 = sld [smem:[#allocation81_spill]] }
  0x36   :  { %s11802_s8 = scalar_lea.hbm %s14336_s1, 16 }
  0x37   :  { %p11803_p8 = scmp.ne.s32.totalorder %s14336_s1, %s11802_s8  ;;  %p11806_p9 = scmp.lt.u32.totalorder %s11802_s8, %s14336_s1 }
  0x39   :  { %p11808_p10 = pnand %p11806_p9, %p11803_p8 }
  0x3b   :  { %11811 = shalt.err (!%p11808_p10)
}
  0x3c   :  { %s11812_s29 = scalar_lea.vmem %s12474_s30, 16  ;;  %s11816_s2 = scalar_lea.vmem %s12474_s30, 32 }
  0x3d   :  { %p11813_p11 = scmp.ne.s32.totalorder %s12474_s30, %s11812_s29  ;;  %p11817_p12 = scmp.lt.s32.totalorder %s12474_s30, %s12474_s30 }
  0x3e   :  { %p11818_p13 = scmp.lt.s32.totalorder %s11816_s2, %s11812_s29 }
  0x40   :  { %p11819_p0 = por %p11818_p13, %p11817_p12 }
  0x42   :  { %p11820_p1 = pnand %p11819_p0, %p11813_p11 }
  0x44   :  { %11823 = shalt.err (!%p11820_p1)
}
  0x45   :  { %89 = dma.hbm_to_vmem [thread:$0]  %s14336_s1, 16, %s12474_s30, [#allocation9]  }
  0x46   :  { %s12316_s7 = smov [#allocation11]   ;;  %s12317_s8 = smov [#allocation14]  }
  0x47   :  { %s108_s3 = sshll.u32 %s12316_s7, 4  ;;  %s130_s27 = sshll.u32 %s12317_s8, 4  ;;  %s109_s3 = int_to_ptr.vmem [resolvable:$true] %s108_s3  ;;  %s131_s27 = int_to_ptr.vmem [resolvable:$true] %s130_s27 }
  0x48   :  { %s14337_s9 = sld [smem:[#allocation83_spill]] }
  0x4e   :  { %s11824_s5 = scalar_lea.hbm %s14337_s9, 16 }
  0x4f   :  { %p11825_p2 = scmp.ne.s32.totalorder %s14337_s9, %s11824_s5  ;;  %p11828_p3 = scmp.lt.u32.totalorder %s11824_s5, %s14337_s9 }
  0x51   :  { %p11830_p4 = pnand %p11828_p3, %p11825_p2 }
  0x53   :  { %11833 = shalt.err (!%p11830_p4)
}
  0x54   :  { %s11834_s30 = scalar_lea.vmem %s109_s3, 16  ;;  %s11838_s1 = scalar_lea.vmem %s109_s3, 32 }
  0x55   :  { %p11835_p5 = scmp.ne.s32.totalorder %s109_s3, %s11834_s30  ;;  %p11839_p6 = scmp.lt.s32.totalorder %s109_s3, %s109_s3 }
  0x56   :  { %p11840_p7 = scmp.lt.s32.totalorder %s11838_s1, %s11834_s30 }
  0x58   :  { %p11841_p8 = por %p11840_p7, %p11839_p6 }
  0x5a   :  { %p11842_p9 = pnand %p11841_p8, %p11835_p5 }
  0x5c   :  { %11845 = shalt.err (!%p11842_p9)
}
  0x5d   :  { %111 = dma.hbm_to_vmem [thread:$0]  %s14337_s9, 16, %s109_s3, [#allocation12]  }
  0x5e   :  { %s14338_s8 = sld [smem:[#allocation85_spill]] }
  0x64   :  { %s11846_s4 = scalar_lea.hbm %s14338_s8, 16 }
  0x65   :  { %p11847_p10 = scmp.ne.s32.totalorder %s14338_s8, %s11846_s4  ;;  %p11850_p11 = scmp.lt.u32.totalorder %s11846_s4, %s14338_s8 }
  0x67   :  { %p11852_p12 = pnand %p11850_p11, %p11847_p10 }
  0x69   :  { %11855 = shalt.err (!%p11852_p12)
}
  0x6a   :  { %s11856_s2 = scalar_lea.vmem %s131_s27, 16  ;;  %s11860_s30 = scalar_lea.vmem %s131_s27, 32 }
  0x6b   :  { %p11857_p13 = scmp.ne.s32.totalorder %s131_s27, %s11856_s2  ;;  %p11861_p0 = scmp.lt.s32.totalorder %s131_s27, %s131_s27 }
  0x6c   :  { %p11862_p1 = scmp.lt.s32.totalorder %s11860_s30, %s11856_s2 }
  0x6e   :  { %p11863_p2 = por %p11862_p1, %p11861_p0 }
  0x70   :  { %p11864_p3 = pnand %p11863_p2, %p11857_p13 }
  0x72   :  { %11867 = shalt.err (!%p11864_p3)
}
  0x73   :  { %133 = dma.hbm_to_vmem [thread:$0]  %s14338_s8, 16, %s131_s27, [#allocation15]  }
  0x74   :  { %s12318_s1 = smov [#allocation17]   ;;  %s12319_s6 = smov [#allocation20]  }
  0x75   :  { %s154_s26 = sshll.u32 %s12318_s1, 4  ;;  %s176_s0 = sshll.u32 %s12319_s6, 4  ;;  %s155_s26 = int_to_ptr.vmem [resolvable:$true] %s154_s26  ;;  %s177_s0 = int_to_ptr.vmem [resolvable:$true] %s176_s0 }
  0x76   :  { %s11868_s24 = scalar_lea.hbm %s14257_s10, 16 }
  0x77   :  { %p11869_p4 = scmp.ne.s32.totalorder %s14257_s10, %s11868_s24  ;;  %p11872_p5 = scmp.lt.u32.totalorder %s11868_s24, %s14257_s10 }
  0x79   :  { %p11874_p6 = pnand %p11872_p5, %p11869_p4 }
  0x7b   :  { %11877 = shalt.err (!%p11874_p6)
}
  0x7c   :  { %s11878_s27 = scalar_lea.vmem %s155_s26, 16  ;;  %s11882_s8 = scalar_lea.vmem %s155_s26, 32 }
  0x7d   :  { %p11879_p7 = scmp.ne.s32.totalorder %s155_s26, %s11878_s27  ;;  %p11883_p8 = scmp.lt.s32.totalorder %s155_s26, %s155_s26 }
  0x7e   :  { %p11884_p9 = scmp.lt.s32.totalorder %s11882_s8, %s11878_s27 }
  0x80   :  { %p11885_p10 = por %p11884_p9, %p11883_p8 }
  0x82   :  { %p11886_p11 = pnand %p11885_p10, %p11879_p7 }
  0x84   :  { %11889 = shalt.err (!%p11886_p11)
}
  0x85   :  { %157 = dma.hbm_to_vmem [thread:$0]  %s14257_s10, 16, %s155_s26, [#allocation18]  }
  0x86   :  { %s11890_s6 = scalar_lea.hbm %s14259_s12, 16 }
  0x87   :  { %p11891_p12 = scmp.ne.s32.totalorder %s14259_s12, %s11890_s6  ;;  %p11894_p13 = scmp.lt.u32.totalorder %s11890_s6, %s14259_s12 }
  0x89   :  { %p11896_p0 = pnand %p11894_p13, %p11891_p12 }
  0x8b   :  { %11899 = shalt.err (!%p11896_p0)
}
  0x8c   :  { %s11900_s28 = scalar_lea.vmem %s177_s0, 16  ;;  %s11904_s29 = scalar_lea.vmem %s177_s0, 32 }
  0x8d   :  { %p11901_p1 = scmp.ne.s32.totalorder %s177_s0, %s11900_s28  ;;  %p11905_p2 = scmp.lt.s32.totalorder %s177_s0, %s177_s0 }
  0x8e   :  { %p11906_p3 = scmp.lt.s32.totalorder %s11904_s29, %s11900_s28 }
  0x90   :  { %p11907_p4 = por %p11906_p3, %p11905_p2 }
  0x92   :  { %p11908_p5 = pnand %p11907_p4, %p11901_p1 }
  0x94   :  { %11911 = shalt.err (!%p11908_p5)
}
  0x95   :  { %179 = dma.hbm_to_vmem [thread:$0]  %s14259_s12, 16, %s177_s0, [#allocation21]  }
  0x96   :  { %s12320_s2 = smov [#allocation23]   ;;  %s12321_s8 = smov [#allocation26]  }
  0x97   :  { %s198_s27 = sshll.u32 %s12320_s2, 4  ;;  %s220_s30 = sshll.u32 %s12321_s8, 4  ;;  %s199_s27 = int_to_ptr.vmem [resolvable:$true] %s198_s27  ;;  %s221_s30 = int_to_ptr.vmem [resolvable:$true] %s220_s30 }
  0x98   :  { %s11912_s1 = scalar_lea.hbm %s14261_s14, 16 }
  0x99   :  { %p11913_p6 = scmp.ne.s32.totalorder %s14261_s14, %s11912_s1  ;;  %p11916_p7 = scmp.lt.u32.totalorder %s11912_s1, %s14261_s14 }
  0x9b   :  { %p11918_p8 = pnand %p11916_p7, %p11913_p6 }
  0x9d   :  { %11921 = shalt.err (!%p11918_p8)
}
  0x9e   :  { %s11922_s12 = scalar_lea.vmem %s199_s27, 16  ;;  %s11926_s0 = scalar_lea.vmem %s199_s27, 32 }
  0x9f   :  { %p11923_p9 = scmp.ne.s32.totalorder %s199_s27, %s11922_s12  ;;  %p11927_p10 = scmp.lt.s32.totalorder %s199_s27, %s199_s27 }
  0xa0   :  { %p11928_p11 = scmp.lt.s32.totalorder %s11926_s0, %s11922_s12 }
  0xa2   :  { %p11929_p12 = por %p11928_p11, %p11927_p10 }
  0xa4   :  { %p11930_p13 = pnand %p11929_p12, %p11923_p9 }
  0xa6   :  { %11933 = shalt.err (!%p11930_p13)
}
  0xa7   :  { %201 = dma.hbm_to_vmem [thread:$0]  %s14261_s14, 16, %s199_s27, [#allocation24]  }
  0xa8   :  { %s11934_s26 = scalar_lea.hbm %s14263_s16, 16 }
  0xa9   :  { %p11935_p0 = scmp.ne.s32.totalorder %s14263_s16, %s11934_s26  ;;  %p11938_p1 = scmp.lt.u32.totalorder %s11934_s26, %s14263_s16 }
  0xab   :  { %p11940_p2 = pnand %p11938_p1, %p11935_p0 }
  0xad   :  { %11943 = shalt.err (!%p11940_p2)
}
  0xae   :  { %s11944_s1 = scalar_lea.vmem %s221_s30, 16  ;;  %s11948_s6 = scalar_lea.vmem %s221_s30, 32 }
  0xaf   :  { %p11945_p3 = scmp.ne.s32.totalorder %s221_s30, %s11944_s1  ;;  %p11949_p4 = scmp.lt.s32.totalorder %s221_s30, %s221_s30 }
  0xb0   :  { %p11950_p5 = scmp.lt.s32.totalorder %s11948_s6, %s11944_s1 }
  0xb2   :  { %p11951_p6 = por %p11950_p5, %p11949_p4 }
  0xb4   :  { %p11952_p7 = pnand %p11951_p6, %p11945_p3 }
  0xb6   :  { %11955 = shalt.err (!%p11952_p7)
}
  0xb7   :  { %223 = dma.hbm_to_vmem [thread:$0]  %s14263_s16, 16, %s221_s30, [#allocation27]  }
  0xb8   :  { %s12322_s7 = smov [#allocation29]   ;;  %s12323_s24 = smov [#allocation32]  }
  0xb9   :  { %s245_s4 = sshll.u32 %s12322_s7, 4  ;;  %s269_s12 = sshll.u32 %s12323_s24, 4  ;;  %s246_s4 = int_to_ptr.vmem [resolvable:$true] %s245_s4  ;;  %s12581_s12 = int_to_ptr.vmem [resolvable:$true] %s269_s12 }
  0xba   :  { %s11956_s28 = scalar_lea.hbm %s14267_s20, 512 }
  0xbb   :  { %p11957_p8 = scmp.ne.s32.totalorder %s14267_s20, %s11956_s28  ;;  %p11960_p9 = scmp.lt.u32.totalorder %s11956_s28, %s14267_s20 }
  0xbd   :  { %p11962_p10 = pnand %p11960_p9, %p11957_p8 }
  0xbf   :  { %11965 = shalt.err (!%p11962_p10)
}
  0xc0   :  { %s11966_s16 = scalar_lea.vmem %s246_s4, 512  ;;  %p11971_p12 = scmp.lt.s32.totalorder %s246_s4, %s246_s4 }
  0xc1   :  { %p11967_p11 = scmp.ne.s32.totalorder %s246_s4, %s11966_s16  ;;  %p11972_p13 = scmp.lt.s32.totalorder %s11966_s16, %s11966_s16 }
  0xc3   :  { %p11973_p0 = por %p11972_p13, %p11971_p12 }
  0xc5   :  { %p11974_p1 = pnand %p11973_p0, %p11967_p11 }
  0xc7   :  { %11977 = shalt.err (!%p11974_p1)
}
  0xc8   :  { %s14339_s30 = smov 8   ;;  %s14340_s8 = smov 128  }
  0xc9   :  { %251 = dma.hbm_to_vmem [thread:$0]  %s14267_s20, 512, %s246_s4, [#allocation30], %s14340_s8, %s14340_s8, %s14339_s30  }
  0xca   :  { %s11978_s14 = scalar_lea.hbm %s14269_s22, 512 }
  0xcb   :  { %p11979_p2 = scmp.ne.s32.totalorder %s14269_s22, %s11978_s14  ;;  %p11982_p3 = scmp.lt.u32.totalorder %s11978_s14, %s14269_s22 }
  0xcd   :  { %p11984_p4 = pnand %p11982_p3, %p11979_p2 }
  0xcf   :  { %11987 = shalt.err (!%p11984_p4)
}
  0xd0   :  { %s11988_s5 = scalar_lea.vmem %s12581_s12, 512  ;;  %p11993_p6 = scmp.lt.s32.totalorder %s12581_s12, %s12581_s12 }
  0xd1   :  { %p11989_p5 = scmp.ne.s32.totalorder %s12581_s12, %s11988_s5  ;;  %p11994_p7 = scmp.lt.s32.totalorder %s11988_s5, %s11988_s5 }
  0xd3   :  { %p11995_p8 = por %p11994_p7, %p11993_p6 }
  0xd5   :  { %p11996_p9 = pnand %p11995_p8, %p11989_p5 }
  0xd7   :  { %11999 = shalt.err (!%p11996_p9)
}
  0xd8   :  { %275 = dma.hbm_to_vmem [thread:$0]  %s14269_s22, 512, %s12581_s12, [#allocation33], %s14340_s8, %s14340_s8, %s14339_s30  }
  0xd9   :  { %s12324_s28 = smov [#allocation2]   ;;  %s12325_s10 = smov [#allocation7]  }
  0xda   :  { %s49_s29 = sshll.u32 %s12324_s28, 4  ;;  %s73_s26 = sshll.u32 %s12325_s10, 4  ;;  %s50_s29 = int_to_ptr.vmem [resolvable:$true] %s49_s29  ;;  %s12618_s26 = int_to_ptr.vmem [resolvable:$true] %s73_s26 }
  0xdb   :  { %s14341_s3 = sld [smem:[#allocation78_spill]] }
  0xe1   :  { %s12000_s9 = scalar_lea.hbm %s14341_s3, 1024 }
  0xe2   :  { %p12001_p10 = scmp.ne.s32.totalorder %s14341_s3, %s12000_s9  ;;  %p12004_p11 = scmp.lt.u32.totalorder %s12000_s9, %s14341_s3 }
  0xe4   :  { %p12006_p12 = pnand %p12004_p11, %p12001_p10 }
  0xe6   :  { %12009 = shalt.err (!%p12006_p12)
}
  0xe7   :  { %s12010_s22 = scalar_lea.vmem %s50_s29, 1024  ;;  %p12015_p0 = scmp.lt.s32.totalorder %s50_s29, %s50_s29 }
  0xe8   :  { %p12011_p13 = scmp.ne.s32.totalorder %s50_s29, %s12010_s22  ;;  %p12016_p1 = scmp.lt.s32.totalorder %s12010_s22, %s12010_s22 }
  0xea   :  { %p12017_p2 = por %p12016_p1, %p12015_p0 }
  0xec   :  { %p12018_p3 = pnand %p12017_p2, %p12011_p13 }
  0xee   :  { %12021 = shalt.err (!%p12018_p3)
}
  0xef   :  { %55 = dma.hbm_to_vmem [thread:$0]  %s14341_s3, 1024, %s50_s29, [#allocation3], %s14340_s8, %s14340_s8, %s14339_s30  }
  0xf0   :  { %s14342_s5 = sld [smem:[#allocation80_spill]] }
  0xf6   :  { %s12022_s20 = scalar_lea.hbm %s14342_s5, 256 }
  0xf7   :  { %p12023_p4 = scmp.ne.s32.totalorder %s14342_s5, %s12022_s20  ;;  %p12026_p5 = scmp.lt.u32.totalorder %s12022_s20, %s14342_s5 }
  0xf9   :  { %p12028_p6 = pnand %p12026_p5, %p12023_p4 }
  0xfb   :  { %12031 = shalt.err (!%p12028_p6)
}
  0xfc   :  { %s12032_s16 = scalar_lea.vmem %s12618_s26, 256  ;;  %p12037_p8 = scmp.lt.s32.totalorder %s12618_s26, %s12618_s26 }
  0xfd   :  { %p12033_p7 = scmp.ne.s32.totalorder %s12618_s26, %s12032_s16  ;;  %p12038_p9 = scmp.lt.s32.totalorder %s12032_s16, %s12032_s16 }
  0xff   :  { %p12039_p10 = por %p12038_p9, %p12037_p8 }
 0x101   :  { %p12040_p11 = pnand %p12039_p10, %p12033_p7 }
 0x103   :  { %12043 = shalt.err (!%p12040_p11)
}
 0x104   :  { %79 = dma.hbm_to_vmem [thread:$0]  %s14342_s5, 256, %s12618_s26, [#allocation6], %s14340_s8, %s14340_s8, %s14339_s30  }
 0x105   :  { %s12326_s9 = smov [#allocation10]   ;;  %s12327_s6 = smov [#allocation13]  }
 0x106   :  { %s95_s1 = sshll.u32 %s12326_s9, 4  ;;  %s117_s14 = sshll.u32 %s12327_s6, 4  ;;  %s96_s1 = int_to_ptr.vmem [resolvable:$true] %s95_s1  ;;  %s12655_s14 = int_to_ptr.vmem [resolvable:$true] %s117_s14 }
 0x107   :  { %s14343_s12 = sld [smem:[#allocation82_spill]] }
 0x10d   :  { %s12044_s7 = scalar_lea.hbm %s14343_s12, 512 }
 0x10e   :  { %p12045_p12 = scmp.ne.s32.totalorder %s14343_s12, %s12044_s7  ;;  %p12048_p13 = scmp.lt.u32.totalorder %s12044_s7, %s14343_s12 }
 0x110   :  { %p12050_p0 = pnand %p12048_p13, %p12045_p12 }
 0x112   :  { %12053 = shalt.err (!%p12050_p0)
}
 0x113   :  { %s12054_s26 = scalar_lea.vmem %s96_s1, 512  ;;  %p12059_p2 = scmp.lt.s32.totalorder %s96_s1, %s96_s1 }
 0x114   :  { %p12055_p1 = scmp.ne.s32.totalorder %s96_s1, %s12054_s26  ;;  %p12060_p3 = scmp.lt.s32.totalorder %s12054_s26, %s12054_s26 }
 0x116   :  { %p12061_p4 = por %p12060_p3, %p12059_p2 }
 0x118   :  { %p12062_p5 = pnand %p12061_p4, %p12055_p1 }
 0x11a   :  { %12065 = shalt.err (!%p12062_p5)
}
 0x11b   :  { %101 = dma.hbm_to_vmem [thread:$0]  %s14343_s12, 512, %s96_s1, [#allocation9], %s14340_s8, %s14340_s8, %s14339_s30  }
 0x11c   :  { %s14344_s16 = sld [smem:[#allocation84_spill]] }
 0x122   :  { %s12066_s29 = scalar_lea.hbm %s14344_s16, 256 }
 0x123   :  { %p12067_p6 = scmp.ne.s32.totalorder %s14344_s16, %s12066_s29  ;;  %p12070_p7 = scmp.lt.u32.totalorder %s12066_s29, %s14344_s16 }
 0x125   :  { %p12072_p8 = pnand %p12070_p7, %p12067_p6 }
 0x127   :  { %12075 = shalt.err (!%p12072_p8)
}
 0x128   :  { %s12076_s22 = scalar_lea.vmem %s12655_s14, 256  ;;  %p12081_p10 = scmp.lt.s32.totalorder %s12655_s14, %s12655_s14 }
 0x129   :  { %p12077_p9 = scmp.ne.s32.totalorder %s12655_s14, %s12076_s22  ;;  %p12082_p11 = scmp.lt.s32.totalorder %s12076_s22, %s12076_s22 }
 0x12b   :  { %p12083_p12 = por %p12082_p11, %p12081_p10 }
 0x12d   :  { %p12084_p13 = pnand %p12083_p12, %p12077_p9 }
 0x12f   :  { %12087 = shalt.err (!%p12084_p13)
}
 0x130   :  { %123 = dma.hbm_to_vmem [thread:$0]  %s14344_s16, 256, %s12655_s14, [#allocation12], %s14340_s8, %s14340_s8, %s14339_s30  }
 0x131   :  { %s12328_s7 = smov [#allocation16]   ;;  %s12329_s0 = smov [#allocation19]  }
 0x132   :  { %s139_s24 = sshll.u32 %s12328_s7, 4  ;;  %s163_s20 = sshll.u32 %s12329_s0, 4  ;;  %s140_s24 = int_to_ptr.vmem [resolvable:$true] %s139_s24  ;;  %s12692_s20 = int_to_ptr.vmem [resolvable:$true] %s163_s20 }
 0x133   :  { %s14345_s5 = sld [smem:[#allocation86_spill]] }
 0x139   :  { %s12088_s28 = scalar_lea.hbm %s14345_s5, 512 }
 0x13a   :  { %p12089_p0 = scmp.ne.s32.totalorder %s14345_s5, %s12088_s28  ;;  %p12092_p1 = scmp.lt.u32.totalorder %s12088_s28, %s14345_s5 }
 0x13c   :  { %p12094_p2 = pnand %p12092_p1, %p12089_p0 }
 0x13e   :  { %12097 = shalt.err (!%p12094_p2)
}
 0x13f   :  { %s12098_s14 = scalar_lea.vmem %s140_s24, 512  ;;  %p12103_p4 = scmp.lt.s32.totalorder %s140_s24, %s140_s24 }
 0x140   :  { %p12099_p3 = scmp.ne.s32.totalorder %s140_s24, %s12098_s14  ;;  %p12104_p5 = scmp.lt.s32.totalorder %s12098_s14, %s12098_s14 }
 0x142   :  { %p12105_p6 = por %p12104_p5, %p12103_p4 }
 0x144   :  { %p12106_p7 = pnand %p12105_p6, %p12099_p3 }
 0x146   :  { %12109 = shalt.err (!%p12106_p7)
}
 0x147   :  { %145 = dma.hbm_to_vmem [thread:$0]  %s14345_s5, 512, %s140_s24, [#allocation15], %s14340_s8, %s14340_s8, %s14339_s30  }
 0x148   :  { %s12110_s22 = scalar_lea.hbm %s14258_s11, 512 }
 0x149   :  { %p12111_p8 = scmp.ne.s32.totalorder %s14258_s11, %s12110_s22  ;;  %p12114_p9 = scmp.lt.u32.totalorder %s12110_s22, %s14258_s11 }
 0x14b   :  { %p12116_p10 = pnand %p12114_p9, %p12111_p8 }
 0x14d   :  { %12119 = shalt.err (!%p12116_p10)
}
 0x14e   :  { %s12120_s4 = scalar_lea.vmem %s12692_s20, 512  ;;  %p12125_p12 = scmp.lt.s32.totalorder %s12692_s20, %s12692_s20 }
 0x14f   :  { %p12121_p11 = scmp.ne.s32.totalorder %s12692_s20, %s12120_s4  ;;  %p12126_p13 = scmp.lt.s32.totalorder %s12120_s4, %s12120_s4 }
 0x151   :  { %p12127_p0 = por %p12126_p13, %p12125_p12 }
 0x153   :  { %p12128_p1 = pnand %p12127_p0, %p12121_p11 }
 0x155   :  { %12131 = shalt.err (!%p12128_p1)
}
 0x156   :  { %169 = dma.hbm_to_vmem [thread:$0]  %s14258_s11, 512, %s12692_s20, [#allocation18], %s14340_s8, %s14340_s8, %s14339_s30  }
 0x157   :  { %s12330_s5 = smov [#allocation22]   ;;  %s12331_s10 = smov [#allocation25]  }
 0x158   :  { %s185_s28 = sshll.u32 %s12330_s5, 4  ;;  %s207_s2 = sshll.u32 %s12331_s10, 4  ;;  %s186_s28 = int_to_ptr.vmem [resolvable:$true] %s185_s28  ;;  %s12729_s2 = int_to_ptr.vmem [resolvable:$true] %s207_s2 }
 0x159   :  { %s12132_s14 = scalar_lea.hbm %s14260_s13, 512 }
 0x15a   :  { %p12133_p2 = scmp.ne.s32.totalorder %s14260_s13, %s12132_s14  ;;  %p12136_p3 = scmp.lt.u32.totalorder %s12132_s14, %s14260_s13 }
 0x15c   :  { %p12138_p4 = pnand %p12136_p3, %p12133_p2 }
 0x15e   :  { %12141 = shalt.err (!%p12138_p4)
}
 0x15f   :  { %s12142_s11 = scalar_lea.vmem %s186_s28, 512  ;;  %p12147_p6 = scmp.lt.s32.totalorder %s186_s28, %s186_s28 }
 0x160   :  { %p12143_p5 = scmp.ne.s32.totalorder %s186_s28, %s12142_s11  ;;  %p12148_p7 = scmp.lt.s32.totalorder %s12142_s11, %s12142_s11 }
 0x162   :  { %p12149_p8 = por %p12148_p7, %p12147_p6 }
 0x164   :  { %p12150_p9 = pnand %p12149_p8, %p12143_p5 }
 0x166   :  { %12153 = shalt.err (!%p12150_p9)
}
 0x167   :  { %191 = dma.hbm_to_vmem [thread:$0]  %s14260_s13, 512, %s186_s28, [#allocation21], %s14340_s8, %s14340_s8, %s14339_s30  }
 0x168   :  { %s12154_s7 = scalar_lea.hbm %s14262_s15, 512 }
 0x169   :  { %p12155_p10 = scmp.ne.s32.totalorder %s14262_s15, %s12154_s7  ;;  %p12158_p11 = scmp.lt.u32.totalorder %s12154_s7, %s14262_s15 }
 0x16b   :  { %p12160_p12 = pnand %p12158_p11, %p12155_p10 }
 0x16d   :  { %12163 = shalt.err (!%p12160_p12)
}
 0x16e   :  { %s12164_s5 = scalar_lea.vmem %s12729_s2, 512  ;;  %p12169_p0 = scmp.lt.s32.totalorder %s12729_s2, %s12729_s2 }
 0x16f   :  { %p12165_p13 = scmp.ne.s32.totalorder %s12729_s2, %s12164_s5  ;;  %p12170_p1 = scmp.lt.s32.totalorder %s12164_s5, %s12164_s5 }
 0x171   :  { %p12171_p2 = por %p12170_p1, %p12169_p0 }
 0x173   :  { %p12172_p3 = pnand %p12171_p2, %p12165_p13 }
 0x175   :  { %12175 = shalt.err (!%p12172_p3)
}
 0x176   :  { %213 = dma.hbm_to_vmem [thread:$0]  %s14262_s15, 512, %s12729_s2, [#allocation24], %s14340_s8, %s14340_s8, %s14339_s30  }
 0x177   :  { %s12332_s10 = smov [#allocation28]   ;;  %s12333_s3 = smov [#allocation31]  }
 0x178   :  { %s233_s29 = sshll.u32 %s12332_s10, 4  ;;  %s257_s14 = sshll.u32 %s12333_s3, 4  ;;  %s234_s29 = int_to_ptr.vmem [resolvable:$true] %s233_s29  ;;  %s12766_s14 = int_to_ptr.vmem [resolvable:$true] %s257_s14 }
 0x179   :  { %s12176_s6 = scalar_lea.hbm %s14266_s19, 512 }
 0x17a   :  { %p12177_p4 = scmp.ne.s32.totalorder %s14266_s19, %s12176_s6  ;;  %p12180_p5 = scmp.lt.u32.totalorder %s12176_s6, %s14266_s19 }
 0x17c   :  { %p12182_p6 = pnand %p12180_p5, %p12177_p4 }
 0x17e   :  { %12185 = shalt.err (!%p12182_p6)
}
 0x17f   :  { %s12186_s15 = scalar_lea.vmem %s234_s29, 512  ;;  %p12191_p8 = scmp.lt.s32.totalorder %s234_s29, %s234_s29 }
 0x180   :  { %p12187_p7 = scmp.ne.s32.totalorder %s234_s29, %s12186_s15  ;;  %p12192_p9 = scmp.lt.s32.totalorder %s12186_s15, %s12186_s15 }
 0x182   :  { %p12193_p10 = por %p12192_p9, %p12191_p8 }
 0x184   :  { %p12194_p11 = pnand %p12193_p10, %p12187_p7 }
 0x186   :  { %12197 = shalt.err (!%p12194_p11)
}
 0x187   :  { %239 = dma.hbm_to_vmem [thread:$0]  %s14266_s19, 512, %s234_s29, [#allocation27], %s14340_s8, %s14340_s8, %s14339_s30  }
 0x188   :  { %s12198_s0 = scalar_lea.hbm %s14268_s21, 512 }
 0x189   :  { %p12199_p12 = scmp.ne.s32.totalorder %s14268_s21, %s12198_s0  ;;  %p12202_p13 = scmp.lt.u32.totalorder %s12198_s0, %s14268_s21 }
 0x18b   :  { %p12204_p0 = pnand %p12202_p13, %p12199_p12 }
 0x18d   :  { %12207 = shalt.err (!%p12204_p0)
}
 0x18e   :  { %s12208_s13 = scalar_lea.vmem %s12766_s14, 512  ;;  %p12213_p2 = scmp.lt.s32.totalorder %s12766_s14, %s12766_s14 }
 0x18f   :  { %p12209_p1 = scmp.ne.s32.totalorder %s12766_s14, %s12208_s13  ;;  %p12214_p3 = scmp.lt.s32.totalorder %s12208_s13, %s12208_s13 }
 0x191   :  { %p12215_p4 = por %p12214_p3, %p12213_p2 }
 0x193   :  { %p12216_p5 = pnand %p12215_p4, %p12209_p1 }
 0x195   :  { %12219 = shalt.err (!%p12216_p5)
}
 0x196   :  { %263 = dma.hbm_to_vmem [thread:$0]  %s14268_s21, 512, %s12766_s14, [#allocation30], %s14340_s8, %s14340_s8, %s14339_s30  }
 0x197   :  { %s12334_s10 = smov [#allocation34]   ;;  %s12220_s9 = scalar_lea.hbm %s14270_s23, 512 }
 0x198   :  { %s281_s29 = sshll.u32 %s12334_s10, 4  ;;  %p12221_p6 = scmp.ne.s32.totalorder %s14270_s23, %s12220_s9  ;;  %s282_s29 = int_to_ptr.vmem [resolvable:$true] %s281_s29 }
 0x199   :  { %p12224_p7 = scmp.lt.u32.totalorder %s12220_s9, %s14270_s23 }
 0x19b   :  { %p12226_p8 = pnand %p12224_p7, %p12221_p6 }
 0x19d   :  { %12229 = shalt.err (!%p12226_p8)
}
 0x19e   :  { %s12230_s22 = scalar_lea.vmem %s282_s29, 512  ;;  %p12235_p10 = scmp.lt.s32.totalorder %s282_s29, %s282_s29 }
 0x19f   :  { %p12231_p9 = scmp.ne.s32.totalorder %s282_s29, %s12230_s22  ;;  %p12236_p11 = scmp.lt.s32.totalorder %s12230_s22, %s12230_s22 }
 0x1a1   :  { %p12237_p12 = por %p12236_p11, %p12235_p10 }
 0x1a3   :  { %p12238_p13 = pnand %p12237_p12, %p12231_p9 }
 0x1a5   :  { %12241 = shalt.err (!%p12238_p13)
}
 0x1a6   :  { %287 = dma.hbm_to_vmem [thread:$0]  %s14270_s23, 512, %s282_s29, [#allocation33], %s14340_s8, %s14340_s8, %s14339_s30  }
 0x1a7   :  { %12286 = dma.done.wait [#allocation3], 1024  }
 0x1a8   :  { %12287 = vsyncadd [#allocation3], 4294966272 }
 0x1a9   :  { %12288 = dma.done.wait [#allocation6], 1280  }
 0x1aa   :  { %12289 = vsyncadd [#allocation6], 4294966016 }
 0x1ab   :  { %12290 = dma.done.wait [#allocation9], 528  }
 0x1ac   :  { %12291 = vsyncadd [#allocation9], 4294966768 }
 0x1ad   :  { %12292 = dma.done.wait [#allocation12], 272  }
 0x1ae   :  { %12293 = vsyncadd [#allocation12], 4294967024 }
 0x1af   :  { %12294 = dma.done.wait [#allocation15], 528  }
 0x1b0   :  { %12295 = vsyncadd [#allocation15], 4294966768 }
 0x1b1   :  { %12296 = dma.done.wait [#allocation18], 528  }
 0x1b2   :  { %12297 = vsyncadd [#allocation18], 4294966768 }
 0x1b3   :  { %12298 = dma.done.wait [#allocation21], 528  }
 0x1b4   :  { %12299 = vsyncadd [#allocation21], 4294966768 }
 0x1b5   :  { %12300 = dma.done.wait [#allocation24], 528  }
 0x1b6   :  { %12301 = vsyncadd [#allocation24], 4294966768 }
 0x1b7   :  { %12302 = dma.done.wait [#allocation27], 528  }
 0x1b8   :  { %12303 = vsyncadd [#allocation27], 4294966768 }
 0x1b9   :  { %12304 = dma.done.wait [#allocation30], 1024  }
 0x1ba   :  { %12305 = vsyncadd [#allocation30], 4294966272 }
 0x1bb   :  { %12306 = dma.done.wait [#allocation33], 1024  }
 0x1bc   :  { %12307 = vsyncadd [#allocation33], 4294966272  ;;  %v14289_v0 = vmov 0.0|0.0   ;;  %vm12336_vm0 = vmmov 0   ;;  %v14291_v1 = vmov 0.0   ;;  %v353_v2 = vld [vmem:[#allocation7] sm:$0xff] }
 0x1bd   :  { %10926 = vmatprep.subr.bf16.mxu0 %v14289_v0  ;;  %9817 = vmatprep.mubr.msk.f32.mxu0 %vm12336_vm0, %v14291_v1  ;;  %v354_v3 = vld [vmem:[#allocation7 + $0x8] sm:$0xff]  ;;  %v437_v5 = vld [vmem:[#allocation10] sm:$0xff]  ;;  %v438_v6 = vld [vmem:[#allocation10 + $0x8] sm:$0xff]  ;;  %vm362_vm1 = vcmask 130048   ;;  %s14346_s8 = sld [smem:[#allocation87_spill]]  ;;  %vm448_vm2 = vcmask 261120  }
 0x1be   :  { %10929 = vmatprep.subr.bf16.mxu1 %v14289_v0  ;;  %9828 = vmatprep.mubr.msk.f32.mxu1 %vm12336_vm0, %v14291_v1  ;;  %v12824_v4 = vpack.c.bf16 %v354_v3, %v353_v2  ;;  %v12826_v7 = vpack.c.bf16 %v438_v6, %v437_v5  ;;  %v351_v8 = vld [vmem:[#allocation2] sm:$0xff]  ;;  %v440_v10 = vld [vmem:[#allocation10 + $0x18] sm:$0xff]  ;;  %v525_v26 = vld [vmem:[#allocation16 + $0x10] sm:$0xff]  ;;  %s12338_s3 = smov 112   ;;  %s12339_s16 = smov 64  }
 0x1bf   :  { %v439_v9 = vld [vmem:[#allocation10 + $0x10] sm:$0xff]  ;;  %v12849_v15 = vld [vmem:[#allocation8] ss:$0 sm:$0xff]  ;;  %v12880_v32 = vld [vmem:[#allocation11] ss:$0 sm:$0xff]  ;;  %s12340_s9 = smov 96  }
 0x1c0   :  { %10928 = vmatpush3.bf16.msra.mxu0 %v12824_v4  ;;  %10931 = vmatpush3.bf16.msra.mxu1 %v12826_v7  ;;  %v12835_v11 = vpack.c.bf16 %v440_v10, %v439_v9  ;;  %v523_v16 = vld [vmem:[#allocation16] sm:$0xff]  ;;  %v524_v17 = vld [vmem:[#allocation16 + $0x8] sm:$0xff]  ;;  %v526_v27 = vld [vmem:[#allocation16 + $0x18] sm:$0xff]  ;;  %s12342_s22 = smov [#allocation36]  }
 0x1c1   :  { %10935 = vmatprep.subr.bf16.mxu0 %v14289_v0  ;;  %10932 = vmatprep.subr.bf16.mxu1 %v14289_v0  ;;  %v12852_v21 = vpack.c.bf16 %v524_v17, %v523_v16  ;;  %v12867_v28 = vpack.c.bf16 %v526_v27, %v525_v26  ;;  %v686_v29 = vld [vmem:[#allocation19] sm:$0xff]  ;;  %v687_v30 = vld [vmem:[#allocation19 + $0x8] sm:$0xff]  ;;  %v688_v39 = vld [vmem:[#allocation19 + $0x10] sm:$0xff]  ;;  %s9154_s21 = sshll.u32 %s12342_s22, 4  ;;  %s9155_s21 = int_to_ptr.vmem [resolvable:$true] %s9154_s21 }
 0x1c2   :  { %v12876_v31 = vpack.c.bf16 %v687_v30, %v686_v29  ;;  %v689_v40 = vld [vmem:[#allocation19 + $0x18] sm:$0xff]  ;;  %v771_v42 = vld [vmem:[#allocation22] sm:$0xff]  ;;  %v772_v43 = vld [vmem:[#allocation22 + $0x8] sm:$0xff]  ;;  %s12242_s14 = scalar_lea.vmem %s9155_s21, 128  ;;  %p12247_p1 = scmp.lt.s32.totalorder %s9155_s21, %s9155_s21 }
 0x1c3   :  { %9818 = vmatmul.mubr.msk.f32.vlgmr.msra.gmra.mrb[0].mxu0 %vm362_vm1, %v351_v8  ;;  %v527_v12 = vld [vmem:[%s14346_s8] sm:$0xff]  ;;  %v528_v13 = vld [vmem:[%s14346_s8 + $0x8] sm:$0xff]  ;;  %v529_v23 = vld [vmem:[%s14346_s8 + $0x10] sm:$0xff]  ;;  %v12891_v41 = vpack.c.bf16 %v689_v40, %v688_v39  ;;  %v12895_v44 = vpack.c.bf16 %v772_v43, %v771_v42  ;;  %p12243_p0 = scmp.ne.s32.totalorder %s9155_s21, %s12242_s14  ;;  %p12248_p2 = scmp.lt.s32.totalorder %s12242_s14, %s12242_s14 }
 0x1c4   :  { %9839 = vmatprep.mubr.msk.f32.mxu0 %vm12336_vm0, %v14291_v1  ;;  %10934 = vmatpush3.bf16.msra.mxu1 %v12835_v11  ;;  %v12845_v14 = vpack.c.bf16 %v528_v13, %v527_v12  ;;  %v530_v24 = vld [vmem:[%s14346_s8 + $0x18] sm:$0xff]  ;;  %v12899_v46 = vld [vmem:[#allocation17] ss:$0 sm:$0xff]  ;;  %v870_v49 = vld [vmem:[#allocation25] sm:$0xff] }
 0x1c5   :  { %10941 = vmatprep.subr.bf16.mxu1 %v14289_v0  ;;  %v12865_v25 = vpack.c.bf16 %v530_v24, %v529_v23  ;;  %v871_v50 = vld [vmem:[#allocation25 + $0x8] sm:$0xff]  ;;  %v872_v54 = vld [vmem:[#allocation25 + $0x10] sm:$0xff]  ;;  %v873_v55 = vld [vmem:[#allocation25 + $0x18] sm:$0xff]  ;;  %p12249_p3 = por %p12248_p2, %p12247_p1 }
 0x1c6   :  { %10937 = vmatpush3.bf16.msra.mxu0 %v12845_v14  ;;  %v12902_v52 = vpack.c.bf16 %v871_v50, %v870_v49  ;;  %v12906_v56 = vpack.c.bf16 %v873_v55, %v872_v54  ;;  %v773_v57 = vld [vmem:[#allocation22 + $0x10] sm:$0xff]  ;;  %v774_v58 = vld [vmem:[#allocation22 + $0x18] sm:$0xff]  ;;  %v954_v8 = vld [vmem:[%s14264_s17 + $0x10] sm:$0xff] }
 0x1c7   :  { %10938 = vmatprep.subr.bf16.mxu0 %v14289_v0  ;;  %v12916_v59 = vpack.c.bf16 %v774_v58, %v773_v57  ;;  %v12920_v60 = vld [vmem:[#allocation20] ss:$0 sm:$0xff]  ;;  %v952_v61 = vld [vmem:[%s14264_s17] sm:$0xff]  ;;  %v955_v9 = vld [vmem:[%s14264_s17 + $0x18] sm:$0xff]  ;;  %p12250_p4 = pnand %p12249_p3, %p12243_p0 }
 0x1c8   :  { %v953_v62 = vld [vmem:[%s14264_s17 + $0x8] sm:$0xff]  ;;  %v12941_v12 = vpack.c.bf16 %v955_v9, %v954_v8  ;;  %v12961_v27 = vld [vmem:[%s14265_s18] ss:$0 sm:$0xff]  ;;  %v1057_v43 = vld [vmem:[#allocation13] sm:$0xff] }
 0x1c9   :  { %v12929_v5 = vpack.c.bf16 %v953_v62, %v952_v61  ;;  %v12939_v10 = vld [vmem:[#allocation26] ss:$0 sm:$0xff]  ;;  %v1292_v54 = vld [vmem:[#allocation31 + $0x8] sm:$0xff]  ;;  %v1293_v55 = vld [vmem:[#allocation31 + $0x10] sm:$0xff] }
 0x1ca   :  { %10940 = vmatpush3.bf16.msra.mxu0 %v12865_v25  ;;  %v1294_v61 = vld [vmem:[#allocation31 + $0x18] sm:$0xff] }
 0x1cb   :  { %10947 = vmatprep.subr.bf16.mxu0 %v14289_v0 }
 0x1cd   :  { %9840 = vmatmul.mubr.f32.vlgmr.msra.gmra.mrb[2].mxu0 %v14291_v1 }
 0x1ce   :  { %9861 = vmatprep.mubr.msk.f32.mxu0 %vm12336_vm0, %v14291_v1  ;;  %10949 = vmatpush3.bf16.msra.mxu0 %v12876_v31 }
 0x1cf   :  { %10950 = vmatprep.subr.bf16.mxu0 %v14289_v0 }
 0x1d2   :  { %10952 = vmatpush3.bf16.msra.mxu0 %v12891_v41 }
 0x1d3   :  { %10959 = vmatprep.subr.bf16.mxu0 %v14289_v0 }
 0x296   :  { %v432_v18 = vpop.f32.mrb[0].mxu0 }
 0x297   :  { %v433_v19 = vadd.f32 %v12849_v15, %v432_v18  ;;  %v9819_v20 = vpop.f32.mrb[1].mxu0 }
 0x299   :  { %v436_v22 = vmax.f32 %v433_v19, 0.0  ;;  %v12952_v19 = vld [vmem:[#allocation23] ss:$0 sm:$0xff] }
 0x29b   :  { %9829 = vmatmul.mubr.msk.f32.vlgmr.msra.gmra.mrb[0].mxu1 %vm448_vm2, %v436_v22 }
 0x29c   :  { %10943 = vmatpush3.bf16.msra.mxu1 %v12852_v21  ;;  %9850 = vmatprep.mubr.msk.f32.mxu1 %vm12336_vm0, %v14291_v1 }
 0x29d   :  { %10944 = vmatprep.subr.bf16.mxu1 %v14289_v0 }
 0x2a0   :  { %10946 = vmatpush3.bf16.msra.mxu1 %v12867_v28  ;;  %v600_v37 = vpop.f32.mrb[2].mxu0 }
 0x2a1   :  { %10953 = vmatprep.subr.bf16.mxu1 %v14289_v0  ;;  %v9841_v38 = vpop.f32.mrb[3].mxu0 }
 0x36e   :  { %v518_v33 = vpop.f32.mrb[0].mxu1 }
 0x36f   :  { %v12883_v34 = vadd.f32 %v12880_v32, %v518_v33  ;;  %v9830_v35 = vpop.f32.mrb[1].mxu1 }
 0x371   :  { %v522_v36 = vmax.f32 %v12883_v34, 0.0 }
 0x373   :  { %9851 = vmatmul.mubr.msk.f32.vlgmr.msra.gmra.mrb[2].mxu1 %vm448_vm2, %v522_v36 }
 0x374   :  { %9872 = vmatprep.mubr.msk.f32.mxu1 %vm12336_vm0, %v14291_v1  ;;  %10955 = vmatpush3.bf16.msra.mxu1 %v12895_v44 }
 0x375   :  { %10956 = vmatprep.subr.bf16.mxu1 %v14289_v0 }
 0x378   :  { %10958 = vmatpush3.bf16.msra.mxu1 %v12916_v59 }
 0x379   :  { %10965 = vmatprep.subr.bf16.mxu1 %v14289_v0 }
 0x446   :  { %v673_v45 = vpop.f32.mrb[2].mxu1 }
 0x447   :  { %v674_v47 = vadd.f32 %v673_v45, %v600_v37  ;;  %v9852_v48 = vpop.f32.mrb[3].mxu1  ;;  %v1058_v45 = vld [vmem:[#allocation13 + $0x8] sm:$0xff] }
 0x448   :  { %v12967_v48 = vpack.c.bf16 %v1058_v45, %v1057_v43  ;;  %v352_v43 = vld [vmem:[#allocation5] sm:$0xff]  ;;  %v1144_v45 = vld [vmem:[#allocation29] sm:$0xff] }
 0x449   :  { %v684_v51 = vadd.f32 %v12899_v46, %v674_v47 }
 0x44b   :  { %v685_v53 = vmax.f32 %v684_v51, 0.0 }
 0x44d   :  { %9862 = vmatmul.mubr.msk.f32.vlgmr.msra.gmra.mrb[4].mxu0 %vm448_vm2, %v685_v53  ;;  %v1291_v53 = vld [vmem:[#allocation31] sm:$0xff] }
 0x44e   :  { %10961 = vmatpush3.bf16.msra.mxu0 %v12902_v52  ;;  %9883 = vmatprep.mubr.msk.f32.mxu0 %vm12336_vm0, %v14291_v1  ;;  %v12971_v58 = vpack.c.bf16 %v1292_v54, %v1291_v53  ;;  %v1146_v54 = vld [vmem:[#allocation29 + $0x10] sm:$0xff] }
 0x44f   :  { %10962 = vmatprep.subr.bf16.mxu0 %v14289_v0 }
 0x452   :  { %10964 = vmatpush3.bf16.msra.mxu0 %v12906_v56 }
 0x453   :  { %10971 = vmatprep.subr.bf16.mxu0 %v14289_v0 }
 0x455   :  { %9884 = vmatmul.mubr.f32.vlgmr.msra.gmra.mrb[6].mxu0 %v14291_v1 }
 0x456   :  { %9901 = vmatprep.mubr.msk.f32.mxu0 %vm12336_vm0, %v14291_v1  ;;  %10973 = vmatpush3.bf16.msra.mxu0 %v12967_v48 }
 0x457   :  { %10974 = vmatprep.subr.bf16.mxu0 %v14289_v0 }
 0x520   :  { %v766_v63 = vpop.f32.mrb[4].mxu0 }
 0x521   :  { %v767_v2 = vadd.f32 %v12920_v60, %v766_v63  ;;  %v9863_v3 = vpop.f32.mrb[5].mxu0 }
 0x523   :  { %v770_v6 = vmax.f32 %v767_v2, 0.0  ;;  %v12974_v2 = vpack.c.bf16 %v1294_v61, %v1293_v55  ;;  %v1147_v55 = vld [vmem:[#allocation29 + $0x18] sm:$0xff] }
 0x525   :  { %9873 = vmatmul.mubr.msk.f32.vlgmr.msra.gmra.mrb[4].mxu1 %vm448_vm2, %v770_v6 }
 0x526   :  { %10967 = vmatpush3.bf16.msra.mxu1 %v12929_v5  ;;  %9894 = vmatprep.mubr.msk.f32.mxu1 %vm12336_vm0, %v14291_v1 }
 0x527   :  { %10968 = vmatprep.subr.bf16.mxu1 %v14289_v0 }
 0x528   :  { %v947_v13 = vpop.f32.mrb[6].mxu0 }
 0x529   :  { %v948_v16 = vadd.f32 %v12939_v10, %v947_v13  ;;  %v9885_v17 = vpop.f32.mrb[7].mxu0 }
 0x52a   :  { %10970 = vmatpush3.bf16.msra.mxu1 %v12941_v12 }
 0x52b   :  { %v951_v18 = vmax.f32 %v948_v16, 0.0  ;;  %10986 = vmatprep.subr.bf16.mxu1 %v14289_v0 }
 0x52d   :  { %9895 = vmatmul.mubr.msk.f32.vlgmr.msra.gmra.mrb[6].mxu1 %vm448_vm2, %v951_v18 }
 0x52e   :  { %9934 = vmatprep.mubr.msk.f32.mxu1 %vm12336_vm0, %v14291_v1  ;;  %10988 = vmatpush3.bf16.msra.mxu1 %v12971_v58 }
 0x52f   :  { %10989 = vmatprep.subr.bf16.mxu1 %v14289_v0 }
 0x532   :  { %10991 = vmatpush3.bf16.msra.mxu1 %v12974_v2 }
 0x533   :  { %10992 = vmatprep.subr.bf16.mxu1 %v14289_v0 }
 0x535   :  { %9935 = vmatmul.mubr.f32.vlgmr.msra.gmra.mrb[8].mxu1 %v14291_v1 }
 0x536   :  { %9945 = vmatprep.mubr.msk.f32.mxu1 %vm12336_vm0, %v14291_v1 }
 0x5f8   :  { %v851_v20 = vpop.f32.mrb[4].mxu1 }
 0x5f9   :  { %v12955_v22 = vadd.f32 %v12952_v19, %v851_v20  ;;  %v9874_v23 = vpop.f32.mrb[5].mxu1 }
 0x5fb   :  { %v856_v24 = vand.u32 2147483647, %v12955_v22  ;;  %v855_v8 = vmax.f32 %v12955_v22, 0.0 }
 0x5fd   :  { %v857_v26 = vsub.f32 0.0, %v856_v24 }
 0x5ff   :  { %v858_v29 = vmul.f32 1.442695, %v857_v26 }
 0x600   :  { %v1032_v30 = vpop.f32.mrb[6].mxu1 }
 0x601   :  { %11568 = vpow2.f32 %v858_v29  ;;  %v12964_v33 = vadd.f32 %v12961_v27, %v1032_v30  ;;  %v9896_v35 = vpop.f32.mrb[7].mxu1 }
 0x603   :  { %v1037_v37 = vand.u32 2147483647, %v12964_v33  ;;  %v1036_v23 = vmax.f32 %v12964_v33, 0.0 }
 0x605   :  { %v1038_v38 = vsub.f32 0.0, %v1037_v37 }
 0x607   :  { %v1039_v39 = vmul.f32 1.442695, %v1038_v38 }
 0x608   :  { %v1361_v61 = vpop.f32.mrb[8].mxu1 }
 0x609   :  { %11570 = vpow2.f32 %v1039_v39 }
 0x60b   :  { %v11569_v40 = vpop.eup %11568 }
 0x60c   :  { %v860_v42 = vadd.f32 1.0, %v11569_v40  ;;  %v863_v47 = vmul.f32 -0.5, %v11569_v40  ;;  %v866_v57 = vand.u32 2147483647, %v11569_v40 }
 0x60e   :  { %11572 = vlog2.f32 %v860_v42  ;;  %v864_v51 = vadd.f32 1.0, %v863_v47  ;;  %vm867_vm3 = vcmp.lt.f32.partialorder %v866_v57, 0.0004427343  ;;  %v1145_v47 = vld [vmem:[#allocation29 + $0x8] sm:$0xff]  ;;  %v13006_v57 = vpack.c.bf16 %v1147_v55, %v1146_v54  ;;  %v1472_v54 = vld [vmem:[#allocation34 + $0x10] sm:$0xff] }
 0x610   :  { %v865_v6 = vmul.f32 %v11569_v40, %v864_v51  ;;  %v12998_v51 = vpack.c.bf16 %v1145_v47, %v1144_v45 }
 0x613   :  { %v11571_v49 = vpop.eup %11570 }
 0x614   :  { %v1041_v50 = vadd.f32 1.0, %v11571_v49  ;;  %v1044_v62 = vmul.f32 -0.5, %v11571_v49  ;;  %v1047_v16 = vand.u32 2147483647, %v11571_v49 }
 0x616   :  { %11574 = vlog2.f32 %v1041_v50  ;;  %v1045_v9 = vadd.f32 1.0, %v1044_v62  ;;  %vm1048_vm4 = vcmp.lt.f32.partialorder %v1047_v16, 0.0004427343  ;;  %v9936_v62 = vpop.f32.mrb[9].mxu1 }
 0x617   :  { %v1391_v62 = vld [vmem:[#allocation32] sm:$0xff] }
 0x618   :  { %v11573_v63 = vpop.eup %11572  ;;  %v1046_v18 = vmul.f32 %v11571_v49, %v1045_v9 }
 0x619   :  { %v862_v3 = vmul.f32 0.6931472, %v11573_v63  ;;  %v13011_v63 = vld [vmem:[#allocation14] ss:$0 sm:$0xff] }
 0x61b   :  { %v868_v13 = vsel %vm867_vm3, %v865_v6, %v862_v3  ;;  %v1140_v3 = vld [vmem:[#allocation28] sm:$0xff]  ;;  %v1141_v6 = vld [vmem:[#allocation28 + $0x8] sm:$0xff] }
 0x61c   :  { %v12978_v17 = vadd.f32 %v868_v13, %v855_v8  ;;  %v13014_v16 = vpack.c.bf16 %v1141_v6, %v1140_v3  ;;  %v1392_v3 = vld [vmem:[#allocation32 + $0x8] sm:$0xff] }
 0x61d   :  { %v13033_v6 = vpack.c.bf16 %v1392_v3, %v1391_v62 }
 0x61e   :  { %14347 = vst [vmem:[#allocation51_spill] sm:$0xff] %v12978_v17  ;;  %1052 = vrot.lane.b32.xlu0 %v12978_v17, %s12338_s3  ;;  %11576 = vlog2.f32 %v12978_v17 }
 0x61f   :  { %10994 = vmatpush3.bf16.msra.mxu1 %v13033_v6 }
 0x620   :  { %v11575_v20 = vpop.eup %11574  ;;  %10995 = vmatprep.subr.bf16.mxu1 %v14289_v0 }
 0x621   :  { %v1043_v24 = vmul.f32 0.6931472, %v11575_v20  ;;  %v1142_v20 = vld [vmem:[#allocation28 + $0x10] sm:$0xff] }
 0x622   :  { %1373 = vrot.lane.b32.xlu0 %v1361_v61, %s12339_s16 }
 0x623   :  { %v1049_v26 = vsel %vm1048_vm4, %v1046_v18, %v1043_v24 }
 0x624   :  { %v12989_v29 = vadd.f32 %v1049_v26, %v1036_v23  ;;  %v1143_v23 = vld [vmem:[#allocation28 + $0x18] sm:$0xff] }
 0x625   :  { %v13018_v24 = vpack.c.bf16 %v1143_v23, %v1142_v20 }
 0x626   :  { %14348 = vst [vmem:[#allocation52_spill] sm:$0xff] %v12989_v29  ;;  %11578 = vlog2.f32 %v12989_v29 }
 0x628   :  { %v11577_v30 = vpop.eup %11576 }
 0x629   :  { %v1574_v35 = vmul.f32 0.6931472, %v11577_v30 }
 0x62b   :  { %v12994_v40 = vmul.f32 2.0, %v1574_v35 }
 0x62d   :  { %14350 = vst [vmem:[#allocation54_spill] sm:$0xff] %v12994_v40 }
 0x630   :  { %v11579_v37 = vpop.eup %11578 }
 0x631   :  { %v1571_v38 = vmul.f32 0.6931472, %v11579_v37 }
 0x633   :  { %v12992_v39 = vmul.f32 2.0, %v1571_v38 }
 0x635   :  { %14349 = vst [vmem:[#allocation53_spill] sm:$0xff] %v12992_v39 }
 0x690   :  { %v1053_v49 = vpop.permute.xlu0 %1052 }
 0x691   :  { %v1055_v50 = vmul.f32 %v1053_v49, %v352_v43 }
 0x693   :  { %v1056_v53 = vadd.f32 %v1055_v50, %v12955_v22 }
 0x694   :  { %v1374_v45 = vpop.permute.xlu0 %1373 }
 0x695   :  { %9902 = vmatmul.mubr.msk.f32.vlgmr.msra.gmra.mrb[8].mxu0 %vm362_vm1, %v1056_v53  ;;  %v1471_v53 = vld [vmem:[#allocation34 + $0x8] sm:$0xff] }
 0x696   :  { %10976 = vmatpush3.bf16.msra.mxu0 %v12998_v51  ;;  %9912 = vmatprep.mubr.msk.f32.mxu0 %vm12336_vm0, %v14291_v1 }
 0x697   :  { %10977 = vmatprep.subr.bf16.mxu0 %v14289_v0 }
 0x69a   :  { %10979 = vmatpush3.bf16.msra.mxu0 %v13006_v57 }
 0x69b   :  { %10980 = vmatprep.subr.bf16.mxu0 %v14289_v0 }
 0x768   :  { %v1135_v8 = vpop.f32.mrb[8].mxu0 }
 0x769   :  { %v1136_v9 = vadd.f32 %v13011_v63, %v1135_v8  ;;  %v9903_v13 = vpop.f32.mrb[9].mxu0  ;;  %v1393_v8 = vld [vmem:[#allocation32 + $0x10] sm:$0xff] }
 0x76b   :  { %v1139_v18 = vmax.f32 %v1136_v9, 0.0  ;;  %v1394_v9 = vld [vmem:[#allocation32 + $0x18] sm:$0xff] }
 0x76d   :  { %9913 = vmatmul.mubr.msk.f32.vlgmr.msra.gmra.mrb[10].mxu0 %vm448_vm2, %v1139_v18  ;;  %v13040_v18 = vpack.c.bf16 %v1394_v9, %v1393_v8 }
 0x76e   :  { %10982 = vmatpush3.bf16.msra.mxu0 %v13014_v16  ;;  %9923 = vmatprep.mubr.msk.f32.mxu0 %vm12336_vm0, %v14291_v1 }
 0x76f   :  { %10983 = vmatprep.subr.bf16.mxu0 %v14289_v0  ;;  %10997 = vmatpush3.bf16.msra.mxu1 %v13040_v18 }
 0x770   :  { %11004 = vmatprep.subr.bf16.mxu1 %v14289_v0 }
 0x772   :  { %10985 = vmatpush3.bf16.msra.mxu0 %v13018_v24 }
 0x773   :  { %10998 = vmatprep.subr.bf16.mxu0 %v14289_v0 }
 0x775   :  { %9924 = vmatmul.mubr.msk.f32.vlgmr.msra.gmra.mrb[10].mxu0 %vm448_vm2, %v522_v36  ;;  %v1470_v36 = vld [vmem:[#allocation34] sm:$0xff] }
 0x776   :  { %9956 = vmatprep.mubr.msk.f32.mxu0 %vm12336_vm0, %v14291_v1  ;;  %v13031_v55 = vpack.c.bf16 %v1471_v53, %v1470_v36 }
 0x778   :  { %11000 = vmatpush3.bf16.msra.mxu0 %v13031_v55 }
 0x779   :  { %11001 = vmatprep.subr.bf16.mxu0 %v14289_v0 }
 0x848   :  { %v1287_v26 = vpop.f32.mrb[10].mxu0 }
 0x849   :  { %v1365_v30 = vadd.f32 %v1361_v61, %v1287_v26  ;;  %v9925_v35 = vpop.f32.mrb[11].mxu0  ;;  %v1473_v61 = vld [vmem:[#allocation34 + $0x18] sm:$0xff] }
 0x84a   :  { %v13036_v13 = vpack.c.bf16 %v1473_v61, %v1472_v54 }
 0x84b   :  { %v9194_v37 = vmul.f32 -1.442695, %v1365_v30 }
 0x84c   :  { %11003 = vmatpush3.bf16.msra.mxu0 %v13036_v13 }
 0x84d   :  { %11580 = vpow2.f32 %v9194_v37  ;;  %11013 = vmatprep.subr.bf16.mxu0 %v14289_v0 }
 0x84f   :  { %9957 = vmatmul.mubr.f32.vlgmr.msra.gmra.mrb[12].mxu0 %v14291_v1 }
 0x850   :  { %11015 = vmatpush3.bf16.msra.mxu0 %v12845_v14  ;;  %9985 = vmatprep.mubr.msk.f32.mxu0 %vm12336_vm0, %v14291_v1 }
 0x851   :  { %11016 = vmatprep.subr.bf16.mxu0 %v14289_v0 }
 0x854   :  { %11018 = vmatpush3.bf16.msra.mxu0 %v12865_v25 }
 0x855   :  { %11025 = vmatprep.subr.bf16.mxu0 %v14289_v0 }
 0x857   :  { %v11581_v38 = vpop.eup %11580 }
 0x858   :  { %v1369_v43 = vadd.f32 1.0, %v11581_v38 }
 0x85a   :  { %11582 = vrcp.f32 %v1369_v43 }
 0x864   :  { %v11583_v47 = vpop.eup %11582 }
 0x865   :  { %v1376_v49 = vmul.f32 %v11583_v47, %v1374_v45  ;;  %v1383_v23 = vsub.f32 1.0, %v11583_v47  ;;  %v1389_v30 = vmul.f32 0.0, %v11583_v47  ;;  %v1592_v47 = vld [vmem:[#allocation2 + $0x8] sm:$0xff] }
 0x867   :  { %1378 = vrot.lane.b32.xlu1 %v1376_v49, %s12339_s16 }
 0x8d9   :  { %v1379_v50 = vpop.permute.xlu1 %1378 }
 0x8da   :  { %v1381_v34 = vadd.f32 %v1379_v50, %v1287_v26 }
 0x8dc   :  { %11584 = vtanh.f32 %v1381_v34 }
 0x8e6   :  { %v11585_v20 = vpop.eup %11584 }
 0x8e7   :  { %1385 = vrot.lane.b32.xlu1 %v11585_v20, %s12340_s9 }
 0x922   :  { %v1540_v38 = vpop.f32.mrb[12].mxu0 }
 0x923   :  { %v9958_v43 = vpop.f32.mrb[13].mxu0  ;;  %1552 = vrot.lane.b32.xlu1 %v1540_v38, %s12339_s16 }
 0x959   :  { %v1386_v26 = vpop.permute.xlu1 %1385 }
 0x95a   :  { %v1388_v35 = vmul.f32 %v1386_v26, %v1383_v23 }
 0x95c   :  { %v13055_v37 = vadd.f32 %v1389_v30, %v1388_v35 }
 0x95e   :  { %1396 = vrot.lane.b32.xlu0 %v13055_v37, %s12340_s9 }
 0x995   :  { %v1553_v61 = vpop.permute.xlu1 %1552 }
 0x9d0   :  { %v13060_v45 = vpop.permute.xlu0 %1396 }
 0x9d1   :  { %9946 = vmatmul.mubr.msk.f32.vlgmr.msra.gmra.mrb[10].mxu1 %vm448_vm2, %v13060_v45 }
 0x9d2   :  { %11006 = vmatpush3.bf16.msra.mxu1 %v12824_v4  ;;  %9963 = vmatprep.mubr.msk.f32.mxu1 %vm12336_vm0, %v14291_v1 }
 0x9d3   :  { %11007 = vmatprep.subr.bf16.mxu1 %v14289_v0 }
 0x9d5   :  { %9964 = vmatmul.mubr.msk.f32.vlgmr.msra.gmra.mrb[12].mxu1 %vm362_vm1, %v1592_v47 }
 0x9d6   :  { %11009 = vmatpush3.bf16.msra.mxu1 %v12826_v7  ;;  %9974 = vmatprep.mubr.msk.f32.mxu1 %vm12336_vm0, %v14291_v1 }
 0x9d7   :  { %11010 = vmatprep.subr.bf16.mxu1 %v14289_v0 }
 0x9da   :  { %11012 = vmatpush3.bf16.msra.mxu1 %v12835_v11 }
 0x9db   :  { %11019 = vmatprep.subr.bf16.mxu1 %v14289_v0 }
 0xaa4   :  { %v1466_v49 = vpop.f32.mrb[10].mxu1 }
 0xaa5   :  { %v1544_v50 = vadd.f32 %v1540_v38, %v1466_v49  ;;  %v9947_v34 = vpop.f32.mrb[11].mxu1 }
 0xaa7   :  { %v9196_v36 = vmul.f32 -1.442695, %v1544_v50 }
 0xaa8   :  { %v1664_v8 = vpop.f32.mrb[12].mxu1 }
 0xaa9   :  { %11586 = vpow2.f32 %v9196_v36  ;;  %v1665_v9 = vadd.f32 %v12849_v15, %v1664_v8  ;;  %v9965_v20 = vpop.f32.mrb[13].mxu1 }
 0xaab   :  { %v1668_v23 = vmax.f32 %v1665_v9, 0.0 }
 0xaad   :  { %9975 = vmatmul.mubr.msk.f32.vlgmr.msra.gmra.mrb[14].mxu1 %vm448_vm2, %v1668_v23 }
 0xaae   :  { %11021 = vmatpush3.bf16.msra.mxu1 %v12852_v21  ;;  %9996 = vmatprep.mubr.msk.f32.mxu1 %vm12336_vm0, %v14291_v1 }
 0xaaf   :  { %11022 = vmatprep.subr.bf16.mxu1 %v14289_v0 }
 0xab2   :  { %11024 = vmatpush3.bf16.msra.mxu1 %v12867_v28 }
 0xab3   :  { %v11587_v53 = vpop.eup %11586  ;;  %11031 = vmatprep.subr.bf16.mxu1 %v14289_v0 }
 0xab4   :  { %v1548_v54 = vadd.f32 1.0, %v11587_v53 }
 0xab6   :  { %11588 = vrcp.f32 %v1548_v54 }
 0xac0   :  { %v11589_v62 = vpop.eup %11588 }
 0xac1   :  { %v1555_v3 = vmul.f32 %v11589_v62, %v1553_v61  ;;  %v1568_v36 = vmul.f32 0.0, %v11589_v62 }
 0xac3   :  { %1557 = vrot.lane.b32.xlu0 %v1555_v3, %s12339_s16 }
 0xb35   :  { %v1558_v26 = vpop.permute.xlu0 %1557 }
 0xb36   :  { %v1560_v30 = vadd.f32 %v1558_v26, %v1466_v49  ;;  %v1562_v49 = vsub.f32 1.0, %v11589_v62 }
 0xb38   :  { %11590 = vtanh.f32 %v1560_v30 }
 0xb42   :  { %v11591_v35 = vpop.eup %11590 }
 0xb43   :  { %1564 = vrot.lane.b32.xlu1 %v11591_v35, %s12340_s9 }
 0xb80   :  { %v1738_v38 = vpop.f32.mrb[14].mxu1 }
 0xb81   :  { %v13086_v43 = vadd.f32 %v12880_v32, %v1738_v38  ;;  %v9976_v47 = vpop.f32.mrb[15].mxu1 }
 0xb83   :  { %v14288_v50 = vmax.f32 %v13086_v43, 0.0 }
 0xb85   :  { %9997 = vmatmul.mubr.msk.f32.vlgmr.msra.gmra.mrb[16].mxu1 %vm448_vm2, %v14288_v50 }
 0xb86   :  { %11033 = vmatpush3.bf16.msra.mxu1 %v12895_v44  ;;  %10018 = vmatprep.mubr.msk.f32.mxu1 %vm12336_vm0, %v14291_v1 }
 0xb87   :  { %11034 = vmatprep.subr.bf16.mxu1 %v14289_v0 }
 0xb8a   :  { %11036 = vmatpush3.bf16.msra.mxu1 %v12916_v59 }
 0xb8b   :  { %11043 = vmatprep.subr.bf16.mxu1 %v14289_v0 }
 0xbb5   :  { %v1565_v34 = vpop.permute.xlu1 %1564 }
 0xbb6   :  { %v1567_v53 = vmul.f32 %v1565_v34, %v1562_v49 }
 0xbb8   :  { %v13098_v54 = vadd.f32 %v1568_v36, %v1567_v53 }
 0xbba   :  { %1744 = vrot.lane.b32.xlu0 %v13098_v54, %s12340_s9 }
 0xc2c   :  { %v13102_v61 = vpop.permute.xlu0 %1744 }
 0xc2d   :  { %9986 = vmatmul.mubr.msk.f32.vlgmr.msra.gmra.mrb[14].mxu0 %vm448_vm2, %v13102_v61 }
 0xc2e   :  { %11027 = vmatpush3.bf16.msra.mxu0 %v12876_v31  ;;  %10007 = vmatprep.mubr.msk.f32.mxu0 %vm12336_vm0, %v14291_v1 }
 0xc2f   :  { %11028 = vmatprep.subr.bf16.mxu0 %v14289_v0 }
 0xc32   :  { %11030 = vmatpush3.bf16.msra.mxu0 %v12891_v41 }
 0xc33   :  { %11037 = vmatprep.subr.bf16.mxu0 %v14289_v0 }
 0xc58   :  { %v1887_v62 = vpop.f32.mrb[16].mxu1 }
 0xc59   :  { %v9998_v3 = vpop.f32.mrb[17].mxu1 }
 0xd00   :  { %v1814_v8 = vpop.f32.mrb[14].mxu0 }
 0xd01   :  { %v1888_v9 = vadd.f32 %v1887_v62, %v1814_v8  ;;  %v9987_v20 = vpop.f32.mrb[15].mxu0 }
 0xd03   :  { %v1891_v23 = vadd.f32 %v12899_v46, %v1888_v9 }
 0xd05   :  { %v1892_v26 = vmax.f32 %v1891_v23, 0.0 }
 0xd07   :  { %10008 = vmatmul.mubr.msk.f32.vlgmr.msra.gmra.mrb[16].mxu0 %vm448_vm2, %v1892_v26 }
 0xd08   :  { %11039 = vmatpush3.bf16.msra.mxu0 %v12902_v52  ;;  %10029 = vmatprep.mubr.msk.f32.mxu0 %vm12336_vm0, %v14291_v1 }
 0xd09   :  { %11040 = vmatprep.subr.bf16.mxu0 %v14289_v0 }
 0xd0c   :  { %11042 = vmatpush3.bf16.msra.mxu0 %v12906_v56 }
 0xd0d   :  { %11049 = vmatprep.subr.bf16.mxu0 %v14289_v0 }
 0xd0f   :  { %10030 = vmatmul.mubr.msk.f32.vlgmr.msra.gmra.mrb[18].mxu0 %vm448_vm2, %v13102_v61 }
 0xd10   :  { %11051 = vmatpush3.bf16.msra.mxu0 %v12967_v48  ;;  %10047 = vmatprep.mubr.msk.f32.mxu0 %vm12336_vm0, %v14291_v1 }
 0xd11   :  { %11052 = vmatprep.subr.bf16.mxu0 %v14289_v0 }
 0xdda   :  { %v1962_v30 = vpop.f32.mrb[16].mxu0 }
 0xddb   :  { %v1963_v35 = vadd.f32 %v12920_v60, %v1962_v30  ;;  %v10009_v38 = vpop.f32.mrb[17].mxu0 }
 0xddd   :  { %v1966_v47 = vmax.f32 %v1963_v35, 0.0 }
 0xddf   :  { %10019 = vmatmul.mubr.msk.f32.vlgmr.msra.gmra.mrb[18].mxu1 %vm448_vm2, %v1966_v47 }
 0xde0   :  { %11045 = vmatpush3.bf16.msra.mxu1 %v12929_v5  ;;  %10040 = vmatprep.mubr.msk.f32.mxu1 %vm12336_vm0, %v14291_v1 }
 0xde1   :  { %11046 = vmatprep.subr.bf16.mxu1 %v14289_v0 }
 0xde2   :  { %v2121_v49 = vpop.f32.mrb[18].mxu0 }
 0xde3   :  { %v2122_v34 = vadd.f32 %v12939_v10, %v2121_v49  ;;  %v10031_v36 = vpop.f32.mrb[19].mxu0 }
 0xde4   :  { %11048 = vmatpush3.bf16.msra.mxu1 %v12941_v12 }
 0xde5   :  { %v2125_v53 = vmax.f32 %v2122_v34, 0.0  ;;  %11064 = vmatprep.subr.bf16.mxu1 %v14289_v0 }
 0xde7   :  { %10041 = vmatmul.mubr.msk.f32.vlgmr.msra.gmra.mrb[20].mxu1 %vm448_vm2, %v2125_v53 }
 0xde8   :  { %11066 = vmatpush3.bf16.msra.mxu1 %v12971_v58  ;;  %10080 = vmatprep.mubr.msk.f32.mxu1 %vm12336_vm0, %v14291_v1 }
 0xde9   :  { %11067 = vmatprep.subr.bf16.mxu1 %v14289_v0 }
 0xdec   :  { %11069 = vmatpush3.bf16.msra.mxu1 %v12974_v2 }
 0xded   :  { %11070 = vmatprep.subr.bf16.mxu1 %v14289_v0 }
 0xdef   :  { %10081 = vmatmul.mubr.msk.f32.vlgmr.msra.gmra.mrb[22].mxu1 %vm448_vm2, %v13060_v45 }
 0xdf0   :  { %11072 = vmatpush3.bf16.msra.mxu1 %v13033_v6  ;;  %10091 = vmatprep.mubr.msk.f32.mxu1 %vm12336_vm0, %v14291_v1 }
 0xdf1   :  { %11073 = vmatprep.subr.bf16.mxu1 %v14289_v0 }
 0xdf4   :  { %11075 = vmatpush3.bf16.msra.mxu1 %v13040_v18 }
 0xdf5   :  { %11082 = vmatprep.subr.bf16.mxu1 %v14289_v0 }
 0xeb2   :  { %v2036_v62 = vpop.f32.mrb[18].mxu1 }
 0xeb3   :  { %v13151_v3 = vadd.f32 %v12952_v19, %v2036_v62  ;;  %v10020_v8 = vpop.f32.mrb[19].mxu1 }
 0xeb5   :  { %14351 = vst [vmem:[#allocation55_spill] sm:$0xff] %v13151_v3  ;;  %v2041_v9 = vand.u32 2147483647, %v13151_v3  ;;  %v2040_v42 = vmax.f32 %v13151_v3, 0.0 }
 0xeb7   :  { %v2042_v20 = vsub.f32 0.0, %v2041_v9 }
 0xeb9   :  { %v2043_v45 = vmul.f32 1.442695, %v2042_v20 }
 0xeba   :  { %v2195_v23 = vpop.f32.mrb[20].mxu1 }
 0xebb   :  { %11592 = vpow2.f32 %v2043_v45  ;;  %v13155_v26 = vadd.f32 %v12961_v27, %v2195_v23  ;;  %v10042_v30 = vpop.f32.mrb[21].mxu1 }
 0xebd   :  { %14352 = vst [vmem:[#allocation56_spill] sm:$0xff] %v13155_v26  ;;  %v2200_v35 = vand.u32 2147483647, %v13155_v26 }
 0xebf   :  { %v2201_v38 = vsub.f32 0.0, %v2200_v35 }
 0xec1   :  { %v2202_v47 = vmul.f32 1.442695, %v2201_v38 }
 0xec2   :  { %v13158_v49 = vpop.f32.mrb[22].mxu1 }
 0xec3   :  { %11594 = vpow2.f32 %v2202_v47  ;;  %2515 = vrot.lane.b32.xlu0 %v13158_v49, %s12339_s16  ;;  %v10082_v34 = vpop.f32.mrb[23].mxu1 }
 0xec5   :  { %v11593_v36 = vpop.eup %11592 }
 0xec6   :  { %v2045_v53 = vadd.f32 1.0, %v11593_v36  ;;  %v2048_v62 = vmul.f32 -0.5, %v11593_v36  ;;  %v2051_v45 = vand.u32 2147483647, %v11593_v36 }
 0xec8   :  { %11596 = vlog2.f32 %v2045_v53  ;;  %v2049_v20 = vadd.f32 1.0, %v2048_v62  ;;  %vm2052_vm5 = vcmp.lt.f32.partialorder %v2051_v45, 0.0004427343 }
 0xeca   :  { %v2050_v38 = vmul.f32 %v11593_v36, %v2049_v20 }
 0xecd   :  { %v11595_v8 = vpop.eup %11594 }
 0xece   :  { %v2204_v9 = vadd.f32 1.0, %v11595_v8  ;;  %v2207_v30 = vmul.f32 -0.5, %v11595_v8  ;;  %v2210_v0 = vand.u32 2147483647, %v11595_v8 }
 0xed0   :  { %11598 = vlog2.f32 %v2204_v9  ;;  %v2208_v34 = vadd.f32 1.0, %v2207_v30  ;;  %v2199_v9 = vmax.f32 %v13155_v26, 0.0  ;;  %vm2211_vm6 = vcmp.lt.f32.partialorder %v2210_v0, 0.0004427343 }
 0xed2   :  { %v11597_v23 = vpop.eup %11596  ;;  %v2209_v62 = vmul.f32 %v11595_v8, %v2208_v34 }
 0xed3   :  { %v2047_v35 = vmul.f32 0.6931472, %v11597_v23 }
 0xed5   :  { %v2053_v47 = vsel %vm2052_vm5, %v2050_v38, %v2047_v35 }
 0xed6   :  { %v13163_v50 = vadd.f32 %v2053_v47, %v2040_v42  ;;  %v1594_v47 = vld [vmem:[#allocation5 + $0x8] sm:$0xff] }
 0xed8   :  { %14353 = vst [vmem:[#allocation57_spill] sm:$0xff] %v13163_v50  ;;  %2215 = vrot.lane.b32.xlu1 %v13163_v50, %s12338_s3  ;;  %11600 = vlog2.f32 %v13163_v50 }
 0xeda   :  { %v11599_v53 = vpop.eup %11598 }
 0xedb   :  { %v2206_v1 = vmul.f32 0.6931472, %v11599_v53  ;;  %v14357_v53 = vmov 0.0  }
 0xedd   :  { %v2212_v36 = vsel %vm2211_vm6, %v2209_v62, %v2206_v1  ;;  %v14358_v62 = vmov 0.0|0.0  }
 0xede   :  { %v13169_v20 = vadd.f32 %v2212_v36, %v2199_v9 }
 0xee0   :  { %14354 = vst [vmem:[#allocation58_spill] sm:$0xff] %v13169_v20  ;;  %11602 = vlog2.f32 %v13169_v20 }
 0xee2   :  { %v11601_v42 = vpop.eup %11600 }
 0xee3   :  { %v2708_v45 = vmul.f32 0.6931472, %v11601_v42 }
 0xee5   :  { %v13174_v38 = vmul.f32 2.0, %v2708_v45 }
 0xee7   :  { %14356 = vst [vmem:[#allocation60_spill] sm:$0xff] %v13174_v38 }
 0xeea   :  { %v11603_v23 = vpop.eup %11602 }
 0xeeb   :  { %v2705_v30 = vmul.f32 0.6931472, %v11603_v23  ;;  %v14359_v23 = vmax.f32 %v13086_v43, 0.0 }
 0xeed   :  { %v13172_v35 = vmul.f32 2.0, %v2705_v30 }
 0xeef   :  { %14355 = vst [vmem:[#allocation59_spill] sm:$0xff] %v13172_v35 }
 0xf4a   :  { %v2216_v0 = vpop.permute.xlu1 %2215 }
 0xf4b   :  { %v2218_v34 = vmul.f32 %v2216_v0, %v1594_v47 }
 0xf4d   :  { %v2219_v1 = vadd.f32 %v2218_v34, %v13151_v3 }
 0xf4f   :  { %10048 = vmatmul.mubr.msk.f32.vlgmr.msra.gmra.mrb[20].mxu0 %vm362_vm1, %v2219_v1 }
 0xf50   :  { %11054 = vmatpush3.bf16.msra.mxu0 %v12998_v51  ;;  %10058 = vmatprep.mubr.msk.f32.mxu0 %vm12336_vm0, %v14357_v53 }
 0xf51   :  { %11055 = vmatprep.subr.bf16.mxu0 %v14358_v62 }
 0xf54   :  { %11057 = vmatpush3.bf16.msra.mxu0 %v13006_v57 }
 0xf55   :  { %11058 = vmatprep.subr.bf16.mxu0 %v14358_v62 }
0x1022   :  { %v2289_v9 = vpop.f32.mrb[20].mxu0 }
0x1023   :  { %v2290_v36 = vadd.f32 %v13011_v63, %v2289_v9  ;;  %v10049_v42 = vpop.f32.mrb[21].mxu0 }
0x1024   :  { %v2516_v42 = vpop.permute.xlu0 %2515 }
0x1025   :  { %v2293_v45 = vmax.f32 %v2290_v36, 0.0 }
0x1027   :  { %10059 = vmatmul.mubr.msk.f32.vlgmr.msra.gmra.mrb[22].mxu0 %vm448_vm2, %v2293_v45 }
0x1028   :  { %11060 = vmatpush3.bf16.msra.mxu0 %v13014_v16  ;;  %10069 = vmatprep.mubr.msk.f32.mxu0 %vm12336_vm0, %v14357_v53 }
0x1029   :  { %11061 = vmatprep.subr.bf16.mxu0 %v14358_v62 }
0x102c   :  { %11063 = vmatpush3.bf16.msra.mxu0 %v13018_v24 }
0x102d   :  { %11076 = vmatprep.subr.bf16.mxu0 %v14358_v62 }
0x102f   :  { %10070 = vmatmul.mubr.msk.f32.vlgmr.msra.gmra.mrb[22].mxu0 %vm448_vm2, %v14359_v23 }
0x1030   :  { %11078 = vmatpush3.bf16.msra.mxu0 %v13031_v55  ;;  %10102 = vmatprep.mubr.msk.f32.mxu0 %vm12336_vm0, %v14357_v53 }
0x1031   :  { %11079 = vmatprep.subr.bf16.mxu0 %v14358_v62 }
0x1034   :  { %11081 = vmatpush3.bf16.msra.mxu0 %v13036_v13 }
0x1035   :  { %11091 = vmatprep.subr.bf16.mxu0 %v14358_v62 }
0x1037   :  { %10103 = vmatmul.mubr.msk.f32.vlgmr.msra.gmra.mrb[24].mxu0 %vm448_vm2, %v13102_v61 }
0x1038   :  { %11093 = vmatpush3.bf16.msra.mxu0 %v12845_v14  ;;  %10131 = vmatprep.mubr.msk.f32.mxu0 %vm12336_vm0, %v14357_v53 }
0x1039   :  { %11094 = vmatprep.subr.bf16.mxu0 %v14358_v62 }
0x103c   :  { %11096 = vmatpush3.bf16.msra.mxu0 %v12865_v25 }
0x103d   :  { %11103 = vmatprep.subr.bf16.mxu0 %v14358_v62 }
0x1102   :  { %v2433_v43 = vpop.f32.mrb[22].mxu0 }
0x1103   :  { %v2507_v30 = vadd.f32 %v13158_v49, %v2433_v43  ;;  %v10071_v47 = vpop.f32.mrb[23].mxu0 }
0x1105   :  { %v9210_v0 = vmul.f32 -1.442695, %v2507_v30 }
0x1107   :  { %11604 = vpow2.f32 %v9210_v0 }
0x110a   :  { %v2674_v34 = vpop.f32.mrb[24].mxu0 }
0x110b   :  { %v10104_v1 = vpop.f32.mrb[25].mxu0 }
0x1111   :  { %v11605_v61 = vpop.eup %11604 }
0x1112   :  { %v2511_v9 = vadd.f32 1.0, %v11605_v61 }
0x1114   :  { %11606 = vrcp.f32 %v2511_v9 }
0x111e   :  { %v11607_v36 = vpop.eup %11606 }
0x111f   :  { %v2518_v45 = vmul.f32 %v11607_v36, %v2516_v42  ;;  %v2525_v49 = vsub.f32 1.0, %v11607_v36  ;;  %v2531_v47 = vmul.f32 %v11607_v36, %v13055_v37 }
0x1121   :  { %2520 = vrot.lane.b32.xlu1 %v2518_v45, %s12339_s16 }
0x1193   :  { %v2521_v23 = vpop.permute.xlu1 %2520 }
0x1194   :  { %v2523_v8 = vadd.f32 %v2521_v23, %v2433_v43 }
0x1196   :  { %11608 = vtanh.f32 %v2523_v8 }
0x11a0   :  { %v11609_v38 = vpop.eup %11608 }
0x11a1   :  { %2527 = vrot.lane.b32.xlu0 %v11609_v38, %s12340_s9  ;;  %v2726_v38 = vld [vmem:[#allocation2 + $0x10] sm:$0xff] }
0x11a5   :  { %2686 = vrot.lane.b32.xlu0 %v2674_v34, %s12339_s16 }
0x1213   :  { %v2528_v30 = vpop.permute.xlu0 %2527 }
0x1214   :  { %v2530_v0 = vmul.f32 %v2528_v30, %v2525_v49 }
0x1216   :  { %v13216_v1 = vadd.f32 %v2531_v47, %v2530_v0 }
0x1217   :  { %v2687_v23 = vpop.permute.xlu0 %2686 }
0x1218   :  { %2534 = vrot.lane.b32.xlu1 %v13216_v1, %s12340_s9 }
0x128a   :  { %v13220_v61 = vpop.permute.xlu1 %2534 }
0x128b   :  { %10092 = vmatmul.mubr.msk.f32.vlgmr.msra.gmra.mrb[24].mxu1 %vm448_vm2, %v13220_v61 }
0x128c   :  { %11084 = vmatpush3.bf16.msra.mxu1 %v12824_v4  ;;  %10109 = vmatprep.mubr.msk.f32.mxu1 %vm12336_vm0, %v14357_v53 }
0x128d   :  { %11085 = vmatprep.subr.bf16.mxu1 %v14358_v62 }
0x128f   :  { %10110 = vmatmul.mubr.msk.f32.vlgmr.msra.gmra.mrb[26].mxu1 %vm362_vm1, %v2726_v38 }
0x1290   :  { %11087 = vmatpush3.bf16.msra.mxu1 %v12826_v7  ;;  %10120 = vmatprep.mubr.msk.f32.mxu1 %vm12336_vm0, %v14357_v53 }
0x1291   :  { %11088 = vmatprep.subr.bf16.mxu1 %v14358_v62 }
0x1294   :  { %11090 = vmatpush3.bf16.msra.mxu1 %v12835_v11 }
0x1295   :  { %11097 = vmatprep.subr.bf16.mxu1 %v14358_v62 }
0x135e   :  { %v2604_v37 = vpop.f32.mrb[24].mxu1 }
0x135f   :  { %v2678_v8 = vadd.f32 %v2674_v34, %v2604_v37  ;;  %v10093_v43 = vpop.f32.mrb[25].mxu1 }
0x1361   :  { %v9213_v9 = vmul.f32 -1.442695, %v2678_v8 }
0x1362   :  { %v2798_v30 = vpop.f32.mrb[26].mxu1 }
0x1363   :  { %11610 = vpow2.f32 %v9213_v9  ;;  %v2799_v47 = vadd.f32 %v12849_v15, %v2798_v30  ;;  %v10111_v0 = vpop.f32.mrb[27].mxu1 }
0x1365   :  { %v2802_v38 = vmax.f32 %v2799_v47, 0.0 }
0x1367   :  { %10121 = vmatmul.mubr.msk.f32.vlgmr.msra.gmra.mrb[28].mxu1 %vm448_vm2, %v2802_v38 }
0x1368   :  { %11099 = vmatpush3.bf16.msra.mxu1 %v12852_v21  ;;  %10142 = vmatprep.mubr.msk.f32.mxu1 %vm12336_vm0, %v14357_v53 }
0x1369   :  { %11100 = vmatprep.subr.bf16.mxu1 %v14358_v62 }
0x136c   :  { %11102 = vmatpush3.bf16.msra.mxu1 %v12867_v28 }
0x136d   :  { %v11611_v36 = vpop.eup %11610  ;;  %11109 = vmatprep.subr.bf16.mxu1 %v14358_v62 }
0x136e   :  { %v2682_v42 = vadd.f32 1.0, %v11611_v36 }
0x1370   :  { %11612 = vrcp.f32 %v2682_v42 }
0x137a   :  { %v11613_v45 = vpop.eup %11612 }
0x137b   :  { %v2689_v49 = vmul.f32 %v11613_v45, %v2687_v23  ;;  %v2702_v23 = vmul.f32 %v11613_v45, %v13098_v54 }
0x137d   :  { %2691 = vrot.lane.b32.xlu1 %v2689_v49, %s12339_s16 }
0x13ef   :  { %v2692_v34 = vpop.permute.xlu1 %2691 }
0x13f0   :  { %v2694_v8 = vadd.f32 %v2692_v34, %v2604_v37 }
0x13f2   :  { %11614 = vtanh.f32 %v2694_v8 }
0x13fc   :  { %v11615_v43 = vpop.eup %11614 }
0x13fd   :  { %2698 = vrot.lane.b32.xlu0 %v11615_v43, %s12340_s9 }
0x143a   :  { %v2872_v15 = vpop.f32.mrb[28].mxu1 }
0x143b   :  { %v13246_v9 = vadd.f32 %v12880_v32, %v2872_v15  ;;  %v10122_v36 = vpop.f32.mrb[29].mxu1  ;;  %v2696_v32 = vsub.f32 1.0, %v11613_v45 }
0x143d   :  { %v14294_v42 = vmax.f32 %v13246_v9, 0.0 }
0x143f   :  { %10143 = vmatmul.mubr.msk.f32.vlgmr.msra.gmra.mrb[30].mxu1 %vm448_vm2, %v14294_v42 }
0x1440   :  { %11111 = vmatpush3.bf16.msra.mxu1 %v12895_v44  ;;  %10164 = vmatprep.mubr.msk.f32.mxu1 %vm12336_vm0, %v14357_v53 }
0x1441   :  { %11112 = vmatprep.subr.bf16.mxu1 %v14358_v62 }
0x1444   :  { %11114 = vmatpush3.bf16.msra.mxu1 %v12916_v59 }
0x1445   :  { %11121 = vmatprep.subr.bf16.mxu1 %v14358_v62 }
0x146f   :  { %v2699_v37 = vpop.permute.xlu0 %2698 }
0x1470   :  { %v2701_v49 = vmul.f32 %v2699_v37, %v2696_v32 }
0x1472   :  { %v13259_v30 = vadd.f32 %v2702_v23, %v2701_v49 }
0x1474   :  { %2878 = vrot.lane.b32.xlu1 %v13259_v30, %s12340_s9 }
0x14e6   :  { %v13263_v47 = vpop.permute.xlu1 %2878 }
0x14e7   :  { %10132 = vmatmul.mubr.msk.f32.vlgmr.msra.gmra.mrb[26].mxu0 %vm448_vm2, %v13263_v47 }
0x14e8   :  { %11105 = vmatpush3.bf16.msra.mxu0 %v12876_v31  ;;  %10153 = vmatprep.mubr.msk.f32.mxu0 %vm12336_vm0, %v14357_v53 }
0x14e9   :  { %11106 = vmatprep.subr.bf16.mxu0 %v14358_v62 }
0x14ec   :  { %11108 = vmatpush3.bf16.msra.mxu0 %v12891_v41 }
0x14ed   :  { %11115 = vmatprep.subr.bf16.mxu0 %v14358_v62 }
0x1512   :  { %v3021_v54 = vpop.f32.mrb[30].mxu1 }
0x1513   :  { %v10144_v45 = vpop.f32.mrb[31].mxu1 }
0x15ba   :  { %v2948_v0 = vpop.f32.mrb[26].mxu0 }
0x15bb   :  { %v3022_v38 = vadd.f32 %v3021_v54, %v2948_v0  ;;  %v10133_v34 = vpop.f32.mrb[27].mxu0 }
0x15bd   :  { %v3025_v8 = vadd.f32 %v12899_v46, %v3022_v38 }
0x15bf   :  { %v3026_v43 = vmax.f32 %v3025_v8, 0.0 }
0x15c1   :  { %10154 = vmatmul.mubr.msk.f32.vlgmr.msra.gmra.mrb[28].mxu0 %vm448_vm2, %v3026_v43 }
0x15c2   :  { %11117 = vmatpush3.bf16.msra.mxu0 %v12902_v52  ;;  %10175 = vmatprep.mubr.msk.f32.mxu0 %vm12336_vm0, %v14357_v53 }
0x15c3   :  { %11118 = vmatprep.subr.bf16.mxu0 %v14358_v62 }
0x15c6   :  { %11120 = vmatpush3.bf16.msra.mxu0 %v12906_v56 }
0x15c7   :  { %11127 = vmatprep.subr.bf16.mxu0 %v14358_v62 }
0x15c9   :  { %10176 = vmatmul.mubr.msk.f32.vlgmr.msra.gmra.mrb[30].mxu0 %vm448_vm2, %v13263_v47 }
0x15ca   :  { %11129 = vmatpush3.bf16.msra.mxu0 %v12967_v48  ;;  %10193 = vmatprep.mubr.msk.f32.mxu0 %vm12336_vm0, %v14357_v53 }
0x15cb   :  { %11130 = vmatprep.subr.bf16.mxu0 %v14358_v62 }
0x1694   :  { %v3096_v46 = vpop.f32.mrb[28].mxu0 }
0x1695   :  { %v3097_v15 = vadd.f32 %v12920_v60, %v3096_v46  ;;  %v10155_v36 = vpop.f32.mrb[29].mxu0 }
0x1697   :  { %v3100_v32 = vmax.f32 %v3097_v15, 0.0 }
0x1699   :  { %10165 = vmatmul.mubr.msk.f32.vlgmr.msra.gmra.mrb[32].mxu1 %vm448_vm2, %v3100_v32 }
0x169a   :  { %11123 = vmatpush3.bf16.msra.mxu1 %v12929_v5  ;;  %10186 = vmatprep.mubr.msk.f32.mxu1 %vm12336_vm0, %v14357_v53 }
0x169b   :  { %11124 = vmatprep.subr.bf16.mxu1 %v14358_v62 }
0x169c   :  { %v3255_v37 = vpop.f32.mrb[30].mxu0 }
0x169d   :  { %v3256_v23 = vadd.f32 %v12939_v10, %v3255_v37  ;;  %v10177_v49 = vpop.f32.mrb[31].mxu0 }
0x169e   :  { %11126 = vmatpush3.bf16.msra.mxu1 %v12941_v12 }
0x169f   :  { %v3259_v54 = vmax.f32 %v3256_v23, 0.0  ;;  %11142 = vmatprep.subr.bf16.mxu1 %v14358_v62 }
0x16a1   :  { %10187 = vmatmul.mubr.msk.f32.vlgmr.msra.gmra.mrb[34].mxu1 %vm448_vm2, %v3259_v54 }
0x16a2   :  { %11144 = vmatpush3.bf16.msra.mxu1 %v12971_v58  ;;  %10226 = vmatprep.mubr.msk.f32.mxu1 %vm12336_vm0, %v14357_v53 }
0x16a3   :  { %11145 = vmatprep.subr.bf16.mxu1 %v14358_v62 }
0x16a6   :  { %11147 = vmatpush3.bf16.msra.mxu1 %v12974_v2 }
0x16a7   :  { %11148 = vmatprep.subr.bf16.mxu1 %v14358_v62 }
0x16a9   :  { %10227 = vmatmul.mubr.msk.f32.vlgmr.msra.gmra.mrb[36].mxu1 %vm448_vm2, %v13220_v61 }
0x16aa   :  { %11150 = vmatpush3.bf16.msra.mxu1 %v13033_v6  ;;  %10237 = vmatprep.mubr.msk.f32.mxu1 %vm12336_vm0, %v14357_v53 }
0x16ab   :  { %11151 = vmatprep.subr.bf16.mxu1 %v14358_v62 }
0x16ae   :  { %11153 = vmatpush3.bf16.msra.mxu1 %v13040_v18 }
0x16af   :  { %11160 = vmatprep.subr.bf16.mxu1 %v14358_v62 }
0x176c   :  { %v3170_v60 = vpop.f32.mrb[32].mxu1 }
0x176d   :  { %v13312_v10 = vadd.f32 %v12952_v19, %v3170_v60  ;;  %v10166_v45 = vpop.f32.mrb[33].mxu1 }
0x176f   :  { %v3175_v0 = vand.u32 2147483647, %v13312_v10 }
0x1771   :  { %v3176_v38 = vsub.f32 0.0, %v3175_v0 }
0x1773   :  { %v3177_v61 = vmul.f32 1.442695, %v3176_v38 }
0x1774   :  { %v3329_v34 = vpop.f32.mrb[34].mxu1 }
0x1775   :  { %11616 = vpow2.f32 %v3177_v61  ;;  %v13316_v8 = vadd.f32 %v12961_v27, %v3329_v34  ;;  %v10188_v43 = vpop.f32.mrb[35].mxu1 }
0x1776   :  { %v3174_v43 = vmax.f32 %v13312_v10, 0.0 }
0x1777   :  { %v3334_v46 = vand.u32 2147483647, %v13316_v8 }
0x1779   :  { %v3335_v15 = vsub.f32 0.0, %v3334_v46 }
0x177b   :  { %v3336_v36 = vmul.f32 1.442695, %v3335_v15 }
0x177c   :  { %v13319_v32 = vpop.f32.mrb[36].mxu1 }
0x177d   :  { %11618 = vpow2.f32 %v3336_v36  ;;  %3649 = vrot.lane.b32.xlu1 %v13319_v32, %s12339_s16  ;;  %v10228_v19 = vpop.f32.mrb[37].mxu1 }
0x177f   :  { %v11617_v37 = vpop.eup %11616 }
0x1780   :  { %v3179_v23 = vadd.f32 1.0, %v11617_v37  ;;  %v3182_v49 = vmul.f32 -0.5, %v11617_v37  ;;  %v3185_v45 = vand.u32 2147483647, %v11617_v37 }
0x1782   :  { %11620 = vlog2.f32 %v3179_v23  ;;  %v3183_v27 = vadd.f32 1.0, %v3182_v49  ;;  %vm3186_vm7 = vcmp.lt.f32.partialorder %v3185_v45, 0.0004427343 }
0x1784   :  { %v3184_v34 = vmul.f32 %v11617_v37, %v3183_v27 }
0x1787   :  { %v11619_v54 = vpop.eup %11618 }
0x1788   :  { %v3338_v60 = vadd.f32 1.0, %v11619_v54  ;;  %v3341_v38 = vmul.f32 -0.5, %v11619_v54  ;;  %v3344_v19 = vand.u32 2147483647, %v11619_v54 }
0x178a   :  { %11622 = vlog2.f32 %v3338_v60  ;;  %v3342_v36 = vadd.f32 1.0, %v3341_v38  ;;  %v3333_v60 = vmax.f32 %v13316_v8, 0.0  ;;  %vm3345_vm8 = vcmp.lt.f32.partialorder %v3344_v19, 0.0004427343 }
0x178c   :  { %v11621_v0 = vpop.eup %11620  ;;  %v3343_v49 = vmul.f32 %v11619_v54, %v3342_v36  ;;  %v13491_v54 = vld [vmem:[%s14265_s18] ss:$0 sm:$0xff] }
0x178d   :  { %v3181_v61 = vmul.f32 0.6931472, %v11621_v0 }
0x178f   :  { %v3187_v46 = vsel %vm3186_vm7, %v3184_v34, %v3181_v61 }
0x1790   :  { %v13324_v15 = vadd.f32 %v3187_v46, %v3174_v43  ;;  %v2728_v46 = vld [vmem:[#allocation5 + $0x10] sm:$0xff] }
0x1792   :  { %14360 = vst [vmem:[#allocation61_spill] sm:$0xff] %v13324_v15  ;;  %3349 = vrot.lane.b32.xlu0 %v13324_v15, %s12338_s3  ;;  %11624 = vlog2.f32 %v13324_v15 }
0x1794   :  { %v11623_v23 = vpop.eup %11622 }
0x1795   :  { %v3340_v42 = vmul.f32 0.6931472, %v11623_v23 }
0x1797   :  { %v3346_v37 = vsel %vm3345_vm8, %v3343_v49, %v3340_v42 }
0x1798   :  { %v13330_v27 = vadd.f32 %v3346_v37, %v3333_v60 }
0x179a   :  { %14361 = vst [vmem:[#allocation62_spill] sm:$0xff] %v13330_v27  ;;  %11626 = vlog2.f32 %v13330_v27 }
0x179c   :  { %v11625_v45 = vpop.eup %11624 }
0x179d   :  { %v3842_v0 = vmul.f32 0.6931472, %v11625_v45  ;;  %v14364_v45 = vmax.f32 %v13246_v9, 0.0 }
0x179f   :  { %v13335_v43 = vmul.f32 2.0, %v3842_v0 }
0x17a1   :  { %14363 = vst [vmem:[#allocation64_spill] sm:$0xff] %v13335_v43 }
0x17a4   :  { %v11627_v38 = vpop.eup %11626 }
0x17a5   :  { %v3839_v61 = vmul.f32 0.6931472, %v11627_v38 }
0x17a7   :  { %v13333_v34 = vmul.f32 2.0, %v3839_v61 }
0x17a9   :  { %14362 = vst [vmem:[#allocation63_spill] sm:$0xff] %v13333_v34 }
0x1804   :  { %v3350_v36 = vpop.permute.xlu0 %3349 }
0x1805   :  { %v3352_v19 = vmul.f32 %v3350_v36, %v2728_v46 }
0x1807   :  { %v3353_v42 = vadd.f32 %v3352_v19, %v13312_v10 }
0x1809   :  { %10194 = vmatmul.mubr.msk.f32.vlgmr.msra.gmra.mrb[32].mxu0 %vm362_vm1, %v3353_v42  ;;  %v3650_v42 = vpop.permute.xlu1 %3649 }
0x180a   :  { %11132 = vmatpush3.bf16.msra.mxu0 %v12998_v51  ;;  %10204 = vmatprep.mubr.msk.f32.mxu0 %vm12336_vm0, %v14357_v53 }
0x180b   :  { %11133 = vmatprep.subr.bf16.mxu0 %v14358_v62 }
0x180e   :  { %11135 = vmatpush3.bf16.msra.mxu0 %v13006_v57 }
0x180f   :  { %11136 = vmatprep.subr.bf16.mxu0 %v14358_v62 }
0x18dc   :  { %v3423_v23 = vpop.f32.mrb[32].mxu0 }
0x18dd   :  { %v3424_v49 = vadd.f32 %v13011_v63, %v3423_v23  ;;  %v10195_v60 = vpop.f32.mrb[33].mxu0 }
0x18df   :  { %v3427_v37 = vmax.f32 %v3424_v49, 0.0 }
0x18e1   :  { %10205 = vmatmul.mubr.msk.f32.vlgmr.msra.gmra.mrb[34].mxu0 %vm448_vm2, %v3427_v37 }
0x18e2   :  { %11138 = vmatpush3.bf16.msra.mxu0 %v13014_v16  ;;  %10215 = vmatprep.mubr.msk.f32.mxu0 %vm12336_vm0, %v14357_v53 }
0x18e3   :  { %11139 = vmatprep.subr.bf16.mxu0 %v14358_v62 }
0x18e6   :  { %11141 = vmatpush3.bf16.msra.mxu0 %v13018_v24 }
0x18e7   :  { %11154 = vmatprep.subr.bf16.mxu0 %v14358_v62 }
0x18e9   :  { %10216 = vmatmul.mubr.msk.f32.vlgmr.msra.gmra.mrb[34].mxu0 %vm448_vm2, %v14364_v45 }
0x18ea   :  { %11156 = vmatpush3.bf16.msra.mxu0 %v13031_v55  ;;  %10248 = vmatprep.mubr.msk.f32.mxu0 %vm12336_vm0, %v14357_v53 }
0x18eb   :  { %11157 = vmatprep.subr.bf16.mxu0 %v14358_v62 }
0x18ee   :  { %11159 = vmatpush3.bf16.msra.mxu0 %v13036_v13 }
0x18ef   :  { %11169 = vmatprep.subr.bf16.mxu0 %v14358_v62 }
0x18f1   :  { %10249 = vmatmul.mubr.msk.f32.vlgmr.msra.gmra.mrb[36].mxu0 %vm448_vm2, %v13263_v47 }
0x18f2   :  { %11171 = vmatpush3.bf16.msra.mxu0 %v12845_v14  ;;  %10277 = vmatprep.mubr.msk.f32.mxu0 %vm12336_vm0, %v14357_v53 }
0x18f3   :  { %11172 = vmatprep.subr.bf16.mxu0 %v14358_v62 }
0x18f6   :  { %11174 = vmatpush3.bf16.msra.mxu0 %v12865_v25 }
0x18f7   :  { %11181 = vmatprep.subr.bf16.mxu0 %v14358_v62 }
0x19bc   :  { %v3567_v63 = vpop.f32.mrb[34].mxu0 }
0x19bd   :  { %v3641_v9 = vadd.f32 %v13319_v32, %v3567_v63  ;;  %v10217_v0 = vpop.f32.mrb[35].mxu0 }
0x19bf   :  { %v9227_v38 = vmul.f32 -1.442695, %v3641_v9 }
0x19c1   :  { %11628 = vpow2.f32 %v9227_v38 }
0x19c4   :  { %v3808_v61 = vpop.f32.mrb[36].mxu0 }
0x19c5   :  { %v10250_v46 = vpop.f32.mrb[37].mxu0 }
0x19cb   :  { %v11629_v47 = vpop.eup %11628 }
0x19cc   :  { %v3645_v36 = vadd.f32 1.0, %v11629_v47 }
0x19ce   :  { %11630 = vrcp.f32 %v3645_v36 }
0x19d8   :  { %v11631_v19 = vpop.eup %11630 }
0x19d9   :  { %v3652_v23 = vmul.f32 %v11631_v19, %v3650_v42  ;;  %v3659_v32 = vsub.f32 1.0, %v11631_v19  ;;  %v3665_v9 = vmul.f32 %v11631_v19, %v13216_v1 }
0x19db   :  { %3654 = vrot.lane.b32.xlu0 %v3652_v23, %s12339_s16 }
0x1a4d   :  { %v3655_v49 = vpop.permute.xlu0 %3654 }
0x1a4e   :  { %v3657_v60 = vadd.f32 %v3655_v49, %v3567_v63  ;;  %v3860_v63 = vld [vmem:[#allocation2 + $0x18] sm:$0xff] }
0x1a50   :  { %11632 = vtanh.f32 %v3657_v60 }
0x1a5a   :  { %v11633_v37 = vpop.eup %11632 }
0x1a5b   :  { %3661 = vrot.lane.b32.xlu1 %v11633_v37, %s12340_s9 }
0x1a5f   :  { %3820 = vrot.lane.b32.xlu1 %v3808_v61, %s12339_s16 }
0x1acd   :  { %v3662_v45 = vpop.permute.xlu1 %3661 }
0x1ace   :  { %v3664_v0 = vmul.f32 %v3662_v45, %v3659_v32  ;;  %v13397_v45 = vld [vmem:[#allocation8] ss:$0 sm:$0xff] }
0x1ad0   :  { %v13377_v38 = vadd.f32 %v3665_v9, %v3664_v0 }
0x1ad1   :  { %v3821_v60 = vpop.permute.xlu1 %3820 }
0x1ad2   :  { %3668 = vrot.lane.b32.xlu0 %v13377_v38, %s12340_s9 }
0x1b44   :  { %v13381_v46 = vpop.permute.xlu0 %3668 }
0x1b45   :  { %10238 = vmatmul.mubr.msk.f32.vlgmr.msra.gmra.mrb[38].mxu1 %vm448_vm2, %v13381_v46 }
0x1b46   :  { %11162 = vmatpush3.bf16.msra.mxu1 %v12824_v4  ;;  %10255 = vmatprep.mubr.msk.f32.mxu1 %vm12336_vm0, %v14357_v53 }
0x1b47   :  { %11163 = vmatprep.subr.bf16.mxu1 %v14358_v62 }
0x1b49   :  { %10256 = vmatmul.mubr.msk.f32.vlgmr.msra.gmra.mrb[40].mxu1 %vm362_vm1, %v3860_v63 }
0x1b4a   :  { %11165 = vmatpush3.bf16.msra.mxu1 %v12826_v7  ;;  %10266 = vmatprep.mubr.msk.f32.mxu1 %vm12336_vm0, %v14357_v53 }
0x1b4b   :  { %11166 = vmatprep.subr.bf16.mxu1 %v14358_v62 }
0x1b4e   :  { %11168 = vmatpush3.bf16.msra.mxu1 %v12835_v11 }
0x1b4f   :  { %11175 = vmatprep.subr.bf16.mxu1 %v14358_v62 }
0x1c18   :  { %v3738_v1 = vpop.f32.mrb[38].mxu1 }
0x1c19   :  { %v3812_v47 = vadd.f32 %v3808_v61, %v3738_v1  ;;  %v10239_v36 = vpop.f32.mrb[39].mxu1 }
0x1c1b   :  { %v9230_v19 = vmul.f32 -1.442695, %v3812_v47 }
0x1c1c   :  { %v3932_v32 = vpop.f32.mrb[40].mxu1 }
0x1c1d   :  { %11634 = vpow2.f32 %v9230_v19  ;;  %v3933_v9 = vadd.f32 %v13397_v45, %v3932_v32  ;;  %v10257_v0 = vpop.f32.mrb[41].mxu1 }
0x1c1f   :  { %v3936_v63 = vmax.f32 %v3933_v9, 0.0 }
0x1c21   :  { %10267 = vmatmul.mubr.msk.f32.vlgmr.msra.gmra.mrb[42].mxu1 %vm448_vm2, %v3936_v63 }
0x1c22   :  { %11177 = vmatpush3.bf16.msra.mxu1 %v12852_v21  ;;  %10288 = vmatprep.mubr.msk.f32.mxu1 %vm12336_vm0, %v14357_v53 }
0x1c23   :  { %11178 = vmatprep.subr.bf16.mxu1 %v14358_v62 }
0x1c26   :  { %11180 = vmatpush3.bf16.msra.mxu1 %v12867_v28 }
0x1c27   :  { %v11635_v42 = vpop.eup %11634  ;;  %11187 = vmatprep.subr.bf16.mxu1 %v14358_v62 }
0x1c28   :  { %v3816_v23 = vadd.f32 1.0, %v11635_v42  ;;  %v13408_v42 = vld [vmem:[#allocation11] ss:$0 sm:$0xff] }
0x1c2a   :  { %11636 = vrcp.f32 %v3816_v23 }
0x1c34   :  { %v11637_v49 = vpop.eup %11636 }
0x1c35   :  { %v3823_v37 = vmul.f32 %v11637_v49, %v3821_v60  ;;  %v3836_v9 = vmul.f32 %v11637_v49, %v13259_v30 }
0x1c37   :  { %3825 = vrot.lane.b32.xlu0 %v3823_v37, %s12339_s16 }
0x1ca9   :  { %v3826_v61 = vpop.permute.xlu0 %3825 }
0x1caa   :  { %v3828_v47 = vadd.f32 %v3826_v61, %v3738_v1  ;;  %v3830_v1 = vsub.f32 1.0, %v11637_v49 }
0x1cac   :  { %11638 = vtanh.f32 %v3828_v47 }
0x1cb6   :  { %v11639_v36 = vpop.eup %11638 }
0x1cb7   :  { %3832 = vrot.lane.b32.xlu1 %v11639_v36, %s12340_s9 }
0x1cf4   :  { %v4006_v19 = vpop.f32.mrb[42].mxu1 }
0x1cf5   :  { %v13411_v23 = vadd.f32 %v13408_v42, %v4006_v19  ;;  %v10268_v60 = vpop.f32.mrb[43].mxu1 }
0x1cf6   :  { %v13438_v60 = vld [vmem:[#allocation17] ss:$0 sm:$0xff] }
0x1cf7   :  { %v14295_v37 = vmax.f32 %v13411_v23, 0.0 }
0x1cf9   :  { %10289 = vmatmul.mubr.msk.f32.vlgmr.msra.gmra.mrb[44].mxu1 %vm448_vm2, %v14295_v37 }
0x1cfa   :  { %11189 = vmatpush3.bf16.msra.mxu1 %v12895_v44  ;;  %10310 = vmatprep.mubr.msk.f32.mxu1 %vm12336_vm0, %v14357_v53 }
0x1cfb   :  { %11190 = vmatprep.subr.bf16.mxu1 %v14358_v62 }
0x1cfe   :  { %11192 = vmatpush3.bf16.msra.mxu1 %v12916_v59 }
0x1cff   :  { %11199 = vmatprep.subr.bf16.mxu1 %v14358_v62 }
0x1d29   :  { %v3833_v32 = vpop.permute.xlu1 %3832 }
0x1d2a   :  { %v3835_v0 = vmul.f32 %v3833_v32, %v3830_v1 }
0x1d2c   :  { %v13424_v63 = vadd.f32 %v3836_v9, %v3835_v0  ;;  %v13454_v0 = vld [vmem:[#allocation20] ss:$0 sm:$0xff] }
0x1d2e   :  { %4012 = vrot.lane.b32.xlu0 %v13424_v63, %s12340_s9 }
0x1da0   :  { %v13428_v61 = vpop.permute.xlu0 %4012 }
0x1da1   :  { %10278 = vmatmul.mubr.msk.f32.vlgmr.msra.gmra.mrb[38].mxu0 %vm448_vm2, %v13428_v61 }
0x1da2   :  { %11183 = vmatpush3.bf16.msra.mxu0 %v12876_v31  ;;  %10299 = vmatprep.mubr.msk.f32.mxu0 %vm12336_vm0, %v14357_v53 }
0x1da3   :  { %11184 = vmatprep.subr.bf16.mxu0 %v14358_v62 }
0x1da6   :  { %11186 = vmatpush3.bf16.msra.mxu0 %v12891_v41 }
0x1da7   :  { %11193 = vmatprep.subr.bf16.mxu0 %v14358_v62 }
0x1dcc   :  { %v4155_v30 = vpop.f32.mrb[44].mxu1 }
0x1dcd   :  { %v10290_v49 = vpop.f32.mrb[45].mxu1 }
0x1e74   :  { %v4082_v47 = vpop.f32.mrb[38].mxu0 }
0x1e75   :  { %v4156_v36 = vadd.f32 %v4155_v30, %v4082_v47  ;;  %v10279_v19 = vpop.f32.mrb[39].mxu0 }
0x1e76   :  { %v13462_v19 = vld [vmem:[#allocation26] ss:$0 sm:$0xff] }
0x1e77   :  { %v4159_v1 = vadd.f32 %v13438_v60, %v4156_v36 }
0x1e79   :  { %v4160_v32 = vmax.f32 %v4159_v1, 0.0 }
0x1e7b   :  { %10300 = vmatmul.mubr.msk.f32.vlgmr.msra.gmra.mrb[40].mxu0 %vm448_vm2, %v4160_v32 }
0x1e7c   :  { %11195 = vmatpush3.bf16.msra.mxu0 %v12902_v52  ;;  %10321 = vmatprep.mubr.msk.f32.mxu0 %vm12336_vm0, %v14357_v53 }
0x1e7d   :  { %11196 = vmatprep.subr.bf16.mxu0 %v14358_v62 }
0x1e80   :  { %11198 = vmatpush3.bf16.msra.mxu0 %v12906_v56 }
0x1e81   :  { %11205 = vmatprep.subr.bf16.mxu0 %v14358_v62 }
0x1e83   :  { %10322 = vmatmul.mubr.msk.f32.vlgmr.msra.gmra.mrb[42].mxu0 %vm448_vm2, %v13428_v61 }
0x1e84   :  { %11207 = vmatpush3.bf16.msra.mxu0 %v12967_v48  ;;  %10339 = vmatprep.mubr.msk.f32.mxu0 %vm12336_vm0, %v14357_v53 }
0x1e85   :  { %11208 = vmatprep.subr.bf16.mxu0 %v14358_v62 }
0x1f4e   :  { %v4230_v9 = vpop.f32.mrb[40].mxu0 }
0x1f4f   :  { %v4231_v30 = vadd.f32 %v13454_v0, %v4230_v9  ;;  %v10301_v49 = vpop.f32.mrb[41].mxu0 }
0x1f50   :  { %v13482_v49 = vld [vmem:[#allocation23] ss:$0 sm:$0xff] }
0x1f51   :  { %v4234_v47 = vmax.f32 %v4231_v30, 0.0 }
0x1f53   :  { %10311 = vmatmul.mubr.msk.f32.vlgmr.msra.gmra.mrb[46].mxu1 %vm448_vm2, %v4234_v47 }
0x1f54   :  { %11201 = vmatpush3.bf16.msra.mxu1 %v12929_v5  ;;  %10332 = vmatprep.mubr.msk.f32.mxu1 %vm12336_vm0, %v14357_v53 }
0x1f55   :  { %11202 = vmatprep.subr.bf16.mxu1 %v14358_v62 }
0x1f56   :  { %v4389_v36 = vpop.f32.mrb[42].mxu0 }
0x1f57   :  { %v4390_v1 = vadd.f32 %v13462_v19, %v4389_v36  ;;  %v10323_v32 = vpop.f32.mrb[43].mxu0 }
0x1f58   :  { %11204 = vmatpush3.bf16.msra.mxu1 %v12941_v12 }
0x1f59   :  { %v4393_v9 = vmax.f32 %v4390_v1, 0.0  ;;  %11220 = vmatprep.subr.bf16.mxu1 %v14358_v62 }
0x1f5b   :  { %10333 = vmatmul.mubr.msk.f32.vlgmr.msra.gmra.mrb[48].mxu1 %vm448_vm2, %v4393_v9 }
0x1f5c   :  { %11222 = vmatpush3.bf16.msra.mxu1 %v12971_v58  ;;  %10372 = vmatprep.mubr.msk.f32.mxu1 %vm12336_vm0, %v14357_v53 }
0x1f5d   :  { %11223 = vmatprep.subr.bf16.mxu1 %v14358_v62 }
0x1f60   :  { %11225 = vmatpush3.bf16.msra.mxu1 %v12974_v2 }
0x1f61   :  { %11226 = vmatprep.subr.bf16.mxu1 %v14358_v62 }
0x1f63   :  { %10373 = vmatmul.mubr.msk.f32.vlgmr.msra.gmra.mrb[50].mxu1 %vm448_vm2, %v13381_v46 }
0x1f64   :  { %11228 = vmatpush3.bf16.msra.mxu1 %v13033_v6  ;;  %10383 = vmatprep.mubr.msk.f32.mxu1 %vm12336_vm0, %v14357_v53 }
0x1f65   :  { %11229 = vmatprep.subr.bf16.mxu1 %v14358_v62 }
0x1f68   :  { %11231 = vmatpush3.bf16.msra.mxu1 %v13040_v18 }
0x1f69   :  { %11238 = vmatprep.subr.bf16.mxu1 %v14358_v62 }
0x2026   :  { %v4304_v30 = vpop.f32.mrb[46].mxu1 }
0x2027   :  { %v13485_v47 = vadd.f32 %v13482_v49, %v4304_v30  ;;  %v10312_v36 = vpop.f32.mrb[47].mxu1 }
0x2029   :  { %14365 = vst [vmem:[#allocation65_spill] sm:$0xff] %v13485_v47  ;;  %v4309_v46 = vand.u32 2147483647, %v13485_v47  ;;  %v4308_v39 = vmax.f32 %v13485_v47, 0.0 }
0x202b   :  { %v4310_v1 = vsub.f32 0.0, %v4309_v46 }
0x202d   :  { %v4311_v32 = vmul.f32 1.442695, %v4310_v1 }
0x202e   :  { %v4463_v9 = vpop.f32.mrb[48].mxu1 }
0x202f   :  { %11640 = vpow2.f32 %v4311_v32  ;;  %v13494_v37 = vadd.f32 %v13491_v54, %v4463_v9  ;;  %v10334_v35 = vpop.f32.mrb[49].mxu1 }
0x2031   :  { %14366 = vst [vmem:[#allocation66_spill] sm:$0xff] %v13494_v37  ;;  %v4468_v50 = vand.u32 2147483647, %v13494_v37 }
0x2033   :  { %v4469_v30 = vsub.f32 0.0, %v4468_v50 }
0x2035   :  { %v4470_v20 = vmul.f32 1.442695, %v4469_v30 }
0x2036   :  { %v13497_v36 = vpop.f32.mrb[50].mxu1 }
0x2037   :  { %11642 = vpow2.f32 %v4470_v20  ;;  %4783 = vrot.lane.b32.xlu0 %v13497_v36, %s12339_s16  ;;  %v10374_v46 = vpop.f32.mrb[51].mxu1 }
0x2039   :  { %v11641_v1 = vpop.eup %11640 }
0x203a   :  { %v4313_v32 = vadd.f32 1.0, %v11641_v1  ;;  %v4316_v3 = vmul.f32 -0.5, %v11641_v1  ;;  %v4319_v35 = vand.u32 2147483647, %v11641_v1 }
0x203c   :  { %11644 = vlog2.f32 %v4313_v32  ;;  %v4317_v9 = vadd.f32 1.0, %v4316_v3  ;;  %vm4320_vm9 = vcmp.lt.f32.partialorder %v4319_v35, 0.0004427343 }
0x203e   :  { %v4318_v30 = vmul.f32 %v11641_v1, %v4317_v9 }
0x2041   :  { %v11643_v26 = vpop.eup %11642 }
0x2042   :  { %v4472_v43 = vadd.f32 1.0, %v11643_v26  ;;  %v4475_v40 = vmul.f32 -0.5, %v11643_v26  ;;  %v4478_v17 = vand.u32 2147483647, %v11643_v26 }
0x2044   :  { %11646 = vlog2.f32 %v4472_v43  ;;  %v4476_v46 = vadd.f32 1.0, %v4475_v40  ;;  %v4467_v43 = vmax.f32 %v13494_v37, 0.0  ;;  %vm4479_vm10 = vcmp.lt.f32.partialorder %v4478_v17, 0.0004427343 }
0x2046   :  { %v11645_v34 = vpop.eup %11644  ;;  %v4477_v3 = vmul.f32 %v11643_v26, %v4476_v46 }
0x2047   :  { %v4315_v50 = vmul.f32 0.6931472, %v11645_v34 }
0x2049   :  { %v4321_v20 = vsel %vm4320_vm9, %v4318_v30, %v4315_v50 }
0x204a   :  { %v13502_v15 = vadd.f32 %v4321_v20, %v4308_v39  ;;  %v3862_v20 = vld [vmem:[#allocation5 + $0x18] sm:$0xff] }
0x204c   :  { %14367 = vst [vmem:[#allocation67_spill] sm:$0xff] %v13502_v15  ;;  %4483 = vrot.lane.b32.xlu1 %v13502_v15, %s12338_s3  ;;  %11648 = vlog2.f32 %v13502_v15 }
0x204e   :  { %v11647_v32 = vpop.eup %11646 }
0x204f   :  { %v4474_v27 = vmul.f32 0.6931472, %v11647_v32 }
0x2051   :  { %v4480_v34 = vsel %vm4479_vm10, %v4477_v3, %v4474_v27  ;;  %v13525_v3 = vld [vmem:[#allocation14] ss:$0 sm:$0xff] }
0x2052   :  { %v13508_v1 = vadd.f32 %v4480_v34, %v4467_v43 }
0x2054   :  { %14368 = vst [vmem:[#allocation68_spill] sm:$0xff] %v13508_v1  ;;  %11650 = vlog2.f32 %v13508_v1 }
0x2056   :  { %v11649_v39 = vpop.eup %11648 }
0x2057   :  { %v4976_v9 = vmul.f32 0.6931472, %v11649_v39 }
0x2059   :  { %v13513_v30 = vmul.f32 2.0, %v4976_v9  ;;  %v14371_v9 = vmax.f32 %v13411_v23, 0.0 }
0x205b   :  { %14370 = vst [vmem:[#allocation70_spill] sm:$0xff] %v13513_v30 }
0x205e   :  { %v11651_v40 = vpop.eup %11650 }
0x205f   :  { %v4973_v35 = vmul.f32 0.6931472, %v11651_v40 }
0x2061   :  { %v13511_v50 = vmul.f32 2.0, %v4973_v35 }
0x2063   :  { %14369 = vst [vmem:[#allocation69_spill] sm:$0xff] %v13511_v50 }
0x20be   :  { %v4484_v17 = vpop.permute.xlu1 %4483 }
0x20bf   :  { %v4486_v46 = vmul.f32 %v4484_v17, %v3862_v20 }
0x20c1   :  { %v4487_v27 = vadd.f32 %v4486_v46, %v13485_v47 }
0x20c3   :  { %10340 = vmatmul.mubr.msk.f32.vlgmr.msra.gmra.mrb[44].mxu0 %vm362_vm1, %v4487_v27 }
0x20c4   :  { %11210 = vmatpush3.bf16.msra.mxu0 %v12998_v51  ;;  %10350 = vmatprep.mubr.msk.f32.mxu0 %vm12336_vm0, %v14357_v53 }
0x20c5   :  { %11211 = vmatprep.subr.bf16.mxu0 %v14358_v62 }
0x20c8   :  { %11213 = vmatpush3.bf16.msra.mxu0 %v13006_v57 }
0x20c9   :  { %11214 = vmatprep.subr.bf16.mxu0 %v14358_v62 }
0x2196   :  { %v4557_v32 = vpop.f32.mrb[44].mxu0 }
0x2197   :  { %v4558_v43 = vadd.f32 %v13525_v3, %v4557_v32  ;;  %v10341_v34 = vpop.f32.mrb[45].mxu0 }
0x2199   :  { %v4561_v39 = vmax.f32 %v4558_v43, 0.0  ;;  %v4784_v43 = vpop.permute.xlu0 %4783 }
0x219b   :  { %10351 = vmatmul.mubr.msk.f32.vlgmr.msra.gmra.mrb[46].mxu0 %vm448_vm2, %v4561_v39 }
0x219c   :  { %11216 = vmatpush3.bf16.msra.mxu0 %v13014_v16  ;;  %10361 = vmatprep.mubr.msk.f32.mxu0 %vm12336_vm0, %v14357_v53 }
0x219d   :  { %11217 = vmatprep.subr.bf16.mxu0 %v14358_v62 }
0x21a0   :  { %11219 = vmatpush3.bf16.msra.mxu0 %v13018_v24 }
0x21a1   :  { %11232 = vmatprep.subr.bf16.mxu0 %v14358_v62 }
0x21a3   :  { %10362 = vmatmul.mubr.msk.f32.vlgmr.msra.gmra.mrb[46].mxu0 %vm448_vm2, %v14371_v9 }
0x21a4   :  { %11234 = vmatpush3.bf16.msra.mxu0 %v13031_v55  ;;  %10394 = vmatprep.mubr.msk.f32.mxu0 %vm12336_vm0, %v14357_v53 }
0x21a5   :  { %11235 = vmatprep.subr.bf16.mxu0 %v14358_v62 }
0x21a8   :  { %11237 = vmatpush3.bf16.msra.mxu0 %v13036_v13 }
0x21a9   :  { %11247 = vmatprep.subr.bf16.mxu0 %v14358_v62 }
0x21ab   :  { %10395 = vmatmul.mubr.msk.f32.vlgmr.msra.gmra.mrb[48].mxu0 %vm448_vm2, %v13428_v61 }
0x21ac   :  { %11249 = vmatpush3.bf16.msra.mxu0 %v12845_v14  ;;  %10423 = vmatprep.mubr.msk.f32.mxu0 %vm12336_vm0, %v14357_v53 }
0x21ad   :  { %11250 = vmatprep.subr.bf16.mxu0 %v14358_v62 }
0x21b0   :  { %11252 = vmatpush3.bf16.msra.mxu0 %v12865_v25 }
0x21b1   :  { %11259 = vmatprep.subr.bf16.mxu0 %v14358_v62 }
0x2276   :  { %v4701_v23 = vpop.f32.mrb[46].mxu0 }
0x2277   :  { %v4775_v40 = vadd.f32 %v13497_v36, %v4701_v23  ;;  %v10363_v35 = vpop.f32.mrb[47].mxu0 }
0x2279   :  { %v9244_v20 = vmul.f32 -1.442695, %v4775_v40 }
0x227b   :  { %11652 = vpow2.f32 %v9244_v20 }
0x227e   :  { %v4942_v17 = vpop.f32.mrb[48].mxu0 }
0x227f   :  { %v10396_v46 = vpop.f32.mrb[49].mxu0 }
0x2285   :  { %v11653_v61 = vpop.eup %11652 }
0x2286   :  { %v4779_v27 = vadd.f32 1.0, %v11653_v61 }
0x2288   :  { %11654 = vrcp.f32 %v4779_v27 }
0x2292   :  { %v11655_v32 = vpop.eup %11654 }
0x2293   :  { %v4786_v34 = vmul.f32 %v11655_v32, %v4784_v43  ;;  %v4793_v36 = vsub.f32 1.0, %v11655_v32  ;;  %v4799_v35 = vmul.f32 %v11655_v32, %v13377_v38 }
0x2295   :  { %4788 = vrot.lane.b32.xlu1 %v4786_v34, %s12339_s16 }
0x2307   :  { %v4789_v39 = vpop.permute.xlu1 %4788 }
0x2308   :  { %v4791_v9 = vadd.f32 %v4789_v39, %v4701_v23 }
0x230a   :  { %11656 = vtanh.f32 %v4791_v9 }
0x2314   :  { %v11657_v26 = vpop.eup %11656 }
0x2315   :  { %4795 = vrot.lane.b32.xlu0 %v11657_v26, %s12340_s9  ;;  %v4994_v26 = vld [vmem:[#allocation2 + $0x20] sm:$0xff] }
0x2319   :  { %4954 = vrot.lane.b32.xlu0 %v4942_v17, %s12339_s16 }
0x2387   :  { %v4796_v40 = vpop.permute.xlu0 %4795 }
0x2388   :  { %v4798_v20 = vmul.f32 %v4796_v40, %v4793_v36 }
0x238a   :  { %v13557_v46 = vadd.f32 %v4799_v35, %v4798_v20 }
0x238b   :  { %v4955_v9 = vpop.permute.xlu0 %4954 }
0x238c   :  { %4802 = vrot.lane.b32.xlu1 %v13557_v46, %s12340_s9 }
0x23fe   :  { %v13561_v61 = vpop.permute.xlu1 %4802 }
0x23ff   :  { %10384 = vmatmul.mubr.msk.f32.vlgmr.msra.gmra.mrb[52].mxu1 %vm448_vm2, %v13561_v61 }
0x2400   :  { %11240 = vmatpush3.bf16.msra.mxu1 %v12824_v4  ;;  %10401 = vmatprep.mubr.msk.f32.mxu1 %vm12336_vm0, %v14357_v53 }
0x2401   :  { %11241 = vmatprep.subr.bf16.mxu1 %v14358_v62 }
0x2403   :  { %10402 = vmatmul.mubr.msk.f32.vlgmr.msra.gmra.mrb[54].mxu1 %vm362_vm1, %v4994_v26 }
0x2404   :  { %11243 = vmatpush3.bf16.msra.mxu1 %v12826_v7  ;;  %10412 = vmatprep.mubr.msk.f32.mxu1 %vm12336_vm0, %v14357_v53 }
0x2405   :  { %11244 = vmatprep.subr.bf16.mxu1 %v14358_v62 }
0x2408   :  { %11246 = vmatpush3.bf16.msra.mxu1 %v12835_v11 }
0x2409   :  { %11253 = vmatprep.subr.bf16.mxu1 %v14358_v62 }
0x24d2   :  { %v4872_v38 = vpop.f32.mrb[52].mxu1 }
0x24d3   :  { %v4946_v23 = vadd.f32 %v4942_v17, %v4872_v38  ;;  %v10385_v27 = vpop.f32.mrb[53].mxu1 }
0x24d5   :  { %v9247_v32 = vmul.f32 -1.442695, %v4946_v23 }
0x24d6   :  { %v5066_v40 = vpop.f32.mrb[54].mxu1 }
0x24d7   :  { %11658 = vpow2.f32 %v9247_v32  ;;  %v5067_v35 = vadd.f32 %v13397_v45, %v5066_v40  ;;  %v10403_v20 = vpop.f32.mrb[55].mxu1 }
0x24d9   :  { %v5070_v26 = vmax.f32 %v5067_v35, 0.0 }
0x24db   :  { %10413 = vmatmul.mubr.msk.f32.vlgmr.msra.gmra.mrb[56].mxu1 %vm448_vm2, %v5070_v26 }
0x24dc   :  { %11255 = vmatpush3.bf16.msra.mxu1 %v12852_v21  ;;  %10434 = vmatprep.mubr.msk.f32.mxu1 %vm12336_vm0, %v14357_v53 }
0x24dd   :  { %11256 = vmatprep.subr.bf16.mxu1 %v14358_v62 }
0x24e0   :  { %11258 = vmatpush3.bf16.msra.mxu1 %v12867_v28 }
0x24e1   :  { %v11659_v43 = vpop.eup %11658  ;;  %11265 = vmatprep.subr.bf16.mxu1 %v14358_v62 }
0x24e2   :  { %v4950_v34 = vadd.f32 1.0, %v11659_v43 }
0x24e4   :  { %11660 = vrcp.f32 %v4950_v34 }
0x24ee   :  { %v11661_v39 = vpop.eup %11660 }
0x24ef   :  { %v4957_v36 = vmul.f32 %v11661_v39, %v4955_v9  ;;  %v4970_v40 = vmul.f32 %v11661_v39, %v13424_v63 }
0x24f1   :  { %4959 = vrot.lane.b32.xlu1 %v4957_v36, %s12339_s16 }
0x2563   :  { %v4960_v17 = vpop.permute.xlu1 %4959 }
0x2564   :  { %v4962_v23 = vadd.f32 %v4960_v17, %v4872_v38  ;;  %v4964_v38 = vsub.f32 1.0, %v11661_v39 }
0x2566   :  { %11662 = vtanh.f32 %v4962_v23 }
0x2570   :  { %v11663_v27 = vpop.eup %11662 }
0x2571   :  { %4966 = vrot.lane.b32.xlu0 %v11663_v27, %s12340_s9 }
0x25ae   :  { %v5140_v32 = vpop.f32.mrb[56].mxu1 }
0x25af   :  { %v13587_v43 = vadd.f32 %v13408_v42, %v5140_v32  ;;  %v10414_v34 = vpop.f32.mrb[57].mxu1 }
0x25b1   :  { %v14308_v9 = vmax.f32 %v13587_v43, 0.0 }
0x25b3   :  { %10435 = vmatmul.mubr.msk.f32.vlgmr.msra.gmra.mrb[58].mxu1 %vm448_vm2, %v14308_v9 }
0x25b4   :  { %11267 = vmatpush3.bf16.msra.mxu1 %v12895_v44  ;;  %10456 = vmatprep.mubr.msk.f32.mxu1 %vm12336_vm0, %v14357_v53 }
0x25b5   :  { %11268 = vmatprep.subr.bf16.mxu1 %v14358_v62 }
0x25b8   :  { %11270 = vmatpush3.bf16.msra.mxu1 %v12916_v59 }
0x25b9   :  { %11277 = vmatprep.subr.bf16.mxu1 %v14358_v62 }
0x25e3   :  { %v4967_v36 = vpop.permute.xlu0 %4966 }
0x25e4   :  { %v4969_v35 = vmul.f32 %v4967_v36, %v4964_v38 }
0x25e6   :  { %v13600_v20 = vadd.f32 %v4970_v40, %v4969_v35 }
0x25e8   :  { %5146 = vrot.lane.b32.xlu1 %v13600_v20, %s12340_s9 }
0x265a   :  { %v13604_v26 = vpop.permute.xlu1 %5146 }
0x265b   :  { %10424 = vmatmul.mubr.msk.f32.vlgmr.msra.gmra.mrb[50].mxu0 %vm448_vm2, %v13604_v26 }
0x265c   :  { %11261 = vmatpush3.bf16.msra.mxu0 %v12876_v31  ;;  %10445 = vmatprep.mubr.msk.f32.mxu0 %vm12336_vm0, %v14357_v53 }
0x265d   :  { %11262 = vmatprep.subr.bf16.mxu0 %v14358_v62 }
0x2660   :  { %11264 = vmatpush3.bf16.msra.mxu0 %v12891_v41 }
0x2661   :  { %11271 = vmatprep.subr.bf16.mxu0 %v14358_v62 }
0x2686   :  { %v5289_v63 = vpop.f32.mrb[58].mxu1 }
0x2687   :  { %v10436_v39 = vpop.f32.mrb[59].mxu1 }
0x272e   :  { %v5216_v17 = vpop.f32.mrb[50].mxu0 }
0x272f   :  { %v5290_v23 = vadd.f32 %v5289_v63, %v5216_v17  ;;  %v10425_v27 = vpop.f32.mrb[51].mxu0 }
0x2731   :  { %v5293_v32 = vadd.f32 %v13438_v60, %v5290_v23 }
0x2733   :  { %v5294_v34 = vmax.f32 %v5293_v32, 0.0 }
0x2735   :  { %10446 = vmatmul.mubr.msk.f32.vlgmr.msra.gmra.mrb[52].mxu0 %vm448_vm2, %v5294_v34 }
0x2736   :  { %11273 = vmatpush3.bf16.msra.mxu0 %v12902_v52  ;;  %10467 = vmatprep.mubr.msk.f32.mxu0 %vm12336_vm0, %v14357_v53 }
0x2737   :  { %11274 = vmatprep.subr.bf16.mxu0 %v14358_v62 }
0x273a   :  { %11276 = vmatpush3.bf16.msra.mxu0 %v12906_v56 }
0x273b   :  { %11283 = vmatprep.subr.bf16.mxu0 %v14358_v62 }
0x273d   :  { %10468 = vmatmul.mubr.msk.f32.vlgmr.msra.gmra.mrb[54].mxu0 %vm448_vm2, %v13604_v26 }
0x273e   :  { %11285 = vmatpush3.bf16.msra.mxu0 %v12967_v48  ;;  %10485 = vmatprep.mubr.msk.f32.mxu0 %vm12336_vm0, %v14357_v53 }
0x273f   :  { %11286 = vmatprep.subr.bf16.mxu0 %v14358_v62 }
0x2808   :  { %v5364_v38 = vpop.f32.mrb[52].mxu0 }
0x2809   :  { %v5365_v36 = vadd.f32 %v13454_v0, %v5364_v38  ;;  %v10447_v40 = vpop.f32.mrb[53].mxu0 }
0x280b   :  { %v5368_v35 = vmax.f32 %v5365_v36, 0.0 }
0x280d   :  { %10457 = vmatmul.mubr.msk.f32.vlgmr.msra.gmra.mrb[60].mxu1 %vm448_vm2, %v5368_v35 }
0x280e   :  { %11279 = vmatpush3.bf16.msra.mxu1 %v12929_v5  ;;  %10478 = vmatprep.mubr.msk.f32.mxu1 %vm12336_vm0, %v14357_v53 }
0x280f   :  { %11280 = vmatprep.subr.bf16.mxu1 %v14358_v62 }
0x2810   :  { %v5523_v63 = vpop.f32.mrb[54].mxu0 }
0x2811   :  { %v5524_v39 = vadd.f32 %v13462_v19, %v5523_v63  ;;  %v10469_v17 = vpop.f32.mrb[55].mxu0 }
0x2812   :  { %11282 = vmatpush3.bf16.msra.mxu1 %v12941_v12 }
0x2813   :  { %v5527_v23 = vmax.f32 %v5524_v39, 0.0  ;;  %11298 = vmatprep.subr.bf16.mxu1 %v14358_v62 }
0x2815   :  { %10479 = vmatmul.mubr.msk.f32.vlgmr.msra.gmra.mrb[62].mxu1 %vm448_vm2, %v5527_v23 }
0x2816   :  { %11300 = vmatpush3.bf16.msra.mxu1 %v12971_v58  ;;  %10518 = vmatprep.mubr.msk.f32.mxu1 %vm12336_vm0, %v14357_v53 }
0x2817   :  { %11301 = vmatprep.subr.bf16.mxu1 %v14358_v62 }
0x281a   :  { %11303 = vmatpush3.bf16.msra.mxu1 %v12974_v2 }
0x281b   :  { %11304 = vmatprep.subr.bf16.mxu1 %v14358_v62 }
0x281d   :  { %10519 = vmatmul.mubr.msk.f32.vlgmr.msra.gmra.mrb[64].mxu1 %vm448_vm2, %v13561_v61 }
0x281e   :  { %11306 = vmatpush3.bf16.msra.mxu1 %v13033_v6  ;;  %10529 = vmatprep.mubr.msk.f32.mxu1 %vm12336_vm0, %v14357_v53 }
0x281f   :  { %11307 = vmatprep.subr.bf16.mxu1 %v14358_v62 }
0x2822   :  { %11309 = vmatpush3.bf16.msra.mxu1 %v13040_v18 }
0x2823   :  { %11316 = vmatprep.subr.bf16.mxu1 %v14358_v62 }
0x28e0   :  { %v5438_v27 = vpop.f32.mrb[60].mxu1 }
0x28e1   :  { %v13653_v32 = vadd.f32 %v13482_v49, %v5438_v27  ;;  %v10458_v34 = vpop.f32.mrb[61].mxu1 }
0x28e3   :  { %v5443_v38 = vand.u32 2147483647, %v13653_v32  ;;  %v5442_v1 = vmax.f32 %v13653_v32, 0.0 }
0x28e5   :  { %v5444_v36 = vsub.f32 0.0, %v5443_v38 }
0x28e7   :  { %v5445_v61 = vmul.f32 1.442695, %v5444_v36 }
0x28e8   :  { %v5597_v40 = vpop.f32.mrb[62].mxu1 }
0x28e9   :  { %11664 = vpow2.f32 %v5445_v61  ;;  %v13657_v35 = vadd.f32 %v13491_v54, %v5597_v40  ;;  %v10480_v63 = vpop.f32.mrb[63].mxu1 }
0x28eb   :  { %v5602_v39 = vand.u32 2147483647, %v13657_v35 }
0x28ed   :  { %v5603_v17 = vsub.f32 0.0, %v5602_v39 }
0x28ef   :  { %v5604_v23 = vmul.f32 1.442695, %v5603_v17 }
0x28f0   :  { %v13660_v9 = vpop.f32.mrb[64].mxu1 }
0x28f1   :  { %11666 = vpow2.f32 %v5604_v23  ;;  %5917 = vrot.lane.b32.xlu1 %v13660_v9, %s12339_s16  ;;  %v10520_v27 = vpop.f32.mrb[65].mxu1 }
0x28f3   :  { %v11665_v34 = vpop.eup %11664 }
0x28f4   :  { %v5447_v38 = vadd.f32 1.0, %v11665_v34  ;;  %v5450_v36 = vmul.f32 -0.5, %v11665_v34  ;;  %v5453_v63 = vand.u32 2147483647, %v11665_v34 }
0x28f6   :  { %11668 = vlog2.f32 %v5447_v38  ;;  %v5451_v40 = vadd.f32 1.0, %v5450_v36  ;;  %vm5454_vm11 = vcmp.lt.f32.partialorder %v5453_v63, 0.0004427343 }
0x28f8   :  { %v5452_v17 = vmul.f32 %v11665_v34, %v5451_v40 }
0x28fb   :  { %v11667_v61 = vpop.eup %11666 }
0x28fc   :  { %v5606_v30 = vadd.f32 1.0, %v11667_v61  ;;  %v5609_v15 = vmul.f32 -0.5, %v11667_v61  ;;  %v5612_v37 = vand.u32 2147483647, %v11667_v61 }
0x28fe   :  { %11670 = vlog2.f32 %v5606_v30  ;;  %v5610_v27 = vadd.f32 1.0, %v5609_v15  ;;  %v5601_v30 = vmax.f32 %v13657_v35, 0.0  ;;  %vm5613_vm12 = vcmp.lt.f32.partialorder %v5612_v37, 0.0004427343 }
0x2900   :  { %v11669_v50 = vpop.eup %11668  ;;  %v5611_v36 = vmul.f32 %v11667_v61, %v5610_v27 }
0x2901   :  { %v5449_v39 = vmul.f32 0.6931472, %v11669_v50 }
0x2903   :  { %v5455_v23 = vsel %vm5454_vm11, %v5452_v17, %v5449_v39 }
0x2904   :  { %v13665_v47 = vadd.f32 %v5455_v23, %v5442_v1  ;;  %v4996_v23 = vld [vmem:[#allocation5 + $0x20] sm:$0xff] }
0x2906   :  { %5617 = vrot.lane.b32.xlu0 %v13665_v47, %s12338_s3  ;;  %11672 = vlog2.f32 %v13665_v47 }
0x2908   :  { %v11671_v38 = vpop.eup %11670 }
0x2909   :  { %v5608_v29 = vmul.f32 0.6931472, %v11671_v38 }
0x290b   :  { %v5614_v50 = vsel %vm5613_vm12, %v5611_v36, %v5608_v29 }
0x290c   :  { %v13671_v34 = vadd.f32 %v5614_v50, %v5601_v30 }
0x290e   :  { %11674 = vlog2.f32 %v13671_v34 }
0x2910   :  { %v11673_v1 = vpop.eup %11672 }
0x2911   :  { %v6110_v40 = vmul.f32 0.6931472, %v11673_v1  ;;  %v14372_v1 = vmax.f32 %v13587_v43, 0.0 }
0x2913   :  { %v13676_v17 = vmul.f32 2.0, %v6110_v40 }
0x2918   :  { %v11675_v15 = vpop.eup %11674 }
0x2919   :  { %v6107_v63 = vmul.f32 0.6931472, %v11675_v15 }
0x291b   :  { %v13674_v39 = vmul.f32 2.0, %v6107_v63 }
0x2978   :  { %v5618_v37 = vpop.permute.xlu0 %5617 }
0x2979   :  { %v5620_v27 = vmul.f32 %v5618_v37, %v4996_v23 }
0x297b   :  { %v5621_v29 = vadd.f32 %v5620_v27, %v13653_v32 }
0x297d   :  { %10486 = vmatmul.mubr.msk.f32.vlgmr.msra.gmra.mrb[56].mxu0 %vm362_vm1, %v5621_v29 }
0x297e   :  { %11288 = vmatpush3.bf16.msra.mxu0 %v12998_v51  ;;  %10496 = vmatprep.mubr.msk.f32.mxu0 %vm12336_vm0, %v14357_v53 }
0x297f   :  { %11289 = vmatprep.subr.bf16.mxu0 %v14358_v62 }
0x2982   :  { %11291 = vmatpush3.bf16.msra.mxu0 %v13006_v57 }
0x2983   :  { %11292 = vmatprep.subr.bf16.mxu0 %v14358_v62 }
0x2a50   :  { %v5691_v38 = vpop.f32.mrb[56].mxu0 }
0x2a51   :  { %v5692_v36 = vadd.f32 %v13525_v3, %v5691_v38  ;;  %v10487_v30 = vpop.f32.mrb[57].mxu0  ;;  %v5918_v38 = vpop.permute.xlu1 %5917 }
0x2a53   :  { %v5695_v50 = vmax.f32 %v5692_v36, 0.0 }
0x2a55   :  { %10497 = vmatmul.mubr.msk.f32.vlgmr.msra.gmra.mrb[58].mxu0 %vm448_vm2, %v5695_v50 }
0x2a56   :  { %11294 = vmatpush3.bf16.msra.mxu0 %v13014_v16  ;;  %10507 = vmatprep.mubr.msk.f32.mxu0 %vm12336_vm0, %v14357_v53 }
0x2a57   :  { %11295 = vmatprep.subr.bf16.mxu0 %v14358_v62 }
0x2a5a   :  { %11297 = vmatpush3.bf16.msra.mxu0 %v13018_v24 }
0x2a5b   :  { %11310 = vmatprep.subr.bf16.mxu0 %v14358_v62 }
0x2a5d   :  { %10508 = vmatmul.mubr.msk.f32.vlgmr.msra.gmra.mrb[58].mxu0 %vm448_vm2, %v14372_v1 }
0x2a5e   :  { %11312 = vmatpush3.bf16.msra.mxu0 %v13031_v55  ;;  %10540 = vmatprep.mubr.msk.f32.mxu0 %vm12336_vm0, %v14357_v53 }
0x2a5f   :  { %11313 = vmatprep.subr.bf16.mxu0 %v14358_v62 }
0x2a62   :  { %11315 = vmatpush3.bf16.msra.mxu0 %v13036_v13 }
0x2a63   :  { %11325 = vmatprep.subr.bf16.mxu0 %v14358_v62 }
0x2a65   :  { %10541 = vmatmul.mubr.msk.f32.vlgmr.msra.gmra.mrb[60].mxu0 %vm448_vm2, %v13604_v26 }
0x2a66   :  { %11327 = vmatpush3.bf16.msra.mxu0 %v12845_v14  ;;  %10569 = vmatprep.mubr.msk.f32.mxu0 %vm12336_vm0, %v14357_v53 }
0x2a67   :  { %11328 = vmatprep.subr.bf16.mxu0 %v14358_v62 }
0x2a6a   :  { %11330 = vmatpush3.bf16.msra.mxu0 %v12865_v25 }
0x2a6b   :  { %11337 = vmatprep.subr.bf16.mxu0 %v14358_v62 }
0x2b30   :  { %v5835_v43 = vpop.f32.mrb[58].mxu0 }
0x2b31   :  { %v5909_v40 = vadd.f32 %v13660_v9, %v5835_v43  ;;  %v10509_v15 = vpop.f32.mrb[59].mxu0 }
0x2b33   :  { %v9261_v63 = vmul.f32 -1.442695, %v5909_v40 }
0x2b35   :  { %11676 = vpow2.f32 %v9261_v63 }
0x2b38   :  { %v6076_v23 = vpop.f32.mrb[60].mxu0 }
0x2b39   :  { %v10542_v37 = vpop.f32.mrb[61].mxu0 }
0x2b3f   :  { %v11677_v26 = vpop.eup %11676 }
0x2b40   :  { %v5913_v27 = vadd.f32 1.0, %v11677_v26 }
0x2b42   :  { %11678 = vrcp.f32 %v5913_v27 }
0x2b4c   :  { %v11679_v29 = vpop.eup %11678 }
0x2b4d   :  { %v5920_v36 = vmul.f32 %v11679_v29, %v5918_v38  ;;  %v5927_v9 = vsub.f32 1.0, %v11679_v29  ;;  %v5933_v15 = vmul.f32 %v11679_v29, %v13557_v46 }
0x2b4f   :  { %5922 = vrot.lane.b32.xlu0 %v5920_v36, %s12339_s16 }
0x2bc1   :  { %v5923_v30 = vpop.permute.xlu0 %5922 }
0x2bc2   :  { %v5925_v50 = vadd.f32 %v5923_v30, %v5835_v43  ;;  %v6128_v43 = vld [vmem:[#allocation2 + $0x28] sm:$0xff] }
0x2bc4   :  { %11680 = vtanh.f32 %v5925_v50 }
0x2bce   :  { %v11681_v1 = vpop.eup %11680 }
0x2bcf   :  { %5929 = vrot.lane.b32.xlu1 %v11681_v1, %s12340_s9 }
0x2bd3   :  { %6088 = vrot.lane.b32.xlu1 %v6076_v23, %s12339_s16 }
0x2c41   :  { %v5930_v40 = vpop.permute.xlu1 %5929 }
0x2c42   :  { %v5932_v63 = vmul.f32 %v5930_v40, %v5927_v9 }
0x2c44   :  { %v13718_v37 = vadd.f32 %v5933_v15, %v5932_v63 }
0x2c45   :  { %v6089_v1 = vpop.permute.xlu1 %6088 }
0x2c46   :  { %5936 = vrot.lane.b32.xlu0 %v13718_v37, %s12340_s9 }
0x2cb8   :  { %v13722_v26 = vpop.permute.xlu0 %5936 }
0x2cb9   :  { %10530 = vmatmul.mubr.msk.f32.vlgmr.msra.gmra.mrb[66].mxu1 %vm448_vm2, %v13722_v26 }
0x2cba   :  { %11318 = vmatpush3.bf16.msra.mxu1 %v12824_v4  ;;  %10547 = vmatprep.mubr.msk.f32.mxu1 %vm12336_vm0, %v14357_v53 }
0x2cbb   :  { %11319 = vmatprep.subr.bf16.mxu1 %v14358_v62 }
0x2cbd   :  { %10548 = vmatmul.mubr.msk.f32.vlgmr.msra.gmra.mrb[68].mxu1 %vm362_vm1, %v6128_v43 }
0x2cbe   :  { %11321 = vmatpush3.bf16.msra.mxu1 %v12826_v7  ;;  %10558 = vmatprep.mubr.msk.f32.mxu1 %vm12336_vm0, %v14357_v53 }
0x2cbf   :  { %11322 = vmatprep.subr.bf16.mxu1 %v14358_v62 }
0x2cc2   :  { %11324 = vmatpush3.bf16.msra.mxu1 %v12835_v11 }
0x2cc3   :  { %11331 = vmatprep.subr.bf16.mxu1 %v14358_v62 }
0x2d8c   :  { %v6006_v46 = vpop.f32.mrb[66].mxu1 }
0x2d8d   :  { %v6080_v27 = vadd.f32 %v6076_v23, %v6006_v46  ;;  %v10531_v29 = vpop.f32.mrb[67].mxu1 }
0x2d8f   :  { %v9264_v38 = vmul.f32 -1.442695, %v6080_v27 }
0x2d90   :  { %v6200_v40 = vpop.f32.mrb[68].mxu1 }
0x2d91   :  { %11682 = vpow2.f32 %v9264_v38  ;;  %v6201_v15 = vadd.f32 %v13397_v45, %v6200_v40  ;;  %v10549_v63 = vpop.f32.mrb[69].mxu1 }
0x2d93   :  { %v6204_v43 = vmax.f32 %v6201_v15, 0.0 }
0x2d95   :  { %10559 = vmatmul.mubr.msk.f32.vlgmr.msra.gmra.mrb[70].mxu1 %vm448_vm2, %v6204_v43 }
0x2d96   :  { %11333 = vmatpush3.bf16.msra.mxu1 %v12852_v21  ;;  %10580 = vmatprep.mubr.msk.f32.mxu1 %vm12336_vm0, %v14357_v53 }
0x2d97   :  { %11334 = vmatprep.subr.bf16.mxu1 %v14358_v62 }
0x2d9a   :  { %11336 = vmatpush3.bf16.msra.mxu1 %v12867_v28 }
0x2d9b   :  { %v11683_v36 = vpop.eup %11682  ;;  %11343 = vmatprep.subr.bf16.mxu1 %v14358_v62 }
0x2d9c   :  { %v6084_v30 = vadd.f32 1.0, %v11683_v36 }
0x2d9e   :  { %11684 = vrcp.f32 %v6084_v30 }
0x2da8   :  { %v11685_v50 = vpop.eup %11684 }
0x2da9   :  { %v6091_v9 = vmul.f32 %v11685_v50, %v6089_v1  ;;  %v6104_v1 = vmul.f32 %v11685_v50, %v13600_v20 }
0x2dab   :  { %6093 = vrot.lane.b32.xlu0 %v6091_v9, %s12339_s16 }
0x2e1d   :  { %v6094_v23 = vpop.permute.xlu0 %6093 }
0x2e1e   :  { %v6096_v27 = vadd.f32 %v6094_v23, %v6006_v46 }
0x2e20   :  { %11686 = vtanh.f32 %v6096_v27 }
0x2e2a   :  { %v11687_v29 = vpop.eup %11686 }
0x2e2b   :  { %6100 = vrot.lane.b32.xlu1 %v11687_v29, %s12340_s9 }
0x2e68   :  { %v6274_v45 = vpop.f32.mrb[70].mxu1 }
0x2e69   :  { %v13748_v38 = vadd.f32 %v13408_v42, %v6274_v45  ;;  %v10560_v36 = vpop.f32.mrb[71].mxu1  ;;  %v6098_v42 = vsub.f32 1.0, %v11685_v50 }
0x2e6b   :  { %v6278_v30 = vmax.f32 %v13748_v38, 0.0 }
0x2e6d   :  { %10581 = vmatmul.mubr.msk.f32.vlgmr.msra.gmra.mrb[72].mxu1 %vm448_vm2, %v6278_v30 }
0x2e6e   :  { %11345 = vmatpush3.bf16.msra.mxu1 %v12895_v44  ;;  %10602 = vmatprep.mubr.msk.f32.mxu1 %vm12336_vm0, %v14357_v53 }
0x2e6f   :  { %11346 = vmatprep.subr.bf16.mxu1 %v14358_v62 }
0x2e72   :  { %11348 = vmatpush3.bf16.msra.mxu1 %v12916_v59 }
0x2e73   :  { %11355 = vmatprep.subr.bf16.mxu1 %v14358_v62 }
0x2e9d   :  { %v6101_v46 = vpop.permute.xlu1 %6100 }
0x2e9e   :  { %v6103_v9 = vmul.f32 %v6101_v46, %v6098_v42 }
0x2ea0   :  { %v13761_v40 = vadd.f32 %v6104_v1, %v6103_v9 }
0x2ea2   :  { %6280 = vrot.lane.b32.xlu0 %v13761_v40, %s12340_s9 }
0x2f14   :  { %v13765_v15 = vpop.permute.xlu0 %6280 }
0x2f15   :  { %10570 = vmatmul.mubr.msk.f32.vlgmr.msra.gmra.mrb[62].mxu0 %vm448_vm2, %v13765_v15 }
0x2f16   :  { %11339 = vmatpush3.bf16.msra.mxu0 %v12876_v31  ;;  %10591 = vmatprep.mubr.msk.f32.mxu0 %vm12336_vm0, %v14357_v53 }
0x2f17   :  { %11340 = vmatprep.subr.bf16.mxu0 %v14358_v62 }
0x2f1a   :  { %11342 = vmatpush3.bf16.msra.mxu0 %v12891_v41 }
0x2f1b   :  { %11349 = vmatprep.subr.bf16.mxu0 %v14358_v62 }
0x2f40   :  { %v6423_v20 = vpop.f32.mrb[72].mxu1 }
0x2f41   :  { %v10582_v50 = vpop.f32.mrb[73].mxu1 }
0x2fe8   :  { %v6350_v63 = vpop.f32.mrb[62].mxu0 }
0x2fe9   :  { %v6424_v43 = vadd.f32 %v6423_v20, %v6350_v63  ;;  %v10571_v23 = vpop.f32.mrb[63].mxu0 }
0x2feb   :  { %v6427_v27 = vadd.f32 %v13438_v60, %v6424_v43 }
0x2fed   :  { %v6428_v29 = vmax.f32 %v6427_v27, 0.0 }
0x2fef   :  { %10592 = vmatmul.mubr.msk.f32.vlgmr.msra.gmra.mrb[64].mxu0 %vm448_vm2, %v6428_v29 }
0x2ff0   :  { %11351 = vmatpush3.bf16.msra.mxu0 %v12902_v52  ;;  %10613 = vmatprep.mubr.msk.f32.mxu0 %vm12336_vm0, %v14357_v53 }
0x2ff1   :  { %11352 = vmatprep.subr.bf16.mxu0 %v14358_v62 }
0x2ff4   :  { %11354 = vmatpush3.bf16.msra.mxu0 %v12906_v56 }
0x2ff5   :  { %11361 = vmatprep.subr.bf16.mxu0 %v14358_v62 }
0x2ff7   :  { %10614 = vmatmul.mubr.msk.f32.vlgmr.msra.gmra.mrb[66].mxu0 %vm448_vm2, %v13765_v15 }
0x2ff8   :  { %11363 = vmatpush3.bf16.msra.mxu0 %v12967_v48  ;;  %10631 = vmatprep.mubr.msk.f32.mxu0 %vm12336_vm0, %v14357_v53 }
0x2ff9   :  { %11364 = vmatprep.subr.bf16.mxu0 %v14358_v62 }
0x30c2   :  { %v6498_v60 = vpop.f32.mrb[64].mxu0 }
0x30c3   :  { %v6499_v45 = vadd.f32 %v13454_v0, %v6498_v60  ;;  %v10593_v36 = vpop.f32.mrb[65].mxu0 }
0x30c5   :  { %v6502_v42 = vmax.f32 %v6499_v45, 0.0 }
0x30c7   :  { %10603 = vmatmul.mubr.msk.f32.vlgmr.msra.gmra.mrb[74].mxu1 %vm448_vm2, %v6502_v42 }
0x30c8   :  { %11357 = vmatpush3.bf16.msra.mxu1 %v12929_v5  ;;  %10624 = vmatprep.mubr.msk.f32.mxu1 %vm12336_vm0, %v14357_v53 }
0x30c9   :  { %11358 = vmatprep.subr.bf16.mxu1 %v14358_v62 }
0x30ca   :  { %v6657_v46 = vpop.f32.mrb[66].mxu0 }
0x30cb   :  { %v6658_v1 = vadd.f32 %v13462_v19, %v6657_v46  ;;  %v10615_v9 = vpop.f32.mrb[67].mxu0 }
0x30cc   :  { %11360 = vmatpush3.bf16.msra.mxu1 %v12941_v12 }
0x30cd   :  { %v6661_v20 = vmax.f32 %v6658_v1, 0.0  ;;  %11376 = vmatprep.subr.bf16.mxu1 %v14358_v62 }
0x30cf   :  { %10625 = vmatmul.mubr.msk.f32.vlgmr.msra.gmra.mrb[76].mxu1 %vm448_vm2, %v6661_v20 }
0x30d0   :  { %11378 = vmatpush3.bf16.msra.mxu1 %v12971_v58  ;;  %10664 = vmatprep.mubr.msk.f32.mxu1 %vm12336_vm0, %v14357_v53 }
0x30d1   :  { %11379 = vmatprep.subr.bf16.mxu1 %v14358_v62 }
0x30d4   :  { %11381 = vmatpush3.bf16.msra.mxu1 %v12974_v2 }
0x30d5   :  { %11382 = vmatprep.subr.bf16.mxu1 %v14358_v62 }
0x30d7   :  { %10665 = vmatmul.mubr.msk.f32.vlgmr.msra.gmra.mrb[78].mxu1 %vm448_vm2, %v13722_v26 }
0x30d8   :  { %11384 = vmatpush3.bf16.msra.mxu1 %v13033_v6  ;;  %10675 = vmatprep.mubr.msk.f32.mxu1 %vm12336_vm0, %v14357_v53 }
0x30d9   :  { %11385 = vmatprep.subr.bf16.mxu1 %v14358_v62 }
0x30dc   :  { %11387 = vmatpush3.bf16.msra.mxu1 %v13040_v18 }
0x30dd   :  { %11394 = vmatprep.subr.bf16.mxu1 %v14358_v62 }
0x319a   :  { %v6572_v0 = vpop.f32.mrb[74].mxu1 }
0x319b   :  { %v13814_v19 = vadd.f32 %v13482_v49, %v6572_v0  ;;  %v10604_v50 = vpop.f32.mrb[75].mxu1 }
0x319d   :  { %14373 = vst [vmem:[#allocation71_spill] sm:$0xff] %v13814_v19  ;;  %v6577_v63 = vand.u32 2147483647, %v13814_v19 }
0x319f   :  { %v6578_v43 = vsub.f32 0.0, %v6577_v63 }
0x31a1   :  { %v6579_v26 = vmul.f32 1.442695, %v6578_v43 }
0x31a2   :  { %v6731_v23 = vpop.f32.mrb[76].mxu1 }
0x31a3   :  { %11688 = vpow2.f32 %v6579_v26  ;;  %v13818_v27 = vadd.f32 %v13491_v54, %v6731_v23  ;;  %v10626_v29 = vpop.f32.mrb[77].mxu1 }
0x31a4   :  { %v6576_v29 = vmax.f32 %v13814_v19, 0.0 }
0x31a5   :  { %14374 = vst [vmem:[#allocation72_spill] sm:$0xff] %v13818_v27  ;;  %v6736_v60 = vand.u32 2147483647, %v13818_v27 }
0x31a7   :  { %v6737_v45 = vsub.f32 0.0, %v6736_v60 }
0x31a9   :  { %v6738_v36 = vmul.f32 1.442695, %v6737_v45 }
0x31aa   :  { %v13821_v42 = vpop.f32.mrb[78].mxu1 }
0x31ab   :  { %11690 = vpow2.f32 %v6738_v36  ;;  %7051 = vrot.lane.b32.xlu0 %v13821_v42, %s12339_s16  ;;  %v10666_v49 = vpop.f32.mrb[79].mxu1 }
0x31ad   :  { %v11689_v46 = vpop.eup %11688 }
0x31ae   :  { %v6581_v1 = vadd.f32 1.0, %v11689_v46  ;;  %v6584_v9 = vmul.f32 -0.5, %v11689_v46  ;;  %v6587_v50 = vand.u32 2147483647, %v11689_v46 }
0x31b0   :  { %11692 = vlog2.f32 %v6581_v1  ;;  %v6585_v54 = vadd.f32 1.0, %v6584_v9  ;;  %vm6588_vm13 = vcmp.lt.f32.partialorder %v6587_v50, 0.0004427343 }
0x31b2   :  { %v6586_v23 = vmul.f32 %v11689_v46, %v6585_v54 }
0x31b5   :  { %v11691_v20 = vpop.eup %11690 }
0x31b6   :  { %v6740_v0 = vadd.f32 1.0, %v11691_v20  ;;  %v6743_v43 = vmul.f32 -0.5, %v11691_v20  ;;  %v6746_v49 = vand.u32 2147483647, %v11691_v20 }
0x31b8   :  { %11694 = vlog2.f32 %v6740_v0  ;;  %v6744_v36 = vadd.f32 1.0, %v6743_v43  ;;  %v6735_v0 = vmax.f32 %v13818_v27, 0.0  ;;  %vm6747_vm14 = vcmp.lt.f32.partialorder %v6746_v49, 0.0004427343 }
0x31ba   :  { %v11693_v63 = vpop.eup %11692  ;;  %v6745_v9 = vmul.f32 %v11691_v20, %v6744_v36 }
0x31bb   :  { %v6583_v26 = vmul.f32 0.6931472, %v11693_v63 }
0x31bd   :  { %v6589_v60 = vsel %vm6588_vm13, %v6586_v23, %v6583_v26 }
0x31be   :  { %v13826_v45 = vadd.f32 %v6589_v60, %v6576_v29  ;;  %v6130_v60 = vld [vmem:[#allocation5 + $0x28] sm:$0xff] }
0x31c0   :  { %14375 = vst [vmem:[#allocation73_spill] sm:$0xff] %v13826_v45  ;;  %6751 = vrot.lane.b32.xlu1 %v13826_v45, %s12338_s3  ;;  %11696 = vlog2.f32 %v13826_v45 }
0x31c2   :  { %v11695_v1 = vpop.eup %11694 }
0x31c3   :  { %v6742_v61 = vmul.f32 0.6931472, %v11695_v1 }
0x31c5   :  { %v6748_v46 = vsel %vm6747_vm14, %v6745_v9, %v6742_v61 }
0x31c6   :  { %v13832_v54 = vadd.f32 %v6748_v46, %v6735_v0 }
0x31c8   :  { %14376 = vst [vmem:[#allocation74_spill] sm:$0xff] %v13832_v54  ;;  %11698 = vlog2.f32 %v13832_v54 }
0x31ca   :  { %v11697_v50 = vpop.eup %11696 }
0x31cb   :  { %v7244_v63 = vmul.f32 0.6931472, %v11697_v50 }
0x31cd   :  { %v13837_v29 = vmul.f32 2.0, %v7244_v63 }
0x31cf   :  { %14378 = vst [vmem:[#allocation76_spill] sm:$0xff] %v13837_v29 }
0x31d2   :  { %v11699_v43 = vpop.eup %11698 }
0x31d3   :  { %v7241_v26 = vmul.f32 0.6931472, %v11699_v43 }
0x31d5   :  { %v13835_v23 = vmul.f32 2.0, %v7241_v26 }
0x31d7   :  { %14377 = vst [vmem:[#allocation75_spill] sm:$0xff] %v13835_v23 }
0x3232   :  { %v6752_v36 = vpop.permute.xlu1 %6751 }
0x3233   :  { %v6754_v49 = vmul.f32 %v6752_v36, %v6130_v60  ;;  %v7052_v36 = vpop.permute.xlu0 %7051 }
0x3235   :  { %v6755_v61 = vadd.f32 %v6754_v49, %v13814_v19 }
0x3237   :  { %10632 = vmatmul.mubr.msk.f32.vlgmr.msra.gmra.mrb[68].mxu0 %vm362_vm1, %v6755_v61 }
0x3238   :  { %11366 = vmatpush3.bf16.msra.mxu0 %v12998_v51  ;;  %10642 = vmatprep.mubr.msk.f32.mxu0 %vm12336_vm0, %v14357_v53 }
0x3239   :  { %11367 = vmatprep.subr.bf16.mxu0 %v14358_v62 }
0x323c   :  { %11369 = vmatpush3.bf16.msra.mxu0 %v13006_v57 }
0x323d   :  { %11370 = vmatprep.subr.bf16.mxu0 %v14358_v62 }
0x330a   :  { %v6825_v1 = vpop.f32.mrb[68].mxu0 }
0x330b   :  { %v6826_v9 = vadd.f32 %v13525_v3, %v6825_v1  ;;  %v10633_v0 = vpop.f32.mrb[69].mxu0 }
0x330d   :  { %v6829_v46 = vmax.f32 %v6826_v9, 0.0 }
0x330f   :  { %10643 = vmatmul.mubr.msk.f32.vlgmr.msra.gmra.mrb[70].mxu0 %vm448_vm2, %v6829_v46 }
0x3310   :  { %11372 = vmatpush3.bf16.msra.mxu0 %v13014_v16  ;;  %10653 = vmatprep.mubr.msk.f32.mxu0 %vm12336_vm0, %v14357_v53 }
0x3311   :  { %11373 = vmatprep.subr.bf16.mxu0 %v14358_v62 }
0x3314   :  { %11375 = vmatpush3.bf16.msra.mxu0 %v13018_v24 }
0x3315   :  { %11388 = vmatprep.subr.bf16.mxu0 %v14358_v62 }
0x3317   :  { %10654 = vmatmul.mubr.msk.f32.vlgmr.msra.gmra.mrb[70].mxu0 %vm448_vm2, %v6278_v30 }
0x3318   :  { %11390 = vmatpush3.bf16.msra.mxu0 %v13031_v55  ;;  %10686 = vmatprep.mubr.msk.f32.mxu0 %vm12336_vm0, %v14357_v53 }
0x3319   :  { %11391 = vmatprep.subr.bf16.mxu0 %v14358_v62 }
0x331c   :  { %11393 = vmatpush3.bf16.msra.mxu0 %v13036_v13 }
0x331d   :  { %11403 = vmatprep.subr.bf16.mxu0 %v14358_v62 }
0x331f   :  { %10687 = vmatmul.mubr.msk.f32.vlgmr.msra.gmra.mrb[72].mxu0 %vm448_vm2, %v13765_v15 }
0x3320   :  { %11405 = vmatpush3.bf16.msra.mxu0 %v12845_v14  ;;  %10715 = vmatprep.mubr.msk.f32.mxu0 %vm12336_vm0, %v14357_v53 }
0x3321   :  { %11406 = vmatprep.subr.bf16.mxu0 %v14358_v62 }
0x3324   :  { %11408 = vmatpush3.bf16.msra.mxu0 %v12865_v25 }
0x3325   :  { %11415 = vmatprep.subr.bf16.mxu0 %v14358_v62 }
0x33ea   :  { %v6969_v3 = vpop.f32.mrb[70].mxu0 }
0x33eb   :  { %v7043_v38 = vadd.f32 %v13821_v42, %v6969_v3  ;;  %v10655_v30 = vpop.f32.mrb[71].mxu0 }
0x33ed   :  { %v9278_v50 = vmul.f32 -1.442695, %v7043_v38 }
0x33ef   :  { %11700 = vpow2.f32 %v9278_v50 }
0x33f2   :  { %v7210_v63 = vpop.f32.mrb[72].mxu0 }
0x33f3   :  { %v10688_v43 = vpop.f32.mrb[73].mxu0 }
0x33f9   :  { %v11701_v15 = vpop.eup %11700 }
0x33fa   :  { %v7047_v26 = vadd.f32 1.0, %v11701_v15 }
0x33fc   :  { %11702 = vrcp.f32 %v7047_v26 }
0x3406   :  { %v11703_v60 = vpop.eup %11702 }
0x3407   :  { %v7054_v49 = vmul.f32 %v11703_v60, %v7052_v36  ;;  %v7061_v42 = vsub.f32 1.0, %v11703_v60  ;;  %v7067_v46 = vmul.f32 %v11703_v60, %v13718_v37 }
0x3409   :  { %7056 = vrot.lane.b32.xlu1 %v7054_v49, %s12339_s16 }
0x347b   :  { %v7057_v61 = vpop.permute.xlu1 %7056 }
0x347c   :  { %v7059_v1 = vadd.f32 %v7057_v61, %v6969_v3  ;;  %v7262_v3 = vld [vmem:[#allocation2 + $0x30] sm:$0xff] }
0x347e   :  { %11704 = vtanh.f32 %v7059_v1 }
0x3488   :  { %v11705_v9 = vpop.eup %11704 }
0x3489   :  { %7063 = vrot.lane.b32.xlu0 %v11705_v9, %s12340_s9 }
0x348d   :  { %7222 = vrot.lane.b32.xlu0 %v7210_v63, %s12339_s16 }
0x34fb   :  { %v7064_v0 = vpop.permute.xlu0 %7063 }
0x34fc   :  { %v7066_v38 = vmul.f32 %v7064_v0, %v7061_v42  ;;  %v13899_v42 = vld [vmem:[#allocation8] ss:$0 sm:$0xff] }
0x34fe   :  { %v13879_v30 = vadd.f32 %v7067_v46, %v7066_v38 }
0x34ff   :  { %v7223_v61 = vpop.permute.xlu0 %7222 }
0x3500   :  { %7070 = vrot.lane.b32.xlu1 %v13879_v30, %s12340_s9 }
0x3572   :  { %v13883_v50 = vpop.permute.xlu1 %7070 }
0x3573   :  { %10676 = vmatmul.mubr.msk.f32.vlgmr.msra.gmra.mrb[80].mxu1 %vm448_vm2, %v13883_v50 }
0x3574   :  { %11396 = vmatpush3.bf16.msra.mxu1 %v12824_v4  ;;  %10693 = vmatprep.mubr.msk.f32.mxu1 %vm12336_vm0, %v14357_v53 }
0x3575   :  { %11397 = vmatprep.subr.bf16.mxu1 %v14358_v62 }
0x3577   :  { %10694 = vmatmul.mubr.msk.f32.vlgmr.msra.gmra.mrb[82].mxu1 %vm362_vm1, %v7262_v3 }
0x3578   :  { %11399 = vmatpush3.bf16.msra.mxu1 %v12826_v7  ;;  %10704 = vmatprep.mubr.msk.f32.mxu1 %vm12336_vm0, %v14357_v53 }
0x3579   :  { %11400 = vmatprep.subr.bf16.mxu1 %v14358_v62 }
0x357c   :  { %11402 = vmatpush3.bf16.msra.mxu1 %v12835_v11 }
0x357d   :  { %11409 = vmatprep.subr.bf16.mxu1 %v14358_v62 }
0x3646   :  { %v7140_v37 = vpop.f32.mrb[80].mxu1 }
0x3647   :  { %v7214_v43 = vadd.f32 %v7210_v63, %v7140_v37  ;;  %v10677_v15 = vpop.f32.mrb[81].mxu1 }
0x3649   :  { %v9281_v26 = vmul.f32 -1.442695, %v7214_v43 }
0x364a   :  { %v7334_v9 = vpop.f32.mrb[82].mxu1 }
0x364b   :  { %11706 = vpow2.f32 %v9281_v26  ;;  %v7335_v0 = vadd.f32 %v13899_v42, %v7334_v9  ;;  %v10695_v46 = vpop.f32.mrb[83].mxu1  ;;  %v13910_v26 = vld [vmem:[#allocation11] ss:$0 sm:$0xff] }
0x364d   :  { %v7338_v38 = vmax.f32 %v7335_v0, 0.0 }
0x364f   :  { %10705 = vmatmul.mubr.msk.f32.vlgmr.msra.gmra.mrb[84].mxu1 %vm448_vm2, %v7338_v38 }
0x3650   :  { %11411 = vmatpush3.bf16.msra.mxu1 %v12852_v21  ;;  %10726 = vmatprep.mubr.msk.f32.mxu1 %vm12336_vm0, %v14357_v53 }
0x3651   :  { %11412 = vmatprep.subr.bf16.mxu1 %v14358_v62 }
0x3654   :  { %11414 = vmatpush3.bf16.msra.mxu1 %v12867_v28 }
0x3655   :  { %v11707_v60 = vpop.eup %11706  ;;  %11421 = vmatprep.subr.bf16.mxu1 %v14358_v62 }
0x3656   :  { %v7218_v36 = vadd.f32 1.0, %v11707_v60 }
0x3658   :  { %11708 = vrcp.f32 %v7218_v36 }
0x3662   :  { %v11709_v49 = vpop.eup %11708 }
0x3663   :  { %v7225_v1 = vmul.f32 %v11709_v49, %v7223_v61  ;;  %v7238_v9 = vmul.f32 %v11709_v49, %v13761_v40 }
0x3665   :  { %7227 = vrot.lane.b32.xlu1 %v7225_v1, %s12339_s16 }
0x36d7   :  { %v7228_v63 = vpop.permute.xlu1 %7227 }
0x36d8   :  { %v7230_v3 = vadd.f32 %v7228_v63, %v7140_v37  ;;  %v7232_v37 = vsub.f32 1.0, %v11709_v49 }
0x36da   :  { %11710 = vtanh.f32 %v7230_v3 }
0x36e4   :  { %v11711_v43 = vpop.eup %11710 }
0x36e5   :  { %7234 = vrot.lane.b32.xlu0 %v11711_v43, %s12340_s9 }
0x3722   :  { %v7408_v15 = vpop.f32.mrb[84].mxu1 }
0x3723   :  { %v13913_v60 = vadd.f32 %v13910_v26, %v7408_v15  ;;  %v10706_v36 = vpop.f32.mrb[85].mxu1  ;;  %v13940_v15 = vld [vmem:[#allocation17] ss:$0 sm:$0xff] }
0x3725   :  { %v14316_v61 = vmax.f32 %v13913_v60, 0.0 }
0x3727   :  { %10727 = vmatmul.mubr.msk.f32.vlgmr.msra.gmra.mrb[86].mxu1 %vm448_vm2, %v14316_v61 }
0x3728   :  { %11423 = vmatpush3.bf16.msra.mxu1 %v12895_v44  ;;  %10748 = vmatprep.mubr.msk.f32.mxu1 %vm12336_vm0, %v14357_v53 }
0x3729   :  { %11424 = vmatprep.subr.bf16.mxu1 %v14358_v62 }
0x372c   :  { %11426 = vmatpush3.bf16.msra.mxu1 %v12916_v59 }
0x372d   :  { %11433 = vmatprep.subr.bf16.mxu1 %v14358_v62 }
0x3757   :  { %v7235_v1 = vpop.permute.xlu0 %7234 }
0x3758   :  { %v7237_v0 = vmul.f32 %v7235_v1, %v7232_v37 }
0x375a   :  { %v13926_v46 = vadd.f32 %v7238_v9, %v7237_v0  ;;  %v13956_v9 = vld [vmem:[#allocation20] ss:$0 sm:$0xff] }
0x375c   :  { %7414 = vrot.lane.b32.xlu1 %v13926_v46, %s12340_s9 }
0x37ce   :  { %v13930_v38 = vpop.permute.xlu1 %7414 }
0x37cf   :  { %10716 = vmatmul.mubr.msk.f32.vlgmr.msra.gmra.mrb[74].mxu0 %vm448_vm2, %v13930_v38 }
0x37d0   :  { %11417 = vmatpush3.bf16.msra.mxu0 %v12876_v31  ;;  %10737 = vmatprep.mubr.msk.f32.mxu0 %vm12336_vm0, %v14357_v53 }
0x37d1   :  { %11418 = vmatprep.subr.bf16.mxu0 %v14358_v62 }
0x37d4   :  { %11420 = vmatpush3.bf16.msra.mxu0 %v12891_v41 }
0x37d5   :  { %11427 = vmatprep.subr.bf16.mxu0 %v14358_v62 }
0x37fa   :  { %v7557_v40 = vpop.f32.mrb[86].mxu1 }
0x37fb   :  { %v10728_v49 = vpop.f32.mrb[87].mxu1 }
0x38a2   :  { %v7484_v63 = vpop.f32.mrb[74].mxu0 }
0x38a3   :  { %v7558_v3 = vadd.f32 %v7557_v40, %v7484_v63  ;;  %v10717_v43 = vpop.f32.mrb[75].mxu0 }
0x38a5   :  { %v7561_v36 = vadd.f32 %v13940_v15, %v7558_v3  ;;  %v13964_v3 = vld [vmem:[#allocation26] ss:$0 sm:$0xff] }
0x38a7   :  { %v7562_v37 = vmax.f32 %v7561_v36, 0.0 }
0x38a9   :  { %10738 = vmatmul.mubr.msk.f32.vlgmr.msra.gmra.mrb[76].mxu0 %vm448_vm2, %v7562_v37 }
0x38aa   :  { %11429 = vmatpush3.bf16.msra.mxu0 %v12902_v52  ;;  %10759 = vmatprep.mubr.msk.f32.mxu0 %vm12336_vm0, %v14357_v53 }
0x38ab   :  { %11430 = vmatprep.subr.bf16.mxu0 %v14358_v62 }
0x38ae   :  { %11432 = vmatpush3.bf16.msra.mxu0 %v12906_v56 }
0x38af   :  { %11439 = vmatprep.subr.bf16.mxu0 %v14358_v62 }
0x38b1   :  { %10760 = vmatmul.mubr.msk.f32.vlgmr.msra.gmra.mrb[78].mxu0 %vm448_vm2, %v13930_v38 }
0x38b2   :  { %11441 = vmatpush3.bf16.msra.mxu0 %v12967_v48  ;;  %10777 = vmatprep.mubr.msk.f32.mxu0 %vm12336_vm0, %v14357_v53 }
0x38b3   :  { %11442 = vmatprep.subr.bf16.mxu0 %v14358_v62 }
0x397c   :  { %v7632_v1 = vpop.f32.mrb[76].mxu0 }
0x397d   :  { %v7633_v0 = vadd.f32 %v13956_v9, %v7632_v1  ;;  %v10739_v40 = vpop.f32.mrb[77].mxu0  ;;  %v13984_v1 = vld [vmem:[#allocation23] ss:$0 sm:$0xff] }
0x397f   :  { %v7636_v49 = vmax.f32 %v7633_v0, 0.0 }
0x3981   :  { %10749 = vmatmul.mubr.msk.f32.vlgmr.msra.gmra.mrb[88].mxu1 %vm448_vm2, %v7636_v49 }
0x3982   :  { %11435 = vmatpush3.bf16.msra.mxu1 %v12929_v5  ;;  %10770 = vmatprep.mubr.msk.f32.mxu1 %vm12336_vm0, %v14357_v53 }
0x3983   :  { %11436 = vmatprep.subr.bf16.mxu1 %v14358_v62 }
0x3984   :  { %v7791_v63 = vpop.f32.mrb[78].mxu0 }
0x3985   :  { %v7792_v43 = vadd.f32 %v13964_v3, %v7791_v63  ;;  %v10761_v36 = vpop.f32.mrb[79].mxu0  ;;  %v13993_v63 = vld [vmem:[%s14265_s18] ss:$0 sm:$0xff]  ;;  %s12341_s18 = smov 16  }
0x3986   :  { %11438 = vmatpush3.bf16.msra.mxu1 %v12941_v12  ;;  %14379 = vst [vmem:[#allocation77_spill] sm:$0xff] %v13993_v63 }
0x3987   :  { %v7795_v37 = vmax.f32 %v7792_v43, 0.0  ;;  %11454 = vmatprep.subr.bf16.mxu1 %v14358_v62 }
0x3989   :  { %10771 = vmatmul.mubr.msk.f32.vlgmr.msra.gmra.mrb[90].mxu1 %vm448_vm2, %v7795_v37 }
0x398a   :  { %11456 = vmatpush3.bf16.msra.mxu1 %v12971_v58  ;;  %10810 = vmatprep.mubr.msk.f32.mxu1 %vm12336_vm0, %v14357_v53 }
0x398b   :  { %11457 = vmatprep.subr.bf16.mxu1 %v14358_v62 }
0x398e   :  { %11459 = vmatpush3.bf16.msra.mxu1 %v12974_v2 }
0x398f   :  { %11460 = vmatprep.subr.bf16.mxu1 %v14358_v62 }
0x3991   :  { %10811 = vmatmul.mubr.msk.f32.vlgmr.msra.gmra.mrb[92].mxu1 %vm448_vm2, %v13883_v50 }
0x3992   :  { %11462 = vmatpush3.bf16.msra.mxu1 %v13033_v6  ;;  %10821 = vmatprep.mubr.msk.f32.mxu1 %vm12336_vm0, %v14357_v53 }
0x3993   :  { %11463 = vmatprep.subr.bf16.mxu1 %v14358_v62 }
0x3996   :  { %11465 = vmatpush3.bf16.msra.mxu1 %v13040_v18 }
0x3997   :  { %11472 = vmatprep.subr.bf16.mxu1 %v14358_v62 }
0x3a54   :  { %v7706_v58 = vpop.f32.mrb[88].mxu1 }
0x3a55   :  { %v13987_v2 = vadd.f32 %v13984_v1, %v7706_v58  ;;  %v10750_v0 = vpop.f32.mrb[89].mxu1 }
0x3a57   :  { %v7711_v50 = vand.u32 2147483647, %v13987_v2  ;;  %v7710_v54 = vmax.f32 %v13987_v2, 0.0 }
0x3a59   :  { %v7712_v40 = vsub.f32 0.0, %v7711_v50 }
0x3a5b   :  { %v7713_v6 = vmul.f32 1.442695, %v7712_v40 }
0x3a5c   :  { %v7865_v49 = vpop.f32.mrb[90].mxu1 }
0x3a5d   :  { %11712 = vpow2.f32 %v7713_v6  ;;  %v13996_v18 = vadd.f32 %v13993_v63, %v7865_v49  ;;  %v10772_v43 = vpop.f32.mrb[91].mxu1 }
0x3a5f   :  { %v7870_v36 = vand.u32 2147483647, %v13996_v18 }
0x3a61   :  { %v7871_v37 = vsub.f32 0.0, %v7870_v36 }
0x3a63   :  { %v7872_v58 = vmul.f32 1.442695, %v7871_v37 }
0x3a64   :  { %v13999_v0 = vpop.f32.mrb[92].mxu1 }
0x3a65   :  { %11714 = vpow2.f32 %v7872_v58  ;;  %8185 = vrot.lane.b32.xlu1 %v13999_v0, %s12339_s16  ;;  %v10812_v50 = vpop.f32.mrb[93].mxu1 }
0x3a67   :  { %v11713_v40 = vpop.eup %11712 }
0x3a68   :  { %v7715_v6 = vadd.f32 1.0, %v11713_v40  ;;  %v7718_v20 = vmul.f32 -0.5, %v11713_v40  ;;  %v7721_v43 = vand.u32 2147483647, %v11713_v40 }
0x3a6a   :  { %11716 = vlog2.f32 %v7715_v6  ;;  %v7719_v49 = vadd.f32 1.0, %v7718_v20  ;;  %vm7722_vm15 = vcmp.lt.f32.partialorder %v7721_v43, 0.0004427343 }
0x3a6c   :  { %v7720_v37 = vmul.f32 %v11713_v40, %v7719_v49 }
0x3a6f   :  { %v11715_v61 = vpop.eup %11714 }
0x3a70   :  { %v7874_v29 = vadd.f32 1.0, %v11715_v61  ;;  %v7877_v45 = vmul.f32 -0.5, %v11715_v61  ;;  %v7880_v27 = vand.u32 2147483647, %v11715_v61 }
0x3a72   :  { %11718 = vlog2.f32 %v7874_v29  ;;  %v7878_v50 = vadd.f32 1.0, %v7877_v45  ;;  %v7869_v29 = vmax.f32 %v13996_v18, 0.0  ;;  %vm7881_vm3 = vcmp.lt.f32.partialorder %v7880_v27, 0.0004427343 }
0x3a74   :  { %v11717_v23 = vpop.eup %11716  ;;  %v7879_v20 = vmul.f32 %v11715_v61, %v7878_v50 }
0x3a75   :  { %v7717_v36 = vmul.f32 0.6931472, %v11717_v23 }
0x3a77   :  { %v7723_v58 = vsel %vm7722_vm15, %v7720_v37, %v7717_v36 }
0x3a78   :  { %v14004_v19 = vadd.f32 %v7723_v58, %v7710_v54  ;;  %v7264_v58 = vld [vmem:[#allocation5 + $0x30] sm:$0xff] }
0x3a7a   :  { %7885 = vrot.lane.b32.xlu0 %v14004_v19, %s12338_s3  ;;  %11720 = vlog2.f32 %v14004_v19 }
0x3a7c   :  { %v11719_v6 = vpop.eup %11718 }
0x3a7d   :  { %v7876_v63 = vmul.f32 0.6931472, %v11719_v6 }
0x3a7f   :  { %v7882_v23 = vsel %vm7881_vm3, %v7879_v20, %v7876_v63  ;;  %v14027_v20 = vld [vmem:[#allocation14] ss:$0 sm:$0xff] }
0x3a80   :  { %v14010_v40 = vadd.f32 %v7882_v23, %v7869_v29 }
0x3a82   :  { %11722 = vlog2.f32 %v14010_v40 }
0x3a84   :  { %v11721_v54 = vpop.eup %11720 }
0x3a85   :  { %v8378_v49 = vmul.f32 0.6931472, %v11721_v54 }
0x3a87   :  { %v14015_v37 = vmul.f32 2.0, %v8378_v49 }
0x3a8c   :  { %v11723_v45 = vpop.eup %11722 }
0x3a8d   :  { %v8375_v43 = vmul.f32 0.6931472, %v11723_v45 }
0x3a8f   :  { %v14013_v36 = vmul.f32 2.0, %v8375_v43 }
0x3a91   :  { %v8380_v61 = vsub.f32 %v14013_v36, %v14015_v37 }
0x3ad7   :  { %v8186_v45 = vpop.permute.xlu1 %8185 }
0x3aec   :  { %v7886_v27 = vpop.permute.xlu0 %7885 }
0x3aed   :  { %v7888_v50 = vmul.f32 %v7886_v27, %v7264_v58 }
0x3aef   :  { %v7889_v63 = vadd.f32 %v7888_v50, %v13987_v2 }
0x3af1   :  { %10778 = vmatmul.mubr.msk.f32.vlgmr.msra.gmra.mrb[80].mxu0 %vm362_vm1, %v7889_v63 }
0x3af2   :  { %11444 = vmatpush3.bf16.msra.mxu0 %v12998_v51  ;;  %10788 = vmatprep.mubr.msk.f32.mxu0 %vm12336_vm0, %v14357_v53  ;;  %v14380_v51 = vmax.f32 %v13913_v60, 0.0 }
0x3af3   :  { %11445 = vmatprep.subr.bf16.mxu0 %v14358_v62 }
0x3af6   :  { %11447 = vmatpush3.bf16.msra.mxu0 %v13006_v57 }
0x3af7   :  { %11448 = vmatprep.subr.bf16.mxu0 %v14358_v62 }
0x3bc4   :  { %v7959_v6 = vpop.f32.mrb[80].mxu0 }
0x3bc5   :  { %v7960_v29 = vadd.f32 %v14027_v20, %v7959_v6  ;;  %v10779_v23 = vpop.f32.mrb[81].mxu0 }
0x3bc7   :  { %v7963_v54 = vmax.f32 %v7960_v29, 0.0 }
0x3bc9   :  { %10789 = vmatmul.mubr.msk.f32.vlgmr.msra.gmra.mrb[82].mxu0 %vm448_vm2, %v7963_v54  ;;  %v8396_v54 = vld [vmem:[#allocation2 + $0x38] sm:$0xff] }
0x3bca   :  { %11450 = vmatpush3.bf16.msra.mxu0 %v13014_v16  ;;  %10799 = vmatprep.mubr.msk.f32.mxu0 %vm12336_vm0, %v14357_v53 }
0x3bcb   :  { %11451 = vmatprep.subr.bf16.mxu0 %v14358_v62 }
0x3bce   :  { %11453 = vmatpush3.bf16.msra.mxu0 %v13018_v24 }
0x3bcf   :  { %11466 = vmatprep.subr.bf16.mxu0 %v14358_v62 }
0x3bd1   :  { %10800 = vmatmul.mubr.msk.f32.vlgmr.msra.gmra.mrb[82].mxu0 %vm448_vm2, %v14380_v51 }
0x3bd2   :  { %11468 = vmatpush3.bf16.msra.mxu0 %v13031_v55  ;;  %10832 = vmatprep.mubr.msk.f32.mxu0 %vm12336_vm0, %v14357_v53 }
0x3bd3   :  { %11469 = vmatprep.subr.bf16.mxu0 %v14358_v62 }
0x3bd6   :  { %11471 = vmatpush3.bf16.msra.mxu0 %v13036_v13 }
0x3bd7   :  { %11481 = vmatprep.subr.bf16.mxu0 %v14358_v62 }
0x3bd9   :  { %10833 = vmatmul.mubr.msk.f32.vlgmr.msra.gmra.mrb[84].mxu0 %vm448_vm2, %v13930_v38 }
0x3bda   :  { %11483 = vmatpush3.bf16.msra.mxu0 %v12845_v14  ;;  %10861 = vmatprep.mubr.msk.f32.mxu0 %vm12336_vm0, %v14357_v53 }
0x3bdb   :  { %11484 = vmatprep.subr.bf16.mxu0 %v14358_v62 }
0x3bde   :  { %11486 = vmatpush3.bf16.msra.mxu0 %v12865_v25 }
0x3bdf   :  { %11493 = vmatprep.subr.bf16.mxu0 %v14358_v62 }
0x3ca4   :  { %v8103_v57 = vpop.f32.mrb[82].mxu0 }
0x3ca5   :  { %v8177_v16 = vadd.f32 %v13999_v0, %v8103_v57  ;;  %v10801_v24 = vpop.f32.mrb[83].mxu0 }
0x3ca7   :  { %v9295_v55 = vmul.f32 -1.442695, %v8177_v16 }
0x3ca9   :  { %11724 = vpow2.f32 %v9295_v55 }
0x3cac   :  { %v8344_v13 = vpop.f32.mrb[84].mxu0 }
0x3cad   :  { %v10834_v60 = vpop.f32.mrb[85].mxu0 }
0x3cb3   :  { %v11725_v38 = vpop.eup %11724 }
0x3cb4   :  { %v8181_v49 = vadd.f32 1.0, %v11725_v38 }
0x3cb6   :  { %11726 = vrcp.f32 %v8181_v49 }
0x3cc0   :  { %v11727_v14 = vpop.eup %11726 }
0x3cc1   :  { %v8188_v43 = vmul.f32 %v11727_v14, %v8186_v45  ;;  %v8195_v0 = vsub.f32 1.0, %v11727_v14  ;;  %v8201_v63 = vmul.f32 %v11727_v14, %v13879_v30 }
0x3cc3   :  { %8190 = vrot.lane.b32.xlu0 %v8188_v43, %s12339_s16 }
0x3d35   :  { %v8191_v58 = vpop.permute.xlu0 %8190 }
0x3d36   :  { %v8193_v25 = vadd.f32 %v8191_v58, %v8103_v57 }
0x3d38   :  { %11728 = vtanh.f32 %v8193_v25 }
0x3d42   :  { %v11729_v27 = vpop.eup %11728 }
0x3d43   :  { %8197 = vrot.lane.b32.xlu1 %v11729_v27, %s12340_s9 }
0x3d47   :  { %8356 = vrot.lane.b32.xlu1 %v8344_v13, %s12339_s16 }
0x3db5   :  { %v8198_v50 = vpop.permute.xlu1 %8197 }
0x3db6   :  { %v8200_v6 = vmul.f32 %v8198_v50, %v8195_v0 }
0x3db8   :  { %v8202_v29 = vadd.f32 %v8201_v63, %v8200_v6  ;;  %v1578_v63 = vsub.f32 %v12955_v22, %v12964_v33  ;;  %v3846_v6 = vsub.f32 %v13312_v10, %v13316_v8  ;;  %v14381_v33 = vld [vmem:[#allocation52_spill] sm:$0xff]  ;;  %v14382_v8 = vld [vmem:[#allocation62_spill] sm:$0xff] }
0x3db9   :  { %v8357_v60 = vpop.permute.xlu1 %8356  ;;  %v1585_v10 = vmul.f32 %v14381_v33, %v14381_v33 }
0x3dba   :  { %8204 = vrot.lane.b32.xlu0 %v8202_v29, %s12340_s9  ;;  %v6114_v29 = vsub.f32 %v13653_v32, %v13657_v35  ;;  %v6121_v32 = vmul.f32 %v13671_v34, %v13671_v34 }
0x3e2c   :  { %v8205_v23 = vpop.permute.xlu0 %8204 }
0x3e2d   :  { %10822 = vmatmul.mubr.msk.f32.vlgmr.msra.gmra.mrb[94].mxu1 %vm448_vm2, %v8205_v23  ;;  %v8382_v23 = vsub.f32 %v13987_v2, %v13996_v18  ;;  %v14383_v2 = vld [vmem:[#allocation51_spill] sm:$0xff] }
0x3e2e   :  { %11474 = vmatpush3.bf16.msra.mxu1 %v12824_v4  ;;  %10839 = vmatprep.mubr.msk.f32.mxu1 %vm12336_vm0, %v14357_v53  ;;  %v1577_v18 = vmul.f32 %v14383_v2, %v14383_v2 }
0x3e2f   :  { %11475 = vmatprep.subr.bf16.mxu1 %v14358_v62  ;;  %v8383_v22 = vmul.f32 %v8382_v23, %v8382_v23 }
0x3e31   :  { %10840 = vmatmul.mubr.msk.f32.vlgmr.msra.gmra.mrb[96].mxu1 %vm362_vm1, %v8396_v54  ;;  %v3853_v54 = vmul.f32 %v14382_v8, %v14382_v8 }
0x3e32   :  { %11477 = vmatpush3.bf16.msra.mxu1 %v12826_v7  ;;  %10850 = vmatprep.mubr.msk.f32.mxu1 %vm12336_vm0, %v14357_v53 }
0x3e33   :  { %11478 = vmatprep.subr.bf16.mxu1 %v14358_v62 }
0x3e36   :  { %11480 = vmatpush3.bf16.msra.mxu1 %v12835_v11 }
0x3e37   :  { %11487 = vmatprep.subr.bf16.mxu1 %v14358_v62 }
0x3f00   :  { %v8274_v4 = vpop.f32.mrb[94].mxu1 }
0x3f01   :  { %v8348_v30 = vadd.f32 %v8344_v13, %v8274_v4  ;;  %v10823_v51 = vpop.f32.mrb[95].mxu1 }
0x3f03   :  { %v9298_v57 = vmul.f32 -1.442695, %v8348_v30 }
0x3f04   :  { %v8468_v38 = vpop.f32.mrb[96].mxu1 }
0x3f05   :  { %11730 = vpow2.f32 %v9298_v57  ;;  %v8469_v49 = vadd.f32 %v13899_v42, %v8468_v38  ;;  %v10841_v14 = vpop.f32.mrb[97].mxu1 }
0x3f07   :  { %v8472_v11 = vmax.f32 %v8469_v49, 0.0 }
0x3f09   :  { %10851 = vmatmul.mubr.msk.f32.vlgmr.msra.gmra.mrb[98].mxu1 %vm448_vm2, %v8472_v11  ;;  %v6113_v11 = vmul.f32 %v13665_v47, %v13665_v47 }
0x3f0a   :  { %11489 = vmatpush3.bf16.msra.mxu1 %v12852_v21  ;;  %10872 = vmatprep.mubr.msk.f32.mxu1 %vm12336_vm0, %v14357_v53 }
0x3f0b   :  { %11490 = vmatprep.subr.bf16.mxu1 %v14358_v62 }
0x3f0e   :  { %11492 = vmatpush3.bf16.msra.mxu1 %v12867_v28 }
0x3f0f   :  { %v11731_v16 = vpop.eup %11730  ;;  %11499 = vmatprep.subr.bf16.mxu1 %v14358_v62 }
0x3f10   :  { %v8352_v24 = vadd.f32 1.0, %v11731_v16  ;;  %v14384_v16 = vld [vmem:[#allocation61_spill] sm:$0xff] }
0x3f12   :  { %11732 = vrcp.f32 %v8352_v24 }
0x3f1c   :  { %v11733_v55 = vpop.eup %11732 }
0x3f1d   :  { %v8359_v7 = vmul.f32 %v11733_v55, %v8357_v60  ;;  %v8366_v28 = vsub.f32 1.0, %v11733_v55  ;;  %v8372_v0 = vmul.f32 %v11733_v55, %v13926_v46  ;;  %v6115_v46 = vmul.f32 %v6114_v29, %v6114_v29  ;;  %v14385_v55 = vld [vmem:[#allocation53_spill] sm:$0xff]  ;;  %v14386_v60 = vld [vmem:[#allocation54_spill] sm:$0xff] }
0x3f1f   :  { %8361 = vrot.lane.b32.xlu0 %v8359_v7, %s12339_s16  ;;  %v14387_v7 = vsub.f32 %v14385_v55, %v14386_v60 }
0x3f91   :  { %v8362_v13 = vpop.permute.xlu0 %8361 }
0x3f92   :  { %v8364_v45 = vadd.f32 %v8362_v13, %v8274_v4  ;;  %v8389_v4 = vmul.f32 %v14010_v40, %v14010_v40  ;;  %v14388_v13 = vld [vmem:[#allocation63_spill] sm:$0xff] }
0x3f94   :  { %11734 = vtanh.f32 %v8364_v45  ;;  %v14389_v45 = vld [vmem:[#allocation64_spill] sm:$0xff] }
0x3f95   :  { %11736 = vrcp.f32 %v1585_v10 }
0x3f96   :  { %11738 = vrcp.f32 %v3853_v54 }
0x3f97   :  { %11740 = vrcp.f32 %v6121_v32 }
0x3f98   :  { %11742 = vrcp.f32 %v8389_v4 }
0x3f9e   :  { %v11735_v43 = vpop.eup %11734 }
0x3f9f   :  { %8368 = vrot.lane.b32.xlu1 %v11735_v43, %s12340_s9  ;;  %v11737_v34 = vpop.eup %11736  ;;  %v14390_v43 = vsub.f32 %v14388_v13, %v14389_v45 }
0x3fa0   :  { %v11739_v40 = vpop.eup %11738 }
0x3fdc   :  { %v8542_v42 = vpop.f32.mrb[98].mxu1 }
0x3fdd   :  { %v8543_v58 = vadd.f32 %v13910_v26, %v8542_v42  ;;  %v10852_v25 = vpop.f32.mrb[99].mxu1 }
0x3fde   :  { %v11741_v25 = vpop.eup %11740 }
0x3fdf   :  { %v8546_v21 = vmax.f32 %v8543_v58, 0.0  ;;  %v11743_v47 = vpop.eup %11742 }
0x3fe1   :  { %10873 = vmatmul.mubr.msk.f32.vlgmr.msra.gmra.mrb[100].mxu1 %vm448_vm2, %v8546_v21 }
0x3fe2   :  { %11501 = vmatpush3.bf16.msra.mxu1 %v12895_v44  ;;  %10894 = vmatprep.mubr.msk.f32.mxu1 %vm12336_vm0, %v14357_v53  ;;  %v1579_v44 = vmul.f32 %v1578_v63, %v1578_v63 }
0x3fe3   :  { %11502 = vmatprep.subr.bf16.mxu1 %v14358_v62 }
0x3fe6   :  { %11504 = vmatpush3.bf16.msra.mxu1 %v12916_v59  ;;  %v3847_v59 = vmul.f32 %v3846_v6, %v3846_v6 }
0x3fe7   :  { %11511 = vmatprep.subr.bf16.mxu1 %v14358_v62 }
0x4011   :  { %v8369_v27 = vpop.permute.xlu1 %8368 }
0x4012   :  { %v8371_v26 = vmul.f32 %v8369_v27, %v8366_v28  ;;  %v8381_v28 = vmul.f32 %v14004_v19, %v14004_v19 }
0x4014   :  { %v8373_v50 = vadd.f32 %v8372_v0, %v8371_v26  ;;  %v14391_v0 = vsub.f32 %v13674_v39, %v13676_v17 }
0x4016   :  { %8548 = vrot.lane.b32.xlu0 %v8373_v50, %s12340_s9 }
0x401a   :  { %1581 = vrot.lane.b32.xlu0 %v1579_v44, %s12341_s18 }
0x401e   :  { %3849 = vrot.lane.b32.xlu0 %v3847_v59, %s12341_s18 }
0x4022   :  { %6117 = vrot.lane.b32.xlu0 %v6115_v46, %s12341_s18 }
0x4026   :  { %8385 = vrot.lane.b32.xlu0 %v8383_v22, %s12341_s18 }
0x4088   :  { %v8549_v35 = vpop.permute.xlu0 %8548 }
0x4089   :  { %10862 = vmatmul.mubr.msk.f32.vlgmr.msra.gmra.mrb[86].mxu0 %vm448_vm2, %v8549_v35 }
0x408a   :  { %11495 = vmatpush3.bf16.msra.mxu0 %v12876_v31  ;;  %10883 = vmatprep.mubr.msk.f32.mxu0 %vm12336_vm0, %v14357_v53  ;;  %v3845_v31 = vmul.f32 %v14384_v16, %v14384_v16 }
0x408b   :  { %11496 = vmatprep.subr.bf16.mxu0 %v14358_v62 }
0x408c   :  { %v1582_v30 = vpop.permute.xlu0 %1581 }
0x408d   :  { %v1584_v51 = vadd.f32 %v1582_v30, %v1577_v18 }
0x408e   :  { %11498 = vmatpush3.bf16.msra.mxu0 %v12891_v41 }
0x408f   :  { %v1587_v57 = vmul.f32 %v11737_v34, %v1584_v51  ;;  %11505 = vmatprep.subr.bf16.mxu0 %v14358_v62 }
0x4090   :  { %v3850_v24 = vpop.permute.xlu0 %3849 }
0x4091   :  { %v14126_v38 = vadd.f32 %v1587_v57, %v14387_v7  ;;  %v3852_v49 = vadd.f32 %v3850_v24, %v3845_v31 }
0x4093   :  { %v3855_v14 = vmul.f32 %v11739_v40, %v3852_v49  ;;  %v14393_v49 = vld [vmem:[#allocation56_spill] sm:$0xff]  ;;  %v14394_v40 = vld [vmem:[#allocation55_spill] sm:$0xff] }
0x4094   :  { %v6118_v41 = vpop.permute.xlu0 %6117 }
0x4095   :  { %v14133_v42 = vadd.f32 %v3855_v14, %v14390_v43  ;;  %v6120_v58 = vadd.f32 %v6118_v41, %v6113_v11  ;;  %v2712_v14 = vsub.f32 %v14394_v40, %v14393_v49  ;;  %v14395_v43 = vld [vmem:[#allocation66_spill] sm:$0xff]  ;;  %v14407_v49 = vld [vmem:[#allocation73_spill] sm:$0xff] }
0x4096   :  { %v7247_v40 = vmul.f32 %v14407_v49, %v14407_v49 }
0x4097   :  { %v6123_v21 = vmul.f32 %v11741_v25, %v6120_v58  ;;  %v2713_v45 = vmul.f32 %v2712_v14, %v2712_v14  ;;  %v14396_v58 = vld [vmem:[#allocation65_spill] sm:$0xff] }
0x4098   :  { %v8386_v27 = vpop.permute.xlu0 %8385  ;;  %v4980_v25 = vsub.f32 %v14396_v58, %v14395_v43 }
0x4099   :  { %v14140_v26 = vadd.f32 %v6123_v21, %v14391_v0  ;;  %v8388_v50 = vadd.f32 %v8386_v27, %v8381_v28 }
0x409b   :  { %v8391_v63 = vmul.f32 %v11743_v47, %v8388_v50  ;;  %v4981_v47 = vmul.f32 %v4980_v25, %v4980_v25 }
0x409d   :  { %v14145_v44 = vadd.f32 %v8391_v63, %v8380_v61  ;;  %v14397_v63 = vld [vmem:[#allocation72_spill] sm:$0xff] }
0x40b4   :  { %v8691_v6 = vpop.f32.mrb[100].mxu1 }
0x40b5   :  { %v10874_v59 = vpop.f32.mrb[101].mxu1 }
0x415c   :  { %v8618_v29 = vpop.f32.mrb[86].mxu0 }
0x415d   :  { %v8692_v46 = vadd.f32 %v8691_v6, %v8618_v29  ;;  %v10863_v23 = vpop.f32.mrb[87].mxu0  ;;  %v14398_v6 = vld [vmem:[#allocation71_spill] sm:$0xff] }
0x415e   :  { %v7248_v59 = vsub.f32 %v14398_v6, %v14397_v63  ;;  %v14411_v6 = vld [vmem:[#allocation75_spill] sm:$0xff] }
0x415f   :  { %v8695_v19 = vadd.f32 %v13940_v15, %v8692_v46 }
0x4160   :  { %v7249_v29 = vmul.f32 %v7248_v59, %v7248_v59  ;;  %v14412_v59 = vld [vmem:[#allocation76_spill] sm:$0xff] }
0x4161   :  { %v8696_v22 = vmax.f32 %v8695_v19, 0.0 }
0x4163   :  { %10884 = vmatmul.mubr.msk.f32.vlgmr.msra.gmra.mrb[88].mxu0 %vm448_vm2, %v8696_v22 }
0x4164   :  { %11507 = vmatpush3.bf16.msra.mxu0 %v12902_v52  ;;  %10905 = vmatprep.mubr.msk.f32.mxu0 %vm12336_vm0, %v14357_v53 }
0x4165   :  { %11508 = vmatprep.subr.bf16.mxu0 %v14358_v62 }
0x4168   :  { %11510 = vmatpush3.bf16.msra.mxu0 %v12906_v56 }
0x4169   :  { %11517 = vmatprep.subr.bf16.mxu0 %v14358_v62 }
0x416b   :  { %10906 = vmatmul.mubr.msk.f32.vlgmr.msra.gmra.mrb[90].mxu0 %vm448_vm2, %v8549_v35 }
0x416c   :  { %11519 = vmatpush3.bf16.msra.mxu0 %v12967_v48  ;;  %10923 = vmatprep.mubr.msk.f32.mxu0 %vm12336_vm0, %v14357_v53 }
0x4236   :  { %v8766_v39 = vpop.f32.mrb[88].mxu0 }
0x4237   :  { %v8767_v17 = vadd.f32 %v13956_v9, %v8766_v39  ;;  %v10885_v52 = vpop.f32.mrb[89].mxu0 }
0x4239   :  { %v8770_v15 = vmax.f32 %v8767_v17, 0.0 }
0x423b   :  { %10895 = vmatmul.mubr.msk.f32.vlgmr.msra.gmra.mrb[102].mxu1 %vm448_vm2, %v8770_v15 }
0x423c   :  { %11513 = vmatpush3.bf16.msra.mxu1 %v12929_v5  ;;  %10916 = vmatprep.mubr.msk.f32.mxu1 %vm12336_vm0, %v14357_v53 }
0x423d   :  { %11514 = vmatprep.subr.bf16.mxu1 %v14358_v62  ;;  %v14392_v62 = vld [vmem:[#allocation77_spill] sm:$0xff] }
0x423e   :  { %v8925_v56 = vpop.f32.mrb[90].mxu0 }
0x423f   :  { %v8926_v48 = vadd.f32 %v13964_v3, %v8925_v56  ;;  %v10907_v36 = vpop.f32.mrb[91].mxu0 }
0x4240   :  { %11516 = vmatpush3.bf16.msra.mxu1 %v12941_v12 }
0x4241   :  { %v8929_v37 = vmax.f32 %v8926_v48, 0.0  ;;  %v14399_v48 = vld [vmem:[#allocation58_spill] sm:$0xff] }
0x4242   :  { %v2719_v36 = vmul.f32 %v14399_v48, %v14399_v48 }
0x4243   :  { %10917 = vmatmul.mubr.msk.f32.vlgmr.msra.gmra.mrb[104].mxu1 %vm448_vm2, %v8929_v37  ;;  %v14400_v37 = vld [vmem:[#allocation68_spill] sm:$0xff] }
0x430e   :  { %v8840_v9 = vpop.f32.mrb[102].mxu1 }
0x430f   :  { %v14169_v61 = vadd.f32 %v13984_v1, %v8840_v9  ;;  %v10896_v33 = vpop.f32.mrb[103].mxu1  ;;  %v4987_v9 = vmul.f32 %v14400_v37, %v14400_v37 }
0x4310   :  { %v8398_v33 = vld [vmem:[#allocation5 + $0x38] sm:$0xff] }
0x4311   :  { %v8845_v5 = vand.u32 2147483647, %v14169_v61  ;;  %v8844_v55 = vmax.f32 %v14169_v61, 0.0 }
0x4313   :  { %v8846_v10 = vsub.f32 0.0, %v8845_v5  ;;  %v14401_v5 = vld [vmem:[#allocation74_spill] sm:$0xff] }
0x4315   :  { %v8847_v53 = vmul.f32 1.442695, %v8846_v10  ;;  %v7255_v10 = vmul.f32 %v14401_v5, %v14401_v5 }
0x4316   :  { %v8999_v8 = vpop.f32.mrb[104].mxu1 }
0x4317   :  { %11744 = vpow2.f32 %v8847_v53  ;;  %v9000_v54 = vadd.f32 %v14392_v62, %v8999_v8  ;;  %v10918_v3 = vpop.f32.mrb[105].mxu1 }
0x4319   :  { %v9004_v32 = vand.u32 2147483647, %v9000_v54  ;;  %v9003_v27 = vmax.f32 %v9000_v54, 0.0  ;;  %v9106_v46 = vsub.f32 %v14169_v61, %v9000_v54  ;;  %v14402_v54 = vld [vmem:[#allocation57_spill] sm:$0xff] }
0x431a   :  { %v2711_v3 = vmul.f32 %v14402_v54, %v14402_v54 }
0x431b   :  { %v9005_v35 = vsub.f32 0.0, %v9004_v32  ;;  %v9107_v19 = vmul.f32 %v9106_v46, %v9106_v46 }
0x431d   :  { %v9006_v12 = vmul.f32 1.442695, %v9005_v35 }
0x431f   :  { %11746 = vpow2.f32 %v9006_v12 }
0x4321   :  { %v11745_v2 = vpop.eup %11744 }
0x4322   :  { %v8849_v18 = vadd.f32 1.0, %v11745_v2  ;;  %v8852_v4 = vmul.f32 -0.5, %v11745_v2  ;;  %v8855_v34 = vand.u32 2147483647, %v11745_v2 }
0x4324   :  { %11748 = vlog2.f32 %v8849_v18  ;;  %v8853_v51 = vadd.f32 1.0, %v8852_v4  ;;  %vm8856_vm0 = vcmp.lt.f32.partialorder %v8855_v34, 0.0004427343  ;;  %v14403_v4 = vld [vmem:[#allocation67_spill] sm:$0xff]  ;;  %v14405_v34 = vld [vmem:[#allocation60_spill] sm:$0xff] }
0x4326   :  { %v8854_v24 = vmul.f32 %v11745_v2, %v8853_v51  ;;  %v14404_v51 = vld [vmem:[#allocation59_spill] sm:$0xff] }
0x4329   :  { %v11747_v1 = vpop.eup %11746 }
0x432a   :  { %v9008_v30 = vadd.f32 1.0, %v11747_v1  ;;  %v9011_v16 = vmul.f32 -0.5, %v11747_v1  ;;  %v9014_v41 = vand.u32 2147483647, %v11747_v1 }
0x432c   :  { %11750 = vlog2.f32 %v9008_v30  ;;  %v9012_v11 = vadd.f32 1.0, %v9011_v16  ;;  %vm9015_vm4 = vcmp.lt.f32.partialorder %v9014_v41, 0.0004427343 }
0x432e   :  { %v11749_v57 = vpop.eup %11748  ;;  %v9013_v28 = vmul.f32 %v11747_v1, %v9012_v11  ;;  %v4979_v1 = vmul.f32 %v14403_v4, %v14403_v4  ;;  %v9231_v11 = vadd.f32 -1.0, %v14133_v42  ;;  %v14413_v42 = vsub.f32 %v14411_v6, %v14412_v59 }
0x432f   :  { %v8851_v31 = vmul.f32 0.6931472, %v11749_v57  ;;  %v14406_v57 = vsub.f32 %v14404_v51, %v14405_v34 }
0x4331   :  { %v8857_v60 = vsel %vm8856_vm0, %v8854_v24, %v8851_v31  ;;  %v9197_v24 = vadd.f32 -1.0, %v14126_v38 }
0x4332   :  { %v14174_v7 = vadd.f32 %v8857_v60, %v8844_v55 }
0x4334   :  { %9019 = vrot.lane.b32.xlu1 %v14174_v7, %s12338_s3  ;;  %11752 = vlog2.f32 %v14174_v7  ;;  %v9105_v38 = vmul.f32 %v14174_v7, %v14174_v7 }
0x4336   :  { %v11751_v13 = vpop.eup %11750 }
0x4337   :  { %v9010_v21 = vmul.f32 0.6931472, %v11751_v13  ;;  %v14408_v13 = vld [vmem:[#allocation69_spill] sm:$0xff] }
0x4338   :  { %2715 = vrot.lane.b32.xlu1 %v2713_v45, %s12341_s18  ;;  %v14409_v45 = vld [vmem:[#allocation70_spill] sm:$0xff] }
0x4339   :  { %v9016_v0 = vsel %vm9015_vm4, %v9013_v28, %v9010_v21  ;;  %v14410_v43 = vsub.f32 %v14408_v13, %v14409_v45 }
0x433a   :  { %v9017_v50 = vadd.f32 %v9016_v0, %v9003_v27 }
0x433c   :  { %11754 = vlog2.f32 %v9017_v50  ;;  %4983 = vrot.lane.b32.xlu1 %v4981_v47, %s12341_s18  ;;  %v9113_v32 = vmul.f32 %v9017_v50, %v9017_v50  ;;  %v9265_v47 = vadd.f32 -1.0, %v14140_v26 }
0x433d   :  { %11756 = vrcp.f32 %v2719_v36 }
0x433e   :  { %v11753_v23 = vpop.eup %11752  ;;  %11758 = vrcp.f32 %v4987_v9 }
0x433f   :  { %v9102_v22 = vmul.f32 0.6931472, %v11753_v23  ;;  %11760 = vrcp.f32 %v7255_v10 }
0x4340   :  { %7251 = vrot.lane.b32.xlu1 %v7249_v29, %s12341_s18  ;;  %11762 = vrcp.f32 %v9113_v32 }
0x4341   :  { %v9103_v52 = vmul.f32 2.0, %v9102_v22 }
0x4344   :  { %9109 = vrot.lane.b32.xlu1 %v9107_v19, %s12341_s18 }
0x4346   :  { %v11755_v39 = vpop.eup %11754 }
0x4347   :  { %v9099_v17 = vmul.f32 0.6931472, %v11755_v39  ;;  %v11757_v2 = vpop.eup %11756 }
0x4348   :  { %v11759_v31 = vpop.eup %11758 }
0x4349   :  { %v9100_v15 = vmul.f32 2.0, %v9099_v17  ;;  %v11761_v21 = vpop.eup %11760  ;;  %v9299_v17 = vadd.f32 -1.0, %v14145_v44 }
0x434a   :  { %v11763_v23 = vpop.eup %11762 }
0x434b   :  { %v9104_v56 = vsub.f32 %v9100_v15, %v9103_v52 }
0x43a6   :  { %v9020_v53 = vpop.permute.xlu1 %9019 }
0x43a7   :  { %v9022_v8 = vmul.f32 %v9020_v53, %v8398_v33 }
0x43a9   :  { %v9023_v62 = vadd.f32 %v9022_v8, %v14169_v61 }
0x43aa   :  { %v2716_v35 = vpop.permute.xlu1 %2715 }
0x43ab   :  { %v2718_v12 = vadd.f32 %v2716_v35, %v2711_v3  ;;  %10924 = vmatmul.mubr.msk.f32.vlgmr.msra.gmra.mrb[92].mxu0 %vm362_vm1, %v9023_v62 }
0x43ad   :  { %v2721_v18 = vmul.f32 %v11757_v2, %v2718_v12 }
0x43ae   :  { %v4984_v30 = vpop.permute.xlu1 %4983 }
0x43af   :  { %v2722_v61 = vadd.f32 %v2721_v18, %v14406_v57  ;;  %v4986_v16 = vadd.f32 %v4984_v30, %v4979_v1 }
0x43b1   :  { %v9214_v55 = vadd.f32 -1.0, %v2722_v61  ;;  %v4989_v60 = vmul.f32 %v11759_v31, %v4986_v16 }
0x43b2   :  { %v7252_v14 = vpop.permute.xlu1 %7251 }
0x43b3   :  { %v2724_v41 = vadd.f32 %v9214_v55, %v9197_v24  ;;  %v4990_v58 = vadd.f32 %v4989_v60, %v14410_v43  ;;  %v7254_v25 = vadd.f32 %v7252_v14, %v7247_v40 }
0x43b5   :  { %v3858_v28 = vadd.f32 %v9231_v11, %v2724_v41  ;;  %v9248_v27 = vadd.f32 -1.0, %v4990_v58  ;;  %v7257_v0 = vmul.f32 %v11761_v21, %v7254_v25 }
0x43b6   :  { %v9110_v50 = vpop.permute.xlu1 %9109 }
0x43b7   :  { %v4992_v63 = vadd.f32 %v9248_v27, %v3858_v28  ;;  %v7258_v29 = vadd.f32 %v7257_v0, %v14413_v42  ;;  %v9112_v46 = vadd.f32 %v9110_v50, %v9105_v38 }
0x43b9   :  { %v6126_v19 = vadd.f32 %v9265_v47, %v4992_v63  ;;  %v9282_v22 = vadd.f32 -1.0, %v7258_v29  ;;  %v9115_v39 = vmul.f32 %v11763_v23, %v9112_v46 }
0x43bb   :  { %v7260_v52 = vadd.f32 %v9282_v22, %v6126_v19  ;;  %v9116_v15 = vadd.f32 %v9115_v39, %v9104_v56 }
0x43bd   :  { %v9309_v48 = vadd.f32 -1.0, %v9116_v15  ;;  %v8394_v36 = vadd.f32 %v9299_v17, %v7260_v52 }
0x43bf   :  { %v9118_v7 = vadd.f32 %v9309_v48, %v8394_v36 }
0x43c1   :  { %9120 = vrot.lane.b32.xlu0 %v9118_v7, %s12338_s3 }
0x4433   :  { %v9121_v26 = vpop.permute.xlu0 %9120 }
0x4434   :  { %v9123_v37 = vsel %vm362_vm1, %v9121_v26, 0.0 }
0x4435   :  { %9124 = vadd.xlane.f32.xlu1 %v9123_v37 }
0x447e   :  { %v9093_v9 = vpop.f32.mrb[92].mxu0 }
0x447f   :  { %v9094_v33 = vadd.f32 %v14027_v20, %v9093_v9  ;;  %v10925_v5 = vpop.f32.mrb[93].mxu0 }
0x4481   :  { %v9097_v10 = vmax.f32 %v9094_v33, 0.0 }
0x4483   :  { %9137 = vst.msk [vmem:[#allocation36] sm:$0xff] %vm448_vm2, %v9097_v10 }
0x4484   :  { %12253 = shalt.err (!%p12250_p4)
}
0x4485   :  { %s12254_s8 = scalar_lea.hbm %s14272_s25, 128 }
0x4486   :  { %p12255_p5 = scmp.ne.s32.totalorder %s14272_s25, %s12254_s8  ;;  %p12258_p6 = scmp.lt.u32.totalorder %s12254_s8, %s14272_s25 }
0x4488   :  { %p12260_p7 = pnand %p12258_p6, %p12255_p5 }
0x448a   :  { %12263 = shalt.err (!%p12260_p7)
}
0x448b   :  { %9157 = dma.vmem_to_hbm [thread:$0]  %s9155_s21, 128, %s14272_s25, [#allocation37]   ;;  %vm9135_vm1 = vcmask 0  }
0x448c   :  { %s12343_s4 = smov [#allocation35]  }
0x448d   :  { %s9144_s24 = sshll.u32 %s12343_s4, 4  ;;  %s9145_s24 = int_to_ptr.vmem [resolvable:$true] %s9144_s24 }
0x448e   :  { %s12264_s5 = scalar_lea.vmem %s9145_s24, 16  ;;  %s12268_s13 = scalar_lea.vmem %s9145_s24, 32 }
0x448f   :  { %p12265_p8 = scmp.ne.s32.totalorder %s9145_s24, %s12264_s5  ;;  %p12269_p9 = scmp.lt.s32.totalorder %s9145_s24, %s9145_s24 }
0x4490   :  { %p12270_p10 = scmp.lt.s32.totalorder %s12268_s13, %s12264_s5 }
0x4492   :  { %p12271_p11 = por %p12270_p10, %p12269_p9 }
0x4494   :  { %p12272_p12 = pnand %p12271_p11, %p12265_p8 }
0x44c2   :  { %v9125_v20 = vpop.xlane.xlu1 %9124 }
0x44c3   :  { %v9126_v44 = vrot.slane %v9125_v20, 4 }
0x44c5   :  { %v9127_v56 = vadd.f32 %v9126_v44, %v9125_v20 }
0x44c7   :  { %v9128_v53 = vrot.slane %v9127_v56, 2 }
0x44c9   :  { %v9129_v8 = vadd.f32 %v9128_v53, %v9127_v56 }
0x44cb   :  { %v9130_v62 = vrot.slane %v9129_v8, 1 }
0x44cd   :  { %v9131_v54 = vadd.f32 %v9130_v62, %v9129_v8 }
0x44cf   :  { %11534 = vpush %v9131_v54 }
0x4500   :  { %s11535_s26 = spop %11534 }
0x4501   :  { %v9133_v3 = vstv %s11535_s26 }
0x4502   :  { %v9134_v32 = vmul.f32 0.5, %v9133_v3 }
0x4504   :  { %9136 = vst.msk [vmem:[#allocation35] sm:$0x1] %vm9135_vm1, %v9134_v32 }
0x4505   :  { %12275 = shalt.err (!%p12272_p12)
}
0x4506   :  { %s14414_s28 = sld [smem:[#allocation88_spill]] }
0x450c   :  { %s12276_s10 = scalar_lea.hbm %s14414_s28, 16 }
0x450d   :  { %p12277_p13 = scmp.ne.s32.totalorder %s14414_s28, %s12276_s10  ;;  %p12280_p0 = scmp.lt.u32.totalorder %s12276_s10, %s14414_s28 }
0x450f   :  { %p12282_p1 = pnand %p12280_p0, %p12277_p13 }
0x4511   :  { %12285 = shalt.err (!%p12282_p1)
}
0x4512   :  { %9147 = dma.vmem_to_hbm [thread:$0]  %s9145_s24, 16, %s14414_s28, [#allocation4]  }
0x4513   :  { %12308 = dma.done.wait [#allocation4], 16  }
0x4514   :  { %12309 = vsyncadd [#allocation4], 4294967280 }
0x4515   :  { %12310 = dma.done.wait [#allocation37], 128  }
0x4516   :  { %12311 = vsyncadd [#allocation37], 4294967168 }
0x4517   :  { %9164 = vsyncpa [#allocation3], 1 }
0x4518   :  { %9165 = vsyncpa [#allocation6], 1 }
0x4519   :  { %9166 = vsyncpa [#allocation9], 1 }
0x451a   :  { %9167 = vsyncpa [#allocation12], 1 }
0x451b   :  { %9168 = vsyncpa [#allocation15], 1 }
0x451c   :  { %9169 = vsyncpa [#allocation18], 1 }
0x451d   :  { %9170 = vsyncpa [#allocation21], 1 }
0x451e   :  { %9171 = vsyncpa [#allocation24], 1 }
0x451f   :  { %9172 = vsyncpa [#allocation27], 1 }
0x4520   :  { %9173 = vsyncpa [#allocation30], 1 }
0x4521   :  { %9174 = vsyncpa [#allocation33], 1 }
0x4522   :  { %9175 = vsyncpa [#allocation4], 1 }
0x4523   :  { %9176 = vsyncpa [#allocation37], 1 }

</bundles_post_ra>
